<compile_context>
chip_gen: v7x
topology: tpu7x:2x2x1
jax: 0.10.0
libtpu: 0.0.40
codegen_flags: <defaults>
</compile_context>

<pallas_src>
import jax
import jax.numpy as jnp
from jax.experimental import pallas as pl
from jax.experimental.pallas import tpu as pltpu

HIDDEN = 4096
_LANE = 128


# ---------------------------------------------------------------------------
# Fused kernel: GAP + dense1 + ReLU  (j==0 prologue, resident per split)
#               dense2 column tile + ReLU  (streamed w2)
#               dense3 running accumulator (resident w3 row slab)
# Grid: (n_split ["parallel"], steps_per_split ["arbitrary"]).
# ---------------------------------------------------------------------------
def _fused_kernel(x_ref, w1_ref, b1_ref, w2_ref, b2_ref, w3_ref, o_ref,
                  h1_ref, acc_ref):
    i = pl.program_id(0)                 # TensorCore split (parallel)
    j = pl.program_id(1)                 # hidden-column tile within the split
    spp = pl.num_programs(1)
    col = i * spp + j                    # global hidden-tile index

    @pl.when(j == 0)
    def _():
        # GAP over flattened spatial axis, then dense1 + ReLU; the (B, H1)
        # activation stays resident in VMEM scratch for all column tiles.
        pooled = jnp.mean(x_ref[...].astype(jnp.float32), axis=-1)        # (B, C)
        h1 = jnp.dot(pooled.astype(w1_ref.dtype), w1_ref[...],
                     preferred_element_type=jnp.float32)                  # (B, H1)
        h1 = jnp.maximum(h1 + b1_ref[...].astype(jnp.float32), 0.0)
        h1_ref[...] = h1.astype(h1_ref.dtype)   # cast to weight dtype ONCE
        acc_ref[...] = jnp.zeros_like(acc_ref)

    # dense2 column tile + bias + ReLU (dropout1/dropout2 identity in eval).
    h2 = jnp.dot(h1_ref[...], w2_ref[...],
                 preferred_element_type=jnp.float32)                      # (B, tn)
    h2 = jnp.maximum(h2 + b2_ref[col].astype(jnp.float32), 0.0)

    # dense3 contribution of this hidden tile (running f32 accumulator).
    acc_ref[...] += jnp.dot(h2.astype(w3_ref.dtype), w3_ref[col],
                            preferred_element_type=jnp.float32)           # (B, NCp)

    @pl.when(j == spp - 1)
    def _():
        o_ref[...] = acc_ref[...][None].astype(o_ref.dtype)


# ---------------------------------------------------------------------------
# Wrapper
# ---------------------------------------------------------------------------
def _largest_aligned_divisor(total, want, align=_LANE):
    """Largest multiple of `align` that divides `total` and is <= `want`."""
    want = min(max(want, align), total)
    for cand in range(want - want % align, align - 1, -align):
        if cand > 0 and total % cand == 0:
            return cand
    return total


def _default_num_splits():
    # Use both TensorCores on v7x (2 TC/chip); single-core on v5e/v6e.
    try:
        kind = jax.devices()[0].device_kind.lower()
        if "v7" in kind:
            return 2
    except Exception:
        pass
    return 1


def gap_mlp_block(params, x, *, tn=None, n_split=None):
    """x: (B, C, H, W) NCHW.  Returns logits (B, num_classes) in x.dtype."""
    B, C, H, W = x.shape
    HW = H * W
    x_flat = x.reshape(B, C, HW)

    w1, b1 = params["w1"], params["b1"]
    w2, b2 = params["w2"], params["b2"]
    w3, b3 = params["w3"], params["b3"]
    H1 = w1.shape[1]
    H2 = w2.shape[1]
    NC = w3.shape[1]
    wbytes = jnp.dtype(w2.dtype).itemsize

    # Pad the class axis to a lane-dense multiple of 128 (unmasked stores).
    NCp = ((NC + _LANE - 1) // _LANE) * _LANE
    if NCp != NC:
        w3 = jnp.pad(w3, ((0, 0), (0, NCp - NC)))

    # Streamed w2 column tile: 1024 for <=2-byte weights (8 MiB per bf16 tile,
    # 16 MiB double-buffered), 512 for f32; always a divisor of H2.
    if tn is None:
        tn = 1024 if wbytes <= 2 else 512
    tn = _largest_aligned_divisor(H2, tn)
    n_steps = H2 // tn

    # Split the hidden-tile axis across TensorCores (v7x).  Each split streams
    # steps_per_split contiguous w2 column tiles and emits a partial logit row.
    if n_split is None:
        n_split = _default_num_splits()
    n_split = max(1, min(n_split, n_steps))
    if n_steps % n_split != 0:
        n_split = 1
    steps_per_split = n_steps // n_split

    b1r = b1.reshape(1, H1)
    b2r = b2.reshape(n_steps, 1, tn)           # resident; indexed by hidden tile
    w3r = w3.reshape(n_steps, tn, NCp)         # resident; indexed by hidden tile

    def _nb(a):
        return a.size * jnp.dtype(a.dtype).itemsize

    # Explicit VMEM budget (defaults differ per generation: 16/32/32 MiB).
    resident_bytes = _nb(x_flat) + _nb(w1) + _nb(b1r) + _nb(b2r) + _nb(w3r)
    vmem_bytes = (2 * H1 * tn * wbytes          # double-buffered streamed w2
                  + 2 * resident_bytes          # residents (conservative 2x)
                  + 2 * B * NCp * 4             # output block
                  + B * H1 * wbytes + B * NCp * 4  # h1 + acc scratch
                  + (4 << 20))                  # headroom
    vmem_bytes = int(min(vmem_bytes, 64 << 20))  # stay under v7x physical VMEM

    flops = 2 * B * (C * HW + C * H1 + H1 * H2 + H2 * NCp)
    bytes_accessed = int(_nb(x_flat) + _nb(w1) + _nb(b1r) + _nb(w2)
                         + _nb(b2r) + _nb(w3r) + n_split * B * NCp * 4)

    partials = pl.pallas_call(
        _fused_kernel,
        out_shape=jax.ShapeDtypeStruct((n_split, B, NCp), jnp.float32),
        grid_spec=pltpu.PrefetchScalarGridSpec(
            num_scalar_prefetch=0,
            grid=(n_split, steps_per_split),
            in_specs=[
                pl.BlockSpec((B, C, HW), lambda i, j: (0, 0, 0)),     # x   resident
                pl.BlockSpec((C, H1), lambda i, j: (0, 0)),           # w1  resident
                pl.BlockSpec((1, H1), lambda i, j: (0, 0)),           # b1  resident
                pl.BlockSpec((H1, tn),                                # w2  STREAMED
                             lambda i, j: (0, i * steps_per_split + j)),
                pl.BlockSpec((n_steps, 1, tn), lambda i, j: (0, 0, 0)),   # b2 resident
                pl.BlockSpec((n_steps, tn, NCp), lambda i, j: (0, 0, 0)), # w3 resident
            ],
            out_specs=pl.BlockSpec((1, B, NCp), lambda i, j: (i, 0, 0)),
            scratch_shapes=[
                pltpu.VMEM((B, H1), w2.dtype),      # h1 in weight dtype (hoisted cast)
                pltpu.VMEM((B, NCp), jnp.float32),  # dense3 accumulator
            ],
        ),
        compiler_params=pltpu.CompilerParams(
            dimension_semantics=("parallel", "arbitrary"),
            vmem_limit_bytes=vmem_bytes,
        ),
        cost_estimate=pl.CostEstimate(
            flops=flops, transcendentals=0, bytes_accessed=bytes_accessed),
    )(x_flat, w1, b1r, w2, b2r, w3r)

    logits = partials.sum(axis=0)[:, :NC] + b3.astype(jnp.float32)
    return logits.astype(x.dtype)


# ---------------------------------------------------------------------------
# Params + pure-JAX reference (same mixed-precision policy as the kernel).
# ---------------------------------------------------------------------------
def init_params(key, in_features, num_classes, weight_dtype=jnp.bfloat16):
    ks = jax.random.split(key, 6)
    s1 = 1.0 / jnp.sqrt(in_features)
    s2 = 1.0 / jnp.sqrt(HIDDEN)
    u = jax.random.uniform
    return {
        "w1": u(ks[0], (in_features, HIDDEN), jnp.float32, -s1, s1).astype(weight_dtype),
        "b1": u(ks[1], (HIDDEN,), jnp.float32, -s1, s1),
        "w2": u(ks[2], (HIDDEN, HIDDEN), jnp.float32, -s2, s2).astype(weight_dtype),
        "b2": u(ks[3], (HIDDEN,), jnp.float32, -s2, s2),
        "w3": u(ks[4], (HIDDEN, num_classes), jnp.float32, -s2, s2).astype(weight_dtype),
        "b3": u(ks[5], (num_classes,), jnp.float32, -s2, s2),
    }


def gap_mlp_block_ref(params, x):
    wdt = params["w2"].dtype
    h = jnp.mean(x.astype(jnp.float32), axis=(2, 3))
    h = jnp.dot(h.astype(wdt), params["w1"], preferred_element_type=jnp.float32)
    h = jnp.maximum(h + params["b1"].astype(jnp.float32), 0.0)
    h = jnp.dot(h.astype(wdt), params["w2"], preferred_element_type=jnp.float32)
    h = jnp.maximum(h + params["b2"].astype(jnp.float32), 0.0)
    out = jnp.dot(h.astype(wdt), params["w3"], preferred_element_type=jnp.float32)
    return (out + params["b3"].astype(jnp.float32)).astype(x.dtype)


if __name__ == "__main__":
    B, C, H, W = 2, 4, 16, 16          # in_features = C = 4
    NUM_CLASSES = 10

    key = jax.random.PRNGKey(0)
    kx, kp = jax.random.split(key)
    x = jax.random.normal(kx, (B, C, H, W), dtype=jnp.float32)
    params = init_params(kp, C, NUM_CLASSES)   # bf16 weights, f32 biases

    out = jax.block_until_ready(gap_mlp_block(params, x))
    ref = gap_mlp_block_ref(params, x)

    assert out.shape == (B, NUM_CLASSES)
    assert jnp.allclose(out, ref, atol=2e-2, rtol=2e-2), \
        float(jnp.max(jnp.abs(out - ref)))

    print("KERNEL_OK")
</pallas_src>

<mosaic_0001>
module attributes {stable_mosaic.version = 11 : i64} {
  func.func @_fused_kernel(%arg0: i32, %arg1: i32, %arg2: memref<2x4x256xf32, #tpu.memory_space<vmem>>, %arg3: memref<4x4096xbf16, #tpu.memory_space<vmem>>, %arg4: memref<1x4096xf32, #tpu.memory_space<vmem>>, %arg5: memref<4096x1024xbf16, #tpu.memory_space<vmem>>, %arg6: memref<4x1x1024xf32, #tpu.memory_space<vmem>>, %arg7: memref<4x1024x128xbf16, #tpu.memory_space<vmem>>, %arg8: memref<1x2x128xf32, #tpu.memory_space<vmem>>, %arg9: memref<2x4096xbf16, #tpu.memory_space<vmem>>, %arg10: memref<2x128xf32, #tpu.memory_space<vmem>>) attributes {dimension_semantics = [#tpu.dimension_semantics<parallel>, #tpu.dimension_semantics<arbitrary>], iteration_bounds = array<i64: 1, 4>, scalar_prefetch = 0 : i64, scratch_operands = 2 : i64, tpu.core_type = #tpu.core_type<tc>, window_params = [{pipeline_mode = #tpu.pipeline_mode<synchronous>, transform_indices = @transform_0, window_bounds = array<i64: 2, 4, 256>}, {pipeline_mode = #tpu.pipeline_mode<synchronous>, transform_indices = @transform_1, window_bounds = array<i64: 4, 4096>}, {pipeline_mode = #tpu.pipeline_mode<synchronous>, transform_indices = @transform_2, window_bounds = array<i64: 1, 4096>}, {transform_indices = @transform_3, window_bounds = array<i64: 4096, 1024>}, {pipeline_mode = #tpu.pipeline_mode<synchronous>, transform_indices = @transform_4, window_bounds = array<i64: 4, 1, 1024>}, {pipeline_mode = #tpu.pipeline_mode<synchronous>, transform_indices = @transform_5, window_bounds = array<i64: 4, 1024, 128>}, {transform_indices = @transform_6, window_bounds = array<i64: 1, 2, 128>}]} {
    %c4_i32 = arith.constant 4 : i32
    %0 = arith.muli %arg0, %c4_i32 : i32
    %1 = arith.addi %0, %arg1 : i32
    %c0_i32 = arith.constant 0 : i32
    %2 = arith.cmpi eq, %arg1, %c0_i32 : i32
    %3 = arith.extui %2 : i1 to i32
    %c0_i32_0 = arith.constant 0 : i32
    %4 = arith.cmpi ne, %3, %c0_i32_0 : i32
    scf.if %4 {
      %c0_15 = arith.constant 0 : index
      %c0_16 = arith.constant 0 : index
      %c0_17 = arith.constant 0 : index
      %26 = vector.load %arg2[%c0_15, %c0_16, %c0_17] : memref<2x4x256xf32, #tpu.memory_space<vmem>>, vector<2x4x256xf32>
      %cst_18 = arith.constant dense<0.000000e+00> : vector<2x4xf32>
      %27 = vector.multi_reduction <add>, %26, %cst_18 [2] : vector<2x4x256xf32> to vector<2x4xf32>
      %cst_19 = arith.constant 2.560000e+02 : f32
      %28 = vector.broadcast %cst_19 : f32 to vector<2x4xf32>
      %29 = arith.divf %27, %28 : vector<2x4xf32>
      %30 = arith.truncf %29 : vector<2x4xf32> to vector<2x4xbf16>
      %c0_20 = arith.constant 0 : index
      %c0_21 = arith.constant 0 : index
      %31 = vector.load %arg3[%c0_20, %c0_21] : memref<4x4096xbf16, #tpu.memory_space<vmem>>, vector<4x4096xbf16>
      %cst_22 = arith.constant dense<0.000000e+00> : vector<2x4096xf32>
      %32 = tpu.matmul %30, %31, %cst_22 {dimension_numbers = #tpu.dot_dimension_numbers<[1], [0], [0], [1], [0, 0, 1, 1], [], []>} : vector<2x4xbf16>, vector<4x4096xbf16>, vector<2x4096xf32> -> vector<2x4096xf32>
      %c0_23 = arith.constant 0 : index
      %c0_24 = arith.constant 0 : index
      %33 = vector.load %arg4[%c0_23, %c0_24] : memref<1x4096xf32, #tpu.memory_space<vmem>>, vector<1x4096xf32>
      %34 = vector.broadcast %33 : vector<1x4096xf32> to vector<2x4096xf32>
      %35 = arith.addf %32, %34 : vector<2x4096xf32>
      %cst_25 = arith.constant 0.000000e+00 : f32
      %36 = vector.broadcast %cst_25 : f32 to vector<2x4096xf32>
      %37 = arith.maximumf %35, %36 : vector<2x4096xf32>
      %38 = arith.truncf %37 : vector<2x4096xf32> to vector<2x4096xbf16>
      %c0_26 = arith.constant 0 : index
      %c0_27 = arith.constant 0 : index
      %39 = vector.load %arg9[%c0_26, %c0_27] : memref<2x4096xbf16, #tpu.memory_space<vmem>>, vector<2x4096xbf16>
      tpu.vector_store %arg9[%c0_26, %c0_27], %38 {strides = array<i32>} : memref<2x4096xbf16, #tpu.memory_space<vmem>>, vector<2x4096xbf16>,
      %cst_28 = arith.constant 0.000000e+00 : f32
      %40 = vector.broadcast %cst_28 : f32 to vector<2x128xf32>
      %c0_29 = arith.constant 0 : index
      %c0_30 = arith.constant 0 : index
      %41 = vector.load %arg10[%c0_29, %c0_30] : memref<2x128xf32, #tpu.memory_space<vmem>>, vector<2x128xf32>
      tpu.vector_store %arg10[%c0_29, %c0_30], %40 {strides = array<i32>} : memref<2x128xf32, #tpu.memory_space<vmem>>, vector<2x128xf32>,
    } else {
    }
    %c0 = arith.constant 0 : index
    %c0_1 = arith.constant 0 : index
    %5 = vector.load %arg9[%c0, %c0_1] : memref<2x4096xbf16, #tpu.memory_space<vmem>>, vector<2x4096xbf16>
    %c0_2 = arith.constant 0 : index
    %c0_3 = arith.constant 0 : index
    %6 = vector.load %arg5[%c0_2, %c0_3] : memref<4096x1024xbf16, #tpu.memory_space<vmem>>, vector<4096x1024xbf16>
    %cst = arith.constant dense<0.000000e+00> : vector<2x1024xf32>
    %7 = tpu.matmul %5, %6, %cst {dimension_numbers = #tpu.dot_dimension_numbers<[1], [0], [0], [1], [0, 0, 1, 1], [], []>} : vector<2x4096xbf16>, vector<4096x1024xbf16>, vector<2x1024xf32> -> vector<2x1024xf32>
    %8 = arith.index_cast %1 : i32 to index
    %c0_4 = arith.constant 0 : index
    %c0_5 = arith.constant 0 : index
    %9 = vector.load %arg6[%8, %c0_4, %c0_5] : memref<4x1x1024xf32, #tpu.memory_space<vmem>>, vector<1x1x1024xf32>
    %10 = vector.shape_cast %9 : vector<1x1x1024xf32> to vector<1x1024xf32>
    %11 = vector.broadcast %10 : vector<1x1024xf32> to vector<2x1024xf32>
    %12 = arith.addf %7, %11 : vector<2x1024xf32>
    %cst_6 = arith.constant 0.000000e+00 : f32
    %13 = vector.broadcast %cst_6 : f32 to vector<2x1024xf32>
    %14 = arith.maximumf %12, %13 : vector<2x1024xf32>
    %c0_7 = arith.constant 0 : index
    %c0_8 = arith.constant 0 : index
    %15 = vector.load %arg10[%c0_7, %c0_8] : memref<2x128xf32, #tpu.memory_space<vmem>>, vector<2x128xf32>
    %16 = arith.truncf %14 : vector<2x1024xf32> to vector<2x1024xbf16>
    %17 = arith.index_cast %1 : i32 to index
    %c0_9 = arith.constant 0 : index
    %c0_10 = arith.constant 0 : index
    %18 = vector.load %arg7[%17, %c0_9, %c0_10] : memref<4x1024x128xbf16, #tpu.memory_space<vmem>>, vector<1x1024x128xbf16>
    %19 = vector.shape_cast %18 : vector<1x1024x128xbf16> to vector<1024x128xbf16>
    %cst_11 = arith.constant dense<0.000000e+00> : vector<2x128xf32>
    %20 = tpu.matmul %16, %19, %cst_11 {dimension_numbers = #tpu.dot_dimension_numbers<[1], [0], [0], [1], [0, 0, 1, 1], [], []>} : vector<2x1024xbf16>, vector<1024x128xbf16>, vector<2x128xf32> -> vector<2x128xf32>
    %21 = arith.addf %15, %20 : vector<2x128xf32>
    %c0_12 = arith.constant 0 : index
    %c0_13 = arith.constant 0 : index
    %22 = vector.load %arg10[%c0_12, %c0_13] : memref<2x128xf32, #tpu.memory_space<vmem>>, vector<2x128xf32>
    tpu.vector_store %arg10[%c0_12, %c0_13], %21 {strides = array<i32>} : memref<2x128xf32, #tpu.memory_space<vmem>>, vector<2x128xf32>,
    %c3_i32 = arith.constant 3 : i32
    %23 = arith.cmpi eq, %arg1, %c3_i32 : i32
    %24 = arith.extui %23 : i1 to i32
    %c0_i32_14 = arith.constant 0 : i32
    %25 = arith.cmpi ne, %24, %c0_i32_14 : i32
    scf.if %25 {
      %c0_15 = arith.constant 0 : index
      %c0_16 = arith.constant 0 : index
      %26 = vector.load %arg10[%c0_15, %c0_16] : memref<2x128xf32, #tpu.memory_space<vmem>>, vector<2x128xf32>
      %27 = vector.shape_cast %26 : vector<2x128xf32> to vector<1x2x128xf32>
      %c0_17 = arith.constant 0 : index
      %c0_18 = arith.constant 0 : index
      %c0_19 = arith.constant 0 : index
      %28 = vector.load %arg8[%c0_17, %c0_18, %c0_19] : memref<1x2x128xf32, #tpu.memory_space<vmem>>, vector<1x2x128xf32>
      tpu.vector_store %arg8[%c0_17, %c0_18, %c0_19], %27 {strides = array<i32>} : memref<1x2x128xf32, #tpu.memory_space<vmem>>, vector<1x2x128xf32>,
    } else {
    }
    return
  }
  func.func @transform_0(%arg0: i32, %arg1: i32) -> (i32, i32, i32) {
    %c0_i32 = arith.constant 0 : i32
    %c0_i32_0 = arith.constant 0 : i32
    %c0_i32_1 = arith.constant 0 : i32
    %c0_i32_2 = arith.constant 0 : i32
    return %c0_i32, %c0_i32_0, %c0_i32_1 : i32, i32, i32
  }
  func.func @transform_1(%arg0: i32, %arg1: i32) -> (i32, i32) {
    %c0_i32 = arith.constant 0 : i32
    %c0_i32_0 = arith.constant 0 : i32
    %c0_i32_1 = arith.constant 0 : i32
    return %c0_i32, %c0_i32_0 : i32, i32
  }
  func.func @transform_2(%arg0: i32, %arg1: i32) -> (i32, i32) {
    %c0_i32 = arith.constant 0 : i32
    %c0_i32_0 = arith.constant 0 : i32
    %c0_i32_1 = arith.constant 0 : i32
    return %c0_i32, %c0_i32_0 : i32, i32
  }
  func.func @transform_3(%arg0: i32, %arg1: i32) -> (i32, i32) {
    %c4_i32 = arith.constant 4 : i32
    %0 = arith.muli %arg0, %c4_i32 : i32
    %1 = arith.addi %0, %arg1 : i32
    %c0_i32 = arith.constant 0 : i32
    %c0_i32_0 = arith.constant 0 : i32
    return %c0_i32, %1 : i32, i32
  }
  func.func @transform_4(%arg0: i32, %arg1: i32) -> (i32, i32, i32) {
    %c0_i32 = arith.constant 0 : i32
    %c0_i32_0 = arith.constant 0 : i32
    %c0_i32_1 = arith.constant 0 : i32
    %c0_i32_2 = arith.constant 0 : i32
    return %c0_i32, %c0_i32_0, %c0_i32_1 : i32, i32, i32
  }
  func.func @transform_5(%arg0: i32, %arg1: i32) -> (i32, i32, i32) {
    %c0_i32 = arith.constant 0 : i32
    %c0_i32_0 = arith.constant 0 : i32
    %c0_i32_1 = arith.constant 0 : i32
    %c0_i32_2 = arith.constant 0 : i32
    return %c0_i32, %c0_i32_0, %c0_i32_1 : i32, i32, i32
  }
  func.func @transform_6(%arg0: i32, %arg1: i32) -> (i32, i32, i32) {
    %c0_i32 = arith.constant 0 : i32
    %c0_i32_0 = arith.constant 0 : i32
    %c0_i32_1 = arith.constant 0 : i32
    return %arg0, %c0_i32, %c0_i32_0 : i32, i32, i32
  }
}

</mosaic_0001>

<bundles_post_ra>
// kernel: tpu_custom_call.1
= control target key start
LH: loop header
LB: loop body
LE: loop exit
PB: predicated region body
PF: predicated region fallthrough
CT: control target
= control target key end

     0   :  { %11 = vsyncpa [#allocation5], 0  ;;  %s23786_s0 = inlined_call_operand.hbm [shape: f32[2,4,256], index: 0, kind: input, shape index: {}]   ;;  %s23787_s1 = inlined_call_operand.hbm [shape: bf16[4,4096], index: 1, kind: input, shape index: {}]   ;;  %s23788_s2 = inlined_call_operand.hbm [shape: f32[1,4096], index: 2, kind: input, shape index: {}]   ;;  %s23789_s3 = inlined_call_operand.hbm [shape: bf16[4096,4096], index: 3, kind: input, shape index: {}]   ;;  %s23790_s4 = inlined_call_operand.hbm [shape: f32[4,1,1024], index: 4, kind: input, shape index: {}]   ;;  %s23791_s5 = inlined_call_operand.hbm [shape: bf16[4,1024,128], index: 5, kind: input, shape index: {}]   ;;  %s23792_s6 = inlined_call_operand.hbm [shape: f32[1,2,128], index: 6, kind: output, shape index: {}]  }
   0x1   :  { %12 = vsyncpa [#allocation8], 0 }
   0x2   :  { %13 = vsyncpa [#allocation11], 0 }
   0x3   :  { %15 = vsyncpa [#allocation11 + $0x1], 0 }
   0x4   :  { %16 = vsyncpa [#allocation14], 0 }
   0x5   :  { %17 = vsyncpa [#allocation6], 0  ;;  %s20851_s21 = smov 0   ;;  %s20853_s22 = smov 0  }
   0x6   :  { %s20855_s23 = smov 0   ;;  %s20857_s24 = smov 0  }
   0x7   :  { %s20859_s25 = smov 0   ;;  %s20861_s26 = smov 0  }
   0x8 LB: > { %s20880_s27 = sadd.s32 4294967295, %s20795_s26   ;;  %p122_p0 = scmp.ne.s32.totalorder %s20779_s22, %s20775_s21  ;;  %s20795_s26 = sphi %s20861_s26, %s23_s26   ;;  %s20791_s25 = sphi %s20859_s25, %s23815_s25   ;;  %s20787_s24 = sphi %s20857_s24, %s23814_s24   ;;  %s20783_s23 = sphi %s20855_s23, %s23813_s23   ;;  %s20779_s22 = sphi %s20853_s22, %s23812_s22   ;;  %s20775_s21 = sphi %s20851_s21, %s23811_s21  }
   0x9   : > { %p23793_p1 = scmp.eq.s32.totalorder %s20880_s27, 0  ;;  %p17802_p2 = scmp.ge.s32.totalorder %s20795_s26, 1 }
   0xa   : > { %p201_p3 = scmp.lt.s32.totalorder %s20795_s26, 5  ;;  %s20797_s30 = smov [#allocation7]  }
   0xb   : > { %p20888_p4 = por %p23793_p1, %p122_p0  ;;  %s227_s7 = sshll.u32 %s20797_s30, 4  ;;  %s228_s7 = int_to_ptr.vmem [resolvable:$true] %s227_s7 }
   0xc   : > { %p20892_p5 = pnand %p17802_p2, %p201_p3  ;;  %s20798_s9 = smov [#allocation12]  }
   0xd   : > { %s23796_s28 = scalar_select %p20888_p4, 1, 0 }
   0xe   : > { %s23797_s29 = scalar_select %p20892_p5, 1, 0 }
   0xf   : > { %p20352_p6 = pneg %p20892_p5  ;;  %s248_s10 = sshll.u32 %s20798_s9, 4  ;;  %s20904_s10 = int_to_ptr.vmem [resolvable:$true] %s248_s10 }
  0x10   : > { %s20529_s13 = scalar_lea.hbm %s23787_s1, 1024 }
  0x11   : > { %p20900_p7 = pnand %p20352_p6, %p23793_p1  ;;  %p20530_p8 = scmp.ne.s32.totalorder %s23787_s1, %s20529_s13 }
  0x12   : > { %p20536_p12 = scmp.lt.u32.totalorder %s20529_s13, %s23787_s1 }
  0x13   : > { %p20914_p9 = pneg %p20900_p7 }
  0x15   : > { %p20532_p10 = pnand %p20914_p9, %p20530_p8 }
  0x17   : > { %p20533_p11 = pneg %p20532_p10 }
  0x19   : > { %p20538_p13 = pnand %p20536_p12, %p20533_p11 }
  0x1b   : > { %20541 = shalt.err (!%p20538_p13)
}
  0x1c   : > { %s20542_s19 = scalar_lea.vmem %s228_s7, 1024  ;;  %p20550_p6 = scmp.lt.s32.totalorder %s228_s7, %s228_s7 }
  0x1d   : > { %p20543_p0 = scmp.ne.s32.totalorder %s228_s7, %s20542_s19  ;;  %p20551_p1 = scmp.lt.s32.totalorder %s20542_s19, %s20542_s19 }
  0x1f   : > { %p20545_p2 = pnand %p20543_p0, %p20914_p9  ;;  %p20552_p4 = por %p20551_p1, %p20550_p6 }
  0x21   : > { %p20546_p3 = pneg %p20545_p2 }
  0x23   : > { %p20553_p5 = pnand %p20552_p4, %p20546_p3 }
  0x25   : > { %20556 = shalt.err (!%p20553_p5)
}
  0x26   : > { %20358 = dma.hbm_to_vmem [thread:$0]  (!%p20900_p7), %s23787_s1, 1024, %s228_s7, [#allocation8]  }
  0x27   : > { %s20557_s11 = scalar_lea.hbm %s23790_s4, 512 }
  0x28   : > { %p20558_p8 = scmp.ne.s32.totalorder %s23790_s4, %s20557_s11  ;;  %p20564_p4 = scmp.lt.u32.totalorder %s20557_s11, %s23790_s4 }
  0x2a   : > { %p20560_p10 = pnand %p20558_p8, %p20914_p9 }
  0x2c   : > { %p20561_p1 = pneg %p20560_p10 }
  0x2e   : > { %p20566_p5 = pnand %p20564_p4, %p20561_p1 }
  0x30   : > { %20569 = shalt.err (!%p20566_p5)
}
  0x31   : > { %s20570_s7 = scalar_lea.vmem %s20904_s10, 512  ;;  %p20578_p0 = scmp.lt.s32.totalorder %s20904_s10, %s20904_s10 }
  0x32   : > { %p20571_p11 = scmp.ne.s32.totalorder %s20904_s10, %s20570_s7  ;;  %p20579_p2 = scmp.lt.s32.totalorder %s20570_s7, %s20570_s7 }
  0x34   : > { %p20573_p12 = pnand %p20571_p11, %p20914_p9  ;;  %p20580_p3 = por %p20579_p2, %p20578_p0 }
  0x36   : > { %p20574_p13 = pneg %p20573_p12 }
  0x38   : > { %p20581_p6 = pnand %p20580_p3, %p20574_p13 }
  0x3a   : > { %20584 = shalt.err (!%p20581_p6)
}
  0x3b   : > { %s20799_s17 = smov 128   ;;  %s20800_s18 = smov 8  }
  0x3c   : > { %20364 = dma.hbm_to_vmem [thread:$0]  (!%p20900_p7), %s23790_s4, 512, %s20904_s10, [#allocation11], %s20799_s17, %s20799_s17, %s20800_s18  }
  0x3d   : > { %s20801_s21 = smov [#allocation4]   ;;  %s20802_s9 = smov [#allocation9]  }
  0x3e   : > { %s213_s30 = sshll.u32 %s20801_s21, 4  ;;  %s238_s11 = sshll.u32 %s20802_s9, 4  ;;  %s214_s30 = int_to_ptr.vmem [resolvable:$true] %s213_s30  ;;  %s20953_s11 = int_to_ptr.vmem [resolvable:$true] %s238_s11 }
  0x3f   : > { %s20585_s14 = scalar_lea.hbm %s23786_s0, 256 }
  0x40   : > { %p20586_p8 = scmp.ne.s32.totalorder %s23786_s0, %s20585_s14  ;;  %p20592_p4 = scmp.lt.u32.totalorder %s20585_s14, %s23786_s0 }
  0x42   : > { %p20588_p10 = pnand %p20586_p8, %p20914_p9 }
  0x44   : > { %p20589_p1 = pneg %p20588_p10 }
  0x46   : > { %p20594_p5 = pnand %p20592_p4, %p20589_p1 }
  0x48   : > { %20597 = shalt.err (!%p20594_p5)
}
  0x49   : > { %s20598_s20 = scalar_lea.vmem %s214_s30, 256  ;;  %p20606_p0 = scmp.lt.s32.totalorder %s214_s30, %s214_s30 }
  0x4a   : > { %p20599_p11 = scmp.ne.s32.totalorder %s214_s30, %s20598_s20  ;;  %p20607_p2 = scmp.lt.s32.totalorder %s20598_s20, %s20598_s20 }
  0x4c   : > { %p20601_p12 = pnand %p20599_p11, %p20914_p9  ;;  %p20608_p3 = por %p20607_p2, %p20606_p0 }
  0x4e   : > { %p20602_p13 = pneg %p20601_p12 }
  0x50   : > { %p20609_p6 = pnand %p20608_p3, %p20602_p13 }
  0x52   : > { %20612 = shalt.err (!%p20609_p6)
}
  0x53   : > { %20355 = dma.hbm_to_vmem [thread:$0]  (!%p20900_p7), %s23786_s0, 256, %s214_s30, [#allocation5], %s20799_s17, %s20799_s17, %s20800_s18  }
  0x54   : > { %s20613_s14 = scalar_lea.hbm %s23788_s2, 512 }
  0x55   : > { %p20614_p8 = scmp.ne.s32.totalorder %s23788_s2, %s20613_s14  ;;  %p20620_p4 = scmp.lt.u32.totalorder %s20613_s14, %s23788_s2 }
  0x57   : > { %p20616_p10 = pnand %p20614_p8, %p20914_p9 }
  0x59   : > { %p20617_p1 = pneg %p20616_p10 }
  0x5b   : > { %p20622_p5 = pnand %p20620_p4, %p20617_p1 }
  0x5d   : > { %20625 = shalt.err (!%p20622_p5)
}
  0x5e   : > { %s20626_s17 = scalar_lea.vmem %s20953_s11, 512  ;;  %p20634_p0 = scmp.lt.s32.totalorder %s20953_s11, %s20953_s11 }
  0x5f   : > { %p20627_p11 = scmp.ne.s32.totalorder %s20953_s11, %s20626_s17  ;;  %p20635_p2 = scmp.lt.s32.totalorder %s20626_s17, %s20626_s17 }
  0x61   : > { %p20629_p12 = pnand %p20627_p11, %p20914_p9  ;;  %p20636_p3 = por %p20635_p2, %p20634_p0 }
  0x63   : > { %p20630_p13 = pneg %p20629_p12 }
  0x65   : > { %p20637_p6 = pnand %p20636_p3, %p20630_p13 }
  0x67   : > { %20640 = shalt.err (!%p20637_p6)
}
  0x68   : > { %20361 = dma.hbm_to_vmem [thread:$0]  (!%p20900_p7), %s23788_s2, 512, %s20953_s11, [#allocation8]  }
  0x69   : > { %s20803_s20 = smov [#allocation13]   ;;  %s20641_s13 = scalar_lea.hbm %s23791_s5, 32768 }
  0x6a   : > { %s261_s21 = sshll.u32 %s20803_s20, 4  ;;  %p20642_p8 = scmp.ne.s32.totalorder %s23791_s5, %s20641_s13  ;;  %s262_s21 = int_to_ptr.vmem [resolvable:$true] %s261_s21 }
  0x6b   : > { %p20648_p4 = scmp.lt.u32.totalorder %s20641_s13, %s23791_s5 }
  0x6c   : > { %p20644_p10 = pnand %p20642_p8, %p20914_p9 }
  0x6e   : > { %p20645_p1 = pneg %p20644_p10 }
  0x70   : > { %p20650_p5 = pnand %p20648_p4, %p20645_p1 }
  0x72   : > { %20653 = shalt.err (!%p20650_p5)
}
  0x73   : > { %s20654_s11 = scalar_lea.vmem %s262_s21, 32768  ;;  %p20662_p0 = scmp.lt.s32.totalorder %s262_s21, %s262_s21 }
  0x74   : > { %p20655_p11 = scmp.ne.s32.totalorder %s262_s21, %s20654_s11  ;;  %p20663_p2 = scmp.lt.s32.totalorder %s20654_s11, %s20654_s11 }
  0x76   : > { %p20657_p12 = pnand %p20655_p11, %p20914_p9  ;;  %p20664_p3 = por %p20663_p2, %p20662_p0 }
  0x78   : > { %p20658_p13 = pneg %p20657_p12 }
  0x7a   : > { %p20665_p6 = pnand %p20664_p3, %p20658_p13 }
  0x7c   : > { %20668 = shalt.err (!%p20665_p6)
}
  0x7d   : > { %s20804_s10 = smov 64   ;;  %s20805_s16 = smov 4  }
  0x7e   : > { %20367 = dma.hbm_to_vmem [thread:$0]  (!%p20900_p7), %s23791_s5, 32768, %s262_s21, [#allocation14], %s20804_s10, %s20804_s10, %s20805_s16  }
  0x7f   : > { %s109_s30 = sadd.s32 1, %s20783_s23  ;;  %s32_s20 = sadd.s32 1, %s20791_s25 }
  0x80   : > { %p116_p9 = scmp.ne.s32.totalorder %s20783_s23, %s20779_s22  ;;  %p33_p8 = scmp.ge.s32.totalorder %s32_s20, 4 }
  0x81   : > { %p117_p10 = scmp.eq.s32.totalorder %s20795_s26, 0  ;;  %p20377_p1 = scmp.lt.s32.totalorder %s20795_s26, 4 }
  0x82   : > { %s275_s9 = sand.u32 1, %s20795_s26   ;;  %s23817_s20 = smov (%p33_p8, %s32_s20), 0 }
  0x83   : > { %p118_p4 = por %p117_p10, %p116_p9  ;;  %s106_s12 = ssub.s32 %s20791_s25, %s23817_s20 }
  0x84   : > { %s277_s13 = sand.u32 1, %s20783_s23   ;;  %p107_p5 = scmp.eq.s32.totalorder %s106_s12, 0 }
  0x85   : > { %s17809_s8 = sshll.u32 %s277_s13, 14  ;;  %s19988_s14 = sshll.u32 %s20791_s25, 9 }
  0x86   : > { %s21028_s15 = scalar_select %p107_p5, %s20783_s23, %s109_s30  }
  0x87   : > { %s21033_s19 = scalar_lea.hbm %s23789_s3, %s19988_s14  ;;  %s279_s11 = scalar_lea.vmem [#allocation10], %s17809_s8 }
  0x88   : > { %s288_s10 = sshll.u32 %s279_s11, 4  ;;  %p21039_p7 = pnand %p20377_p1, %p118_p4  ;;  %s21035_s10 = int_to_ptr.vmem [resolvable:$true] %s288_s10 }
  0x89   : > { %s21043_s17 = scalar_lea.sflag [#allocation11], %s275_s9  ;;  %s20669_s18 = scalar_lea.hbm %s21033_s19, 262144 }
  0x8a   : > { %p20670_p11 = scmp.ne.s32.totalorder %s21033_s19, %s20669_s18  ;;  %p20671_p12 = pneg %p21039_p7 }
  0x8b   : > { %s20674_s13 = scalar_lea.hbm %s23789_s3, 1048576  ;;  %p20675_p2 = scmp.lt.u32.totalorder %s21033_s19, %s23789_s3 }
  0x8c   : > { %p20672_p13 = pnand %p20671_p12, %p20670_p11  ;;  %p20676_p3 = scmp.lt.u32.totalorder %s20674_s13, %s20669_s18 }
  0x8d   : > { %p20678_p9 = scmp.lt.u32.totalorder %s20669_s18, %s21033_s19 }
  0x8e   : > { %p20673_p0 = pneg %p20672_p13  ;;  %p20677_p6 = por %p20676_p3, %p20675_p2 }
  0x90   : > { %p20679_p8 = por %p20678_p9, %p20677_p6 }
  0x92   : > { %p20680_p10 = pnand %p20679_p8, %p20673_p0 }
  0x94   : > { %20683 = shalt.err (!%p20680_p10)
}
  0x95   : > { %s20684_s9 = scalar_lea.vmem %s21035_s10, 262144  ;;  %s20806_s21 = smov [#allocation10]  }
  0x96   : > { %p20685_p1 = scmp.ne.s32.totalorder %s21035_s10, %s20684_s9  ;;  %s20689_s7 = sshll.u32 %s20806_s21, 4  ;;  %s20690_s7 = int_to_ptr.vmem [resolvable:$false] %s20689_s7 }
  0x97   : > { %s20691_s11 = scalar_lea.vmem %s20690_s7, 524288  ;;  %p20692_p11 = scmp.lt.s32.totalorder %s21035_s10, %s20690_s7 }
  0x98   : > { %p20687_p4 = pnand %p20685_p1, %p20671_p12  ;;  %p20693_p13 = scmp.lt.s32.totalorder %s20691_s11, %s20684_s9 }
  0x9a   : > { %p20688_p5 = pneg %p20687_p4  ;;  %p20694_p2 = por %p20693_p13, %p20692_p11 }
  0x9c   : > { %p20695_p3 = pnand %p20694_p2, %p20688_p5 }
  0x9e   : > { %20698 = shalt.err (!%p20695_p3)
}
  0x9f   : > { %s20807_s18 = smov 2048   ;;  %s20808_s30 = smov 512  }
  0xa0   : > { %s20809_s12 = smov 32   ;;  %p23801_p12 = scmp.ne.s32.totalorder %s23797_s29, 0 }
  0xa1   : > { %20371 = dma.hbm_to_vmem [thread:$0]  (!%p21039_p7), %s21033_s19, 262144, %s21035_s10, %s21043_s17, %s20807_s18, %s20808_s30, %s20809_s12  }
  0xa2   : > { %300 = sbr.rel (%p23801_p12) target bundleno = 3159 (0xc57), region = 44  ;;  %p23802_p0 = scmp.eq.s32.totalorder (!%p23801_p12), %s20880_s27, 0 }
  0xa9   : > { %20750 = dma.done.wait (%p23802_p0), [#allocation5], 256   ;;  %p23803_p6 = pmov %p23802_p0 }
  0xaa   : > { %p23804_p9 = pmov %p23802_p0 }
  0xab   : > { %20752 = vsyncadd (%p23803_p6), [#allocation5], 4294967040 }
  0xac   : > { %20754 = dma.done.wait (%p23804_p9), [#allocation8], 1536   ;;  %p23805_p8 = pmov %p23802_p0 }
  0xad   : > { %s314_s16 = sand.u32 1, %s20880_s27   ;;  %s316_s19 = sand.u32 1, %s20779_s22  }
  0xae   : > { %20756 = vsyncadd (%p23805_p8), [#allocation8], 4294965760  ;;  %s17816_s10 = sshll.u32 %s316_s19, 14  ;;  %s315_s29 = scalar_lea.sflag [#allocation11], %s314_s16 }
  0xaf   : > { %s21083_s17 = scalar_lea.vmem [#allocation10], %s17816_s10  ;;  %p23806_p7 = scmp.ne.s32.totalorder %s23796_s28, 0 }
  0xb1   : > { %20758 = dma.done.wait (%p23806_p7), %s315_s29, 262144  }
  0xb2   : > { %20760 = vsyncadd (%p23806_p7), %s315_s29, 4294705152  ;;  %p23807_p10 = pmov %p23802_p0 }
  0xb3   : > { %p23808_p1 = pmov %p23802_p0 }
  0xb4   : > { %20762 = dma.done.wait (%p23807_p10), [#allocation11], 512  }
  0xb5   : > { %20764 = vsyncadd (%p23808_p1), [#allocation11], 4294966784  ;;  %p23809_p4 = pmov %p23802_p0 }
  0xb6   : > { %p23810_p5 = pmov %p23802_p0 }
  0xb7   : > { %20766 = dma.done.wait (%p23809_p4), [#allocation14], 32768  }
  0xb8   : > { %20768 = vsyncadd (%p23810_p5), [#allocation14], 4294934528  ;;  %p17819_p11 = scmp.ne.s32.totalorder %s20787_s24, 0 }
  0xb9   : > { %v360_v0 = vld [vmem:[#allocation4] sm:$0xff] (!%p17819_p11)  ;;  %vm368_vm0 = vcmask (!%p17819_p11), 1043456   ;;  %v361_v1 = vld [vmem:[#allocation4 + $0x8] sm:$0xff] (!%p17819_p11)  ;;  %v400_v10 = vlaneseq (!%p17819_p11)  ;;  %v20810_v12 = vmov (!%p17819_p11), 1983009808   ;;  %v384_v15 = vld [vmem:[#allocation7] sm:$0xff] (!%p17819_p11) }
  0xba   : > { %359 = sbr.rel (%p17819_p11) target bundleno = 632 (0x278), region = 72  ;;  %v364_v2 = vcombine.high (!%p17819_p11), %v360_v0, %v360_v0  ;;  %v369_v3 = vsel (!%p17819_p11), %vm368_vm0, %v360_v0, 0.0  ;;  %v365_v4 = vcombine.high (!%p17819_p11), %v361_v1, %v361_v1  ;;  %v374_v6 = vsel (!%p17819_p11), %vm368_vm0, %v361_v1, 0.0  ;;  %v385_v24 = vld [vmem:[#allocation7 + $0x8] sm:$0xff] (!%p17819_p11)  ;;  %v386_v36 = vld [vmem:[#allocation7 + $0x10] sm:$0xff] (!%p17819_p11)  ;;  %v387_v47 = vld [vmem:[#allocation7 + $0x18] sm:$0xff] (!%p17819_p11) }
  0xbb   : > { %v21098_v11 = vshrl.u32 (!%p17819_p11), %v400_v10, 7  ;;  %v587_v13 = vunpack.c.l.s4 (!%p17819_p11), %v20810_v12  ;;  %v585_v17 = vcombine.high (!%p17819_p11), %v384_v15, %v384_v15  ;;  %vm725_vm1 = vcmask (!%p17819_p11), 1041408   ;;  %v388_v57 = vld [vmem:[#allocation7 + $0x20] sm:$0xff] (!%p17819_p11)  ;;  %v389_v1 = vld [vmem:[#allocation7 + $0x28] sm:$0xff] (!%p17819_p11) }
  0xbc   : > { %v370_v5 = vsel (!%p17819_p11), %vm368_vm0, %v364_v2, 0.0  ;;  %v375_v7 = vsel (!%p17819_p11), %vm368_vm0, %v365_v4, 0.0  ;;  %v602_v26 = vcombine.high (!%p17819_p11), %v385_v24, %v385_v24  ;;  %v20811_v27 = vmov (!%p17819_p11), 0  }
  0xbd   : > { %v371_v8 = vadd.f32 (!%p17819_p11), %v370_v5, %v369_v3  ;;  %v376_v9 = vadd.f32 (!%p17819_p11), %v375_v7, %v374_v6  ;;  %v588_v14 = vunpack.c.0.s8 (!%p17819_p11), %v587_v13  ;;  %854 = vmatprep.mubr.bf16.mxu0 (!%p17819_p11), %v20811_v27  ;;  %895 = vmatprep.mubr.bf16.mxu1 (!%p17819_p11), %v20811_v27  ;;  %v565_v33 = vand.u32 (!%p17819_p11), 127, %v400_v10 }
  0xbe   : > { %v619_v41 = vcombine.high (!%p17819_p11), %v386_v36, %v386_v36  ;;  %vm574_vm2 = vcmask (!%p17819_p11), 1041409   ;;  %vm721_vm3 = vcmask (!%p17819_p11), 31744   ;;  %v636_v54 = vcombine.high (!%p17819_p11), %v387_v47, %v387_v47 }
  0xbf   : > { %372 = vadd.xlane.f32.xlu0 (!%p17819_p11), %v371_v8  ;;  %v21101_v16 = vsub.s32 (!%p17819_p11), %v588_v14, %v21098_v11  ;;  %v568_v38 = vsub.s32 (!%p17819_p11), %v565_v33, %v21098_v11  ;;  %v653_v62 = vcombine.high (!%p17819_p11), %v388_v57, %v388_v57  ;;  %v670_v6 = vcombine.high (!%p17819_p11), %v389_v1, %v389_v1 }
  0xc0   : > { %v20812_v33 = vmov (!%p17819_p11), 0.0  }
  0xc1   : > { %v592_v18 = vrot.slane %v384_v15, %v21101_v16  ;;  %v599_v19 = vrot.slane %v585_v17, %v21101_v16  ;;  %v609_v25 = vrot.slane %v385_v24, %v21101_v16  ;;  %v616_v29 = vrot.slane %v602_v26, %v21101_v16  ;;  %1778 = vst [vmem:[#allocation3] sm:$0x3] %v20812_v33 }
  0xc2   : > { %v626_v45 = vrot.slane %v386_v36, %v21101_v16  ;;  %v633_v46 = vrot.slane %v619_v41, %v21101_v16  ;;  %v643_v55 = vrot.slane %v387_v47, %v21101_v16  ;;  %v650_v56 = vrot.slane %v636_v54, %v21101_v16  ;;  %v392_v36 = vld [vmem:[#allocation9] sm:$0xff] }
  0xc3   : > { %377 = vadd.xlane.f32.xlu0 %v376_v9  ;;  %v600_v20 = vcombine.high %v592_v18, %v592_v18  ;;  %v601_v21 = vcombine.high %v599_v19, %v599_v19  ;;  %v727_v22 = vsel %vm725_vm1, %v592_v18, 0  ;;  %v733_v23 = vsel %vm725_vm1, %v599_v19, 0  ;;  %v390_v9 = vld [vmem:[#allocation7 + $0x30] sm:$0xff]  ;;  %v391_v19 = vld [vmem:[#allocation7 + $0x38] sm:$0xff] }
  0xc4   : > { %v617_v28 = vcombine.high %v609_v25, %v609_v25  ;;  %v618_v30 = vcombine.high %v616_v29, %v616_v29  ;;  %v739_v50 = vsel %vm725_vm1, %v609_v25, 0  ;;  %v745_v51 = vsel %vm725_vm1, %v616_v29, 0 }
  0xc5   : > { %17820 = vmatprep.subr.msk.bf16.mxu0 %vm725_vm1, %v600_v20  ;;  %17822 = vmatprep.subr.msk.bf16.mxu1 %vm725_vm1, %v601_v21  ;;  %v634_v52 = vcombine.high %v626_v45, %v626_v45  ;;  %v635_v53 = vcombine.high %v633_v46, %v633_v46  ;;  %v751_v58 = vsel %vm725_vm1, %v626_v45, 0  ;;  %v757_v59 = vsel %vm725_vm1, %v633_v46, 0 }
  0xc6   : > { %823 = vmatpush1.bf16.msra.mxu0 %v727_v22  ;;  %864 = vmatpush1.bf16.msra.mxu1 %v733_v23  ;;  %v651_v60 = vcombine.high %v643_v55, %v643_v55  ;;  %v652_v61 = vcombine.high %v650_v56, %v650_v56  ;;  %v660_v63 = vrot.slane %v388_v57, %v21101_v16  ;;  %v763_v2 = vsel %vm725_vm1, %v643_v55, 0 }
  0xc7   : > { %17824 = vmatprep.subr.msk.bf16.mxu0 %vm725_vm1, %v617_v28  ;;  %17826 = vmatprep.subr.msk.bf16.mxu1 %vm725_vm1, %v618_v30  ;;  %v667_v0 = vrot.slane %v653_v62, %v21101_v16  ;;  %v769_v3 = vsel %vm725_vm1, %v650_v56, 0  ;;  %v677_v7 = vrot.slane %v389_v1, %v21101_v16  ;;  %v684_v8 = vrot.slane %v670_v6, %v21101_v16 }
  0xc8   : > { %v668_v4 = vcombine.high %v660_v63, %v660_v63  ;;  %v775_v10 = vsel %vm725_vm1, %v660_v63, 0  ;;  %v687_v15 = vcombine.high %v390_v9, %v390_v9  ;;  %v694_v17 = vrot.slane %v390_v9, %v21101_v16 }
  0xc9   : > { %v669_v5 = vcombine.high %v667_v0, %v667_v0  ;;  %v781_v12 = vsel %vm725_vm1, %v667_v0, 0  ;;  %v685_v13 = vcombine.high %v677_v7, %v677_v7  ;;  %v686_v14 = vcombine.high %v684_v8, %v684_v8 }
  0xca   : > { %v701_v18 = vrot.slane %v687_v15, %v21101_v16  ;;  %v787_v20 = vsel %vm725_vm1, %v677_v7, 0  ;;  %v793_v21 = vsel %vm725_vm1, %v684_v8, 0  ;;  %v702_v22 = vcombine.high %v694_v17, %v694_v17 }
  0xcb   : > { %v704_v24 = vcombine.high %v391_v19, %v391_v19  ;;  %v711_v25 = vrot.slane %v391_v19, %v21101_v16  ;;  %v799_v28 = vsel %vm725_vm1, %v694_v17, 0  ;;  %v21225_v57 = vsub.s32 5, %v21098_v11 }
  0xcc   : > { %v703_v23 = vcombine.high %v701_v18, %v701_v18  ;;  %v805_v29 = vsel %vm725_vm1, %v701_v18, 0 }
  0xcd   : > { %v718_v26 = vrot.slane %v704_v24, %v21101_v16  ;;  %v719_v30 = vcombine.high %v711_v25, %v711_v25  ;;  %v811_v16 = vsel %vm725_vm1, %v711_v25, 0  ;;  %v423_v6 = vrot.slane %v392_v36, %v21225_v57 }
 0x14c   : > { %v373_v31 = vpop.xlane.xlu0 %372 }
 0x14d   : > { %v380_v32 = vmul.f32 0.00390625, %v373_v31  ;;  %v720_v31 = vcombine.high %v718_v26, %v718_v26 }
 0x14f   : > { %v382_v34 = vpack.c.bf16 %v380_v32, %v380_v32  ;;  %v817_v32 = vsel %vm725_vm1, %v718_v26, 0 }
 0x150   : > { %v378_v35 = vpop.xlane.xlu0 %377 }
 0x151   : > { %v381_v37 = vmul.f32 0.00390625, %v378_v35  ;;  %v562_v39 = vunpack.c.l.b16 %v382_v34  ;;  %v21203_v34 = vsub.s32 0, %v21098_v11  ;;  %v21206_v35 = vsub.s32 2, %v21098_v11 }
 0x153   : > { %v383_v40 = vpack.c.bf16 %v381_v37, %v381_v37  ;;  %v569_v43 = vrot.slane %v562_v39, %v568_v38  ;;  %v21209_v37 = vsub.s32 1, %v21098_v11  ;;  %v411_v41 = vrot.slane %v392_v36, %v21206_v35 }
 0x155   : > { %v563_v42 = vunpack.c.l.b16 %v383_v40  ;;  %v403_v40 = vrot.slane %v392_v36, %v21203_v34 }
 0x157   : > { %v573_v44 = vrot.slane %v563_v42, %v568_v38  ;;  %v20813_v38 = vmov 1966171168   ;;  %v407_v42 = vrot.slane %v392_v36, %v21209_v37 }
 0x158   : > { %v1579_v39 = vunpack.c.l.s4 %v20813_v38 }
 0x159   : > { %v575_v48 = vsel %vm574_vm2, %v573_v44, %v569_v43 }
 0x15a   : > { %v21118_v49 = vpack.c.b16 %v575_v48, %v575_v48  ;;  %v1580_v46 = vunpack.c.0.s8 %v1579_v39 }
 0x15c   : > { %17821 = vmatmul.mubr.msk.bf16.vlgmr.msra.gmra.mrb[0].mxu0 %vm721_vm3, %v21118_v49  ;;  %17823 = vmatmul.mubr.msk.bf16.vlgmr.msra.gmra.mrb[0].mxu1 %vm721_vm3, %v21118_v49  ;;  %v21231_v0 = vsub.s32 %v1580_v46, %v21098_v11 }
 0x15d   : > { %905 = vmatpush1.bf16.msra.mxu0 %v739_v50  ;;  %946 = vmatpush1.bf16.msra.mxu1 %v745_v51  ;;  %v21219_v51 = vsub.s32 4, %v21098_v11 }
 0x15e   : > { %936 = vmatprep.mubr.bf16.mxu0 %v20811_v27  ;;  %977 = vmatprep.mubr.bf16.mxu1 %v20811_v27 }
 0x15f   : > { %17828 = vmatprep.subr.msk.bf16.mxu0 %vm725_vm1, %v634_v52  ;;  %17830 = vmatprep.subr.msk.bf16.mxu1 %vm725_vm1, %v635_v53  ;;  %v21222_v52 = vsub.s32 6, %v21098_v11 }
 0x164   : > { %17825 = vmatmul.mubr.msk.bf16.vlgmr.msra.gmra.mrb[4].mxu0 %vm721_vm3, %v21118_v49  ;;  %17827 = vmatmul.mubr.msk.bf16.vlgmr.msra.gmra.mrb[4].mxu1 %vm721_vm3, %v21118_v49 }
 0x165   : > { %987 = vmatpush1.bf16.msra.mxu0 %v751_v58  ;;  %1028 = vmatpush1.bf16.msra.mxu1 %v757_v59  ;;  %v21228_v58 = vsub.s32 7, %v21098_v11 }
 0x166   : > { %1018 = vmatprep.mubr.bf16.mxu0 %v20811_v27  ;;  %1059 = vmatprep.mubr.bf16.mxu1 %v20811_v27 }
 0x167   : > { %17832 = vmatprep.subr.msk.bf16.mxu0 %vm725_vm1, %v651_v60  ;;  %17834 = vmatprep.subr.msk.bf16.mxu1 %vm725_vm1, %v652_v61  ;;  %v431_v7 = vrot.slane %v392_v36, %v21228_v58 }
 0x16c   : > { %17829 = vmatmul.mubr.msk.bf16.vlgmr.msra.gmra.mrb[8].mxu0 %vm721_vm3, %v21118_v49  ;;  %17831 = vmatmul.mubr.msk.bf16.vlgmr.msra.gmra.mrb[8].mxu1 %vm721_vm3, %v21118_v49 }
 0x16d   : > { %1069 = vmatpush1.bf16.msra.mxu0 %v763_v2  ;;  %1110 = vmatpush1.bf16.msra.mxu1 %v769_v3  ;;  %v419_v2 = vrot.slane %v392_v36, %v21219_v51  ;;  %v427_v3 = vrot.slane %v392_v36, %v21222_v52 }
 0x16e   : > { %1100 = vmatprep.mubr.bf16.mxu0 %v20811_v27  ;;  %1141 = vmatprep.mubr.bf16.mxu1 %v20811_v27 }
 0x16f   : > { %17836 = vmatprep.subr.msk.bf16.mxu0 %vm725_vm1, %v668_v4  ;;  %17838 = vmatprep.subr.msk.bf16.mxu1 %vm725_vm1, %v669_v5 }
 0x174   : > { %17833 = vmatmul.mubr.msk.bf16.vlgmr.msra.gmra.mrb[12].mxu0 %vm721_vm3, %v21118_v49  ;;  %17835 = vmatmul.mubr.msk.bf16.vlgmr.msra.gmra.mrb[12].mxu1 %vm721_vm3, %v21118_v49 }
 0x175   : > { %1151 = vmatpush1.bf16.msra.mxu0 %v775_v10  ;;  %1192 = vmatpush1.bf16.msra.mxu1 %v781_v12 }
 0x176   : > { %1182 = vmatprep.mubr.bf16.mxu0 %v20811_v27  ;;  %1223 = vmatprep.mubr.bf16.mxu1 %v20811_v27 }
 0x177   : > { %17840 = vmatprep.subr.msk.bf16.mxu0 %vm725_vm1, %v685_v13  ;;  %17842 = vmatprep.subr.msk.bf16.mxu1 %vm725_vm1, %v686_v14 }
 0x17c   : > { %17837 = vmatmul.mubr.msk.bf16.vlgmr.msra.gmra.mrb[16].mxu0 %vm721_vm3, %v21118_v49  ;;  %17839 = vmatmul.mubr.msk.bf16.vlgmr.msra.gmra.mrb[16].mxu1 %vm721_vm3, %v21118_v49 }
 0x17d   : > { %1233 = vmatpush1.bf16.msra.mxu0 %v787_v20  ;;  %1274 = vmatpush1.bf16.msra.mxu1 %v793_v21 }
 0x17e   : > { %1264 = vmatprep.mubr.bf16.mxu0 %v20811_v27  ;;  %1305 = vmatprep.mubr.bf16.mxu1 %v20811_v27 }
 0x17f   : > { %17844 = vmatprep.subr.msk.bf16.mxu0 %vm725_vm1, %v702_v22  ;;  %17846 = vmatprep.subr.msk.bf16.mxu1 %vm725_vm1, %v703_v23  ;;  %v393_v22 = vld [vmem:[#allocation9 + $0x8] sm:$0xff] }
 0x180   : > { %v439_v33 = vrot.slane %v393_v22, %v21209_v37 }
 0x184   : > { %17841 = vmatmul.mubr.msk.bf16.vlgmr.msra.gmra.mrb[20].mxu0 %vm721_vm3, %v21118_v49  ;;  %17843 = vmatmul.mubr.msk.bf16.vlgmr.msra.gmra.mrb[20].mxu1 %vm721_vm3, %v21118_v49 }
 0x185   : > { %1315 = vmatpush1.bf16.msra.mxu0 %v799_v28  ;;  %1356 = vmatpush1.bf16.msra.mxu1 %v805_v29 }
 0x186   : > { %1346 = vmatprep.mubr.bf16.mxu0 %v20811_v27  ;;  %1387 = vmatprep.mubr.bf16.mxu1 %v20811_v27 }
 0x187   : > { %17848 = vmatprep.subr.msk.bf16.mxu0 %vm725_vm1, %v719_v30  ;;  %17850 = vmatprep.subr.msk.bf16.mxu1 %vm725_vm1, %v720_v31  ;;  %v435_v30 = vrot.slane %v393_v22, %v21203_v34  ;;  %v443_v31 = vrot.slane %v393_v22, %v21206_v35 }
 0x18c   : > { %17845 = vmatmul.mubr.msk.bf16.vlgmr.msra.gmra.mrb[24].mxu0 %vm721_vm3, %v21118_v49  ;;  %17847 = vmatmul.mubr.msk.bf16.vlgmr.msra.gmra.mrb[24].mxu1 %vm721_vm3, %v21118_v49 }
 0x18d   : > { %1397 = vmatpush1.bf16.msra.mxu0 %v811_v16  ;;  %1438 = vmatpush1.bf16.msra.mxu1 %v817_v32 }
 0x18e   : > { %1428 = vmatprep.mubr.bf16.mxu0 %v20811_v27  ;;  %1469 = vmatprep.mubr.bf16.mxu1 %v20811_v27  ;;  %v21212_v27 = vsub.s32 3, %v21098_v11 }
 0x190   : > { %v415_v43 = vrot.slane %v392_v36, %v21212_v27  ;;  %v447_v36 = vrot.slane %v393_v22, %v21212_v27 }
 0x194   : > { %17849 = vmatmul.mubr.msk.bf16.vlgmr.msra.gmra.mrb[28].mxu0 %vm721_vm3, %v21118_v49  ;;  %17851 = vmatmul.mubr.msk.bf16.vlgmr.msra.gmra.mrb[28].mxu1 %vm721_vm3, %v21118_v49 }
 0x22f   : > { %v856_v44 = vpop.f32.mrb[0].mxu0  ;;  %v897_v45 = vpop.f32.mrb[0].mxu1 }
 0x230   : > { %v857_v47 = vadd.f32 %v856_v44, %v403_v40  ;;  %v898_v48 = vadd.f32 %v897_v45, %v411_v41  ;;  %v858_v49 = vpop.f32.mrb[1].mxu0  ;;  %v899_v50 = vpop.f32.mrb[1].mxu1 }
 0x231   : > { %v859_v53 = vadd.f32 %v858_v49, %v407_v42  ;;  %v900_v54 = vadd.f32 %v899_v50, %v415_v43  ;;  %v860_v55 = vpop.f32.mrb[2].mxu0  ;;  %v901_v56 = vpop.f32.mrb[2].mxu1 }
 0x232   : > { %v1478_v59 = vmax.f32 %v857_v47, 0.0  ;;  %v1480_v60 = vmax.f32 %v898_v48, 0.0  ;;  %v861_v61 = vpop.f32.mrb[3].mxu0  ;;  %v902_v62 = vpop.f32.mrb[3].mxu1 }
 0x233   : > { %v1479_v63 = vmax.f32 %v859_v53, 0.0  ;;  %v1481_v1 = vmax.f32 %v900_v54, 0.0 }
 0x235   : > { %v17852_v4 = vpack.c.bf16 %v1479_v63, %v1478_v59  ;;  %v17853_v5 = vpack.c.bf16 %v1481_v1, %v1480_v60  ;;  %v451_v63 = vrot.slane %v393_v22, %v21219_v51  ;;  %v459_v1 = vrot.slane %v393_v22, %v21222_v52 }
 0x237   : > { %v1584_v8 = vrot.slane %v17852_v4, %v21231_v0  ;;  %v1591_v9 = vrot.slane %v17853_v5, %v21231_v0  ;;  %v938_v10 = vpop.f32.mrb[4].mxu0  ;;  %v979_v12 = vpop.f32.mrb[4].mxu1 }
 0x238   : > { %v939_v13 = vadd.f32 %v938_v10, %v419_v2  ;;  %v980_v11 = vadd.f32 %v979_v12, %v427_v3  ;;  %v940_v14 = vpop.f32.mrb[5].mxu0  ;;  %v981_v15 = vpop.f32.mrb[5].mxu1  ;;  %v455_v2 = vrot.slane %v393_v22, %v21225_v57 }
 0x239   : > { %v1606_v17 = vcombine.low %v1584_v8, %v1591_v9  ;;  %v941_v18 = vadd.f32 %v940_v14, %v423_v6  ;;  %v982_v19 = vadd.f32 %v981_v15, %v431_v7  ;;  %v942_v20 = vpop.f32.mrb[6].mxu0  ;;  %v983_v21 = vpop.f32.mrb[6].mxu1  ;;  %v463_v6 = vrot.slane %v393_v22, %v21228_v58 }
 0x23a   : > { %v1482_v23 = vmax.f32 %v939_v13, 0.0  ;;  %v1484_v24 = vmax.f32 %v980_v11, 0.0  ;;  %v943_v25 = vpop.f32.mrb[7].mxu0  ;;  %v984_v26 = vpop.f32.mrb[7].mxu1  ;;  %v394_v21 = vld [vmem:[#allocation9 + $0x10] sm:$0xff] }
 0x23b   : > { %v1483_v28 = vmax.f32 %v941_v18, 0.0  ;;  %v1485_v29 = vmax.f32 %v982_v19, 0.0  ;;  %v1614_v59 = vrot.slane %v1606_v17, %v21231_v0 }
 0x23d   : > { %v17854_v16 = vpack.c.bf16 %v1483_v28, %v1482_v23  ;;  %v17855_v32 = vpack.c.bf16 %v1485_v29, %v1484_v24  ;;  %v467_v29 = vrot.slane %v394_v21, %v21203_v34 }
 0x23f   : > { %v1598_v38 = vrot.slane %v17854_v16, %v21231_v0  ;;  %v1605_v39 = vrot.slane %v17855_v32, %v21231_v0  ;;  %v1020_v40 = vpop.f32.mrb[8].mxu0  ;;  %v1061_v41 = vpop.f32.mrb[8].mxu1  ;;  %v471_v32 = vrot.slane %v394_v21, %v21209_v37 }
 0x240   : > { %v1021_v42 = vadd.f32 %v1020_v40, %v435_v30  ;;  %v1062_v43 = vadd.f32 %v1061_v41, %v443_v31  ;;  %v1022_v44 = vpop.f32.mrb[9].mxu0  ;;  %v1063_v45 = vpop.f32.mrb[9].mxu1  ;;  %v475_v30 = vrot.slane %v394_v21, %v21206_v35 }
 0x241   : > { %v1607_v46 = vcombine.low %v1598_v38, %v1605_v39  ;;  %v1023_v47 = vadd.f32 %v1022_v44, %v439_v33  ;;  %v1064_v48 = vadd.f32 %v1063_v45, %v447_v36  ;;  %v1024_v49 = vpop.f32.mrb[10].mxu0  ;;  %v1065_v50 = vpop.f32.mrb[10].mxu1  ;;  %v479_v33 = vrot.slane %v394_v21, %v21212_v27 }
 0x242   : > { %v1486_v53 = vmax.f32 %v1021_v42, 0.0  ;;  %v1488_v54 = vmax.f32 %v1062_v43, 0.0  ;;  %v1025_v55 = vpop.f32.mrb[11].mxu0  ;;  %v1066_v56 = vpop.f32.mrb[11].mxu1 }
 0x243   : > { %v1621_v60 = vrot.slane %v1607_v46, %v21231_v0  ;;  %v1487_v61 = vmax.f32 %v1023_v47, 0.0  ;;  %v1489_v62 = vmax.f32 %v1064_v48, 0.0 }
 0x245   : > { %v1622_v3 = vcombine.low %v1614_v59, %v1621_v60  ;;  %v17856_v4 = vpack.c.bf16 %v1487_v61, %v1486_v53  ;;  %v17857_v5 = vpack.c.bf16 %v1489_v62, %v1488_v54  ;;  %v483_v62 = vrot.slane %v394_v21, %v21219_v51 }
 0x247   : > { %1774 = vst [vmem:[#allocation2] sm:$0xff] %v1622_v3  ;;  %v1633_v7 = vrot.slane %v17856_v4, %v21231_v0  ;;  %v1640_v8 = vrot.slane %v17857_v5, %v21231_v0  ;;  %v1102_v9 = vpop.f32.mrb[12].mxu0  ;;  %v1143_v10 = vpop.f32.mrb[12].mxu1  ;;  %v495_v5 = vrot.slane %v394_v21, %v21228_v58 }
 0x248   : > { %v1103_v12 = vadd.f32 %v1102_v9, %v451_v63  ;;  %v1144_v13 = vadd.f32 %v1143_v10, %v459_v1  ;;  %v1104_v11 = vpop.f32.mrb[13].mxu0  ;;  %v1145_v14 = vpop.f32.mrb[13].mxu1  ;;  %v491_v63 = vrot.slane %v394_v21, %v21222_v52  ;;  %v487_v1 = vrot.slane %v394_v21, %v21225_v57 }
 0x249   : > { %v1655_v15 = vcombine.low %v1633_v7, %v1640_v8  ;;  %v1105_v17 = vadd.f32 %v1104_v11, %v455_v2  ;;  %v1146_v18 = vadd.f32 %v1145_v14, %v463_v6  ;;  %v1106_v19 = vpop.f32.mrb[14].mxu0  ;;  %v1147_v20 = vpop.f32.mrb[14].mxu1 }
 0x24a   : > { %v1490_v23 = vmax.f32 %v1103_v12, 0.0  ;;  %v1492_v24 = vmax.f32 %v1144_v13, 0.0  ;;  %v1107_v22 = vpop.f32.mrb[15].mxu0  ;;  %v1148_v25 = vpop.f32.mrb[15].mxu1  ;;  %v395_v20 = vld [vmem:[#allocation9 + $0x18] sm:$0xff] }
 0x24b   : > { %v1491_v26 = vmax.f32 %v1105_v17, 0.0  ;;  %v1493_v28 = vmax.f32 %v1146_v18, 0.0  ;;  %v1663_v56 = vrot.slane %v1655_v15, %v21231_v0 }
 0x24d   : > { %v17858_v31 = vpack.c.bf16 %v1491_v26, %v1490_v23  ;;  %v17859_v16 = vpack.c.bf16 %v1493_v28, %v1492_v24  ;;  %v499_v28 = vrot.slane %v395_v20, %v21203_v34 }
 0x24f   : > { %v1647_v36 = vrot.slane %v17858_v31, %v21231_v0  ;;  %v1654_v38 = vrot.slane %v17859_v16, %v21231_v0  ;;  %v1184_v39 = vpop.f32.mrb[16].mxu0  ;;  %v1225_v40 = vpop.f32.mrb[16].mxu1  ;;  %v503_v16 = vrot.slane %v395_v20, %v21209_v37 }
 0x250   : > { %v1185_v41 = vadd.f32 %v1184_v39, %v467_v29  ;;  %v1226_v42 = vadd.f32 %v1225_v40, %v475_v30  ;;  %v1186_v43 = vpop.f32.mrb[17].mxu0  ;;  %v1227_v44 = vpop.f32.mrb[17].mxu1  ;;  %v507_v29 = vrot.slane %v395_v20, %v21206_v35 }
 0x251   : > { %v1656_v45 = vcombine.low %v1647_v36, %v1654_v38  ;;  %v1187_v46 = vadd.f32 %v1186_v43, %v471_v32  ;;  %v1228_v47 = vadd.f32 %v1227_v44, %v479_v33  ;;  %v1188_v48 = vpop.f32.mrb[18].mxu0  ;;  %v1229_v49 = vpop.f32.mrb[18].mxu1  ;;  %v511_v32 = vrot.slane %v395_v20, %v21212_v27 }
 0x252   : > { %v1494_v50 = vmax.f32 %v1185_v41, 0.0  ;;  %v1496_v53 = vmax.f32 %v1226_v42, 0.0  ;;  %v1189_v54 = vpop.f32.mrb[19].mxu0  ;;  %v1230_v55 = vpop.f32.mrb[19].mxu1 }
 0x253   : > { %v1670_v59 = vrot.slane %v1656_v45, %v21231_v0  ;;  %v1495_v60 = vmax.f32 %v1187_v46, 0.0  ;;  %v1497_v61 = vmax.f32 %v1228_v47, 0.0  ;;  %v515_v55 = vrot.slane %v395_v20, %v21219_v51 }
 0x255   : > { %v1671_v2 = vcombine.low %v1663_v56, %v1670_v59  ;;  %v17860_v3 = vpack.c.bf16 %v1495_v60, %v1494_v50  ;;  %v17861_v4 = vpack.c.bf16 %v1497_v61, %v1496_v53  ;;  %v523_v56 = vrot.slane %v395_v20, %v21222_v52 }
 0x256   : > { %v519_v59 = vrot.slane %v395_v20, %v21225_v57 }
 0x257   : > { %1775 = vst [vmem:[#allocation2 + $0x8] sm:$0xff] %v1671_v2  ;;  %v1682_v6 = vrot.slane %v17860_v3, %v21231_v0  ;;  %v1689_v7 = vrot.slane %v17861_v4, %v21231_v0  ;;  %v1266_v8 = vpop.f32.mrb[20].mxu0  ;;  %v1307_v9 = vpop.f32.mrb[20].mxu1 }
 0x258   : > { %v1267_v10 = vadd.f32 %v1266_v8, %v483_v62  ;;  %v1308_v12 = vadd.f32 %v1307_v9, %v491_v63  ;;  %v1268_v13 = vpop.f32.mrb[21].mxu0  ;;  %v1309_v11 = vpop.f32.mrb[21].mxu1  ;;  %v527_v63 = vrot.slane %v395_v20, %v21228_v58 }
 0x259   : > { %v1704_v14 = vcombine.low %v1682_v6, %v1689_v7  ;;  %v1269_v15 = vadd.f32 %v1268_v13, %v487_v1  ;;  %v1310_v17 = vadd.f32 %v1309_v11, %v495_v5  ;;  %v1270_v18 = vpop.f32.mrb[22].mxu0  ;;  %v1311_v19 = vpop.f32.mrb[22].mxu1 }
 0x25a   : > { %v1498_v23 = vmax.f32 %v1267_v10, 0.0  ;;  %v1500_v24 = vmax.f32 %v1308_v12, 0.0  ;;  %v1271_v21 = vpop.f32.mrb[23].mxu0  ;;  %v1312_v22 = vpop.f32.mrb[23].mxu1 }
 0x25b   : > { %v1499_v25 = vmax.f32 %v1269_v15, 0.0  ;;  %v1501_v26 = vmax.f32 %v1310_v17, 0.0  ;;  %v1712_v27 = vrot.slane %v1704_v14, %v21231_v0 }
 0x25d   : > { %v17862_v30 = vpack.c.bf16 %v1499_v25, %v1498_v23  ;;  %v17863_v31 = vpack.c.bf16 %v1501_v26, %v1500_v24 }
 0x25f   : > { %v1696_v33 = vrot.slane %v17862_v30, %v21231_v0  ;;  %v1703_v36 = vrot.slane %v17863_v31, %v21231_v0  ;;  %v1348_v38 = vpop.f32.mrb[24].mxu0  ;;  %v1389_v39 = vpop.f32.mrb[24].mxu1 }
 0x260   : > { %v1349_v40 = vadd.f32 %v1348_v38, %v499_v28  ;;  %v1390_v41 = vadd.f32 %v1389_v39, %v507_v29  ;;  %v1350_v42 = vpop.f32.mrb[25].mxu0  ;;  %v1391_v43 = vpop.f32.mrb[25].mxu1 }
 0x261   : > { %v1705_v44 = vcombine.low %v1696_v33, %v1703_v36  ;;  %v1351_v34 = vadd.f32 %v1350_v42, %v503_v16  ;;  %v1392_v45 = vadd.f32 %v1391_v43, %v511_v32  ;;  %v1352_v35 = vpop.f32.mrb[26].mxu0  ;;  %v1393_v46 = vpop.f32.mrb[26].mxu1 }
 0x262   : > { %v1502_v47 = vmax.f32 %v1349_v40, 0.0  ;;  %v1504_v48 = vmax.f32 %v1390_v41, 0.0  ;;  %v1353_v37 = vpop.f32.mrb[27].mxu0  ;;  %v1394_v49 = vpop.f32.mrb[27].mxu1 }
 0x263   : > { %v1719_v50 = vrot.slane %v1705_v44, %v21231_v0  ;;  %v1503_v53 = vmax.f32 %v1351_v34, 0.0  ;;  %v1505_v54 = vmax.f32 %v1392_v45, 0.0 }
 0x265   : > { %v1720_v60 = vcombine.low %v1712_v27, %v1719_v50  ;;  %v17864_v61 = vpack.c.bf16 %v1503_v53, %v1502_v47  ;;  %v17865_v62 = vpack.c.bf16 %v1505_v54, %v1504_v48 }
 0x267   : > { %1776 = vst [vmem:[#allocation2 + $0x10] sm:$0xff] %v1720_v60  ;;  %v1731_v1 = vrot.slane %v17864_v61, %v21231_v0  ;;  %v1738_v2 = vrot.slane %v17865_v62, %v21231_v0  ;;  %v1430_v3 = vpop.f32.mrb[28].mxu0  ;;  %v1471_v4 = vpop.f32.mrb[28].mxu1 }
 0x268   : > { %v1431_v5 = vadd.f32 %v1430_v3, %v515_v55  ;;  %v1472_v6 = vadd.f32 %v1471_v4, %v523_v56  ;;  %v1432_v7 = vpop.f32.mrb[29].mxu0  ;;  %v1473_v51 = vpop.f32.mrb[29].mxu1 }
 0x269   : > { %v1753_v8 = vcombine.low %v1731_v1, %v1738_v2  ;;  %v1433_v52 = vadd.f32 %v1432_v7, %v519_v59  ;;  %v1474_v9 = vadd.f32 %v1473_v51, %v527_v63  ;;  %v1434_v57 = vpop.f32.mrb[30].mxu0  ;;  %v1475_v10 = vpop.f32.mrb[30].mxu1 }
 0x26a   : > { %v1506_v12 = vmax.f32 %v1431_v5, 0.0  ;;  %v1508_v13 = vmax.f32 %v1472_v6, 0.0  ;;  %v1435_v11 = vpop.f32.mrb[31].mxu0  ;;  %v1476_v58 = vpop.f32.mrb[31].mxu1 }
 0x26b   : > { %v1507_v14 = vmax.f32 %v1433_v52, 0.0  ;;  %v1509_v15 = vmax.f32 %v1474_v9, 0.0  ;;  %v1761_v24 = vrot.slane %v1753_v8, %v21231_v0 }
 0x26d   : > { %v17866_v17 = vpack.c.bf16 %v1507_v14, %v1506_v12  ;;  %v17867_v18 = vpack.c.bf16 %v1509_v15, %v1508_v13 }
 0x26f   : > { %v1745_v19 = vrot.slane %v17866_v17, %v21231_v0  ;;  %v1752_v20 = vrot.slane %v17867_v18, %v21231_v0 }
 0x271   : > { %v1754_v23 = vcombine.low %v1745_v19, %v1752_v20 }
 0x273   : > { %v1768_v21 = vrot.slane %v1754_v23, %v21231_v0 }
 0x275   : > { %v1769_v22 = vcombine.low %v1761_v24, %v1768_v21 }
 0x277   : > { %1777 = vst [vmem:[#allocation2 + $0x18] sm:$0xff] %v1769_v22 }
 0x278 PF: > { %v1783_v25 = vld [vmem:[%s21083_s17] sm:$0xff]  ;;  %v1784_v28 = vld [vmem:[%s21083_s17 + $0x8] sm:$0xff]  ;;  %v3835_v59 = vlaneseq  ;;  %v20814_v60 = vmov 1966171168   ;;  %s19989_s28 = sshll.u32 %s20787_s24, 9  ;;  %s17868_s8 = sshll.u32 %s20787_s24, 3 }
 0x279   : > { %v1787_v26 = vld [vmem:[%s21083_s17 + $0x20] sm:$0xff]  ;;  %v1788_v0 = vld [vmem:[%s21083_s17 + $0x28] sm:$0xff]  ;;  %v3881_v61 = vunpack.c.l.s4 %v20814_v60  ;;  %s23528_s13 = scalar_lea.vmem [#allocation13], %s19989_s28  ;;  %s3832_s14 = scalar_lea.vmem [#allocation12], %s17868_s8 }
 0x27a   : > { %v17870_v29 = vcombine.high %v1783_v25, %v1787_v26  ;;  %v17869_v30 = vcombine.low %v1783_v25, %v1787_v26  ;;  %v1791_v31 = vld [vmem:[%s21083_s17 + $0x40] sm:$0xff]  ;;  %v17872_v32 = vcombine.high %v1784_v28, %v1788_v0  ;;  %v17871_v33 = vcombine.low %v1784_v28, %v1788_v0  ;;  %v1792_v38 = vld [vmem:[%s21083_s17 + $0x48] sm:$0xff]  ;;  %p19983_p13 = scmp.ne.s32.totalorder %s20787_s24, 3 }
 0x27b   : > { %v1795_v16 = vld [vmem:[%s21083_s17 + $0x60] sm:$0xff]  ;;  %v1796_v39 = vld [vmem:[%s21083_s17 + $0x68] sm:$0xff]  ;;  %v21307_v7 = vshrl.u32 %v3835_v59, 7  ;;  %v3882_v51 = vunpack.c.0.s8 %v3881_v61 }
 0x27c   : > { %v17878_v36 = vcombine.high %v1791_v31, %v1795_v16  ;;  %v1799_v40 = vld [vmem:[%s21083_s17 + $0x80] sm:$0xff]  ;;  %14347 = vmatprep.subr.bf16.mxu0 %v17870_v29  ;;  %v17880_v41 = vcombine.high %v1792_v38, %v1796_v39  ;;  %v1800_v43 = vld [vmem:[%s21083_s17 + $0x88] sm:$0xff]  ;;  %15003 = vmatprep.subr.bf16.mxu1 %v17872_v32  ;;  %v17877_v34 = vcombine.low %v1791_v31, %v1795_v16 }
 0x27d   : > { %v1803_v42 = vld [vmem:[%s21083_s17 + $0xa0] sm:$0xff]  ;;  %v1804_v44 = vld [vmem:[%s21083_s17 + $0xa8] sm:$0xff]  ;;  %14348 = vmatpush1.bf16.msra.mxu0 %v17869_v30  ;;  %15004 = vmatpush1.bf16.msra.mxu1 %v17871_v33  ;;  %v17879_v45 = vcombine.low %v1792_v38, %v1796_v39  ;;  %v21314_v58 = vsub.s32 %v3882_v51, %v21307_v7 }
 0x27e   : > { %14349 = vmatprep.subr.bf16.mxu0 %v17878_v36  ;;  %v17886_v35 = vcombine.high %v1799_v40, %v1803_v42  ;;  %15005 = vmatprep.subr.bf16.mxu1 %v17880_v41  ;;  %v17888_v46 = vcombine.high %v1800_v43, %v1804_v44  ;;  %v1807_v47 = vld [vmem:[%s21083_s17 + $0xc0] sm:$0xff]  ;;  %v1808_v37 = vld [vmem:[%s21083_s17 + $0xc8] sm:$0xff]  ;;  %v17885_v27 = vcombine.low %v1799_v40, %v1803_v42 }
 0x27f   : > { %v1811_v48 = vld [vmem:[%s21083_s17 + $0xe0] sm:$0xff]  ;;  %v1812_v49 = vld [vmem:[%s21083_s17 + $0xe8] sm:$0xff]  ;;  %v17887_v50 = vcombine.low %v1800_v43, %v1804_v44 }
 0x280   : > { %v17894_v53 = vcombine.high %v1807_v47, %v1811_v48  ;;  %v17896_v54 = vcombine.high %v1808_v37, %v1812_v49  ;;  %v1815_v55 = vld [vmem:[%s21083_s17 + $0x100] sm:$0xff]  ;;  %v1816_v62 = vld [vmem:[%s21083_s17 + $0x108] sm:$0xff]  ;;  %v17893_v1 = vcombine.low %v1807_v47, %v1811_v48  ;;  %v17895_v2 = vcombine.low %v1808_v37, %v1812_v49 }
 0x281   : > { %14350 = vmatpush1.bf16.msra.mxu0 %v17877_v34  ;;  %15006 = vmatpush1.bf16.msra.mxu1 %v17879_v45  ;;  %v1819_v56 = vld [vmem:[%s21083_s17 + $0x120] sm:$0xff]  ;;  %v1820_v63 = vld [vmem:[%s21083_s17 + $0x128] sm:$0xff] }
 0x282   : > { %14351 = vmatprep.subr.bf16.mxu0 %v17886_v35  ;;  %15007 = vmatprep.subr.bf16.mxu1 %v17888_v46  ;;  %v17902_v3 = vcombine.high %v1815_v55, %v1819_v56  ;;  %v17904_v4 = vcombine.high %v1816_v62, %v1820_v63  ;;  %v1823_v5 = vld [vmem:[%s21083_s17 + $0x140] sm:$0xff]  ;;  %v1824_v8 = vld [vmem:[%s21083_s17 + $0x148] sm:$0xff]  ;;  %v17901_v9 = vcombine.low %v1815_v55, %v1819_v56 }
 0x283   : > { %v1827_v6 = vld [vmem:[%s21083_s17 + $0x160] sm:$0xff]  ;;  %v1828_v52 = vld [vmem:[%s21083_s17 + $0x168] sm:$0xff]  ;;  %v17903_v57 = vcombine.low %v1816_v62, %v1820_v63 }
 0x284   : > { %v17910_v10 = vcombine.high %v1823_v5, %v1827_v6  ;;  %v17912_v12 = vcombine.high %v1824_v8, %v1828_v52  ;;  %v1831_v13 = vld [vmem:[%s21083_s17 + $0x180] sm:$0xff]  ;;  %v1832_v14 = vld [vmem:[%s21083_s17 + $0x188] sm:$0xff]  ;;  %v17909_v17 = vcombine.low %v1823_v5, %v1827_v6  ;;  %v17911_v18 = vcombine.low %v1824_v8, %v1828_v52 }
 0x285   : > { %14352 = vmatpush1.bf16.msra.mxu0 %v17885_v27  ;;  %15008 = vmatpush1.bf16.msra.mxu1 %v17887_v50  ;;  %v1835_v11 = vld [vmem:[%s21083_s17 + $0x1a0] sm:$0xff]  ;;  %v1836_v15 = vld [vmem:[%s21083_s17 + $0x1a8] sm:$0xff] }
 0x286   : > { %14353 = vmatprep.subr.bf16.mxu0 %v17894_v53  ;;  %15009 = vmatprep.subr.bf16.mxu1 %v17896_v54  ;;  %v17918_v19 = vcombine.high %v1831_v13, %v1835_v11  ;;  %v21318_v20 = vld [vmem:[#allocation2] sm:$0xff]  ;;  %v17920_v23 = vcombine.high %v1832_v14, %v1836_v15  ;;  %v1839_v24 = vld [vmem:[%s21083_s17 + $0x1c0] sm:$0xff]  ;;  %v17917_v28 = vcombine.low %v1831_v13, %v1835_v11 }
 0x287   : > { %v1843_v21 = vld [vmem:[%s21083_s17 + $0x1e0] sm:$0xff]  ;;  %v21324_v22 = vrot.slane %v21318_v20, %v21314_v58  ;;  %v1840_v25 = vld [vmem:[%s21083_s17 + $0x1c8] sm:$0xff]  ;;  %v17919_v0 = vcombine.low %v1832_v14, %v1836_v15 }
 0x288   : > { %v1844_v26 = vld [vmem:[%s21083_s17 + $0x1e8] sm:$0xff]  ;;  %v17926_v30 = vcombine.high %v1839_v24, %v1843_v21  ;;  %v1847_v16 = vld [vmem:[%s21083_s17 + $0x200] sm:$0xff]  ;;  %v17925_v39 = vcombine.low %v1839_v24, %v1843_v21 }
 0x289   : > { %14354 = vmatpush1.bf16.msra.mxu0 %v17893_v1  ;;  %15010 = vmatpush1.bf16.msra.mxu1 %v17895_v2  ;;  %v3894_v29 = vcombine.high %v21324_v22, %v21324_v22  ;;  %v17928_v31 = vcombine.high %v1840_v25, %v1844_v26  ;;  %v1851_v32 = vld [vmem:[%s21083_s17 + $0x220] sm:$0xff]  ;;  %v1848_v36 = vld [vmem:[%s21083_s17 + $0x208] sm:$0xff]  ;;  %v17927_v40 = vcombine.low %v1840_v25, %v1844_v26 }
 0x28a   : > { %14355 = vmatprep.subr.bf16.mxu0 %v17902_v3  ;;  %15011 = vmatprep.subr.bf16.mxu1 %v17904_v4  ;;  %v1852_v38 = vld [vmem:[%s21083_s17 + $0x228] sm:$0xff]  ;;  %v17934_v41 = vcombine.high %v1847_v16, %v1851_v32  ;;  %v1855_v43 = vld [vmem:[%s21083_s17 + $0x240] sm:$0xff]  ;;  %v17933_v35 = vcombine.low %v1847_v16, %v1851_v32 }
 0x28b   : > { %v21333_v33 = vrot.slane %v3894_v29, %v21314_v58  ;;  %v17936_v42 = vcombine.high %v1848_v36, %v1852_v38  ;;  %v1859_v44 = vld [vmem:[%s21083_s17 + $0x260] sm:$0xff]  ;;  %v1856_v34 = vld [vmem:[%s21083_s17 + $0x248] sm:$0xff]  ;;  %v17935_v46 = vcombine.low %v1848_v36, %v1852_v38 }
 0x28c   : > { %v1860_v45 = vld [vmem:[%s21083_s17 + $0x268] sm:$0xff]  ;;  %v17942_v47 = vcombine.high %v1855_v43, %v1859_v44  ;;  %v1863_v37 = vld [vmem:[%s21083_s17 + $0x280] sm:$0xff]  ;;  %v17941_v53 = vcombine.low %v1855_v43, %v1859_v44 }
 0x28d   : > { %14356 = vmatpush1.bf16.msra.mxu0 %v17901_v9  ;;  %15012 = vmatpush1.bf16.msra.mxu1 %v17903_v57  ;;  %v17944_v48 = vcombine.high %v1856_v34, %v1860_v45  ;;  %v1867_v49 = vld [vmem:[%s21083_s17 + $0x2a0] sm:$0xff]  ;;  %v1864_v27 = vld [vmem:[%s21083_s17 + $0x288] sm:$0xff]  ;;  %v17943_v54 = vcombine.low %v1856_v34, %v1860_v45 }
 0x28e   : > { %14357 = vmatprep.subr.bf16.mxu0 %v17910_v10  ;;  %15013 = vmatprep.subr.bf16.mxu1 %v17912_v12  ;;  %v1868_v50 = vld [vmem:[%s21083_s17 + $0x2a8] sm:$0xff]  ;;  %v17950_v55 = vcombine.high %v1863_v37, %v1867_v49  ;;  %v1871_v59 = vld [vmem:[%s21083_s17 + $0x2c0] sm:$0xff]  ;;  %v17949_v63 = vcombine.low %v1863_v37, %v1867_v49 }
 0x28f   : > { %14379 = vmatprep.mubr.bf16.mxu0 %v21333_v33  ;;  %15035 = vmatprep.mubr.bf16.mxu1 %v21333_v33  ;;  %v17952_v56 = vcombine.high %v1864_v27, %v1868_v50  ;;  %v1875_v60 = vld [vmem:[%s21083_s17 + $0x2e0] sm:$0xff]  ;;  %v1872_v61 = vld [vmem:[%s21083_s17 + $0x2c8] sm:$0xff]  ;;  %v17951_v1 = vcombine.low %v1864_v27, %v1868_v50 }
 0x290   : > { %v1876_v62 = vld [vmem:[%s21083_s17 + $0x2e8] sm:$0xff]  ;;  %v17958_v2 = vcombine.high %v1871_v59, %v1875_v60  ;;  %v1879_v4 = vld [vmem:[%s21083_s17 + $0x300] sm:$0xff]  ;;  %v17957_v8 = vcombine.low %v1871_v59, %v1875_v60  ;;  %v21383_v59 = vcombine.high %v21333_v33, %v21333_v33 }
 0x291   : > { %14358 = vmatpush1.bf16.msra.mxu0 %v17909_v17  ;;  %15014 = vmatpush1.bf16.msra.mxu1 %v17911_v18  ;;  %v17960_v3 = vcombine.high %v1872_v61, %v1876_v62  ;;  %v1883_v5 = vld [vmem:[%s21083_s17 + $0x320] sm:$0xff]  ;;  %v1880_v6 = vld [vmem:[%s21083_s17 + $0x308] sm:$0xff]  ;;  %v17959_v52 = vcombine.low %v1872_v61, %v1876_v62 }
 0x292   : > { %14359 = vmatprep.subr.bf16.mxu0 %v17918_v19  ;;  %15015 = vmatprep.subr.bf16.mxu1 %v17920_v23  ;;  %v1884_v51 = vld [vmem:[%s21083_s17 + $0x328] sm:$0xff]  ;;  %v17966_v9 = vcombine.high %v1879_v4, %v1883_v5  ;;  %v1887_v10 = vld [vmem:[%s21083_s17 + $0x340] sm:$0xff]  ;;  %v17965_v14 = vcombine.low %v1879_v4, %v1883_v5 }
 0x293   : > { %v17968_v57 = vcombine.high %v1880_v6, %v1884_v51  ;;  %v1891_v12 = vld [vmem:[%s21083_s17 + $0x360] sm:$0xff]  ;;  %v1888_v13 = vld [vmem:[%s21083_s17 + $0x348] sm:$0xff]  ;;  %v17967_v15 = vcombine.low %v1880_v6, %v1884_v51 }
 0x294   : > { %v1892_v11 = vld [vmem:[%s21083_s17 + $0x368] sm:$0xff]  ;;  %v17974_v17 = vcombine.high %v1887_v10, %v1891_v12  ;;  %v1895_v19 = vld [vmem:[%s21083_s17 + $0x380] sm:$0xff]  ;;  %v17973_v25 = vcombine.low %v1887_v10, %v1891_v12 }
 0x295   : > { %14360 = vmatpush1.bf16.msra.mxu0 %v17917_v28  ;;  %15016 = vmatpush1.bf16.msra.mxu1 %v17919_v0  ;;  %v17976_v18 = vcombine.high %v1888_v13, %v1892_v11  ;;  %v1899_v23 = vld [vmem:[%s21083_s17 + $0x3a0] sm:$0xff]  ;;  %v1896_v24 = vld [vmem:[%s21083_s17 + $0x388] sm:$0xff]  ;;  %v17975_v26 = vcombine.low %v1888_v13, %v1892_v11 }
 0x296   : > { %14361 = vmatprep.subr.bf16.mxu0 %v17926_v30  ;;  %15017 = vmatprep.subr.bf16.mxu1 %v17928_v31  ;;  %v1900_v21 = vld [vmem:[%s21083_s17 + $0x3a8] sm:$0xff]  ;;  %v17982_v28 = vcombine.high %v1895_v19, %v1899_v23  ;;  %v1903_v0 = vld [vmem:[%s21083_s17 + $0x3c0] sm:$0xff]  ;;  %v17981_v32 = vcombine.low %v1895_v19, %v1899_v23 }
 0x297   : > { %v17984_v29 = vcombine.high %v1896_v24, %v1900_v21  ;;  %v1907_v30 = vld [vmem:[%s21083_s17 + $0x3e0] sm:$0xff]  ;;  %v1904_v31 = vld [vmem:[%s21083_s17 + $0x3c8] sm:$0xff]  ;;  %v17983_v36 = vcombine.low %v1896_v24, %v1900_v21 }
 0x298   : > { %v1908_v16 = vld [vmem:[%s21083_s17 + $0x3e8] sm:$0xff]  ;;  %v17990_v38 = vcombine.high %v1903_v0, %v1907_v30  ;;  %v17989_v44 = vcombine.low %v1903_v0, %v1907_v30 }
 0x299   : > { %14362 = vmatpush1.bf16.msra.mxu0 %v17925_v39  ;;  %15018 = vmatpush1.bf16.msra.mxu1 %v17927_v40  ;;  %v17992_v39 = vcombine.high %v1904_v31, %v1908_v16  ;;  %v1911_v40 = vld [vmem:[%s21083_s17 + $0x400] sm:$0xff]  ;;  %v1916_v43 = vld [vmem:[%s21083_s17 + $0x428] sm:$0xff]  ;;  %v17991_v34 = vcombine.low %v1904_v31, %v1908_v16 }
 0x29a   : > { %14363 = vmatprep.subr.bf16.mxu0 %v17934_v41  ;;  %15019 = vmatprep.subr.bf16.mxu1 %v17936_v42  ;;  %v1915_v41 = vld [vmem:[%s21083_s17 + $0x420] sm:$0xff]  ;;  %v1912_v42 = vld [vmem:[%s21083_s17 + $0x408] sm:$0xff] }
 0x29b   : > { %v17998_v45 = vcombine.high %v1911_v40, %v1915_v41  ;;  %v1920_v37 = vld [vmem:[%s21083_s17 + $0x448] sm:$0xff]  ;;  %v17997_v27 = vcombine.low %v1911_v40, %v1915_v41  ;;  %v17999_v50 = vcombine.low %v1912_v42, %v1916_v43 }
 0x29c   : > { %v1924_v49 = vld [vmem:[%s21083_s17 + $0x468] sm:$0xff] }
 0x29d   : > { %14364 = vmatpush1.bf16.msra.mxu0 %v17933_v35  ;;  %15020 = vmatpush1.bf16.msra.mxu1 %v17935_v46  ;;  %v18000_v35 = vcombine.high %v1912_v42, %v1916_v43  ;;  %v1919_v46 = vld [vmem:[%s21083_s17 + $0x440] sm:$0xff]  ;;  %v1932_v60 = vld [vmem:[%s21083_s17 + $0x4a8] sm:$0xff]  ;;  %v18007_v62 = vcombine.low %v1920_v37, %v1924_v49 }
 0x29e   : > { %14365 = vmatprep.subr.bf16.mxu0 %v17942_v47  ;;  %15021 = vmatprep.subr.bf16.mxu1 %v17944_v48  ;;  %v1923_v47 = vld [vmem:[%s21083_s17 + $0x460] sm:$0xff]  ;;  %v21375_v48 = vrot.slane %v21324_v22, %v21314_v58  ;;  %v1928_v22 = vld [vmem:[%s21083_s17 + $0x488] sm:$0xff] }
 0x29f   : > { %v18005_v61 = vcombine.low %v1919_v46, %v1923_v47  ;;  %v1936_v4 = vld [vmem:[%s21083_s17 + $0x4c8] sm:$0xff]  ;;  %v18015_v51 = vcombine.low %v1928_v22, %v1932_v60 }
 0x2a0   : > { %v1940_v5 = vld [vmem:[%s21083_s17 + $0x4e8] sm:$0xff] }
 0x2a1   : > { %14366 = vmatpush1.bf16.msra.mxu0 %v17941_v53  ;;  %15022 = vmatpush1.bf16.msra.mxu1 %v17943_v54  ;;  %v18006_v53 = vcombine.high %v1919_v46, %v1923_v47  ;;  %v18008_v54 = vcombine.high %v1920_v37, %v1924_v49  ;;  %v1944_v10 = vld [vmem:[%s21083_s17 + $0x508] sm:$0xff]  ;;  %v18023_v11 = vcombine.low %v1936_v4, %v1940_v5 }
 0x2a2   : > { %14367 = vmatprep.subr.bf16.mxu0 %v17950_v55  ;;  %15023 = vmatprep.subr.bf16.mxu1 %v17952_v56  ;;  %v1927_v55 = vld [vmem:[%s21083_s17 + $0x480] sm:$0xff]  ;;  %v1948_v12 = vld [vmem:[%s21083_s17 + $0x528] sm:$0xff] }
 0x2a3   : > { %v1931_v56 = vld [vmem:[%s21083_s17 + $0x4a0] sm:$0xff]  ;;  %v1952_v19 = vld [vmem:[%s21083_s17 + $0x548] sm:$0xff]  ;;  %v18031_v21 = vcombine.low %v1944_v10, %v1948_v12 }
 0x2a4   : > { %v18013_v6 = vcombine.low %v1927_v55, %v1931_v56  ;;  %v1956_v23 = vld [vmem:[%s21083_s17 + $0x568] sm:$0xff] }
 0x2a5   : > { %14368 = vmatpush1.bf16.msra.mxu0 %v17949_v63  ;;  %15024 = vmatpush1.bf16.msra.mxu1 %v17951_v1  ;;  %v18014_v63 = vcombine.high %v1927_v55, %v1931_v56  ;;  %v18016_v1 = vcombine.high %v1928_v22, %v1932_v60  ;;  %v1960_v0 = vld [vmem:[%s21083_s17 + $0x588] sm:$0xff]  ;;  %v18039_v16 = vcombine.low %v1952_v19, %v1956_v23 }
 0x2a6   : > { %14369 = vmatprep.subr.bf16.mxu0 %v17958_v2  ;;  %15025 = vmatprep.subr.bf16.mxu1 %v17960_v3  ;;  %v1935_v2 = vld [vmem:[%s21083_s17 + $0x4c0] sm:$0xff]  ;;  %v1964_v30 = vld [vmem:[%s21083_s17 + $0x5a8] sm:$0xff] }
 0x2a7   : > { %v1939_v3 = vld [vmem:[%s21083_s17 + $0x4e0] sm:$0xff]  ;;  %v1968_v40 = vld [vmem:[%s21083_s17 + $0x5c8] sm:$0xff]  ;;  %v18047_v43 = vcombine.low %v1960_v0, %v1964_v30 }
 0x2a8   : > { %v18021_v13 = vcombine.low %v1935_v2, %v1939_v3  ;;  %v1972_v41 = vld [vmem:[%s21083_s17 + $0x5e8] sm:$0xff] }
 0x2a9   : > { %14370 = vmatpush1.bf16.msra.mxu0 %v17957_v8  ;;  %15026 = vmatpush1.bf16.msra.mxu1 %v17959_v52  ;;  %v18022_v8 = vcombine.high %v1935_v2, %v1939_v3  ;;  %v18024_v52 = vcombine.high %v1936_v4, %v1940_v5  ;;  %v1976_v46 = vld [vmem:[%s21083_s17 + $0x608] sm:$0xff]  ;;  %v18055_v49 = vcombine.low %v1968_v40, %v1972_v41 }
 0x2aa   : > { %14371 = vmatprep.subr.bf16.mxu0 %v17966_v9  ;;  %15027 = vmatprep.subr.bf16.mxu1 %v17968_v57  ;;  %v1943_v9 = vld [vmem:[%s21083_s17 + $0x500] sm:$0xff]  ;;  %v1980_v47 = vld [vmem:[%s21083_s17 + $0x628] sm:$0xff] }
 0x2ab   : > { %v1947_v57 = vld [vmem:[%s21083_s17 + $0x520] sm:$0xff]  ;;  %v1984_v55 = vld [vmem:[%s21083_s17 + $0x648] sm:$0xff]  ;;  %v18063_v60 = vcombine.low %v1976_v46, %v1980_v47 }
 0x2ac   : > { %v18029_v24 = vcombine.low %v1943_v9, %v1947_v57  ;;  %v1988_v56 = vld [vmem:[%s21083_s17 + $0x668] sm:$0xff] }
 0x2ad   : > { %14372 = vmatpush1.bf16.msra.mxu0 %v17965_v14  ;;  %15028 = vmatpush1.bf16.msra.mxu1 %v17967_v15  ;;  %v18030_v14 = vcombine.high %v1943_v9, %v1947_v57  ;;  %v18032_v15 = vcombine.high %v1944_v10, %v1948_v12  ;;  %v1992_v2 = vld [vmem:[%s21083_s17 + $0x688] sm:$0xff]  ;;  %v18071_v5 = vcombine.low %v1984_v55, %v1988_v56 }
 0x2ae   : > { %14373 = vmatprep.subr.bf16.mxu0 %v17974_v17  ;;  %15029 = vmatprep.subr.bf16.mxu1 %v17976_v18  ;;  %v1951_v17 = vld [vmem:[%s21083_s17 + $0x540] sm:$0xff]  ;;  %v1996_v3 = vld [vmem:[%s21083_s17 + $0x6a8] sm:$0xff] }
 0x2af   : > { %v1955_v18 = vld [vmem:[%s21083_s17 + $0x560] sm:$0xff]  ;;  %v2000_v9 = vld [vmem:[%s21083_s17 + $0x6c8] sm:$0xff]  ;;  %v18079_v12 = vcombine.low %v1992_v2, %v1996_v3 }
 0x2b0   : > { %v18037_v31 = vcombine.low %v1951_v17, %v1955_v18  ;;  %v2004_v57 = vld [vmem:[%s21083_s17 + $0x6e8] sm:$0xff] }
 0x2b1   : > { %14374 = vmatpush1.bf16.msra.mxu0 %v17973_v25  ;;  %15030 = vmatpush1.bf16.msra.mxu1 %v17975_v26  ;;  %v18038_v25 = vcombine.high %v1951_v17, %v1955_v18  ;;  %v18040_v26 = vcombine.high %v1952_v19, %v1956_v23  ;;  %v2008_v17 = vld [vmem:[%s21083_s17 + $0x708] sm:$0xff]  ;;  %v18087_v23 = vcombine.low %v2000_v9, %v2004_v57 }
 0x2b2   : > { %14375 = vmatprep.subr.bf16.mxu0 %v17982_v28  ;;  %15031 = vmatprep.subr.bf16.mxu1 %v17984_v29  ;;  %v1959_v28 = vld [vmem:[%s21083_s17 + $0x580] sm:$0xff]  ;;  %v2012_v18 = vld [vmem:[%s21083_s17 + $0x728] sm:$0xff] }
 0x2b3   : > { %v1963_v29 = vld [vmem:[%s21083_s17 + $0x5a0] sm:$0xff] }
 0x2b4   : > { %v18045_v42 = vcombine.low %v1959_v28, %v1963_v29 }
 0x2b5   : > { %14376 = vmatpush1.bf16.msra.mxu0 %v17981_v32  ;;  %15032 = vmatpush1.bf16.msra.mxu1 %v17983_v36  ;;  %v18046_v32 = vcombine.high %v1959_v28, %v1963_v29  ;;  %v18048_v36 = vcombine.high %v1960_v0, %v1964_v30  ;;  %v2016_v28 = vld [vmem:[%s21083_s17 + $0x748] sm:$0xff]  ;;  %v18095_v30 = vcombine.low %v2008_v17, %v2012_v18 }
 0x2b6   : > { %14377 = vmatprep.subr.bf16.mxu0 %v17990_v38  ;;  %15033 = vmatprep.subr.bf16.mxu1 %v17992_v39  ;;  %v1967_v38 = vld [vmem:[%s21083_s17 + $0x5c0] sm:$0xff]  ;;  %v2020_v29 = vld [vmem:[%s21083_s17 + $0x768] sm:$0xff] }
 0x2b7   : > { %v1971_v39 = vld [vmem:[%s21083_s17 + $0x5e0] sm:$0xff] }
 0x2b8   : > { %v18053_v37 = vcombine.low %v1967_v38, %v1971_v39 }
 0x2b9   : > { %14378 = vmatpush1.bf16.msra.mxu0 %v17989_v44  ;;  %15034 = vmatpush1.bf16.msra.mxu1 %v17991_v34  ;;  %v18054_v44 = vcombine.high %v1967_v38, %v1971_v39  ;;  %v18056_v34 = vcombine.high %v1968_v40, %v1972_v41  ;;  %v2024_v38 = vld [vmem:[%s21083_s17 + $0x788] sm:$0xff]  ;;  %v18103_v41 = vcombine.low %v2016_v28, %v2020_v29 }
 0x2ba   : > { %14388 = vmatprep.subr.bf16.mxu0 %v17998_v45  ;;  %15044 = vmatprep.subr.bf16.mxu1 %v18000_v35  ;;  %v1975_v45 = vld [vmem:[%s21083_s17 + $0x600] sm:$0xff]  ;;  %v2028_v39 = vld [vmem:[%s21083_s17 + $0x7a8] sm:$0xff] }
 0x2bb   : > { %v1979_v35 = vld [vmem:[%s21083_s17 + $0x620] sm:$0xff] }
 0x2bc   : > { %14380 = vmatmul.mubr.bf16.vlgmr.msra.gmra.mrb[0].mxu0 %v21375_v48  ;;  %15036 = vmatmul.mubr.bf16.vlgmr.msra.gmra.mrb[0].mxu1 %v21375_v48  ;;  %v18061_v22 = vcombine.low %v1975_v45, %v1979_v35 }
 0x2bd   : > { %14389 = vmatpush1.bf16.msra.mxu0 %v17997_v27  ;;  %15045 = vmatpush1.bf16.msra.mxu1 %v17999_v50  ;;  %v18062_v27 = vcombine.high %v1975_v45, %v1979_v35  ;;  %v18064_v50 = vcombine.high %v1976_v46, %v1980_v47  ;;  %v3879_v45 = vcombine.high %v21318_v20, %v21318_v20  ;;  %v2032_v35 = vld [vmem:[%s21083_s17 + $0x7c8] sm:$0xff] }
 0x2be   : > { %14390 = vmatprep.subr.bf16.mxu0 %v18006_v53  ;;  %15046 = vmatprep.subr.bf16.mxu1 %v18008_v54  ;;  %v1983_v53 = vld [vmem:[%s21083_s17 + $0x640] sm:$0xff]  ;;  %v2036_v46 = vld [vmem:[%s21083_s17 + $0x7e8] sm:$0xff] }
 0x2bf   : > { %14420 = vmatprep.mubr.bf16.mxu0 %v21383_v59  ;;  %15076 = vmatprep.mubr.bf16.mxu1 %v21383_v59  ;;  %v1987_v54 = vld [vmem:[%s21083_s17 + $0x660] sm:$0xff]  ;;  %v2040_v20 = vld [vmem:[%s21083_s17 + $0x808] sm:$0xff] }
 0x2c0   : > { %v18069_v4 = vcombine.low %v1983_v53, %v1987_v54 }
 0x2c1   : > { %14391 = vmatpush1.bf16.msra.mxu0 %v18005_v61  ;;  %15047 = vmatpush1.bf16.msra.mxu1 %v18007_v62  ;;  %v18070_v61 = vcombine.high %v1983_v53, %v1987_v54  ;;  %v18072_v62 = vcombine.high %v1984_v55, %v1988_v56  ;;  %v2043_v53 = vld [vmem:[%s21083_s17 + $0x820] sm:$0xff]  ;;  %v21448_v54 = vrot.slane %v3879_v45, %v21314_v58  ;;  %v2044_v55 = vld [vmem:[%s21083_s17 + $0x828] sm:$0xff] }
 0x2c2   : > { %14392 = vmatprep.subr.bf16.mxu0 %v18014_v63  ;;  %15048 = vmatprep.subr.bf16.mxu1 %v18016_v1  ;;  %v1991_v63 = vld [vmem:[%s21083_s17 + $0x680] sm:$0xff] }
 0x2c3   : > { %v1995_v1 = vld [vmem:[%s21083_s17 + $0x6a0] sm:$0xff] }
 0x2c4   : > { %v18077_v10 = vcombine.low %v1991_v63, %v1995_v1  ;;  %v2087_v45 = vld [vmem:[%s21083_s17 + $0x980] sm:$0xff] }
 0x2c5   : > { %14393 = vmatpush1.bf16.msra.mxu0 %v18013_v6  ;;  %15049 = vmatpush1.bf16.msra.mxu1 %v18015_v51  ;;  %v18078_v6 = vcombine.high %v1991_v63, %v1995_v1  ;;  %v18080_v51 = vcombine.high %v1992_v2, %v1996_v3  ;;  %v2051_v63 = vld [vmem:[%s21083_s17 + $0x860] sm:$0xff]  ;;  %v3895_v1 = vcombine.high %v21448_v54, %v21448_v54  ;;  %v2048_v3 = vld [vmem:[%s21083_s17 + $0x848] sm:$0xff] }
 0x2c6   : > { %14394 = vmatprep.subr.bf16.mxu0 %v18022_v8  ;;  %15050 = vmatprep.subr.bf16.mxu1 %v18024_v52  ;;  %v1999_v8 = vld [vmem:[%s21083_s17 + $0x6c0] sm:$0xff]  ;;  %v21458_v2 = vcombine.high %v21375_v48, %v21375_v48 }
 0x2c7   : > { %v2003_v52 = vld [vmem:[%s21083_s17 + $0x6e0] sm:$0xff] }
 0x2c8   : > { %v18085_v19 = vcombine.low %v1999_v8, %v2003_v52 }
 0x2c9   : > { %14395 = vmatpush1.bf16.msra.mxu0 %v18021_v13  ;;  %15051 = vmatpush1.bf16.msra.mxu1 %v18023_v11  ;;  %v18086_v13 = vcombine.high %v1999_v8, %v2003_v52  ;;  %v18088_v11 = vcombine.high %v2000_v9, %v2004_v57  ;;  %v2055_v52 = vld [vmem:[%s21083_s17 + $0x880] sm:$0xff]  ;;  %v21465_v57 = vrot.slane %v3895_v1, %v21314_v58 }
 0x2ca   : > { %14396 = vmatprep.subr.bf16.mxu0 %v18030_v14  ;;  %15052 = vmatprep.subr.bf16.mxu1 %v18032_v15  ;;  %v2007_v14 = vld [vmem:[%s21083_s17 + $0x700] sm:$0xff] }
 0x2cb   : > { %v2011_v15 = vld [vmem:[%s21083_s17 + $0x720] sm:$0xff] }
 0x2cc   : > { %v18093_v0 = vcombine.low %v2007_v14, %v2011_v15  ;;  %v2059_v9 = vld [vmem:[%s21083_s17 + $0x8a0] sm:$0xff] }
 0x2cd   : > { %14397 = vmatpush1.bf16.msra.mxu0 %v18029_v24  ;;  %15053 = vmatpush1.bf16.msra.mxu1 %v18031_v21  ;;  %v18094_v24 = vcombine.high %v2007_v14, %v2011_v15  ;;  %v18096_v21 = vcombine.high %v2008_v17, %v2012_v18  ;;  %v18142_v14 = vcombine.high %v2055_v52, %v2059_v9  ;;  %v2063_v17 = vld [vmem:[%s21083_s17 + $0x8c0] sm:$0xff] }
 0x2ce   : > { %14398 = vmatprep.subr.bf16.mxu0 %v18038_v25  ;;  %15054 = vmatprep.subr.bf16.mxu1 %v18040_v26  ;;  %v2015_v25 = vld [vmem:[%s21083_s17 + $0x740] sm:$0xff] }
 0x2cf   : > { %v2019_v26 = vld [vmem:[%s21083_s17 + $0x760] sm:$0xff] }
 0x2d0   : > { %v18101_v40 = vcombine.low %v2015_v25, %v2019_v26  ;;  %v2067_v18 = vld [vmem:[%s21083_s17 + $0x8e0] sm:$0xff] }
 0x2d1   : > { %14399 = vmatpush1.bf16.msra.mxu0 %v18037_v31  ;;  %15055 = vmatpush1.bf16.msra.mxu1 %v18039_v16  ;;  %v18102_v31 = vcombine.high %v2015_v25, %v2019_v26  ;;  %v18104_v16 = vcombine.high %v2016_v28, %v2020_v29  ;;  %v18150_v25 = vcombine.high %v2063_v17, %v2067_v18  ;;  %v2071_v28 = vld [vmem:[%s21083_s17 + $0x900] sm:$0xff] }
 0x2d2   : > { %14400 = vmatprep.subr.bf16.mxu0 %v18046_v32  ;;  %15056 = vmatprep.subr.bf16.mxu1 %v18048_v36  ;;  %v2023_v32 = vld [vmem:[%s21083_s17 + $0x780] sm:$0xff] }
 0x2d3   : > { %v2027_v36 = vld [vmem:[%s21083_s17 + $0x7a0] sm:$0xff] }
 0x2d4   : > { %v18109_v47 = vcombine.low %v2023_v32, %v2027_v36  ;;  %v2075_v29 = vld [vmem:[%s21083_s17 + $0x920] sm:$0xff] }
 0x2d5   : > { %14401 = vmatpush1.bf16.msra.mxu0 %v18045_v42  ;;  %15057 = vmatpush1.bf16.msra.mxu1 %v18047_v43  ;;  %v18110_v42 = vcombine.high %v2023_v32, %v2027_v36  ;;  %v18112_v43 = vcombine.high %v2024_v38, %v2028_v39  ;;  %v18158_v32 = vcombine.high %v2071_v28, %v2075_v29  ;;  %v2107_v1 = vld [vmem:[%s21083_s17 + $0xa20] sm:$0xff] }
 0x2d6   : > { %14402 = vmatprep.subr.bf16.mxu0 %v18054_v44  ;;  %15058 = vmatprep.subr.bf16.mxu1 %v18056_v34  ;;  %v2031_v44 = vld [vmem:[%s21083_s17 + $0x7c0] sm:$0xff] }
 0x2d7   : > { %v2035_v34 = vld [vmem:[%s21083_s17 + $0x7e0] sm:$0xff] }
 0x2d8   : > { %v18117_v56 = vcombine.low %v2031_v44, %v2035_v34 }
 0x2d9   : > { %14403 = vmatpush1.bf16.msra.mxu0 %v18053_v37  ;;  %15059 = vmatpush1.bf16.msra.mxu1 %v18055_v49  ;;  %v18111_v37 = vcombine.low %v2024_v38, %v2028_v39  ;;  %v18118_v49 = vcombine.high %v2031_v44, %v2035_v34  ;;  %v2079_v38 = vld [vmem:[%s21083_s17 + $0x940] sm:$0xff] }
 0x2da   : > { %14404 = vmatprep.subr.bf16.mxu0 %v18062_v27  ;;  %15060 = vmatprep.subr.bf16.mxu1 %v18064_v50  ;;  %v18120_v27 = vcombine.high %v2032_v35, %v2036_v46  ;;  %v2039_v50 = vld [vmem:[%s21083_s17 + $0x800] sm:$0xff] }
 0x2db   : > { %v2083_v39 = vld [vmem:[%s21083_s17 + $0x960] sm:$0xff] }
 0x2dc   : > { %v18166_v44 = vcombine.high %v2079_v38, %v2083_v39 }
 0x2dd   : > { %14405 = vmatpush1.bf16.msra.mxu0 %v18061_v22  ;;  %15061 = vmatpush1.bf16.msra.mxu1 %v18063_v60  ;;  %v18119_v22 = vcombine.low %v2032_v35, %v2036_v46  ;;  %v18126_v60 = vcombine.high %v2039_v50, %v2043_v53  ;;  %v2091_v35 = vld [vmem:[%s21083_s17 + $0x9a0] sm:$0xff]  ;;  %v2088_v46 = vld [vmem:[%s21083_s17 + $0x988] sm:$0xff] }
 0x2de   : > { %14406 = vmatprep.subr.bf16.mxu0 %v18070_v61  ;;  %15062 = vmatprep.subr.bf16.mxu1 %v18072_v62  ;;  %v18128_v61 = vcombine.high %v2040_v20, %v2044_v55  ;;  %v2047_v62 = vld [vmem:[%s21083_s17 + $0x840] sm:$0xff] }
 0x2e1   : > { %14407 = vmatpush1.bf16.msra.mxu0 %v18069_v4  ;;  %15063 = vmatpush1.bf16.msra.mxu1 %v18071_v5  ;;  %v2052_v4 = vld [vmem:[%s21083_s17 + $0x868] sm:$0xff]  ;;  %v18125_v5 = vcombine.low %v2039_v50, %v2043_v53  ;;  %v2095_v53 = vld [vmem:[%s21083_s17 + $0x9c0] sm:$0xff] }
 0x2e2   : > { %14408 = vmatprep.subr.bf16.mxu0 %v18078_v6  ;;  %15064 = vmatprep.subr.bf16.mxu1 %v18080_v51  ;;  %v18127_v6 = vcombine.low %v2040_v20, %v2044_v55  ;;  %v18134_v51 = vcombine.high %v2047_v62, %v2051_v63  ;;  %v18136_v8 = vcombine.high %v2048_v3, %v2052_v4  ;;  %v2099_v20 = vld [vmem:[%s21083_s17 + $0x9e0] sm:$0xff]  ;;  %v2096_v55 = vld [vmem:[%s21083_s17 + $0x9c8] sm:$0xff] }
 0x2e5   : > { %14409 = vmatpush1.bf16.msra.mxu0 %v18077_v10  ;;  %15065 = vmatpush1.bf16.msra.mxu1 %v18079_v12  ;;  %v2056_v10 = vld [vmem:[%s21083_s17 + $0x888] sm:$0xff] }
 0x2e6   : > { %14410 = vmatprep.subr.bf16.mxu0 %v18086_v13  ;;  %15066 = vmatprep.subr.bf16.mxu1 %v18088_v11  ;;  %v2060_v12 = vld [vmem:[%s21083_s17 + $0x8a8] sm:$0xff]  ;;  %v18133_v13 = vcombine.low %v2047_v62, %v2051_v63  ;;  %v18135_v11 = vcombine.low %v2048_v3, %v2052_v4  ;;  %v2103_v63 = vld [vmem:[%s21083_s17 + $0xa00] sm:$0xff] }
 0x2e7   : > { %v18144_v15 = vcombine.high %v2056_v10, %v2060_v12  ;;  %v2104_v3 = vld [vmem:[%s21083_s17 + $0xa08] sm:$0xff] }
 0x2e8   : > { %v2108_v4 = vld [vmem:[%s21083_s17 + $0xa28] sm:$0xff] }
 0x2e9   : > { %14411 = vmatpush1.bf16.msra.mxu0 %v18085_v19  ;;  %15067 = vmatpush1.bf16.msra.mxu1 %v18087_v23  ;;  %v2064_v19 = vld [vmem:[%s21083_s17 + $0x8c8] sm:$0xff] }
 0x2ea   : > { %14412 = vmatprep.subr.bf16.mxu0 %v18094_v24  ;;  %15068 = vmatprep.subr.bf16.mxu1 %v18096_v21  ;;  %v2068_v23 = vld [vmem:[%s21083_s17 + $0x8e8] sm:$0xff]  ;;  %v18141_v24 = vcombine.low %v2055_v52, %v2059_v9  ;;  %v18143_v21 = vcombine.low %v2056_v10, %v2060_v12  ;;  %v2111_v52 = vld [vmem:[%s21083_s17 + $0xa40] sm:$0xff] }
 0x2eb   : > { %v18152_v26 = vcombine.high %v2064_v19, %v2068_v23  ;;  %v2115_v9 = vld [vmem:[%s21083_s17 + $0xa60] sm:$0xff]  ;;  %v2112_v10 = vld [vmem:[%s21083_s17 + $0xa48] sm:$0xff] }
 0x2ec   : > { %v2116_v12 = vld [vmem:[%s21083_s17 + $0xa68] sm:$0xff] }
 0x2ed   : > { %14413 = vmatpush1.bf16.msra.mxu0 %v18093_v0  ;;  %15069 = vmatpush1.bf16.msra.mxu1 %v18095_v30  ;;  %v2072_v0 = vld [vmem:[%s21083_s17 + $0x908] sm:$0xff] }
 0x2ee   : > { %14414 = vmatprep.subr.bf16.mxu0 %v18102_v31  ;;  %15070 = vmatprep.subr.bf16.mxu1 %v18104_v16  ;;  %v2076_v30 = vld [vmem:[%s21083_s17 + $0x928] sm:$0xff]  ;;  %v18149_v31 = vcombine.low %v2063_v17, %v2067_v18  ;;  %v18151_v16 = vcombine.low %v2064_v19, %v2068_v23  ;;  %v2119_v17 = vld [vmem:[%s21083_s17 + $0xa80] sm:$0xff] }
 0x2ef   : > { %v18160_v36 = vcombine.high %v2072_v0, %v2076_v30  ;;  %v2123_v18 = vld [vmem:[%s21083_s17 + $0xaa0] sm:$0xff]  ;;  %v2120_v19 = vld [vmem:[%s21083_s17 + $0xa88] sm:$0xff] }
 0x2f0   : > { %v2124_v23 = vld [vmem:[%s21083_s17 + $0xaa8] sm:$0xff] }
 0x2f1   : > { %14415 = vmatpush1.bf16.msra.mxu0 %v18101_v40  ;;  %15071 = vmatpush1.bf16.msra.mxu1 %v18103_v41  ;;  %v2080_v40 = vld [vmem:[%s21083_s17 + $0x948] sm:$0xff] }
 0x2f2   : > { %14416 = vmatprep.subr.bf16.mxu0 %v18110_v42  ;;  %15072 = vmatprep.subr.bf16.mxu1 %v18112_v43  ;;  %v2084_v41 = vld [vmem:[%s21083_s17 + $0x968] sm:$0xff]  ;;  %v18157_v42 = vcombine.low %v2071_v28, %v2075_v29  ;;  %v18159_v43 = vcombine.low %v2072_v0, %v2076_v30  ;;  %v2127_v28 = vld [vmem:[%s21083_s17 + $0xac0] sm:$0xff] }
 0x2f3   : > { %v18168_v34 = vcombine.high %v2080_v40, %v2084_v41  ;;  %v2131_v29 = vld [vmem:[%s21083_s17 + $0xae0] sm:$0xff]  ;;  %v2128_v0 = vld [vmem:[%s21083_s17 + $0xac8] sm:$0xff] }
 0x2f4   : > { %v2132_v30 = vld [vmem:[%s21083_s17 + $0xae8] sm:$0xff] }
 0x2f5   : > { %14417 = vmatpush1.bf16.msra.mxu0 %v18109_v47  ;;  %15073 = vmatpush1.bf16.msra.mxu1 %v18111_v37  ;;  %v2092_v47 = vld [vmem:[%s21083_s17 + $0x9a8] sm:$0xff]  ;;  %v18165_v37 = vcombine.low %v2079_v38, %v2083_v39  ;;  %v2135_v38 = vld [vmem:[%s21083_s17 + $0xb00] sm:$0xff] }
 0x2f6   : > { %14418 = vmatprep.subr.bf16.mxu0 %v18118_v49  ;;  %15074 = vmatprep.subr.bf16.mxu1 %v18120_v27  ;;  %v18167_v49 = vcombine.low %v2080_v40, %v2084_v41  ;;  %v18174_v27 = vcombine.high %v2087_v45, %v2091_v35  ;;  %v18176_v50 = vcombine.high %v2088_v46, %v2092_v47  ;;  %v2139_v39 = vld [vmem:[%s21083_s17 + $0xb20] sm:$0xff]  ;;  %v2136_v40 = vld [vmem:[%s21083_s17 + $0xb08] sm:$0xff] }
 0x2f7   : > { %v2140_v41 = vld [vmem:[%s21083_s17 + $0xb28] sm:$0xff] }
 0x2f9   : > { %14419 = vmatpush1.bf16.msra.mxu0 %v18117_v56  ;;  %15075 = vmatpush1.bf16.msra.mxu1 %v18119_v22  ;;  %v2100_v56 = vld [vmem:[%s21083_s17 + $0x9e8] sm:$0xff]  ;;  %v18173_v22 = vcombine.low %v2087_v45, %v2091_v35  ;;  %v2143_v45 = vld [vmem:[%s21083_s17 + $0xb40] sm:$0xff] }
 0x2fa   : > { %14429 = vmatprep.subr.bf16.mxu0 %v18126_v60  ;;  %15085 = vmatprep.subr.bf16.mxu1 %v18128_v61  ;;  %v18175_v60 = vcombine.low %v2088_v46, %v2092_v47  ;;  %v18182_v61 = vcombine.high %v2095_v53, %v2099_v20  ;;  %v18184_v62 = vcombine.high %v2096_v55, %v2100_v56  ;;  %v2147_v35 = vld [vmem:[%s21083_s17 + $0xb60] sm:$0xff]  ;;  %v2144_v46 = vld [vmem:[%s21083_s17 + $0xb48] sm:$0xff] }
 0x2fb   : > { %v2148_v47 = vld [vmem:[%s21083_s17 + $0xb68] sm:$0xff] }
 0x2fc   : > { %14421 = vmatmul.mubr.bf16.vlgmr.msra.gmra.mrb[0].mxu0 %v21458_v2  ;;  %15077 = vmatmul.mubr.bf16.vlgmr.msra.gmra.mrb[0].mxu1 %v21458_v2 }
 0x2fd   : > { %14430 = vmatpush1.bf16.msra.mxu0 %v18125_v5  ;;  %15086 = vmatpush1.bf16.msra.mxu1 %v18127_v6  ;;  %v18181_v5 = vcombine.low %v2095_v53, %v2099_v20  ;;  %v18183_v6 = vcombine.low %v2096_v55, %v2100_v56  ;;  %v2151_v53 = vld [vmem:[%s21083_s17 + $0xb80] sm:$0xff]  ;;  %v2152_v55 = vld [vmem:[%s21083_s17 + $0xb88] sm:$0xff] }
 0x2fe   : > { %14431 = vmatprep.subr.bf16.mxu0 %v18134_v51  ;;  %15087 = vmatprep.subr.bf16.mxu1 %v18136_v8  ;;  %v18190_v51 = vcombine.high %v2103_v63, %v2107_v1  ;;  %v18192_v8 = vcombine.high %v2104_v3, %v2108_v4  ;;  %v2155_v20 = vld [vmem:[%s21083_s17 + $0xba0] sm:$0xff]  ;;  %v2156_v56 = vld [vmem:[%s21083_s17 + $0xba8] sm:$0xff] }
 0x2ff   : > { %14461 = vmatprep.mubr.bf16.mxu0 %v21465_v57  ;;  %15117 = vmatprep.mubr.bf16.mxu1 %v21465_v57 }
 0x301   : > { %14432 = vmatpush1.bf16.msra.mxu0 %v18133_v13  ;;  %15088 = vmatpush1.bf16.msra.mxu1 %v18135_v11  ;;  %v18189_v13 = vcombine.low %v2103_v63, %v2107_v1  ;;  %v18191_v11 = vcombine.low %v2104_v3, %v2108_v4  ;;  %v2159_v63 = vld [vmem:[%s21083_s17 + $0xbc0] sm:$0xff]  ;;  %v2160_v3 = vld [vmem:[%s21083_s17 + $0xbc8] sm:$0xff] }
 0x302   : > { %14433 = vmatprep.subr.bf16.mxu0 %v18142_v14  ;;  %15089 = vmatprep.subr.bf16.mxu1 %v18144_v15  ;;  %v18198_v14 = vcombine.high %v2111_v52, %v2115_v9  ;;  %v18200_v15 = vcombine.high %v2112_v10, %v2116_v12  ;;  %v2163_v1 = vld [vmem:[%s21083_s17 + $0xbe0] sm:$0xff]  ;;  %v2164_v4 = vld [vmem:[%s21083_s17 + $0xbe8] sm:$0xff] }
 0x305   : > { %14434 = vmatpush1.bf16.msra.mxu0 %v18141_v24  ;;  %15090 = vmatpush1.bf16.msra.mxu1 %v18143_v21  ;;  %v18197_v24 = vcombine.low %v2111_v52, %v2115_v9  ;;  %v18199_v21 = vcombine.low %v2112_v10, %v2116_v12  ;;  %v2167_v52 = vld [vmem:[%s21083_s17 + $0xc00] sm:$0xff]  ;;  %v2168_v10 = vld [vmem:[%s21083_s17 + $0xc08] sm:$0xff] }
 0x306   : > { %14435 = vmatprep.subr.bf16.mxu0 %v18150_v25  ;;  %15091 = vmatprep.subr.bf16.mxu1 %v18152_v26  ;;  %v18206_v25 = vcombine.high %v2119_v17, %v2123_v18  ;;  %v18208_v26 = vcombine.high %v2120_v19, %v2124_v23  ;;  %v2171_v9 = vld [vmem:[%s21083_s17 + $0xc20] sm:$0xff]  ;;  %v2172_v12 = vld [vmem:[%s21083_s17 + $0xc28] sm:$0xff] }
 0x309   : > { %14436 = vmatpush1.bf16.msra.mxu0 %v18149_v31  ;;  %15092 = vmatpush1.bf16.msra.mxu1 %v18151_v16  ;;  %v18205_v31 = vcombine.low %v2119_v17, %v2123_v18  ;;  %v18207_v16 = vcombine.low %v2120_v19, %v2124_v23  ;;  %v2175_v17 = vld [vmem:[%s21083_s17 + $0xc40] sm:$0xff]  ;;  %v21533_v19 = vrot.slane %v21448_v54, %v21314_v58  ;;  %v2176_v23 = vld [vmem:[%s21083_s17 + $0xc48] sm:$0xff] }
 0x30a   : > { %14437 = vmatprep.subr.bf16.mxu0 %v18158_v32  ;;  %15093 = vmatprep.subr.bf16.mxu1 %v18160_v36  ;;  %v18214_v32 = vcombine.high %v2127_v28, %v2131_v29  ;;  %v18216_v36 = vcombine.high %v2128_v0, %v2132_v30  ;;  %v2179_v18 = vld [vmem:[%s21083_s17 + $0xc60] sm:$0xff]  ;;  %v2184_v54 = vld [vmem:[%s21083_s17 + $0xc88] sm:$0xff] }
 0x30d   : > { %14438 = vmatpush1.bf16.msra.mxu0 %v18157_v42  ;;  %15094 = vmatpush1.bf16.msra.mxu1 %v18159_v43  ;;  %v18213_v42 = vcombine.low %v2127_v28, %v2131_v29  ;;  %v18215_v43 = vcombine.low %v2128_v0, %v2132_v30  ;;  %v2183_v29 = vld [vmem:[%s21083_s17 + $0xc80] sm:$0xff]  ;;  %v21541_v30 = vcombine.high %v21465_v57, %v21465_v57 }
 0x30e   : > { %14439 = vmatprep.subr.bf16.mxu0 %v18166_v44  ;;  %15095 = vmatprep.subr.bf16.mxu1 %v18168_v34  ;;  %v18222_v44 = vcombine.high %v2135_v38, %v2139_v39  ;;  %v18224_v34 = vcombine.high %v2136_v40, %v2140_v41  ;;  %v2187_v0 = vld [vmem:[%s21083_s17 + $0xca0] sm:$0xff] }
 0x311   : > { %14440 = vmatpush1.bf16.msra.mxu0 %v18165_v37  ;;  %15096 = vmatpush1.bf16.msra.mxu1 %v18167_v49  ;;  %v18221_v37 = vcombine.low %v2135_v38, %v2139_v39  ;;  %v18223_v49 = vcombine.low %v2136_v40, %v2140_v41  ;;  %v2191_v39 = vld [vmem:[%s21083_s17 + $0xcc0] sm:$0xff]  ;;  %v2192_v41 = vld [vmem:[%s21083_s17 + $0xcc8] sm:$0xff] }
 0x312   : > { %14441 = vmatprep.subr.bf16.mxu0 %v18174_v27  ;;  %15097 = vmatprep.subr.bf16.mxu1 %v18176_v50  ;;  %v18230_v27 = vcombine.high %v2143_v45, %v2147_v35  ;;  %v18232_v50 = vcombine.high %v2144_v46, %v2148_v47  ;;  %v2195_v40 = vld [vmem:[%s21083_s17 + $0xce0] sm:$0xff] }
 0x315   : > { %14442 = vmatpush1.bf16.msra.mxu0 %v18173_v22  ;;  %15098 = vmatpush1.bf16.msra.mxu1 %v18175_v60  ;;  %v18229_v22 = vcombine.low %v2143_v45, %v2147_v35  ;;  %v18231_v60 = vcombine.low %v2144_v46, %v2148_v47  ;;  %v2199_v35 = vld [vmem:[%s21083_s17 + $0xd00] sm:$0xff]  ;;  %v2200_v47 = vld [vmem:[%s21083_s17 + $0xd08] sm:$0xff] }
 0x316   : > { %14443 = vmatprep.subr.bf16.mxu0 %v18182_v61  ;;  %15099 = vmatprep.subr.bf16.mxu1 %v18184_v62  ;;  %v18238_v61 = vcombine.high %v2151_v53, %v2155_v20  ;;  %v18240_v62 = vcombine.high %v2152_v55, %v2156_v56  ;;  %v2203_v46 = vld [vmem:[%s21083_s17 + $0xd20] sm:$0xff] }
 0x319   : > { %14444 = vmatpush1.bf16.msra.mxu0 %v18181_v5  ;;  %15100 = vmatpush1.bf16.msra.mxu1 %v18183_v6  ;;  %v18237_v5 = vcombine.low %v2151_v53, %v2155_v20  ;;  %v18239_v6 = vcombine.low %v2152_v55, %v2156_v56  ;;  %v2207_v20 = vld [vmem:[%s21083_s17 + $0xd40] sm:$0xff]  ;;  %v2208_v56 = vld [vmem:[%s21083_s17 + $0xd48] sm:$0xff] }
 0x31a   : > { %14445 = vmatprep.subr.bf16.mxu0 %v18190_v51  ;;  %15101 = vmatprep.subr.bf16.mxu1 %v18192_v8  ;;  %v18246_v51 = vcombine.high %v2159_v63, %v2163_v1  ;;  %v18248_v8 = vcombine.high %v2160_v3, %v2164_v4  ;;  %v2211_v55 = vld [vmem:[%s21083_s17 + $0xd60] sm:$0xff] }
 0x31d   : > { %14446 = vmatpush1.bf16.msra.mxu0 %v18189_v13  ;;  %15102 = vmatpush1.bf16.msra.mxu1 %v18191_v11  ;;  %v18245_v13 = vcombine.low %v2159_v63, %v2163_v1  ;;  %v18247_v11 = vcombine.low %v2160_v3, %v2164_v4  ;;  %v2215_v1 = vld [vmem:[%s21083_s17 + $0xd80] sm:$0xff]  ;;  %v2216_v4 = vld [vmem:[%s21083_s17 + $0xd88] sm:$0xff] }
 0x31e   : > { %14447 = vmatprep.subr.bf16.mxu0 %v18198_v14  ;;  %15103 = vmatprep.subr.bf16.mxu1 %v18200_v15  ;;  %v18254_v14 = vcombine.high %v2167_v52, %v2171_v9  ;;  %v18256_v15 = vcombine.high %v2168_v10, %v2172_v12  ;;  %v2219_v3 = vld [vmem:[%s21083_s17 + $0xda0] sm:$0xff] }
 0x321   : > { %14448 = vmatpush1.bf16.msra.mxu0 %v18197_v24  ;;  %15104 = vmatpush1.bf16.msra.mxu1 %v18199_v21  ;;  %v2180_v24 = vld [vmem:[%s21083_s17 + $0xc68] sm:$0xff]  ;;  %v18253_v21 = vcombine.low %v2167_v52, %v2171_v9  ;;  %v2223_v9 = vld [vmem:[%s21083_s17 + $0xdc0] sm:$0xff] }
 0x322   : > { %14449 = vmatprep.subr.bf16.mxu0 %v18206_v25  ;;  %15105 = vmatprep.subr.bf16.mxu1 %v18208_v26  ;;  %v18255_v25 = vcombine.low %v2168_v10, %v2172_v12  ;;  %v18262_v26 = vcombine.high %v2175_v17, %v2179_v18  ;;  %v18264_v28 = vcombine.high %v2176_v23, %v2180_v24  ;;  %v2227_v10 = vld [vmem:[%s21083_s17 + $0xde0] sm:$0xff]  ;;  %v2224_v12 = vld [vmem:[%s21083_s17 + $0xdc8] sm:$0xff] }
 0x325   : > { %14450 = vmatpush1.bf16.msra.mxu0 %v18205_v31  ;;  %15106 = vmatpush1.bf16.msra.mxu1 %v18207_v16  ;;  %v2188_v31 = vld [vmem:[%s21083_s17 + $0xca8] sm:$0xff]  ;;  %v18261_v16 = vcombine.low %v2175_v17, %v2179_v18  ;;  %v2231_v18 = vld [vmem:[%s21083_s17 + $0xe00] sm:$0xff] }
 0x326   : > { %14451 = vmatprep.subr.bf16.mxu0 %v18214_v32  ;;  %15107 = vmatprep.subr.bf16.mxu1 %v18216_v36  ;;  %v18263_v32 = vcombine.low %v2176_v23, %v2180_v24  ;;  %v18270_v36 = vcombine.high %v2183_v29, %v2187_v0  ;;  %v18272_v38 = vcombine.high %v2184_v54, %v2188_v31  ;;  %v2235_v23 = vld [vmem:[%s21083_s17 + $0xe20] sm:$0xff]  ;;  %v2232_v24 = vld [vmem:[%s21083_s17 + $0xe08] sm:$0xff] }
 0x329   : > { %14452 = vmatpush1.bf16.msra.mxu0 %v18213_v42  ;;  %15108 = vmatpush1.bf16.msra.mxu1 %v18215_v43  ;;  %v2196_v42 = vld [vmem:[%s21083_s17 + $0xce8] sm:$0xff]  ;;  %v18269_v43 = vcombine.low %v2183_v29, %v2187_v0  ;;  %v2239_v0 = vld [vmem:[%s21083_s17 + $0xe40] sm:$0xff] }
 0x32a   : > { %14453 = vmatprep.subr.bf16.mxu0 %v18222_v44  ;;  %15109 = vmatprep.subr.bf16.mxu1 %v18224_v34  ;;  %v18271_v44 = vcombine.low %v2184_v54, %v2188_v31  ;;  %v18278_v34 = vcombine.high %v2191_v39, %v2195_v40  ;;  %v18280_v45 = vcombine.high %v2192_v41, %v2196_v42  ;;  %v2243_v54 = vld [vmem:[%s21083_s17 + $0xe60] sm:$0xff]  ;;  %v2240_v31 = vld [vmem:[%s21083_s17 + $0xe48] sm:$0xff] }
 0x32d   : > { %14454 = vmatpush1.bf16.msra.mxu0 %v18221_v37  ;;  %15110 = vmatpush1.bf16.msra.mxu1 %v18223_v49  ;;  %v2204_v37 = vld [vmem:[%s21083_s17 + $0xd28] sm:$0xff]  ;;  %v18277_v49 = vcombine.low %v2191_v39, %v2195_v40  ;;  %v2247_v40 = vld [vmem:[%s21083_s17 + $0xe80] sm:$0xff] }
 0x32e   : > { %14455 = vmatprep.subr.bf16.mxu0 %v18230_v27  ;;  %15111 = vmatprep.subr.bf16.mxu1 %v18232_v50  ;;  %v18279_v27 = vcombine.low %v2192_v41, %v2196_v42  ;;  %v18286_v50 = vcombine.high %v2199_v35, %v2203_v46  ;;  %v18288_v53 = vcombine.high %v2200_v47, %v2204_v37  ;;  %v2251_v41 = vld [vmem:[%s21083_s17 + $0xea0] sm:$0xff]  ;;  %v2248_v42 = vld [vmem:[%s21083_s17 + $0xe88] sm:$0xff] }
 0x331   : > { %14456 = vmatpush1.bf16.msra.mxu0 %v18229_v22  ;;  %15112 = vmatpush1.bf16.msra.mxu1 %v18231_v60  ;;  %v2212_v22 = vld [vmem:[%s21083_s17 + $0xd68] sm:$0xff]  ;;  %v18285_v60 = vcombine.low %v2199_v35, %v2203_v46  ;;  %v2255_v46 = vld [vmem:[%s21083_s17 + $0xec0] sm:$0xff] }
 0x332   : > { %14457 = vmatprep.subr.bf16.mxu0 %v18238_v61  ;;  %15113 = vmatprep.subr.bf16.mxu1 %v18240_v62  ;;  %v18287_v61 = vcombine.low %v2200_v47, %v2204_v37  ;;  %v18294_v62 = vcombine.high %v2207_v20, %v2211_v55  ;;  %v18296_v63 = vcombine.high %v2208_v56, %v2212_v22  ;;  %v2259_v47 = vld [vmem:[%s21083_s17 + $0xee0] sm:$0xff]  ;;  %v2256_v37 = vld [vmem:[%s21083_s17 + $0xec8] sm:$0xff] }
 0x335   : > { %14458 = vmatpush1.bf16.msra.mxu0 %v18237_v5  ;;  %15114 = vmatpush1.bf16.msra.mxu1 %v18239_v6  ;;  %v2220_v5 = vld [vmem:[%s21083_s17 + $0xda8] sm:$0xff]  ;;  %v18293_v6 = vcombine.low %v2207_v20, %v2211_v55  ;;  %v2263_v55 = vld [vmem:[%s21083_s17 + $0xf00] sm:$0xff] }
 0x336   : > { %14459 = vmatprep.subr.bf16.mxu0 %v18246_v51  ;;  %15115 = vmatprep.subr.bf16.mxu1 %v18248_v8  ;;  %v18295_v51 = vcombine.low %v2208_v56, %v2212_v22  ;;  %v18302_v8 = vcombine.high %v2215_v1, %v2219_v3  ;;  %v18304_v52 = vcombine.high %v2216_v4, %v2220_v5  ;;  %v2267_v56 = vld [vmem:[%s21083_s17 + $0xf20] sm:$0xff]  ;;  %v2264_v22 = vld [vmem:[%s21083_s17 + $0xf08] sm:$0xff] }
 0x339   : > { %14460 = vmatpush1.bf16.msra.mxu0 %v18245_v13  ;;  %15116 = vmatpush1.bf16.msra.mxu1 %v18247_v11  ;;  %v2228_v13 = vld [vmem:[%s21083_s17 + $0xde8] sm:$0xff]  ;;  %v18301_v11 = vcombine.low %v2215_v1, %v2219_v3  ;;  %v2271_v3 = vld [vmem:[%s21083_s17 + $0xf40] sm:$0xff] }
 0x33a   : > { %14470 = vmatprep.subr.bf16.mxu0 %v18254_v14  ;;  %15126 = vmatprep.subr.bf16.mxu1 %v18256_v15  ;;  %v18303_v14 = vcombine.low %v2216_v4, %v2220_v5  ;;  %v18310_v15 = vcombine.high %v2223_v9, %v2227_v10  ;;  %v18312_v17 = vcombine.high %v2224_v12, %v2228_v13  ;;  %v2275_v4 = vld [vmem:[%s21083_s17 + $0xf60] sm:$0xff]  ;;  %v2272_v5 = vld [vmem:[%s21083_s17 + $0xf48] sm:$0xff] }
 0x33c   : > { %14462 = vmatmul.mubr.bf16.vlgmr.msra.gmra.mrb[0].mxu0 %v21533_v19  ;;  %15118 = vmatmul.mubr.bf16.vlgmr.msra.gmra.mrb[0].mxu1 %v21533_v19 }
 0x33d   : > { %14471 = vmatpush1.bf16.msra.mxu0 %v18253_v21  ;;  %15127 = vmatpush1.bf16.msra.mxu1 %v18255_v25  ;;  %v2236_v21 = vld [vmem:[%s21083_s17 + $0xe28] sm:$0xff]  ;;  %v18309_v25 = vcombine.low %v2223_v9, %v2227_v10  ;;  %v2279_v10 = vld [vmem:[%s21083_s17 + $0xf80] sm:$0xff] }
 0x33e   : > { %14472 = vmatprep.subr.bf16.mxu0 %v18262_v26  ;;  %15128 = vmatprep.subr.bf16.mxu1 %v18264_v28  ;;  %v18311_v26 = vcombine.low %v2224_v12, %v2228_v13  ;;  %v18318_v28 = vcombine.high %v2231_v18, %v2235_v23  ;;  %v18320_v29 = vcombine.high %v2232_v24, %v2236_v21  ;;  %v2283_v12 = vld [vmem:[%s21083_s17 + $0xfa0] sm:$0xff]  ;;  %v2280_v13 = vld [vmem:[%s21083_s17 + $0xf88] sm:$0xff] }
 0x33f   : > { %14502 = vmatprep.mubr.bf16.mxu0 %v21541_v30  ;;  %15158 = vmatprep.mubr.bf16.mxu1 %v21541_v30 }
 0x341   : > { %14473 = vmatpush1.bf16.msra.mxu0 %v18261_v16  ;;  %15129 = vmatpush1.bf16.msra.mxu1 %v18263_v32  ;;  %v2244_v16 = vld [vmem:[%s21083_s17 + $0xe68] sm:$0xff]  ;;  %v18317_v32 = vcombine.low %v2231_v18, %v2235_v23  ;;  %v2287_v23 = vld [vmem:[%s21083_s17 + $0xfc0] sm:$0xff] }
 0x342   : > { %14474 = vmatprep.subr.bf16.mxu0 %v18270_v36  ;;  %15130 = vmatprep.subr.bf16.mxu1 %v18272_v38  ;;  %v18319_v36 = vcombine.low %v2232_v24, %v2236_v21  ;;  %v18326_v38 = vcombine.high %v2239_v0, %v2243_v54  ;;  %v18328_v39 = vcombine.high %v2240_v31, %v2244_v16  ;;  %v2291_v24 = vld [vmem:[%s21083_s17 + $0xfe0] sm:$0xff]  ;;  %v2288_v21 = vld [vmem:[%s21083_s17 + $0xfc8] sm:$0xff] }
 0x345   : > { %14475 = vmatpush1.bf16.msra.mxu0 %v18269_v43  ;;  %15131 = vmatpush1.bf16.msra.mxu1 %v18271_v44  ;;  %v2252_v43 = vld [vmem:[%s21083_s17 + $0xea8] sm:$0xff]  ;;  %v18325_v44 = vcombine.low %v2239_v0, %v2243_v54  ;;  %v18374_v0 = vcombine.high %v2287_v23, %v2291_v24 }
 0x346   : > { %14476 = vmatprep.subr.bf16.mxu0 %v18278_v34  ;;  %15132 = vmatprep.subr.bf16.mxu1 %v18280_v45  ;;  %v18327_v34 = vcombine.low %v2240_v31, %v2244_v16  ;;  %v18334_v45 = vcombine.high %v2247_v40, %v2251_v41  ;;  %v18336_v35 = vcombine.high %v2248_v42, %v2252_v43  ;;  %v2295_v31 = vld [vmem:[%s21083_s17 + $0x1000] sm:$0xff] }
 0x347   : > { %v2299_v16 = vld [vmem:[%s21083_s17 + $0x1020] sm:$0xff] }
 0x349   : > { %14477 = vmatpush1.bf16.msra.mxu0 %v18277_v49  ;;  %15133 = vmatpush1.bf16.msra.mxu1 %v18279_v27  ;;  %v2260_v49 = vld [vmem:[%s21083_s17 + $0xee8] sm:$0xff]  ;;  %v18333_v27 = vcombine.low %v2247_v40, %v2251_v41  ;;  %v18382_v41 = vcombine.high %v2295_v31, %v2299_v16 }
 0x34a   : > { %14478 = vmatprep.subr.bf16.mxu0 %v18286_v50  ;;  %15134 = vmatprep.subr.bf16.mxu1 %v18288_v53  ;;  %v18335_v50 = vcombine.low %v2248_v42, %v2252_v43  ;;  %v18342_v53 = vcombine.high %v2255_v46, %v2259_v47  ;;  %v18344_v20 = vcombine.high %v2256_v37, %v2260_v49  ;;  %v2303_v43 = vld [vmem:[%s21083_s17 + $0x1040] sm:$0xff] }
 0x34d   : > { %14479 = vmatpush1.bf16.msra.mxu0 %v18285_v60  ;;  %15135 = vmatpush1.bf16.msra.mxu1 %v18287_v61  ;;  %v2268_v60 = vld [vmem:[%s21083_s17 + $0xf28] sm:$0xff]  ;;  %v18341_v61 = vcombine.low %v2255_v46, %v2259_v47  ;;  %v18381_v47 = vcombine.low %v2295_v31, %v2299_v16 }
 0x34e   : > { %14480 = vmatprep.subr.bf16.mxu0 %v18294_v62  ;;  %15136 = vmatprep.subr.bf16.mxu1 %v18296_v63  ;;  %v18343_v62 = vcombine.low %v2256_v37, %v2260_v49  ;;  %v18350_v63 = vcombine.high %v2263_v55, %v2267_v56  ;;  %v18352_v1 = vcombine.high %v2264_v22, %v2268_v60  ;;  %v2308_v46 = vld [vmem:[%s21083_s17 + $0x1068] sm:$0xff] }
 0x34f   : > { %v2344_v31 = vld [vmem:[%s21083_s17 + $0x1188] sm:$0xff] }
 0x350   : > { %v2348_v16 = vld [vmem:[%s21083_s17 + $0x11a8] sm:$0xff] }
 0x351   : > { %14481 = vmatpush1.bf16.msra.mxu0 %v18293_v6  ;;  %15137 = vmatpush1.bf16.msra.mxu1 %v18295_v51  ;;  %v2276_v6 = vld [vmem:[%s21083_s17 + $0xf68] sm:$0xff]  ;;  %v18349_v51 = vcombine.low %v2263_v55, %v2267_v56 }
 0x352   : > { %14482 = vmatprep.subr.bf16.mxu0 %v18302_v8  ;;  %15138 = vmatprep.subr.bf16.mxu1 %v18304_v52  ;;  %v18351_v8 = vcombine.low %v2264_v22, %v2268_v60  ;;  %v18358_v52 = vcombine.high %v2271_v3, %v2275_v4  ;;  %v18360_v9 = vcombine.high %v2272_v5, %v2276_v6  ;;  %v2312_v55 = vld [vmem:[%s21083_s17 + $0x1088] sm:$0xff] }
 0x353   : > { %v2316_v56 = vld [vmem:[%s21083_s17 + $0x10a8] sm:$0xff] }
 0x355   : > { %14483 = vmatpush1.bf16.msra.mxu0 %v18301_v11  ;;  %15139 = vmatpush1.bf16.msra.mxu1 %v18303_v14  ;;  %v2284_v11 = vld [vmem:[%s21083_s17 + $0xfa8] sm:$0xff]  ;;  %v18357_v14 = vcombine.low %v2271_v3, %v2275_v4 }
 0x356   : > { %14484 = vmatprep.subr.bf16.mxu0 %v18310_v15  ;;  %15140 = vmatprep.subr.bf16.mxu1 %v18312_v17  ;;  %v18359_v15 = vcombine.low %v2272_v5, %v2276_v6  ;;  %v18366_v17 = vcombine.high %v2279_v10, %v2283_v12  ;;  %v18368_v18 = vcombine.high %v2280_v13, %v2284_v11  ;;  %v2320_v3 = vld [vmem:[%s21083_s17 + $0x10c8] sm:$0xff] }
 0x357   : > { %v2324_v4 = vld [vmem:[%s21083_s17 + $0x10e8] sm:$0xff]  ;;  %v18399_v6 = vcombine.low %v2312_v55, %v2316_v56 }
 0x359   : > { %14485 = vmatpush1.bf16.msra.mxu0 %v18309_v25  ;;  %15141 = vmatpush1.bf16.msra.mxu1 %v18311_v26  ;;  %v2292_v25 = vld [vmem:[%s21083_s17 + $0xfe8] sm:$0xff]  ;;  %v21601_v26 = vld [vmem:[#allocation2 + $0x8] sm:$0xff] }
 0x35a   : > { %14486 = vmatprep.subr.bf16.mxu0 %v18318_v28  ;;  %15142 = vmatprep.subr.bf16.mxu1 %v18320_v29  ;;  %v18365_v28 = vcombine.low %v2279_v10, %v2283_v12  ;;  %v18367_v29 = vcombine.low %v2280_v13, %v2284_v11  ;;  %v18376_v54 = vcombine.high %v2288_v21, %v2292_v25  ;;  %v2328_v10 = vld [vmem:[%s21083_s17 + $0x1108] sm:$0xff] }
 0x35b   : > { %v18375_v40 = vcombine.low %v2288_v21, %v2292_v25  ;;  %v2332_v12 = vld [vmem:[%s21083_s17 + $0x1128] sm:$0xff]  ;;  %v18407_v11 = vcombine.low %v2320_v3, %v2324_v4 }
 0x35c   : > { %v18415_v25 = vcombine.low %v2328_v10, %v2332_v12 }
 0x35d   : > { %14487 = vmatpush1.bf16.msra.mxu0 %v18317_v32  ;;  %15143 = vmatpush1.bf16.msra.mxu1 %v18319_v36  ;;  %v21607_v32 = vrot.slane %v21601_v26, %v21314_v58  ;;  %v2296_v36 = vld [vmem:[%s21083_s17 + $0x1008] sm:$0xff] }
 0x35e   : > { %14488 = vmatprep.subr.bf16.mxu0 %v18326_v38  ;;  %15144 = vmatprep.subr.bf16.mxu1 %v18328_v39  ;;  %v2300_v38 = vld [vmem:[%s21083_s17 + $0x1028] sm:$0xff]  ;;  %v18373_v39 = vcombine.low %v2287_v23, %v2291_v24 }
 0x35f   : > { %v18384_v42 = vcombine.high %v2296_v36, %v2300_v38  ;;  %v18383_v37 = vcombine.low %v2296_v36, %v2300_v38  ;;  %v2336_v23 = vld [vmem:[%s21083_s17 + $0x1148] sm:$0xff] }
 0x360   : > { %v2340_v24 = vld [vmem:[%s21083_s17 + $0x1168] sm:$0xff] }
 0x361   : > { %14489 = vmatpush1.bf16.msra.mxu0 %v18325_v44  ;;  %15145 = vmatpush1.bf16.msra.mxu1 %v18327_v34  ;;  %v2307_v44 = vld [vmem:[%s21083_s17 + $0x1060] sm:$0xff]  ;;  %v3943_v34 = vcombine.high %v21607_v32, %v21607_v32  ;;  %v18423_v38 = vcombine.low %v2336_v23, %v2340_v24 }
 0x362   : > { %14490 = vmatprep.subr.bf16.mxu0 %v18334_v45  ;;  %15146 = vmatprep.subr.bf16.mxu1 %v18336_v35  ;;  %v21617_v45 = vcombine.high %v21533_v19, %v21533_v19  ;;  %v2304_v35 = vld [vmem:[%s21083_s17 + $0x1048] sm:$0xff]  ;;  %v18390_v49 = vcombine.high %v2303_v43, %v2307_v44  ;;  %v18389_v22 = vcombine.low %v2303_v43, %v2307_v44 }
 0x363   : > { %v18391_v60 = vcombine.low %v2304_v35, %v2308_v46  ;;  %v2352_v43 = vld [vmem:[%s21083_s17 + $0x11c8] sm:$0xff] }
 0x364   : > { %v2356_v44 = vld [vmem:[%s21083_s17 + $0x11e8] sm:$0xff] }
 0x365   : > { %14491 = vmatpush1.bf16.msra.mxu0 %v18333_v27  ;;  %15147 = vmatpush1.bf16.msra.mxu1 %v18335_v50  ;;  %v18392_v27 = vcombine.high %v2304_v35, %v2308_v46  ;;  %v2311_v50 = vld [vmem:[%s21083_s17 + $0x1080] sm:$0xff]  ;;  %v18431_v35 = vcombine.low %v2344_v31, %v2348_v16 }
 0x366   : > { %14492 = vmatprep.subr.bf16.mxu0 %v18342_v53  ;;  %15148 = vmatprep.subr.bf16.mxu1 %v18344_v20  ;;  %v2315_v53 = vld [vmem:[%s21083_s17 + $0x10a0] sm:$0xff]  ;;  %v21624_v20 = vrot.slane %v3943_v34, %v21314_v58 }
 0x367   : > { %v18397_v5 = vcombine.low %v2311_v50, %v2315_v53 }
 0x369   : > { %14493 = vmatpush1.bf16.msra.mxu0 %v18341_v61  ;;  %15149 = vmatpush1.bf16.msra.mxu1 %v18343_v62  ;;  %v18398_v61 = vcombine.high %v2311_v50, %v2315_v53  ;;  %v18400_v62 = vcombine.high %v2312_v55, %v2316_v56  ;;  %v2364_v50 = vld [vmem:[%s21083_s17 + $0x1228] sm:$0xff]  ;;  %v18439_v55 = vcombine.low %v2352_v43, %v2356_v44 }
 0x36a   : > { %14494 = vmatprep.subr.bf16.mxu0 %v18350_v63  ;;  %15150 = vmatprep.subr.bf16.mxu1 %v18352_v1  ;;  %v2319_v63 = vld [vmem:[%s21083_s17 + $0x10c0] sm:$0xff] }
 0x36b   : > { %v2323_v1 = vld [vmem:[%s21083_s17 + $0x10e0] sm:$0xff] }
 0x36c   : > { %v18405_v13 = vcombine.low %v2319_v63, %v2323_v1 }
 0x36d   : > { %14495 = vmatpush1.bf16.msra.mxu0 %v18349_v51  ;;  %15151 = vmatpush1.bf16.msra.mxu1 %v18351_v8  ;;  %v18406_v51 = vcombine.high %v2319_v63, %v2323_v1  ;;  %v18408_v8 = vcombine.high %v2320_v3, %v2324_v4  ;;  %v2372_v63 = vld [vmem:[%s21083_s17 + $0x1268] sm:$0xff] }
 0x36e   : > { %14496 = vmatprep.subr.bf16.mxu0 %v18358_v52  ;;  %15152 = vmatprep.subr.bf16.mxu1 %v18360_v9  ;;  %v2327_v52 = vld [vmem:[%s21083_s17 + $0x1100] sm:$0xff] }
 0x36f   : > { %v2331_v9 = vld [vmem:[%s21083_s17 + $0x1120] sm:$0xff] }
 0x370   : > { %v18413_v21 = vcombine.low %v2327_v52, %v2331_v9 }
 0x371   : > { %14497 = vmatpush1.bf16.msra.mxu0 %v18357_v14  ;;  %15153 = vmatpush1.bf16.msra.mxu1 %v18359_v15  ;;  %v18414_v14 = vcombine.high %v2327_v52, %v2331_v9  ;;  %v18416_v15 = vcombine.high %v2328_v10, %v2332_v12  ;;  %v2380_v52 = vld [vmem:[%s21083_s17 + $0x12a8] sm:$0xff] }
 0x372   : > { %14498 = vmatprep.subr.bf16.mxu0 %v18366_v17  ;;  %15154 = vmatprep.subr.bf16.mxu1 %v18368_v18  ;;  %v2335_v17 = vld [vmem:[%s21083_s17 + $0x1140] sm:$0xff] }
 0x373   : > { %v2339_v18 = vld [vmem:[%s21083_s17 + $0x1160] sm:$0xff] }
 0x374   : > { %v18421_v36 = vcombine.low %v2335_v17, %v2339_v18 }
 0x375   : > { %14499 = vmatpush1.bf16.msra.mxu0 %v18365_v28  ;;  %15155 = vmatpush1.bf16.msra.mxu1 %v18367_v29  ;;  %v18422_v28 = vcombine.high %v2335_v17, %v2339_v18  ;;  %v18424_v29 = vcombine.high %v2336_v23, %v2340_v24  ;;  %v2388_v17 = vld [vmem:[%s21083_s17 + $0x12e8] sm:$0xff] }
 0x376   : > { %14500 = vmatprep.subr.bf16.mxu0 %v18374_v0  ;;  %15156 = vmatprep.subr.bf16.mxu1 %v18376_v54  ;;  %v2343_v0 = vld [vmem:[%s21083_s17 + $0x1180] sm:$0xff] }
 0x377   : > { %v2347_v54 = vld [vmem:[%s21083_s17 + $0x11a0] sm:$0xff] }
 0x378   : > { %v18429_v34 = vcombine.low %v2343_v0, %v2347_v54 }
 0x379   : > { %14501 = vmatpush1.bf16.msra.mxu0 %v18373_v39  ;;  %15157 = vmatpush1.bf16.msra.mxu1 %v18375_v40  ;;  %v18430_v39 = vcombine.high %v2343_v0, %v2347_v54  ;;  %v18432_v40 = vcombine.high %v2344_v31, %v2348_v16  ;;  %v2396_v0 = vld [vmem:[%s21083_s17 + $0x1328] sm:$0xff] }
 0x37a   : > { %14511 = vmatprep.subr.bf16.mxu0 %v18382_v41  ;;  %15167 = vmatprep.subr.bf16.mxu1 %v18384_v42  ;;  %v2351_v41 = vld [vmem:[%s21083_s17 + $0x11c0] sm:$0xff] }
 0x37b   : > { %v2355_v42 = vld [vmem:[%s21083_s17 + $0x11e0] sm:$0xff] }
 0x37c   : > { %14503 = vmatmul.mubr.bf16.vlgmr.msra.gmra.mrb[0].mxu0 %v21617_v45  ;;  %15159 = vmatmul.mubr.bf16.vlgmr.msra.gmra.mrb[0].mxu1 %v21617_v45  ;;  %v18438_v46 = vcombine.high %v2351_v41, %v2355_v42  ;;  %v18437_v53 = vcombine.low %v2351_v41, %v2355_v42  ;;  %v2404_v41 = vld [vmem:[%s21083_s17 + $0x1368] sm:$0xff] }
 0x37d   : > { %14512 = vmatpush1.bf16.msra.mxu0 %v18381_v47  ;;  %15168 = vmatpush1.bf16.msra.mxu1 %v18383_v37  ;;  %v18440_v47 = vcombine.high %v2352_v43, %v2356_v44  ;;  %v2359_v37 = vld [vmem:[%s21083_s17 + $0x1200] sm:$0xff] }
 0x37e   : > { %14513 = vmatprep.subr.bf16.mxu0 %v18390_v49  ;;  %15169 = vmatprep.subr.bf16.mxu1 %v18392_v27  ;;  %v2363_v49 = vld [vmem:[%s21083_s17 + $0x1220] sm:$0xff]  ;;  %v2360_v27 = vld [vmem:[%s21083_s17 + $0x1208] sm:$0xff] }
 0x37f   : > { %14543 = vmatprep.mubr.bf16.mxu0 %v21624_v20  ;;  %15199 = vmatprep.mubr.bf16.mxu1 %v21624_v20  ;;  %v18446_v56 = vcombine.high %v2359_v37, %v2363_v49  ;;  %v18445_v1 = vcombine.low %v2359_v37, %v2363_v49  ;;  %v18447_v3 = vcombine.low %v2360_v27, %v2364_v50  ;;  %v2412_v37 = vld [vmem:[%s21083_s17 + $0x13a8] sm:$0xff] }
 0x381   : > { %14514 = vmatpush1.bf16.msra.mxu0 %v18389_v22  ;;  %15170 = vmatpush1.bf16.msra.mxu1 %v18391_v60  ;;  %v18448_v22 = vcombine.high %v2360_v27, %v2364_v50  ;;  %v2367_v60 = vld [vmem:[%s21083_s17 + $0x1240] sm:$0xff] }
 0x382   : > { %14515 = vmatprep.subr.bf16.mxu0 %v18398_v61  ;;  %15171 = vmatprep.subr.bf16.mxu1 %v18400_v62  ;;  %v2371_v61 = vld [vmem:[%s21083_s17 + $0x1260] sm:$0xff]  ;;  %v2368_v62 = vld [vmem:[%s21083_s17 + $0x1248] sm:$0xff] }
 0x383   : > { %v18454_v4 = vcombine.high %v2367_v60, %v2371_v61  ;;  %v18453_v9 = vcombine.low %v2367_v60, %v2371_v61  ;;  %v18455_v10 = vcombine.low %v2368_v62, %v2372_v63  ;;  %v2420_v60 = vld [vmem:[%s21083_s17 + $0x13e8] sm:$0xff] }
 0x385   : > { %14516 = vmatpush1.bf16.msra.mxu0 %v18397_v5  ;;  %15172 = vmatpush1.bf16.msra.mxu1 %v18399_v6  ;;  %v18456_v5 = vcombine.high %v2368_v62, %v2372_v63  ;;  %v2375_v6 = vld [vmem:[%s21083_s17 + $0x1280] sm:$0xff] }
 0x386   : > { %14517 = vmatprep.subr.bf16.mxu0 %v18406_v51  ;;  %15173 = vmatprep.subr.bf16.mxu1 %v18408_v8  ;;  %v2379_v51 = vld [vmem:[%s21083_s17 + $0x12a0] sm:$0xff]  ;;  %v2376_v8 = vld [vmem:[%s21083_s17 + $0x1288] sm:$0xff] }
 0x387   : > { %v18462_v12 = vcombine.high %v2375_v6, %v2379_v51  ;;  %v18461_v18 = vcombine.low %v2375_v6, %v2379_v51  ;;  %v18463_v23 = vcombine.low %v2376_v8, %v2380_v52  ;;  %v2428_v6 = vld [vmem:[%s21083_s17 + $0x1428] sm:$0xff] }
 0x389   : > { %14518 = vmatpush1.bf16.msra.mxu0 %v18405_v13  ;;  %15174 = vmatpush1.bf16.msra.mxu1 %v18407_v11  ;;  %v18464_v13 = vcombine.high %v2376_v8, %v2380_v52  ;;  %v2383_v11 = vld [vmem:[%s21083_s17 + $0x12c0] sm:$0xff] }
 0x38a   : > { %14519 = vmatprep.subr.bf16.mxu0 %v18414_v14  ;;  %15175 = vmatprep.subr.bf16.mxu1 %v18416_v15  ;;  %v2387_v14 = vld [vmem:[%s21083_s17 + $0x12e0] sm:$0xff]  ;;  %v2384_v15 = vld [vmem:[%s21083_s17 + $0x12c8] sm:$0xff] }
 0x38b   : > { %v18470_v24 = vcombine.high %v2383_v11, %v2387_v14  ;;  %v18469_v54 = vcombine.low %v2383_v11, %v2387_v14  ;;  %v18471_v31 = vcombine.low %v2384_v15, %v2388_v17  ;;  %v2432_v11 = vld [vmem:[%s21083_s17 + $0x1448] sm:$0xff] }
 0x38c   : > { %v2436_v14 = vld [vmem:[%s21083_s17 + $0x1468] sm:$0xff] }
 0x38d   : > { %14520 = vmatpush1.bf16.msra.mxu0 %v18413_v21  ;;  %15176 = vmatpush1.bf16.msra.mxu1 %v18415_v25  ;;  %v18472_v21 = vcombine.high %v2384_v15, %v2388_v17  ;;  %v2391_v25 = vld [vmem:[%s21083_s17 + $0x1300] sm:$0xff] }
 0x38e   : > { %14521 = vmatprep.subr.bf16.mxu0 %v18422_v28  ;;  %15177 = vmatprep.subr.bf16.mxu1 %v18424_v29  ;;  %v2395_v28 = vld [vmem:[%s21083_s17 + $0x1320] sm:$0xff]  ;;  %v2392_v29 = vld [vmem:[%s21083_s17 + $0x1308] sm:$0xff] }
 0x38f   : > { %v18478_v16 = vcombine.high %v2391_v25, %v2395_v28  ;;  %v18477_v42 = vcombine.low %v2391_v25, %v2395_v28  ;;  %v18479_v43 = vcombine.low %v2392_v29, %v2396_v0  ;;  %v21700_v25 = vcombine.high %v21624_v20, %v21624_v20  ;;  %v2444_v28 = vld [vmem:[%s21083_s17 + $0x14a8] sm:$0xff] }
 0x391   : > { %14522 = vmatpush1.bf16.msra.mxu0 %v18421_v36  ;;  %15178 = vmatpush1.bf16.msra.mxu1 %v18423_v38  ;;  %v18480_v36 = vcombine.high %v2392_v29, %v2396_v0  ;;  %v2399_v38 = vld [vmem:[%s21083_s17 + $0x1340] sm:$0xff]  ;;  %v18519_v0 = vcombine.low %v2432_v11, %v2436_v14 }
 0x392   : > { %14523 = vmatprep.subr.bf16.mxu0 %v18430_v39  ;;  %15179 = vmatprep.subr.bf16.mxu1 %v18432_v40  ;;  %v2403_v39 = vld [vmem:[%s21083_s17 + $0x1360] sm:$0xff]  ;;  %v2400_v40 = vld [vmem:[%s21083_s17 + $0x1348] sm:$0xff] }
 0x393   : > { %v18486_v44 = vcombine.high %v2399_v38, %v2403_v39  ;;  %v18485_v49 = vcombine.low %v2399_v38, %v2403_v39  ;;  %v18487_v27 = vcombine.low %v2400_v40, %v2404_v41  ;;  %v2448_v38 = vld [vmem:[%s21083_s17 + $0x14c8] sm:$0xff] }
 0x394   : > { %v2452_v39 = vld [vmem:[%s21083_s17 + $0x14e8] sm:$0xff] }
 0x395   : > { %14524 = vmatpush1.bf16.msra.mxu0 %v18429_v34  ;;  %15180 = vmatpush1.bf16.msra.mxu1 %v18431_v35  ;;  %v18488_v34 = vcombine.high %v2400_v40, %v2404_v41  ;;  %v2407_v35 = vld [vmem:[%s21083_s17 + $0x1380] sm:$0xff] }
 0x396   : > { %14525 = vmatprep.subr.bf16.mxu0 %v18438_v46  ;;  %15181 = vmatprep.subr.bf16.mxu1 %v18440_v47  ;;  %v2411_v46 = vld [vmem:[%s21083_s17 + $0x13a0] sm:$0xff]  ;;  %v2408_v47 = vld [vmem:[%s21083_s17 + $0x1388] sm:$0xff] }
 0x397   : > { %v18494_v50 = vcombine.high %v2407_v35, %v2411_v46  ;;  %v18493_v61 = vcombine.low %v2407_v35, %v2411_v46  ;;  %v18495_v62 = vcombine.low %v2408_v47, %v2412_v37  ;;  %v2456_v35 = vld [vmem:[%s21083_s17 + $0x1508] sm:$0xff] }
 0x398   : > { %v2460_v46 = vld [vmem:[%s21083_s17 + $0x1528] sm:$0xff] }
 0x399   : > { %14526 = vmatpush1.bf16.msra.mxu0 %v18437_v53  ;;  %15182 = vmatpush1.bf16.msra.mxu1 %v18439_v55  ;;  %v18496_v53 = vcombine.high %v2408_v47, %v2412_v37  ;;  %v2415_v55 = vld [vmem:[%s21083_s17 + $0x13c0] sm:$0xff]  ;;  %v18535_v37 = vcombine.low %v2448_v38, %v2452_v39 }
 0x39a   : > { %14527 = vmatprep.subr.bf16.mxu0 %v18446_v56  ;;  %15183 = vmatprep.subr.bf16.mxu1 %v18448_v22  ;;  %v2419_v56 = vld [vmem:[%s21083_s17 + $0x13e0] sm:$0xff]  ;;  %v2416_v22 = vld [vmem:[%s21083_s17 + $0x13c8] sm:$0xff] }
 0x39b   : > { %v18502_v63 = vcombine.high %v2415_v55, %v2419_v56  ;;  %v18501_v51 = vcombine.low %v2415_v55, %v2419_v56  ;;  %v18503_v8 = vcombine.low %v2416_v22, %v2420_v60  ;;  %v2464_v55 = vld [vmem:[%s21083_s17 + $0x1548] sm:$0xff] }
 0x39c   : > { %v2468_v56 = vld [vmem:[%s21083_s17 + $0x1568] sm:$0xff] }
 0x39d   : > { %14528 = vmatpush1.bf16.msra.mxu0 %v18445_v1  ;;  %15184 = vmatpush1.bf16.msra.mxu1 %v18447_v3  ;;  %v18504_v1 = vcombine.high %v2416_v22, %v2420_v60  ;;  %v2423_v3 = vld [vmem:[%s21083_s17 + $0x1400] sm:$0xff]  ;;  %v18543_v60 = vcombine.low %v2456_v35, %v2460_v46 }
 0x39e   : > { %14529 = vmatprep.subr.bf16.mxu0 %v18454_v4  ;;  %15185 = vmatprep.subr.bf16.mxu1 %v18456_v5  ;;  %v2427_v4 = vld [vmem:[%s21083_s17 + $0x1420] sm:$0xff]  ;;  %v2424_v5 = vld [vmem:[%s21083_s17 + $0x1408] sm:$0xff] }
 0x39f   : > { %v18510_v52 = vcombine.high %v2423_v3, %v2427_v4  ;;  %v18509_v15 = vcombine.low %v2423_v3, %v2427_v4  ;;  %v18511_v17 = vcombine.low %v2424_v5, %v2428_v6  ;;  %v2472_v3 = vld [vmem:[%s21083_s17 + $0x1588] sm:$0xff] }
 0x3a0   : > { %v2476_v4 = vld [vmem:[%s21083_s17 + $0x15a8] sm:$0xff] }
 0x3a1   : > { %14530 = vmatpush1.bf16.msra.mxu0 %v18453_v9  ;;  %15186 = vmatpush1.bf16.msra.mxu1 %v18455_v10  ;;  %v18512_v9 = vcombine.high %v2424_v5, %v2428_v6  ;;  %v2431_v10 = vld [vmem:[%s21083_s17 + $0x1440] sm:$0xff]  ;;  %v18551_v6 = vcombine.low %v2464_v55, %v2468_v56 }
 0x3a2   : > { %14531 = vmatprep.subr.bf16.mxu0 %v18462_v12  ;;  %15187 = vmatprep.subr.bf16.mxu1 %v18464_v13  ;;  %v2435_v12 = vld [vmem:[%s21083_s17 + $0x1460] sm:$0xff]  ;;  %v21692_v13 = vrot.slane %v21607_v32, %v21314_v58  ;;  %v2440_v32 = vld [vmem:[%s21083_s17 + $0x1488] sm:$0xff] }
 0x3a3   : > { %v18517_v29 = vcombine.low %v2431_v10, %v2435_v12  ;;  %v18527_v41 = vcombine.low %v2440_v32, %v2444_v28 }
 0x3a5   : > { %14532 = vmatpush1.bf16.msra.mxu0 %v18461_v18  ;;  %15188 = vmatpush1.bf16.msra.mxu1 %v18463_v23  ;;  %v18518_v18 = vcombine.high %v2431_v10, %v2435_v12  ;;  %v18520_v23 = vcombine.high %v2432_v11, %v2436_v14  ;;  %v2480_v10 = vld [vmem:[%s21083_s17 + $0x15c8] sm:$0xff]  ;;  %v18559_v14 = vcombine.low %v2472_v3, %v2476_v4 }
 0x3a6   : > { %14533 = vmatprep.subr.bf16.mxu0 %v18470_v24  ;;  %15189 = vmatprep.subr.bf16.mxu1 %v18472_v21  ;;  %v2439_v24 = vld [vmem:[%s21083_s17 + $0x1480] sm:$0xff]  ;;  %v2484_v12 = vld [vmem:[%s21083_s17 + $0x15e8] sm:$0xff] }
 0x3a7   : > { %v2443_v21 = vld [vmem:[%s21083_s17 + $0x14a0] sm:$0xff] }
 0x3a8   : > { %v18525_v40 = vcombine.low %v2439_v24, %v2443_v21 }
 0x3a9   : > { %14534 = vmatpush1.bf16.msra.mxu0 %v18469_v54  ;;  %15190 = vmatpush1.bf16.msra.mxu1 %v18471_v31  ;;  %v18526_v54 = vcombine.high %v2439_v24, %v2443_v21  ;;  %v18528_v31 = vcombine.high %v2440_v32, %v2444_v28  ;;  %v2488_v24 = vld [vmem:[%s21083_s17 + $0x1608] sm:$0xff]  ;;  %v18567_v28 = vcombine.low %v2480_v10, %v2484_v12 }
 0x3aa   : > { %14535 = vmatprep.subr.bf16.mxu0 %v18478_v16  ;;  %15191 = vmatprep.subr.bf16.mxu1 %v18480_v36  ;;  %v2447_v16 = vld [vmem:[%s21083_s17 + $0x14c0] sm:$0xff]  ;;  %v2492_v21 = vld [vmem:[%s21083_s17 + $0x1628] sm:$0xff] }
 0x3ab   : > { %v2451_v36 = vld [vmem:[%s21083_s17 + $0x14e0] sm:$0xff] }
 0x3ac   : > { %v18533_v47 = vcombine.low %v2447_v16, %v2451_v36 }
 0x3ad   : > { %14536 = vmatpush1.bf16.msra.mxu0 %v18477_v42  ;;  %15192 = vmatpush1.bf16.msra.mxu1 %v18479_v43  ;;  %v18534_v42 = vcombine.high %v2447_v16, %v2451_v36  ;;  %v18536_v43 = vcombine.high %v2448_v38, %v2452_v39  ;;  %v2496_v16 = vld [vmem:[%s21083_s17 + $0x1648] sm:$0xff]  ;;  %v18575_v39 = vcombine.low %v2488_v24, %v2492_v21 }
 0x3ae   : > { %14537 = vmatprep.subr.bf16.mxu0 %v18486_v44  ;;  %15193 = vmatprep.subr.bf16.mxu1 %v18488_v34  ;;  %v2455_v44 = vld [vmem:[%s21083_s17 + $0x1500] sm:$0xff]  ;;  %v2500_v36 = vld [vmem:[%s21083_s17 + $0x1668] sm:$0xff] }
 0x3af   : > { %v2459_v34 = vld [vmem:[%s21083_s17 + $0x1520] sm:$0xff] }
 0x3b0   : > { %v18541_v22 = vcombine.low %v2455_v44, %v2459_v34 }
 0x3b1   : > { %14538 = vmatpush1.bf16.msra.mxu0 %v18485_v49  ;;  %15194 = vmatpush1.bf16.msra.mxu1 %v18487_v27  ;;  %v18542_v49 = vcombine.high %v2455_v44, %v2459_v34  ;;  %v18544_v27 = vcombine.high %v2456_v35, %v2460_v46  ;;  %v2504_v44 = vld [vmem:[%s21083_s17 + $0x1688] sm:$0xff]  ;;  %v18583_v46 = vcombine.low %v2496_v16, %v2500_v36 }
 0x3b2   : > { %14539 = vmatprep.subr.bf16.mxu0 %v18494_v50  ;;  %15195 = vmatprep.subr.bf16.mxu1 %v18496_v53  ;;  %v2463_v50 = vld [vmem:[%s21083_s17 + $0x1540] sm:$0xff]  ;;  %v2508_v34 = vld [vmem:[%s21083_s17 + $0x16a8] sm:$0xff] }
 0x3b3   : > { %v2467_v53 = vld [vmem:[%s21083_s17 + $0x1560] sm:$0xff] }
 0x3b4   : > { %v18549_v5 = vcombine.low %v2463_v50, %v2467_v53 }
 0x3b5   : > { %14540 = vmatpush1.bf16.msra.mxu0 %v18493_v61  ;;  %15196 = vmatpush1.bf16.msra.mxu1 %v18495_v62  ;;  %v18550_v61 = vcombine.high %v2463_v50, %v2467_v53  ;;  %v18552_v62 = vcombine.high %v2464_v55, %v2468_v56  ;;  %v2512_v50 = vld [vmem:[%s21083_s17 + $0x16c8] sm:$0xff]  ;;  %v18591_v56 = vcombine.low %v2504_v44, %v2508_v34 }
 0x3b6   : > { %14541 = vmatprep.subr.bf16.mxu0 %v18502_v63  ;;  %15197 = vmatprep.subr.bf16.mxu1 %v18504_v1  ;;  %v2471_v63 = vld [vmem:[%s21083_s17 + $0x1580] sm:$0xff]  ;;  %v2516_v53 = vld [vmem:[%s21083_s17 + $0x16e8] sm:$0xff] }
 0x3b7   : > { %v2475_v1 = vld [vmem:[%s21083_s17 + $0x15a0] sm:$0xff] }
 0x3b8   : > { %v18557_v11 = vcombine.low %v2471_v63, %v2475_v1 }
 0x3b9   : > { %14542 = vmatpush1.bf16.msra.mxu0 %v18501_v51  ;;  %15198 = vmatpush1.bf16.msra.mxu1 %v18503_v8  ;;  %v18558_v51 = vcombine.high %v2471_v63, %v2475_v1  ;;  %v18560_v8 = vcombine.high %v2472_v3, %v2476_v4  ;;  %v2520_v63 = vld [vmem:[%s21083_s17 + $0x1708] sm:$0xff]  ;;  %v18599_v4 = vcombine.low %v2512_v50, %v2516_v53 }
 0x3ba   : > { %14552 = vmatprep.subr.bf16.mxu0 %v18510_v52  ;;  %15208 = vmatprep.subr.bf16.mxu1 %v18512_v9  ;;  %v2479_v52 = vld [vmem:[%s21083_s17 + $0x15c0] sm:$0xff]  ;;  %v2524_v1 = vld [vmem:[%s21083_s17 + $0x1728] sm:$0xff] }
 0x3bb   : > { %v2483_v9 = vld [vmem:[%s21083_s17 + $0x15e0] sm:$0xff] }
 0x3bc   : > { %14544 = vmatmul.mubr.bf16.vlgmr.msra.gmra.mrb[0].mxu0 %v21692_v13  ;;  %15200 = vmatmul.mubr.bf16.vlgmr.msra.gmra.mrb[0].mxu1 %v21692_v13  ;;  %v18565_v32 = vcombine.low %v2479_v52, %v2483_v9 }
 0x3bd   : > { %14553 = vmatpush1.bf16.msra.mxu0 %v18509_v15  ;;  %15209 = vmatpush1.bf16.msra.mxu1 %v18511_v17  ;;  %v18566_v15 = vcombine.high %v2479_v52, %v2483_v9  ;;  %v18568_v17 = vcombine.high %v2480_v10, %v2484_v12  ;;  %v2528_v52 = vld [vmem:[%s21083_s17 + $0x1748] sm:$0xff]  ;;  %v18607_v12 = vcombine.low %v2520_v63, %v2524_v1 }
 0x3be   : > { %14554 = vmatprep.subr.bf16.mxu0 %v18518_v18  ;;  %15210 = vmatprep.subr.bf16.mxu1 %v18520_v23  ;;  %v2487_v18 = vld [vmem:[%s21083_s17 + $0x1600] sm:$0xff]  ;;  %v2532_v9 = vld [vmem:[%s21083_s17 + $0x1768] sm:$0xff] }
 0x3bf   : > { %14584 = vmatprep.mubr.bf16.mxu0 %v21700_v25  ;;  %15240 = vmatprep.mubr.bf16.mxu1 %v21700_v25  ;;  %v2491_v23 = vld [vmem:[%s21083_s17 + $0x1620] sm:$0xff] }
 0x3c0   : > { %v18573_v38 = vcombine.low %v2487_v18, %v2491_v23 }
 0x3c1   : > { %14555 = vmatpush1.bf16.msra.mxu0 %v18517_v29  ;;  %15211 = vmatpush1.bf16.msra.mxu1 %v18519_v0  ;;  %v18574_v29 = vcombine.high %v2487_v18, %v2491_v23  ;;  %v18576_v0 = vcombine.high %v2488_v24, %v2492_v21  ;;  %v2536_v18 = vld [vmem:[%s21083_s17 + $0x1788] sm:$0xff]  ;;  %v18615_v21 = vcombine.low %v2528_v52, %v2532_v9 }
 0x3c2   : > { %14556 = vmatprep.subr.bf16.mxu0 %v18526_v54  ;;  %15212 = vmatprep.subr.bf16.mxu1 %v18528_v31  ;;  %v2495_v54 = vld [vmem:[%s21083_s17 + $0x1640] sm:$0xff]  ;;  %v2540_v23 = vld [vmem:[%s21083_s17 + $0x17a8] sm:$0xff] }
 0x3c3   : > { %v2499_v31 = vld [vmem:[%s21083_s17 + $0x1660] sm:$0xff] }
 0x3c4   : > { %v18581_v35 = vcombine.low %v2495_v54, %v2499_v31 }
 0x3c5   : > { %14557 = vmatpush1.bf16.msra.mxu0 %v18525_v40  ;;  %15213 = vmatpush1.bf16.msra.mxu1 %v18527_v41  ;;  %v18582_v40 = vcombine.high %v2495_v54, %v2499_v31  ;;  %v18584_v41 = vcombine.high %v2496_v16, %v2500_v36  ;;  %v3928_v54 = vcombine.high %v21601_v26, %v21601_v26  ;;  %v2544_v31 = vld [vmem:[%s21083_s17 + $0x17c8] sm:$0xff] }
 0x3c6   : > { %14558 = vmatprep.subr.bf16.mxu0 %v18534_v42  ;;  %15214 = vmatprep.subr.bf16.mxu1 %v18536_v43  ;;  %v2503_v42 = vld [vmem:[%s21083_s17 + $0x1680] sm:$0xff]  ;;  %v2548_v16 = vld [vmem:[%s21083_s17 + $0x17e8] sm:$0xff] }
 0x3c7   : > { %v2507_v43 = vld [vmem:[%s21083_s17 + $0x16a0] sm:$0xff]  ;;  %v2552_v26 = vld [vmem:[%s21083_s17 + $0x1808] sm:$0xff] }
 0x3c8   : > { %v18589_v55 = vcombine.low %v2503_v42, %v2507_v43 }
 0x3c9   : > { %14559 = vmatpush1.bf16.msra.mxu0 %v18533_v47  ;;  %15215 = vmatpush1.bf16.msra.mxu1 %v18535_v37  ;;  %v18590_v47 = vcombine.high %v2503_v42, %v2507_v43  ;;  %v18592_v37 = vcombine.high %v2504_v44, %v2508_v34  ;;  %v2555_v42 = vld [vmem:[%s21083_s17 + $0x1820] sm:$0xff]  ;;  %v21765_v43 = vrot.slane %v3928_v54, %v21314_v58  ;;  %v2556_v44 = vld [vmem:[%s21083_s17 + $0x1828] sm:$0xff] }
 0x3ca   : > { %14560 = vmatprep.subr.bf16.mxu0 %v18542_v49  ;;  %15216 = vmatprep.subr.bf16.mxu1 %v18544_v27  ;;  %v2511_v49 = vld [vmem:[%s21083_s17 + $0x16c0] sm:$0xff] }
 0x3cb   : > { %v2515_v27 = vld [vmem:[%s21083_s17 + $0x16e0] sm:$0xff] }
 0x3cc   : > { %v18597_v3 = vcombine.low %v2511_v49, %v2515_v27  ;;  %v2591_v54 = vld [vmem:[%s21083_s17 + $0x1940] sm:$0xff] }
 0x3cd   : > { %14561 = vmatpush1.bf16.msra.mxu0 %v18541_v22  ;;  %15217 = vmatpush1.bf16.msra.mxu1 %v18543_v60  ;;  %v18598_v22 = vcombine.high %v2511_v49, %v2515_v27  ;;  %v18600_v60 = vcombine.high %v2512_v50, %v2516_v53  ;;  %v2563_v49 = vld [vmem:[%s21083_s17 + $0x1860] sm:$0xff]  ;;  %v3944_v27 = vcombine.high %v21765_v43, %v21765_v43  ;;  %v2560_v53 = vld [vmem:[%s21083_s17 + $0x1848] sm:$0xff] }
 0x3ce   : > { %14562 = vmatprep.subr.bf16.mxu0 %v18550_v61  ;;  %15218 = vmatprep.subr.bf16.mxu1 %v18552_v62  ;;  %v2519_v61 = vld [vmem:[%s21083_s17 + $0x1700] sm:$0xff]  ;;  %v21775_v50 = vcombine.high %v21692_v13, %v21692_v13 }
 0x3cf   : > { %v2523_v62 = vld [vmem:[%s21083_s17 + $0x1720] sm:$0xff] }
 0x3d0   : > { %v18605_v10 = vcombine.low %v2519_v61, %v2523_v62 }
 0x3d1   : > { %14563 = vmatpush1.bf16.msra.mxu0 %v18549_v5  ;;  %15219 = vmatpush1.bf16.msra.mxu1 %v18551_v6  ;;  %v18606_v5 = vcombine.high %v2519_v61, %v2523_v62  ;;  %v18608_v6 = vcombine.high %v2520_v63, %v2524_v1  ;;  %v2567_v62 = vld [vmem:[%s21083_s17 + $0x1880] sm:$0xff]  ;;  %v21782_v1 = vrot.slane %v3944_v27, %v21314_v58 }
 0x3d2   : > { %14564 = vmatprep.subr.bf16.mxu0 %v18558_v51  ;;  %15220 = vmatprep.subr.bf16.mxu1 %v18560_v8  ;;  %v2527_v51 = vld [vmem:[%s21083_s17 + $0x1740] sm:$0xff] }
 0x3d3   : > { %v2531_v8 = vld [vmem:[%s21083_s17 + $0x1760] sm:$0xff] }
 0x3d4   : > { %v18613_v24 = vcombine.low %v2527_v51, %v2531_v8  ;;  %v2571_v63 = vld [vmem:[%s21083_s17 + $0x18a0] sm:$0xff] }
 0x3d5   : > { %14565 = vmatpush1.bf16.msra.mxu0 %v18557_v11  ;;  %15221 = vmatpush1.bf16.msra.mxu1 %v18559_v14  ;;  %v18614_v11 = vcombine.high %v2527_v51, %v2531_v8  ;;  %v18616_v14 = vcombine.high %v2528_v52, %v2532_v9  ;;  %v18654_v51 = vcombine.high %v2567_v62, %v2571_v63  ;;  %v2575_v52 = vld [vmem:[%s21083_s17 + $0x18c0] sm:$0xff] }
 0x3d6   : > { %14566 = vmatprep.subr.bf16.mxu0 %v18566_v15  ;;  %15222 = vmatprep.subr.bf16.mxu1 %v18568_v17  ;;  %v2535_v15 = vld [vmem:[%s21083_s17 + $0x1780] sm:$0xff] }
 0x3d7   : > { %v2539_v17 = vld [vmem:[%s21083_s17 + $0x17a0] sm:$0xff] }
 0x3d8   : > { %v18621_v36 = vcombine.low %v2535_v15, %v2539_v17  ;;  %v2579_v9 = vld [vmem:[%s21083_s17 + $0x18e0] sm:$0xff] }
 0x3d9   : > { %14567 = vmatpush1.bf16.msra.mxu0 %v18565_v32  ;;  %15223 = vmatpush1.bf16.msra.mxu1 %v18567_v28  ;;  %v18622_v32 = vcombine.high %v2535_v15, %v2539_v17  ;;  %v18624_v28 = vcombine.high %v2536_v18, %v2540_v23  ;;  %v18662_v15 = vcombine.high %v2575_v52, %v2579_v9  ;;  %v2611_v27 = vld [vmem:[%s21083_s17 + $0x19e0] sm:$0xff] }
 0x3da   : > { %14568 = vmatprep.subr.bf16.mxu0 %v18574_v29  ;;  %15224 = vmatprep.subr.bf16.mxu1 %v18576_v0  ;;  %v2543_v29 = vld [vmem:[%s21083_s17 + $0x17c0] sm:$0xff] }
 0x3db   : > { %v2547_v0 = vld [vmem:[%s21083_s17 + $0x17e0] sm:$0xff] }
 0x3dc   : > { %v18629_v34 = vcombine.low %v2543_v29, %v2547_v0 }
 0x3dd   : > { %14569 = vmatpush1.bf16.msra.mxu0 %v18573_v38  ;;  %15225 = vmatpush1.bf16.msra.mxu1 %v18575_v39  ;;  %v18623_v38 = vcombine.low %v2536_v18, %v2540_v23  ;;  %v18630_v39 = vcombine.high %v2543_v29, %v2547_v0  ;;  %v2583_v18 = vld [vmem:[%s21083_s17 + $0x1900] sm:$0xff] }
 0x3de   : > { %14570 = vmatprep.subr.bf16.mxu0 %v18582_v40  ;;  %15226 = vmatprep.subr.bf16.mxu1 %v18584_v41  ;;  %v18632_v40 = vcombine.high %v2544_v31, %v2548_v16  ;;  %v2551_v41 = vld [vmem:[%s21083_s17 + $0x1800] sm:$0xff] }
 0x3df   : > { %v2587_v23 = vld [vmem:[%s21083_s17 + $0x1920] sm:$0xff] }
 0x3e0   : > { %v18670_v29 = vcombine.high %v2583_v18, %v2587_v23 }
 0x3e1   : > { %14571 = vmatpush1.bf16.msra.mxu0 %v18581_v35  ;;  %15227 = vmatpush1.bf16.msra.mxu1 %v18583_v46  ;;  %v18631_v35 = vcombine.low %v2544_v31, %v2548_v16  ;;  %v18638_v46 = vcombine.high %v2551_v41, %v2555_v42  ;;  %v2595_v31 = vld [vmem:[%s21083_s17 + $0x1960] sm:$0xff]  ;;  %v2592_v16 = vld [vmem:[%s21083_s17 + $0x1948] sm:$0xff] }
 0x3e2   : > { %14572 = vmatprep.subr.bf16.mxu0 %v18590_v47  ;;  %15228 = vmatprep.subr.bf16.mxu1 %v18592_v37  ;;  %v18640_v47 = vcombine.high %v2552_v26, %v2556_v44  ;;  %v2559_v37 = vld [vmem:[%s21083_s17 + $0x1840] sm:$0xff] }
 0x3e5   : > { %14573 = vmatpush1.bf16.msra.mxu0 %v18589_v55  ;;  %15229 = vmatpush1.bf16.msra.mxu1 %v18591_v56  ;;  %v2564_v55 = vld [vmem:[%s21083_s17 + $0x1868] sm:$0xff]  ;;  %v18637_v56 = vcombine.low %v2551_v41, %v2555_v42  ;;  %v2599_v42 = vld [vmem:[%s21083_s17 + $0x1980] sm:$0xff] }
 0x3e6   : > { %14574 = vmatprep.subr.bf16.mxu0 %v18598_v22  ;;  %15230 = vmatprep.subr.bf16.mxu1 %v18600_v60  ;;  %v18639_v22 = vcombine.low %v2552_v26, %v2556_v44  ;;  %v18646_v60 = vcombine.high %v2559_v37, %v2563_v49  ;;  %v18648_v61 = vcombine.high %v2560_v53, %v2564_v55  ;;  %v2603_v26 = vld [vmem:[%s21083_s17 + $0x19a0] sm:$0xff]  ;;  %v2600_v44 = vld [vmem:[%s21083_s17 + $0x1988] sm:$0xff] }
 0x3e9   : > { %14575 = vmatpush1.bf16.msra.mxu0 %v18597_v3  ;;  %15231 = vmatpush1.bf16.msra.mxu1 %v18599_v4  ;;  %v2568_v3 = vld [vmem:[%s21083_s17 + $0x1888] sm:$0xff] }
 0x3ea   : > { %14576 = vmatprep.subr.bf16.mxu0 %v18606_v5  ;;  %15232 = vmatprep.subr.bf16.mxu1 %v18608_v6  ;;  %v2572_v4 = vld [vmem:[%s21083_s17 + $0x18a8] sm:$0xff]  ;;  %v18645_v5 = vcombine.low %v2559_v37, %v2563_v49  ;;  %v18647_v6 = vcombine.low %v2560_v53, %v2564_v55  ;;  %v2607_v49 = vld [vmem:[%s21083_s17 + $0x19c0] sm:$0xff] }
 0x3eb   : > { %v18656_v8 = vcombine.high %v2568_v3, %v2572_v4  ;;  %v2608_v53 = vld [vmem:[%s21083_s17 + $0x19c8] sm:$0xff] }
 0x3ec   : > { %v2612_v55 = vld [vmem:[%s21083_s17 + $0x19e8] sm:$0xff] }
 0x3ed   : > { %14577 = vmatpush1.bf16.msra.mxu0 %v18605_v10  ;;  %15233 = vmatpush1.bf16.msra.mxu1 %v18607_v12  ;;  %v2576_v10 = vld [vmem:[%s21083_s17 + $0x18c8] sm:$0xff] }
 0x3ee   : > { %14578 = vmatprep.subr.bf16.mxu0 %v18614_v11  ;;  %15234 = vmatprep.subr.bf16.mxu1 %v18616_v14  ;;  %v2580_v12 = vld [vmem:[%s21083_s17 + $0x18e8] sm:$0xff]  ;;  %v18653_v11 = vcombine.low %v2567_v62, %v2571_v63  ;;  %v18655_v14 = vcombine.low %v2568_v3, %v2572_v4  ;;  %v2615_v62 = vld [vmem:[%s21083_s17 + $0x1a00] sm:$0xff] }
 0x3ef   : > { %v18664_v17 = vcombine.high %v2576_v10, %v2580_v12  ;;  %v2619_v63 = vld [vmem:[%s21083_s17 + $0x1a20] sm:$0xff]  ;;  %v2616_v3 = vld [vmem:[%s21083_s17 + $0x1a08] sm:$0xff] }
 0x3f0   : > { %v2620_v4 = vld [vmem:[%s21083_s17 + $0x1a28] sm:$0xff] }
 0x3f1   : > { %14579 = vmatpush1.bf16.msra.mxu0 %v18613_v24  ;;  %15235 = vmatpush1.bf16.msra.mxu1 %v18615_v21  ;;  %v2584_v24 = vld [vmem:[%s21083_s17 + $0x1908] sm:$0xff] }
 0x3f2   : > { %14580 = vmatprep.subr.bf16.mxu0 %v18622_v32  ;;  %15236 = vmatprep.subr.bf16.mxu1 %v18624_v28  ;;  %v2588_v21 = vld [vmem:[%s21083_s17 + $0x1928] sm:$0xff]  ;;  %v18661_v32 = vcombine.low %v2575_v52, %v2579_v9  ;;  %v18663_v28 = vcombine.low %v2576_v10, %v2580_v12  ;;  %v2623_v52 = vld [vmem:[%s21083_s17 + $0x1a40] sm:$0xff] }
 0x3f3   : > { %v18672_v0 = vcombine.high %v2584_v24, %v2588_v21  ;;  %v2627_v9 = vld [vmem:[%s21083_s17 + $0x1a60] sm:$0xff]  ;;  %v2624_v10 = vld [vmem:[%s21083_s17 + $0x1a48] sm:$0xff] }
 0x3f4   : > { %v2628_v12 = vld [vmem:[%s21083_s17 + $0x1a68] sm:$0xff] }
 0x3f5   : > { %14581 = vmatpush1.bf16.msra.mxu0 %v18621_v36  ;;  %15237 = vmatpush1.bf16.msra.mxu1 %v18623_v38  ;;  %v2596_v36 = vld [vmem:[%s21083_s17 + $0x1968] sm:$0xff]  ;;  %v18669_v38 = vcombine.low %v2583_v18, %v2587_v23  ;;  %v2631_v18 = vld [vmem:[%s21083_s17 + $0x1a80] sm:$0xff] }
 0x3f6   : > { %14582 = vmatprep.subr.bf16.mxu0 %v18630_v39  ;;  %15238 = vmatprep.subr.bf16.mxu1 %v18632_v40  ;;  %v18671_v39 = vcombine.low %v2584_v24, %v2588_v21  ;;  %v18678_v40 = vcombine.high %v2591_v54, %v2595_v31  ;;  %v18680_v41 = vcombine.high %v2592_v16, %v2596_v36  ;;  %v2635_v23 = vld [vmem:[%s21083_s17 + $0x1aa0] sm:$0xff]  ;;  %v2632_v24 = vld [vmem:[%s21083_s17 + $0x1a88] sm:$0xff] }
 0x3f7   : > { %v2636_v21 = vld [vmem:[%s21083_s17 + $0x1aa8] sm:$0xff] }
 0x3f9   : > { %14583 = vmatpush1.bf16.msra.mxu0 %v18629_v34  ;;  %15239 = vmatpush1.bf16.msra.mxu1 %v18631_v35  ;;  %v2604_v34 = vld [vmem:[%s21083_s17 + $0x19a8] sm:$0xff]  ;;  %v18677_v35 = vcombine.low %v2591_v54, %v2595_v31  ;;  %v2639_v54 = vld [vmem:[%s21083_s17 + $0x1ac0] sm:$0xff] }
 0x3fa   : > { %14593 = vmatprep.subr.bf16.mxu0 %v18638_v46  ;;  %15249 = vmatprep.subr.bf16.mxu1 %v18640_v47  ;;  %v18679_v46 = vcombine.low %v2592_v16, %v2596_v36  ;;  %v18686_v47 = vcombine.high %v2599_v42, %v2603_v26  ;;  %v18688_v37 = vcombine.high %v2600_v44, %v2604_v34  ;;  %v2643_v31 = vld [vmem:[%s21083_s17 + $0x1ae0] sm:$0xff]  ;;  %v2640_v16 = vld [vmem:[%s21083_s17 + $0x1ac8] sm:$0xff] }
 0x3fb   : > { %v2644_v36 = vld [vmem:[%s21083_s17 + $0x1ae8] sm:$0xff] }
 0x3fc   : > { %14585 = vmatmul.mubr.bf16.vlgmr.msra.gmra.mrb[0].mxu0 %v21775_v50  ;;  %15241 = vmatmul.mubr.bf16.vlgmr.msra.gmra.mrb[0].mxu1 %v21775_v50 }
 0x3fd   : > { %14594 = vmatpush1.bf16.msra.mxu0 %v18637_v56  ;;  %15250 = vmatpush1.bf16.msra.mxu1 %v18639_v22  ;;  %v18685_v56 = vcombine.low %v2599_v42, %v2603_v26  ;;  %v18687_v22 = vcombine.low %v2600_v44, %v2604_v34  ;;  %v2647_v42 = vld [vmem:[%s21083_s17 + $0x1b00] sm:$0xff]  ;;  %v2648_v44 = vld [vmem:[%s21083_s17 + $0x1b08] sm:$0xff] }
 0x3fe   : > { %14595 = vmatprep.subr.bf16.mxu0 %v18646_v60  ;;  %15251 = vmatprep.subr.bf16.mxu1 %v18648_v61  ;;  %v18694_v60 = vcombine.high %v2607_v49, %v2611_v27  ;;  %v18696_v61 = vcombine.high %v2608_v53, %v2612_v55  ;;  %v2651_v26 = vld [vmem:[%s21083_s17 + $0x1b20] sm:$0xff]  ;;  %v2652_v34 = vld [vmem:[%s21083_s17 + $0x1b28] sm:$0xff] }
 0x3ff   : > { %14625 = vmatprep.mubr.bf16.mxu0 %v21782_v1  ;;  %15281 = vmatprep.mubr.bf16.mxu1 %v21782_v1 }
 0x401   : > { %14596 = vmatpush1.bf16.msra.mxu0 %v18645_v5  ;;  %15252 = vmatpush1.bf16.msra.mxu1 %v18647_v6  ;;  %v18693_v5 = vcombine.low %v2607_v49, %v2611_v27  ;;  %v18695_v6 = vcombine.low %v2608_v53, %v2612_v55  ;;  %v2655_v49 = vld [vmem:[%s21083_s17 + $0x1b40] sm:$0xff]  ;;  %v2656_v53 = vld [vmem:[%s21083_s17 + $0x1b48] sm:$0xff] }
 0x402   : > { %14597 = vmatprep.subr.bf16.mxu0 %v18654_v51  ;;  %15253 = vmatprep.subr.bf16.mxu1 %v18656_v8  ;;  %v18702_v51 = vcombine.high %v2615_v62, %v2619_v63  ;;  %v18704_v8 = vcombine.high %v2616_v3, %v2620_v4  ;;  %v2659_v27 = vld [vmem:[%s21083_s17 + $0x1b60] sm:$0xff]  ;;  %v2660_v55 = vld [vmem:[%s21083_s17 + $0x1b68] sm:$0xff] }
 0x405   : > { %14598 = vmatpush1.bf16.msra.mxu0 %v18653_v11  ;;  %15254 = vmatpush1.bf16.msra.mxu1 %v18655_v14  ;;  %v18701_v11 = vcombine.low %v2615_v62, %v2619_v63  ;;  %v18703_v14 = vcombine.low %v2616_v3, %v2620_v4  ;;  %v2663_v62 = vld [vmem:[%s21083_s17 + $0x1b80] sm:$0xff]  ;;  %v2664_v3 = vld [vmem:[%s21083_s17 + $0x1b88] sm:$0xff] }
 0x406   : > { %14599 = vmatprep.subr.bf16.mxu0 %v18662_v15  ;;  %15255 = vmatprep.subr.bf16.mxu1 %v18664_v17  ;;  %v18710_v15 = vcombine.high %v2623_v52, %v2627_v9  ;;  %v18712_v17 = vcombine.high %v2624_v10, %v2628_v12  ;;  %v2667_v63 = vld [vmem:[%s21083_s17 + $0x1ba0] sm:$0xff]  ;;  %v2668_v4 = vld [vmem:[%s21083_s17 + $0x1ba8] sm:$0xff] }
 0x409   : > { %14600 = vmatpush1.bf16.msra.mxu0 %v18661_v32  ;;  %15256 = vmatpush1.bf16.msra.mxu1 %v18663_v28  ;;  %v18709_v32 = vcombine.low %v2623_v52, %v2627_v9  ;;  %v18711_v28 = vcombine.low %v2624_v10, %v2628_v12  ;;  %v2671_v52 = vld [vmem:[%s21083_s17 + $0x1bc0] sm:$0xff]  ;;  %v2672_v10 = vld [vmem:[%s21083_s17 + $0x1bc8] sm:$0xff] }
 0x40a   : > { %14601 = vmatprep.subr.bf16.mxu0 %v18670_v29  ;;  %15257 = vmatprep.subr.bf16.mxu1 %v18672_v0  ;;  %v18718_v29 = vcombine.high %v2631_v18, %v2635_v23  ;;  %v18720_v0 = vcombine.high %v2632_v24, %v2636_v21  ;;  %v2675_v9 = vld [vmem:[%s21083_s17 + $0x1be0] sm:$0xff]  ;;  %v2676_v12 = vld [vmem:[%s21083_s17 + $0x1be8] sm:$0xff] }
 0x40d   : > { %14602 = vmatpush1.bf16.msra.mxu0 %v18669_v38  ;;  %15258 = vmatpush1.bf16.msra.mxu1 %v18671_v39  ;;  %v18717_v38 = vcombine.low %v2631_v18, %v2635_v23  ;;  %v18719_v39 = vcombine.low %v2632_v24, %v2636_v21  ;;  %v2679_v18 = vld [vmem:[%s21083_s17 + $0x1c00] sm:$0xff]  ;;  %v2680_v24 = vld [vmem:[%s21083_s17 + $0x1c08] sm:$0xff] }
 0x40e   : > { %14603 = vmatprep.subr.bf16.mxu0 %v18678_v40  ;;  %15259 = vmatprep.subr.bf16.mxu1 %v18680_v41  ;;  %v18726_v40 = vcombine.high %v2639_v54, %v2643_v31  ;;  %v18728_v41 = vcombine.high %v2640_v16, %v2644_v36  ;;  %v2683_v23 = vld [vmem:[%s21083_s17 + $0x1c20] sm:$0xff]  ;;  %v2684_v21 = vld [vmem:[%s21083_s17 + $0x1c28] sm:$0xff] }
 0x411   : > { %14604 = vmatpush1.bf16.msra.mxu0 %v18677_v35  ;;  %15260 = vmatpush1.bf16.msra.mxu1 %v18679_v46  ;;  %v18725_v35 = vcombine.low %v2639_v54, %v2643_v31  ;;  %v18727_v46 = vcombine.low %v2640_v16, %v2644_v36  ;;  %v2687_v54 = vld [vmem:[%s21083_s17 + $0x1c40] sm:$0xff]  ;;  %v21850_v16 = vrot.slane %v21765_v43, %v21314_v58  ;;  %v2688_v36 = vld [vmem:[%s21083_s17 + $0x1c48] sm:$0xff] }
 0x412   : > { %14605 = vmatprep.subr.bf16.mxu0 %v18686_v47  ;;  %15261 = vmatprep.subr.bf16.mxu1 %v18688_v37  ;;  %v18734_v47 = vcombine.high %v2647_v42, %v2651_v26  ;;  %v18736_v37 = vcombine.high %v2648_v44, %v2652_v34  ;;  %v2691_v31 = vld [vmem:[%s21083_s17 + $0x1c60] sm:$0xff]  ;;  %v2696_v43 = vld [vmem:[%s21083_s17 + $0x1c88] sm:$0xff] }
 0x415   : > { %14606 = vmatpush1.bf16.msra.mxu0 %v18685_v56  ;;  %15262 = vmatpush1.bf16.msra.mxu1 %v18687_v22  ;;  %v18733_v56 = vcombine.low %v2647_v42, %v2651_v26  ;;  %v18735_v22 = vcombine.low %v2648_v44, %v2652_v34  ;;  %v2695_v26 = vld [vmem:[%s21083_s17 + $0x1c80] sm:$0xff]  ;;  %v21858_v34 = vcombine.high %v21782_v1, %v21782_v1 }
 0x416   : > { %14607 = vmatprep.subr.bf16.mxu0 %v18694_v60  ;;  %15263 = vmatprep.subr.bf16.mxu1 %v18696_v61  ;;  %v18742_v60 = vcombine.high %v2655_v49, %v2659_v27  ;;  %v18744_v61 = vcombine.high %v2656_v53, %v2660_v55  ;;  %v2699_v44 = vld [vmem:[%s21083_s17 + $0x1ca0] sm:$0xff] }
 0x419   : > { %14608 = vmatpush1.bf16.msra.mxu0 %v18693_v5  ;;  %15264 = vmatpush1.bf16.msra.mxu1 %v18695_v6  ;;  %v18741_v5 = vcombine.low %v2655_v49, %v2659_v27  ;;  %v18743_v6 = vcombine.low %v2656_v53, %v2660_v55  ;;  %v2703_v27 = vld [vmem:[%s21083_s17 + $0x1cc0] sm:$0xff]  ;;  %v2704_v55 = vld [vmem:[%s21083_s17 + $0x1cc8] sm:$0xff] }
 0x41a   : > { %14609 = vmatprep.subr.bf16.mxu0 %v18702_v51  ;;  %15265 = vmatprep.subr.bf16.mxu1 %v18704_v8  ;;  %v18750_v51 = vcombine.high %v2663_v62, %v2667_v63  ;;  %v18752_v8 = vcombine.high %v2664_v3, %v2668_v4  ;;  %v2707_v53 = vld [vmem:[%s21083_s17 + $0x1ce0] sm:$0xff] }
 0x41d   : > { %14610 = vmatpush1.bf16.msra.mxu0 %v18701_v11  ;;  %15266 = vmatpush1.bf16.msra.mxu1 %v18703_v14  ;;  %v18749_v11 = vcombine.low %v2663_v62, %v2667_v63  ;;  %v18751_v14 = vcombine.low %v2664_v3, %v2668_v4  ;;  %v2711_v63 = vld [vmem:[%s21083_s17 + $0x1d00] sm:$0xff]  ;;  %v2712_v4 = vld [vmem:[%s21083_s17 + $0x1d08] sm:$0xff] }
 0x41e   : > { %14611 = vmatprep.subr.bf16.mxu0 %v18710_v15  ;;  %15267 = vmatprep.subr.bf16.mxu1 %v18712_v17  ;;  %v18758_v15 = vcombine.high %v2671_v52, %v2675_v9  ;;  %v18760_v17 = vcombine.high %v2672_v10, %v2676_v12  ;;  %v2715_v3 = vld [vmem:[%s21083_s17 + $0x1d20] sm:$0xff] }
 0x421   : > { %14612 = vmatpush1.bf16.msra.mxu0 %v18709_v32  ;;  %15268 = vmatpush1.bf16.msra.mxu1 %v18711_v28  ;;  %v18757_v32 = vcombine.low %v2671_v52, %v2675_v9  ;;  %v18759_v28 = vcombine.low %v2672_v10, %v2676_v12  ;;  %v2719_v9 = vld [vmem:[%s21083_s17 + $0x1d40] sm:$0xff]  ;;  %v2720_v12 = vld [vmem:[%s21083_s17 + $0x1d48] sm:$0xff] }
 0x422   : > { %14613 = vmatprep.subr.bf16.mxu0 %v18718_v29  ;;  %15269 = vmatprep.subr.bf16.mxu1 %v18720_v0  ;;  %v18766_v29 = vcombine.high %v2679_v18, %v2683_v23  ;;  %v18768_v0 = vcombine.high %v2680_v24, %v2684_v21  ;;  %v2723_v10 = vld [vmem:[%s21083_s17 + $0x1d60] sm:$0xff] }
 0x425   : > { %14614 = vmatpush1.bf16.msra.mxu0 %v18717_v38  ;;  %15270 = vmatpush1.bf16.msra.mxu1 %v18719_v39  ;;  %v2692_v38 = vld [vmem:[%s21083_s17 + $0x1c68] sm:$0xff]  ;;  %v18765_v39 = vcombine.low %v2679_v18, %v2683_v23  ;;  %v2727_v23 = vld [vmem:[%s21083_s17 + $0x1d80] sm:$0xff] }
 0x426   : > { %14615 = vmatprep.subr.bf16.mxu0 %v18726_v40  ;;  %15271 = vmatprep.subr.bf16.mxu1 %v18728_v41  ;;  %v18767_v40 = vcombine.low %v2680_v24, %v2684_v21  ;;  %v18774_v41 = vcombine.high %v2687_v54, %v2691_v31  ;;  %v18776_v42 = vcombine.high %v2688_v36, %v2692_v38  ;;  %v2731_v24 = vld [vmem:[%s21083_s17 + $0x1da0] sm:$0xff]  ;;  %v2728_v21 = vld [vmem:[%s21083_s17 + $0x1d88] sm:$0xff] }
 0x429   : > { %14616 = vmatpush1.bf16.msra.mxu0 %v18725_v35  ;;  %15272 = vmatpush1.bf16.msra.mxu1 %v18727_v46  ;;  %v2700_v35 = vld [vmem:[%s21083_s17 + $0x1ca8] sm:$0xff]  ;;  %v18773_v46 = vcombine.low %v2687_v54, %v2691_v31  ;;  %v2735_v31 = vld [vmem:[%s21083_s17 + $0x1dc0] sm:$0xff] }
 0x42a   : > { %14617 = vmatprep.subr.bf16.mxu0 %v18734_v47  ;;  %15273 = vmatprep.subr.bf16.mxu1 %v18736_v37  ;;  %v18775_v47 = vcombine.low %v2688_v36, %v2692_v38  ;;  %v18782_v37 = vcombine.high %v2695_v26, %v2699_v44  ;;  %v18784_v49 = vcombine.high %v2696_v43, %v2700_v35  ;;  %v2739_v36 = vld [vmem:[%s21083_s17 + $0x1de0] sm:$0xff]  ;;  %v2736_v38 = vld [vmem:[%s21083_s17 + $0x1dc8] sm:$0xff] }
 0x42d   : > { %14618 = vmatpush1.bf16.msra.mxu0 %v18733_v56  ;;  %15274 = vmatpush1.bf16.msra.mxu1 %v18735_v22  ;;  %v2708_v56 = vld [vmem:[%s21083_s17 + $0x1ce8] sm:$0xff]  ;;  %v18781_v22 = vcombine.low %v2695_v26, %v2699_v44  ;;  %v2743_v44 = vld [vmem:[%s21083_s17 + $0x1e00] sm:$0xff] }
 0x42e   : > { %14619 = vmatprep.subr.bf16.mxu0 %v18742_v60  ;;  %15275 = vmatprep.subr.bf16.mxu1 %v18744_v61  ;;  %v18783_v60 = vcombine.low %v2696_v43, %v2700_v35  ;;  %v18790_v61 = vcombine.high %v2703_v27, %v2707_v53  ;;  %v18792_v62 = vcombine.high %v2704_v55, %v2708_v56  ;;  %v2747_v43 = vld [vmem:[%s21083_s17 + $0x1e20] sm:$0xff]  ;;  %v2744_v35 = vld [vmem:[%s21083_s17 + $0x1e08] sm:$0xff] }
 0x431   : > { %14620 = vmatpush1.bf16.msra.mxu0 %v18741_v5  ;;  %15276 = vmatpush1.bf16.msra.mxu1 %v18743_v6  ;;  %v2716_v5 = vld [vmem:[%s21083_s17 + $0x1d28] sm:$0xff]  ;;  %v18789_v6 = vcombine.low %v2703_v27, %v2707_v53  ;;  %v2751_v53 = vld [vmem:[%s21083_s17 + $0x1e40] sm:$0xff] }
 0x432   : > { %14621 = vmatprep.subr.bf16.mxu0 %v18750_v51  ;;  %15277 = vmatprep.subr.bf16.mxu1 %v18752_v8  ;;  %v18791_v51 = vcombine.low %v2704_v55, %v2708_v56  ;;  %v18798_v8 = vcombine.high %v2711_v63, %v2715_v3  ;;  %v18800_v52 = vcombine.high %v2712_v4, %v2716_v5  ;;  %v2755_v55 = vld [vmem:[%s21083_s17 + $0x1e60] sm:$0xff]  ;;  %v2752_v56 = vld [vmem:[%s21083_s17 + $0x1e48] sm:$0xff] }
 0x435   : > { %14622 = vmatpush1.bf16.msra.mxu0 %v18749_v11  ;;  %15278 = vmatpush1.bf16.msra.mxu1 %v18751_v14  ;;  %v2724_v11 = vld [vmem:[%s21083_s17 + $0x1d68] sm:$0xff]  ;;  %v18797_v14 = vcombine.low %v2711_v63, %v2715_v3  ;;  %v2759_v3 = vld [vmem:[%s21083_s17 + $0x1e80] sm:$0xff] }
 0x436   : > { %14623 = vmatprep.subr.bf16.mxu0 %v18758_v15  ;;  %15279 = vmatprep.subr.bf16.mxu1 %v18760_v17  ;;  %v18799_v15 = vcombine.low %v2712_v4, %v2716_v5  ;;  %v18806_v17 = vcombine.high %v2719_v9, %v2723_v10  ;;  %v18808_v18 = vcombine.high %v2720_v12, %v2724_v11  ;;  %v2763_v4 = vld [vmem:[%s21083_s17 + $0x1ea0] sm:$0xff]  ;;  %v2760_v5 = vld [vmem:[%s21083_s17 + $0x1e88] sm:$0xff] }
 0x439   : > { %14624 = vmatpush1.bf16.msra.mxu0 %v18757_v32  ;;  %15280 = vmatpush1.bf16.msra.mxu1 %v18759_v28  ;;  %v2732_v32 = vld [vmem:[%s21083_s17 + $0x1da8] sm:$0xff]  ;;  %v18805_v28 = vcombine.low %v2719_v9, %v2723_v10  ;;  %v2767_v10 = vld [vmem:[%s21083_s17 + $0x1ec0] sm:$0xff] }
 0x43a   : > { %14634 = vmatprep.subr.bf16.mxu0 %v18766_v29  ;;  %15290 = vmatprep.subr.bf16.mxu1 %v18768_v0  ;;  %v18807_v29 = vcombine.low %v2720_v12, %v2724_v11  ;;  %v18814_v0 = vcombine.high %v2727_v23, %v2731_v24  ;;  %v18816_v54 = vcombine.high %v2728_v21, %v2732_v32  ;;  %v2771_v12 = vld [vmem:[%s21083_s17 + $0x1ee0] sm:$0xff]  ;;  %v2768_v11 = vld [vmem:[%s21083_s17 + $0x1ec8] sm:$0xff] }
 0x43c   : > { %14626 = vmatmul.mubr.bf16.vlgmr.msra.gmra.mrb[0].mxu0 %v21850_v16  ;;  %15282 = vmatmul.mubr.bf16.vlgmr.msra.gmra.mrb[0].mxu1 %v21850_v16 }
 0x43d   : > { %14635 = vmatpush1.bf16.msra.mxu0 %v18765_v39  ;;  %15291 = vmatpush1.bf16.msra.mxu1 %v18767_v40  ;;  %v2740_v39 = vld [vmem:[%s21083_s17 + $0x1de8] sm:$0xff]  ;;  %v18813_v40 = vcombine.low %v2727_v23, %v2731_v24  ;;  %v2775_v24 = vld [vmem:[%s21083_s17 + $0x1f00] sm:$0xff] }
 0x43e   : > { %14636 = vmatprep.subr.bf16.mxu0 %v18774_v41  ;;  %15292 = vmatprep.subr.bf16.mxu1 %v18776_v42  ;;  %v18815_v41 = vcombine.low %v2728_v21, %v2732_v32  ;;  %v18822_v42 = vcombine.high %v2735_v31, %v2739_v36  ;;  %v18824_v26 = vcombine.high %v2736_v38, %v2740_v39  ;;  %v2779_v21 = vld [vmem:[%s21083_s17 + $0x1f20] sm:$0xff]  ;;  %v2776_v32 = vld [vmem:[%s21083_s17 + $0x1f08] sm:$0xff] }
 0x43f   : > { %14666 = vmatprep.mubr.bf16.mxu0 %v21858_v34  ;;  %15322 = vmatprep.mubr.bf16.mxu1 %v21858_v34 }
 0x441   : > { %14637 = vmatpush1.bf16.msra.mxu0 %v18773_v46  ;;  %15293 = vmatpush1.bf16.msra.mxu1 %v18775_v47  ;;  %v2748_v46 = vld [vmem:[%s21083_s17 + $0x1e28] sm:$0xff]  ;;  %v18821_v47 = vcombine.low %v2735_v31, %v2739_v36  ;;  %v2783_v36 = vld [vmem:[%s21083_s17 + $0x1f40] sm:$0xff] }
 0x442   : > { %14638 = vmatprep.subr.bf16.mxu0 %v18782_v37  ;;  %15294 = vmatprep.subr.bf16.mxu1 %v18784_v49  ;;  %v18823_v37 = vcombine.low %v2736_v38, %v2740_v39  ;;  %v18830_v49 = vcombine.high %v2743_v44, %v2747_v43  ;;  %v18832_v27 = vcombine.high %v2744_v35, %v2748_v46  ;;  %v2787_v38 = vld [vmem:[%s21083_s17 + $0x1f60] sm:$0xff]  ;;  %v2784_v39 = vld [vmem:[%s21083_s17 + $0x1f48] sm:$0xff] }
 0x445   : > { %14639 = vmatpush1.bf16.msra.mxu0 %v18781_v22  ;;  %15295 = vmatpush1.bf16.msra.mxu1 %v18783_v60  ;;  %v2756_v22 = vld [vmem:[%s21083_s17 + $0x1e68] sm:$0xff]  ;;  %v18829_v60 = vcombine.low %v2743_v44, %v2747_v43  ;;  %v2791_v43 = vld [vmem:[%s21083_s17 + $0x1f80] sm:$0xff] }
 0x446   : > { %14640 = vmatprep.subr.bf16.mxu0 %v18790_v61  ;;  %15296 = vmatprep.subr.bf16.mxu1 %v18792_v62  ;;  %v18831_v61 = vcombine.low %v2744_v35, %v2748_v46  ;;  %v18838_v62 = vcombine.high %v2751_v53, %v2755_v55  ;;  %v18840_v63 = vcombine.high %v2752_v56, %v2756_v22  ;;  %v2795_v35 = vld [vmem:[%s21083_s17 + $0x1fa0] sm:$0xff]  ;;  %v2792_v46 = vld [vmem:[%s21083_s17 + $0x1f88] sm:$0xff] }
 0x449   : > { %14641 = vmatpush1.bf16.msra.mxu0 %v18789_v6  ;;  %15297 = vmatpush1.bf16.msra.mxu1 %v18791_v51  ;;  %v2764_v6 = vld [vmem:[%s21083_s17 + $0x1ea8] sm:$0xff]  ;;  %v18837_v51 = vcombine.low %v2751_v53, %v2755_v55  ;;  %v2799_v55 = vld [vmem:[%s21083_s17 + $0x1fc0] sm:$0xff] }
 0x44a   : > { %14642 = vmatprep.subr.bf16.mxu0 %v18798_v8  ;;  %15298 = vmatprep.subr.bf16.mxu1 %v18800_v52  ;;  %v18839_v8 = vcombine.low %v2752_v56, %v2756_v22  ;;  %v18846_v52 = vcombine.high %v2759_v3, %v2763_v4  ;;  %v18848_v9 = vcombine.high %v2760_v5, %v2764_v6  ;;  %v2803_v56 = vld [vmem:[%s21083_s17 + $0x1fe0] sm:$0xff]  ;;  %v2800_v22 = vld [vmem:[%s21083_s17 + $0x1fc8] sm:$0xff] }
 0x44d   : > { %14643 = vmatpush1.bf16.msra.mxu0 %v18797_v14  ;;  %15299 = vmatpush1.bf16.msra.mxu1 %v18799_v15  ;;  %v2772_v14 = vld [vmem:[%s21083_s17 + $0x1ee8] sm:$0xff]  ;;  %v18845_v15 = vcombine.low %v2759_v3, %v2763_v4  ;;  %v18886_v3 = vcombine.high %v2799_v55, %v2803_v56 }
 0x44e   : > { %14644 = vmatprep.subr.bf16.mxu0 %v18806_v17  ;;  %15300 = vmatprep.subr.bf16.mxu1 %v18808_v18  ;;  %v18847_v17 = vcombine.low %v2760_v5, %v2764_v6  ;;  %v18854_v18 = vcombine.high %v2767_v10, %v2771_v12  ;;  %v18856_v23 = vcombine.high %v2768_v11, %v2772_v14  ;;  %v2807_v5 = vld [vmem:[%s21083_s17 + $0x2000] sm:$0xff] }
 0x44f   : > { %v2811_v6 = vld [vmem:[%s21083_s17 + $0x2020] sm:$0xff] }
 0x451   : > { %14645 = vmatpush1.bf16.msra.mxu0 %v18805_v28  ;;  %15301 = vmatpush1.bf16.msra.mxu1 %v18807_v29  ;;  %v2780_v28 = vld [vmem:[%s21083_s17 + $0x1f28] sm:$0xff]  ;;  %v18853_v29 = vcombine.low %v2767_v10, %v2771_v12  ;;  %v18894_v12 = vcombine.high %v2807_v5, %v2811_v6 }
 0x452   : > { %14646 = vmatprep.subr.bf16.mxu0 %v18814_v0  ;;  %15302 = vmatprep.subr.bf16.mxu1 %v18816_v54  ;;  %v18855_v0 = vcombine.low %v2768_v11, %v2772_v14  ;;  %v18862_v54 = vcombine.high %v2775_v24, %v2779_v21  ;;  %v18864_v31 = vcombine.high %v2776_v32, %v2780_v28  ;;  %v2815_v14 = vld [vmem:[%s21083_s17 + $0x2040] sm:$0xff] }
 0x455   : > { %14647 = vmatpush1.bf16.msra.mxu0 %v18813_v40  ;;  %15303 = vmatpush1.bf16.msra.mxu1 %v18815_v41  ;;  %v2788_v40 = vld [vmem:[%s21083_s17 + $0x1f68] sm:$0xff]  ;;  %v18861_v41 = vcombine.low %v2775_v24, %v2779_v21  ;;  %v18893_v21 = vcombine.low %v2807_v5, %v2811_v6 }
 0x456   : > { %14648 = vmatprep.subr.bf16.mxu0 %v18822_v42  ;;  %15304 = vmatprep.subr.bf16.mxu1 %v18824_v26  ;;  %v18863_v42 = vcombine.low %v2776_v32, %v2780_v28  ;;  %v18870_v26 = vcombine.high %v2783_v36, %v2787_v38  ;;  %v18872_v44 = vcombine.high %v2784_v39, %v2788_v40  ;;  %v2820_v24 = vld [vmem:[%s21083_s17 + $0x2068] sm:$0xff] }
 0x457   : > { %v2848_v5 = vld [vmem:[%s21083_s17 + $0x2148] sm:$0xff] }
 0x458   : > { %v2852_v6 = vld [vmem:[%s21083_s17 + $0x2168] sm:$0xff] }
 0x459   : > { %14649 = vmatpush1.bf16.msra.mxu0 %v18821_v47  ;;  %15305 = vmatpush1.bf16.msra.mxu1 %v18823_v37  ;;  %v2796_v47 = vld [vmem:[%s21083_s17 + $0x1fa8] sm:$0xff]  ;;  %v18869_v37 = vcombine.low %v2783_v36, %v2787_v38 }
 0x45a   : > { %14650 = vmatprep.subr.bf16.mxu0 %v18830_v49  ;;  %15306 = vmatprep.subr.bf16.mxu1 %v18832_v27  ;;  %v18871_v49 = vcombine.low %v2784_v39, %v2788_v40  ;;  %v18878_v27 = vcombine.high %v2791_v43, %v2795_v35  ;;  %v18880_v53 = vcombine.high %v2792_v46, %v2796_v47  ;;  %v2824_v36 = vld [vmem:[%s21083_s17 + $0x2088] sm:$0xff] }
 0x45b   : > { %v2828_v38 = vld [vmem:[%s21083_s17 + $0x20a8] sm:$0xff] }
 0x45d   : > { %14651 = vmatpush1.bf16.msra.mxu0 %v18829_v60  ;;  %15307 = vmatpush1.bf16.msra.mxu1 %v18831_v61  ;;  %v2804_v60 = vld [vmem:[%s21083_s17 + $0x1fe8] sm:$0xff]  ;;  %v21918_v61 = vld [vmem:[#allocation2 + $0x10] sm:$0xff] }
 0x45e   : > { %14652 = vmatprep.subr.bf16.mxu0 %v18838_v62  ;;  %15308 = vmatprep.subr.bf16.mxu1 %v18840_v63  ;;  %v18877_v62 = vcombine.low %v2791_v43, %v2795_v35  ;;  %v18879_v63 = vcombine.low %v2792_v46, %v2796_v47  ;;  %v18888_v4 = vcombine.high %v2800_v22, %v2804_v60  ;;  %v2832_v43 = vld [vmem:[%s21083_s17 + $0x20c8] sm:$0xff] }
 0x45f   : > { %v18887_v10 = vcombine.low %v2800_v22, %v2804_v60  ;;  %v2836_v35 = vld [vmem:[%s21083_s17 + $0x20e8] sm:$0xff]  ;;  %v18911_v47 = vcombine.low %v2824_v36, %v2828_v38 }
 0x460   : > { %v18919_v60 = vcombine.low %v2832_v43, %v2836_v35 }
 0x461   : > { %14653 = vmatpush1.bf16.msra.mxu0 %v18837_v51  ;;  %15309 = vmatpush1.bf16.msra.mxu1 %v18839_v8  ;;  %v21924_v51 = vrot.slane %v21918_v61, %v21314_v58  ;;  %v2808_v8 = vld [vmem:[%s21083_s17 + $0x2008] sm:$0xff] }
 0x462   : > { %14654 = vmatprep.subr.bf16.mxu0 %v18846_v52  ;;  %15310 = vmatprep.subr.bf16.mxu1 %v18848_v9  ;;  %v2812_v52 = vld [vmem:[%s21083_s17 + $0x2028] sm:$0xff]  ;;  %v18885_v9 = vcombine.low %v2799_v55, %v2803_v56 }
 0x463   : > { %v18896_v11 = vcombine.high %v2808_v8, %v2812_v52  ;;  %v18895_v32 = vcombine.low %v2808_v8, %v2812_v52  ;;  %v2840_v55 = vld [vmem:[%s21083_s17 + $0x2108] sm:$0xff] }
 0x464   : > { %v2844_v56 = vld [vmem:[%s21083_s17 + $0x2128] sm:$0xff] }
 0x465   : > { %14655 = vmatpush1.bf16.msra.mxu0 %v18845_v15  ;;  %15311 = vmatpush1.bf16.msra.mxu1 %v18847_v17  ;;  %v2819_v15 = vld [vmem:[%s21083_s17 + $0x2060] sm:$0xff]  ;;  %v3992_v17 = vcombine.high %v21924_v51, %v21924_v51  ;;  %v18927_v52 = vcombine.low %v2840_v55, %v2844_v56 }
 0x466   : > { %14656 = vmatprep.subr.bf16.mxu0 %v18854_v18  ;;  %15312 = vmatprep.subr.bf16.mxu1 %v18856_v23  ;;  %v21934_v18 = vcombine.high %v21850_v16, %v21850_v16  ;;  %v2816_v23 = vld [vmem:[%s21083_s17 + $0x2048] sm:$0xff]  ;;  %v18902_v28 = vcombine.high %v2815_v14, %v2819_v15  ;;  %v18901_v39 = vcombine.low %v2815_v14, %v2819_v15 }
 0x467   : > { %v18903_v40 = vcombine.low %v2816_v23, %v2820_v24  ;;  %v2856_v14 = vld [vmem:[%s21083_s17 + $0x2188] sm:$0xff] }
 0x468   : > { %v2860_v15 = vld [vmem:[%s21083_s17 + $0x21a8] sm:$0xff] }
 0x469   : > { %14657 = vmatpush1.bf16.msra.mxu0 %v18853_v29  ;;  %15313 = vmatpush1.bf16.msra.mxu1 %v18855_v0  ;;  %v18904_v29 = vcombine.high %v2816_v23, %v2820_v24  ;;  %v2823_v0 = vld [vmem:[%s21083_s17 + $0x2080] sm:$0xff]  ;;  %v18935_v23 = vcombine.low %v2848_v5, %v2852_v6 }
 0x46a   : > { %14658 = vmatprep.subr.bf16.mxu0 %v18862_v54  ;;  %15314 = vmatprep.subr.bf16.mxu1 %v18864_v31  ;;  %v2827_v54 = vld [vmem:[%s21083_s17 + $0x20a0] sm:$0xff]  ;;  %v21941_v31 = vrot.slane %v3992_v17, %v21314_v58 }
 0x46b   : > { %v18909_v46 = vcombine.low %v2823_v0, %v2827_v54 }
 0x46d   : > { %14659 = vmatpush1.bf16.msra.mxu0 %v18861_v41  ;;  %15315 = vmatpush1.bf16.msra.mxu1 %v18863_v42  ;;  %v18910_v41 = vcombine.high %v2823_v0, %v2827_v54  ;;  %v18912_v42 = vcombine.high %v2824_v36, %v2828_v38  ;;  %v2868_v0 = vld [vmem:[%s21083_s17 + $0x21e8] sm:$0xff]  ;;  %v18943_v36 = vcombine.low %v2856_v14, %v2860_v15 }
 0x46e   : > { %14660 = vmatprep.subr.bf16.mxu0 %v18870_v26  ;;  %15316 = vmatprep.subr.bf16.mxu1 %v18872_v44  ;;  %v2831_v26 = vld [vmem:[%s21083_s17 + $0x20c0] sm:$0xff] }
 0x46f   : > { %v2835_v44 = vld [vmem:[%s21083_s17 + $0x20e0] sm:$0xff] }
 0x470   : > { %v18917_v22 = vcombine.low %v2831_v26, %v2835_v44 }
 0x471   : > { %14661 = vmatpush1.bf16.msra.mxu0 %v18869_v37  ;;  %15317 = vmatpush1.bf16.msra.mxu1 %v18871_v49  ;;  %v18918_v37 = vcombine.high %v2831_v26, %v2835_v44  ;;  %v18920_v49 = vcombine.high %v2832_v43, %v2836_v35  ;;  %v2876_v26 = vld [vmem:[%s21083_s17 + $0x2228] sm:$0xff] }
 0x472   : > { %14662 = vmatprep.subr.bf16.mxu0 %v18878_v27  ;;  %15318 = vmatprep.subr.bf16.mxu1 %v18880_v53  ;;  %v2839_v27 = vld [vmem:[%s21083_s17 + $0x2100] sm:$0xff] }
 0x473   : > { %v2843_v53 = vld [vmem:[%s21083_s17 + $0x2120] sm:$0xff] }
 0x474   : > { %v18925_v8 = vcombine.low %v2839_v27, %v2843_v53 }
 0x475   : > { %14663 = vmatpush1.bf16.msra.mxu0 %v18877_v62  ;;  %15319 = vmatpush1.bf16.msra.mxu1 %v18879_v63  ;;  %v18926_v62 = vcombine.high %v2839_v27, %v2843_v53  ;;  %v18928_v63 = vcombine.high %v2840_v55, %v2844_v56  ;;  %v2884_v27 = vld [vmem:[%s21083_s17 + $0x2268] sm:$0xff] }
 0x476   : > { %14664 = vmatprep.subr.bf16.mxu0 %v18886_v3  ;;  %15320 = vmatprep.subr.bf16.mxu1 %v18888_v4  ;;  %v2847_v3 = vld [vmem:[%s21083_s17 + $0x2140] sm:$0xff] }
 0x477   : > { %v2851_v4 = vld [vmem:[%s21083_s17 + $0x2160] sm:$0xff] }
 0x478   : > { %v18933_v17 = vcombine.low %v2847_v3, %v2851_v4 }
 0x479   : > { %14665 = vmatpush1.bf16.msra.mxu0 %v18885_v9  ;;  %15321 = vmatpush1.bf16.msra.mxu1 %v18887_v10  ;;  %v18934_v9 = vcombine.high %v2847_v3, %v2851_v4  ;;  %v18936_v10 = vcombine.high %v2848_v5, %v2852_v6  ;;  %v2892_v3 = vld [vmem:[%s21083_s17 + $0x22a8] sm:$0xff] }
 0x47a   : > { %14675 = vmatprep.subr.bf16.mxu0 %v18894_v12  ;;  %15331 = vmatprep.subr.bf16.mxu1 %v18896_v11  ;;  %v2855_v12 = vld [vmem:[%s21083_s17 + $0x2180] sm:$0xff] }
 0x47b   : > { %v2859_v11 = vld [vmem:[%s21083_s17 + $0x21a0] sm:$0xff] }
 0x47c   : > { %14667 = vmatmul.mubr.bf16.vlgmr.msra.gmra.mrb[0].mxu0 %v21934_v18  ;;  %15323 = vmatmul.mubr.bf16.vlgmr.msra.gmra.mrb[0].mxu1 %v21934_v18  ;;  %v18942_v24 = vcombine.high %v2855_v12, %v2859_v11  ;;  %v18941_v54 = vcombine.low %v2855_v12, %v2859_v11  ;;  %v2900_v12 = vld [vmem:[%s21083_s17 + $0x22e8] sm:$0xff] }
 0x47d   : > { %14676 = vmatpush1.bf16.msra.mxu0 %v18893_v21  ;;  %15332 = vmatpush1.bf16.msra.mxu1 %v18895_v32  ;;  %v18944_v21 = vcombine.high %v2856_v14, %v2860_v15  ;;  %v2863_v32 = vld [vmem:[%s21083_s17 + $0x21c0] sm:$0xff] }
 0x47e   : > { %14677 = vmatprep.subr.bf16.mxu0 %v18902_v28  ;;  %15333 = vmatprep.subr.bf16.mxu1 %v18904_v29  ;;  %v2867_v28 = vld [vmem:[%s21083_s17 + $0x21e0] sm:$0xff]  ;;  %v2864_v29 = vld [vmem:[%s21083_s17 + $0x21c8] sm:$0xff] }
 0x47f   : > { %14707 = vmatprep.mubr.bf16.mxu0 %v21941_v31  ;;  %15363 = vmatprep.mubr.bf16.mxu1 %v21941_v31  ;;  %v18950_v38 = vcombine.high %v2863_v32, %v2867_v28  ;;  %v18949_v44 = vcombine.low %v2863_v32, %v2867_v28  ;;  %v18951_v43 = vcombine.low %v2864_v29, %v2868_v0  ;;  %v2908_v32 = vld [vmem:[%s21083_s17 + $0x2328] sm:$0xff] }
 0x481   : > { %14678 = vmatpush1.bf16.msra.mxu0 %v18901_v39  ;;  %15334 = vmatpush1.bf16.msra.mxu1 %v18903_v40  ;;  %v18952_v39 = vcombine.high %v2864_v29, %v2868_v0  ;;  %v2871_v40 = vld [vmem:[%s21083_s17 + $0x2200] sm:$0xff] }
 0x482   : > { %14679 = vmatprep.subr.bf16.mxu0 %v18910_v41  ;;  %15335 = vmatprep.subr.bf16.mxu1 %v18912_v42  ;;  %v2875_v41 = vld [vmem:[%s21083_s17 + $0x2220] sm:$0xff]  ;;  %v2872_v42 = vld [vmem:[%s21083_s17 + $0x2208] sm:$0xff] }
 0x483   : > { %v18958_v35 = vcombine.high %v2871_v40, %v2875_v41  ;;  %v18957_v53 = vcombine.low %v2871_v40, %v2875_v41  ;;  %v18959_v55 = vcombine.low %v2872_v42, %v2876_v26  ;;  %v2916_v40 = vld [vmem:[%s21083_s17 + $0x2368] sm:$0xff] }
 0x485   : > { %14680 = vmatpush1.bf16.msra.mxu0 %v18909_v46  ;;  %15336 = vmatpush1.bf16.msra.mxu1 %v18911_v47  ;;  %v18960_v46 = vcombine.high %v2872_v42, %v2876_v26  ;;  %v2879_v47 = vld [vmem:[%s21083_s17 + $0x2240] sm:$0xff] }
 0x486   : > { %14681 = vmatprep.subr.bf16.mxu0 %v18918_v37  ;;  %15337 = vmatprep.subr.bf16.mxu1 %v18920_v49  ;;  %v2883_v37 = vld [vmem:[%s21083_s17 + $0x2260] sm:$0xff]  ;;  %v2880_v49 = vld [vmem:[%s21083_s17 + $0x2248] sm:$0xff] }
 0x487   : > { %v18966_v56 = vcombine.high %v2879_v47, %v2883_v37  ;;  %v18965_v4 = vcombine.low %v2879_v47, %v2883_v37  ;;  %v18967_v5 = vcombine.low %v2880_v49, %v2884_v27  ;;  %v2924_v47 = vld [vmem:[%s21083_s17 + $0x23a8] sm:$0xff] }
 0x489   : > { %14682 = vmatpush1.bf16.msra.mxu0 %v18917_v22  ;;  %15338 = vmatpush1.bf16.msra.mxu1 %v18919_v60  ;;  %v18968_v22 = vcombine.high %v2880_v49, %v2884_v27  ;;  %v2887_v60 = vld [vmem:[%s21083_s17 + $0x2280] sm:$0xff] }
 0x48a   : > { %14683 = vmatprep.subr.bf16.mxu0 %v18926_v62  ;;  %15339 = vmatprep.subr.bf16.mxu1 %v18928_v63  ;;  %v2891_v62 = vld [vmem:[%s21083_s17 + $0x22a0] sm:$0xff]  ;;  %v2888_v63 = vld [vmem:[%s21083_s17 + $0x2288] sm:$0xff] }
 0x48b   : > { %v18974_v6 = vcombine.high %v2887_v60, %v2891_v62  ;;  %v18973_v11 = vcombine.low %v2887_v60, %v2891_v62  ;;  %v18975_v14 = vcombine.low %v2888_v63, %v2892_v3  ;;  %v2932_v60 = vld [vmem:[%s21083_s17 + $0x23e8] sm:$0xff] }
 0x48d   : > { %14684 = vmatpush1.bf16.msra.mxu0 %v18925_v8  ;;  %15340 = vmatpush1.bf16.msra.mxu1 %v18927_v52  ;;  %v18976_v8 = vcombine.high %v2888_v63, %v2892_v3  ;;  %v2895_v52 = vld [vmem:[%s21083_s17 + $0x22c0] sm:$0xff] }
 0x48e   : > { %14685 = vmatprep.subr.bf16.mxu0 %v18934_v9  ;;  %15341 = vmatprep.subr.bf16.mxu1 %v18936_v10  ;;  %v2899_v9 = vld [vmem:[%s21083_s17 + $0x22e0] sm:$0xff]  ;;  %v2896_v10 = vld [vmem:[%s21083_s17 + $0x22c8] sm:$0xff] }
 0x48f   : > { %v18982_v15 = vcombine.high %v2895_v52, %v2899_v9  ;;  %v18981_v28 = vcombine.low %v2895_v52, %v2899_v9  ;;  %v18983_v29 = vcombine.low %v2896_v10, %v2900_v12  ;;  %v2940_v52 = vld [vmem:[%s21083_s17 + $0x2428] sm:$0xff] }
 0x491   : > { %14686 = vmatpush1.bf16.msra.mxu0 %v18933_v17  ;;  %15342 = vmatpush1.bf16.msra.mxu1 %v18935_v23  ;;  %v18984_v17 = vcombine.high %v2896_v10, %v2900_v12  ;;  %v2903_v23 = vld [vmem:[%s21083_s17 + $0x2300] sm:$0xff] }
 0x492   : > { %14687 = vmatprep.subr.bf16.mxu0 %v18942_v24  ;;  %15343 = vmatprep.subr.bf16.mxu1 %v18944_v21  ;;  %v2907_v24 = vld [vmem:[%s21083_s17 + $0x2320] sm:$0xff]  ;;  %v2904_v21 = vld [vmem:[%s21083_s17 + $0x2308] sm:$0xff] }
 0x493   : > { %v18990_v0 = vcombine.high %v2903_v23, %v2907_v24  ;;  %v18989_v41 = vcombine.low %v2903_v23, %v2907_v24  ;;  %v18991_v42 = vcombine.low %v2904_v21, %v2908_v32  ;;  %v2944_v23 = vld [vmem:[%s21083_s17 + $0x2448] sm:$0xff] }
 0x494   : > { %v2948_v24 = vld [vmem:[%s21083_s17 + $0x2468] sm:$0xff] }
 0x495   : > { %14688 = vmatpush1.bf16.msra.mxu0 %v18941_v54  ;;  %15344 = vmatpush1.bf16.msra.mxu1 %v18943_v36  ;;  %v18992_v54 = vcombine.high %v2904_v21, %v2908_v32  ;;  %v2911_v36 = vld [vmem:[%s21083_s17 + $0x2340] sm:$0xff] }
 0x496   : > { %14689 = vmatprep.subr.bf16.mxu0 %v18950_v38  ;;  %15345 = vmatprep.subr.bf16.mxu1 %v18952_v39  ;;  %v2915_v38 = vld [vmem:[%s21083_s17 + $0x2360] sm:$0xff]  ;;  %v2912_v39 = vld [vmem:[%s21083_s17 + $0x2348] sm:$0xff] }
 0x497   : > { %v18998_v26 = vcombine.high %v2911_v36, %v2915_v38  ;;  %v18997_v37 = vcombine.low %v2911_v36, %v2915_v38  ;;  %v18999_v49 = vcombine.low %v2912_v39, %v2916_v40  ;;  %v22017_v36 = vcombine.high %v21941_v31, %v21941_v31  ;;  %v2956_v38 = vld [vmem:[%s21083_s17 + $0x24a8] sm:$0xff] }
 0x499   : > { %14690 = vmatpush1.bf16.msra.mxu0 %v18949_v44  ;;  %15346 = vmatpush1.bf16.msra.mxu1 %v18951_v43  ;;  %v19000_v44 = vcombine.high %v2912_v39, %v2916_v40  ;;  %v2919_v43 = vld [vmem:[%s21083_s17 + $0x2380] sm:$0xff]  ;;  %v19031_v40 = vcombine.low %v2944_v23, %v2948_v24 }
 0x49a   : > { %14691 = vmatprep.subr.bf16.mxu0 %v18958_v35  ;;  %15347 = vmatprep.subr.bf16.mxu1 %v18960_v46  ;;  %v2923_v35 = vld [vmem:[%s21083_s17 + $0x23a0] sm:$0xff]  ;;  %v2920_v46 = vld [vmem:[%s21083_s17 + $0x2388] sm:$0xff] }
 0x49b   : > { %v19006_v27 = vcombine.high %v2919_v43, %v2923_v35  ;;  %v19005_v62 = vcombine.low %v2919_v43, %v2923_v35  ;;  %v19007_v63 = vcombine.low %v2920_v46, %v2924_v47  ;;  %v2960_v43 = vld [vmem:[%s21083_s17 + $0x24c8] sm:$0xff] }
 0x49c   : > { %v2964_v35 = vld [vmem:[%s21083_s17 + $0x24e8] sm:$0xff] }
 0x49d   : > { %14692 = vmatpush1.bf16.msra.mxu0 %v18957_v53  ;;  %15348 = vmatpush1.bf16.msra.mxu1 %v18959_v55  ;;  %v19008_v53 = vcombine.high %v2920_v46, %v2924_v47  ;;  %v2927_v55 = vld [vmem:[%s21083_s17 + $0x23c0] sm:$0xff] }
 0x49e   : > { %14693 = vmatprep.subr.bf16.mxu0 %v18966_v56  ;;  %15349 = vmatprep.subr.bf16.mxu1 %v18968_v22  ;;  %v2931_v56 = vld [vmem:[%s21083_s17 + $0x23e0] sm:$0xff]  ;;  %v2928_v22 = vld [vmem:[%s21083_s17 + $0x23c8] sm:$0xff] }
 0x49f   : > { %v19014_v3 = vcombine.high %v2927_v55, %v2931_v56  ;;  %v19013_v9 = vcombine.low %v2927_v55, %v2931_v56  ;;  %v19015_v10 = vcombine.low %v2928_v22, %v2932_v60  ;;  %v2968_v55 = vld [vmem:[%s21083_s17 + $0x2508] sm:$0xff] }
 0x4a0   : > { %v2972_v56 = vld [vmem:[%s21083_s17 + $0x2528] sm:$0xff] }
 0x4a1   : > { %14694 = vmatpush1.bf16.msra.mxu0 %v18965_v4  ;;  %15350 = vmatpush1.bf16.msra.mxu1 %v18967_v5  ;;  %v19016_v4 = vcombine.high %v2928_v22, %v2932_v60  ;;  %v2935_v5 = vld [vmem:[%s21083_s17 + $0x2400] sm:$0xff]  ;;  %v19047_v60 = vcombine.low %v2960_v43, %v2964_v35 }
 0x4a2   : > { %14695 = vmatprep.subr.bf16.mxu0 %v18974_v6  ;;  %15351 = vmatprep.subr.bf16.mxu1 %v18976_v8  ;;  %v2939_v6 = vld [vmem:[%s21083_s17 + $0x2420] sm:$0xff]  ;;  %v2936_v8 = vld [vmem:[%s21083_s17 + $0x2408] sm:$0xff] }
 0x4a3   : > { %v19022_v12 = vcombine.high %v2935_v5, %v2939_v6  ;;  %v19021_v21 = vcombine.low %v2935_v5, %v2939_v6  ;;  %v19023_v32 = vcombine.low %v2936_v8, %v2940_v52  ;;  %v2976_v5 = vld [vmem:[%s21083_s17 + $0x2548] sm:$0xff] }
 0x4a4   : > { %v2980_v6 = vld [vmem:[%s21083_s17 + $0x2568] sm:$0xff] }
 0x4a5   : > { %14696 = vmatpush1.bf16.msra.mxu0 %v18973_v11  ;;  %15352 = vmatpush1.bf16.msra.mxu1 %v18975_v14  ;;  %v19024_v11 = vcombine.high %v2936_v8, %v2940_v52  ;;  %v2943_v14 = vld [vmem:[%s21083_s17 + $0x2440] sm:$0xff]  ;;  %v19055_v52 = vcombine.low %v2968_v55, %v2972_v56 }
 0x4a6   : > { %14697 = vmatprep.subr.bf16.mxu0 %v18982_v15  ;;  %15353 = vmatprep.subr.bf16.mxu1 %v18984_v17  ;;  %v2947_v15 = vld [vmem:[%s21083_s17 + $0x2460] sm:$0xff]  ;;  %v22009_v17 = vrot.slane %v21924_v51, %v21314_v58  ;;  %v2952_v51 = vld [vmem:[%s21083_s17 + $0x2488] sm:$0xff] }
 0x4a7   : > { %v19029_v39 = vcombine.low %v2943_v14, %v2947_v15  ;;  %v19039_v47 = vcombine.low %v2952_v51, %v2956_v38 }
 0x4a9   : > { %14698 = vmatpush1.bf16.msra.mxu0 %v18981_v28  ;;  %15354 = vmatpush1.bf16.msra.mxu1 %v18983_v29  ;;  %v19030_v28 = vcombine.high %v2943_v14, %v2947_v15  ;;  %v19032_v29 = vcombine.high %v2944_v23, %v2948_v24  ;;  %v2984_v14 = vld [vmem:[%s21083_s17 + $0x2588] sm:$0xff]  ;;  %v19063_v24 = vcombine.low %v2976_v5, %v2980_v6 }
 0x4aa   : > { %14699 = vmatprep.subr.bf16.mxu0 %v18990_v0  ;;  %15355 = vmatprep.subr.bf16.mxu1 %v18992_v54  ;;  %v2951_v0 = vld [vmem:[%s21083_s17 + $0x2480] sm:$0xff]  ;;  %v2988_v15 = vld [vmem:[%s21083_s17 + $0x25a8] sm:$0xff] }
 0x4ab   : > { %v2955_v54 = vld [vmem:[%s21083_s17 + $0x24a0] sm:$0xff] }
 0x4ac   : > { %v19037_v46 = vcombine.low %v2951_v0, %v2955_v54 }
 0x4ad   : > { %14700 = vmatpush1.bf16.msra.mxu0 %v18989_v41  ;;  %15356 = vmatpush1.bf16.msra.mxu1 %v18991_v42  ;;  %v19038_v41 = vcombine.high %v2951_v0, %v2955_v54  ;;  %v19040_v42 = vcombine.high %v2952_v51, %v2956_v38  ;;  %v2992_v0 = vld [vmem:[%s21083_s17 + $0x25c8] sm:$0xff]  ;;  %v19071_v38 = vcombine.low %v2984_v14, %v2988_v15 }
 0x4ae   : > { %14701 = vmatprep.subr.bf16.mxu0 %v18998_v26  ;;  %15357 = vmatprep.subr.bf16.mxu1 %v19000_v44  ;;  %v2959_v26 = vld [vmem:[%s21083_s17 + $0x24c0] sm:$0xff]  ;;  %v2996_v54 = vld [vmem:[%s21083_s17 + $0x25e8] sm:$0xff] }
 0x4af   : > { %v2963_v44 = vld [vmem:[%s21083_s17 + $0x24e0] sm:$0xff] }
 0x4b0   : > { %v19045_v22 = vcombine.low %v2959_v26, %v2963_v44 }
 0x4b1   : > { %14702 = vmatpush1.bf16.msra.mxu0 %v18997_v37  ;;  %15358 = vmatpush1.bf16.msra.mxu1 %v18999_v49  ;;  %v19046_v37 = vcombine.high %v2959_v26, %v2963_v44  ;;  %v19048_v49 = vcombine.high %v2960_v43, %v2964_v35  ;;  %v3000_v26 = vld [vmem:[%s21083_s17 + $0x2608] sm:$0xff]  ;;  %v19079_v35 = vcombine.low %v2992_v0, %v2996_v54 }
 0x4b2   : > { %14703 = vmatprep.subr.bf16.mxu0 %v19006_v27  ;;  %15359 = vmatprep.subr.bf16.mxu1 %v19008_v53  ;;  %v2967_v27 = vld [vmem:[%s21083_s17 + $0x2500] sm:$0xff]  ;;  %v3004_v44 = vld [vmem:[%s21083_s17 + $0x2628] sm:$0xff] }
 0x4b3   : > { %v2971_v53 = vld [vmem:[%s21083_s17 + $0x2520] sm:$0xff] }
 0x4b4   : > { %v19053_v8 = vcombine.low %v2967_v27, %v2971_v53 }
 0x4b5   : > { %14704 = vmatpush1.bf16.msra.mxu0 %v19005_v62  ;;  %15360 = vmatpush1.bf16.msra.mxu1 %v19007_v63  ;;  %v19054_v62 = vcombine.high %v2967_v27, %v2971_v53  ;;  %v19056_v63 = vcombine.high %v2968_v55, %v2972_v56  ;;  %v3008_v27 = vld [vmem:[%s21083_s17 + $0x2648] sm:$0xff]  ;;  %v19087_v56 = vcombine.low %v3000_v26, %v3004_v44 }
 0x4b6   : > { %14705 = vmatprep.subr.bf16.mxu0 %v19014_v3  ;;  %15361 = vmatprep.subr.bf16.mxu1 %v19016_v4  ;;  %v2975_v3 = vld [vmem:[%s21083_s17 + $0x2540] sm:$0xff]  ;;  %v3012_v53 = vld [vmem:[%s21083_s17 + $0x2668] sm:$0xff] }
 0x4b7   : > { %v2979_v4 = vld [vmem:[%s21083_s17 + $0x2560] sm:$0xff] }
 0x4b8   : > { %v19061_v23 = vcombine.low %v2975_v3, %v2979_v4 }
 0x4b9   : > { %14706 = vmatpush1.bf16.msra.mxu0 %v19013_v9  ;;  %15362 = vmatpush1.bf16.msra.mxu1 %v19015_v10  ;;  %v19062_v9 = vcombine.high %v2975_v3, %v2979_v4  ;;  %v19064_v10 = vcombine.high %v2976_v5, %v2980_v6  ;;  %v3016_v3 = vld [vmem:[%s21083_s17 + $0x2688] sm:$0xff]  ;;  %v19095_v6 = vcombine.low %v3008_v27, %v3012_v53 }
 0x4ba   : > { %14716 = vmatprep.subr.bf16.mxu0 %v19022_v12  ;;  %15372 = vmatprep.subr.bf16.mxu1 %v19024_v11  ;;  %v2983_v12 = vld [vmem:[%s21083_s17 + $0x2580] sm:$0xff]  ;;  %v3020_v4 = vld [vmem:[%s21083_s17 + $0x26a8] sm:$0xff] }
 0x4bb   : > { %v2987_v11 = vld [vmem:[%s21083_s17 + $0x25a0] sm:$0xff] }
 0x4bc   : > { %14708 = vmatmul.mubr.bf16.vlgmr.msra.gmra.mrb[0].mxu0 %v22009_v17  ;;  %15364 = vmatmul.mubr.bf16.vlgmr.msra.gmra.mrb[0].mxu1 %v22009_v17  ;;  %v19069_v51 = vcombine.low %v2983_v12, %v2987_v11 }
 0x4bd   : > { %14717 = vmatpush1.bf16.msra.mxu0 %v19021_v21  ;;  %15373 = vmatpush1.bf16.msra.mxu1 %v19023_v32  ;;  %v19070_v21 = vcombine.high %v2983_v12, %v2987_v11  ;;  %v19072_v32 = vcombine.high %v2984_v14, %v2988_v15  ;;  %v3024_v12 = vld [vmem:[%s21083_s17 + $0x26c8] sm:$0xff]  ;;  %v19103_v15 = vcombine.low %v3016_v3, %v3020_v4 }
 0x4be   : > { %14718 = vmatprep.subr.bf16.mxu0 %v19030_v28  ;;  %15374 = vmatprep.subr.bf16.mxu1 %v19032_v29  ;;  %v2991_v28 = vld [vmem:[%s21083_s17 + $0x25c0] sm:$0xff]  ;;  %v3028_v11 = vld [vmem:[%s21083_s17 + $0x26e8] sm:$0xff] }
 0x4bf   : > { %14748 = vmatprep.mubr.bf16.mxu0 %v22017_v36  ;;  %15404 = vmatprep.mubr.bf16.mxu1 %v22017_v36  ;;  %v2995_v29 = vld [vmem:[%s21083_s17 + $0x25e0] sm:$0xff] }
 0x4c0   : > { %v19077_v43 = vcombine.low %v2991_v28, %v2995_v29 }
 0x4c1   : > { %14719 = vmatpush1.bf16.msra.mxu0 %v19029_v39  ;;  %15375 = vmatpush1.bf16.msra.mxu1 %v19031_v40  ;;  %v19078_v39 = vcombine.high %v2991_v28, %v2995_v29  ;;  %v19080_v40 = vcombine.high %v2992_v0, %v2996_v54  ;;  %v3032_v28 = vld [vmem:[%s21083_s17 + $0x2708] sm:$0xff]  ;;  %v19111_v54 = vcombine.low %v3024_v12, %v3028_v11 }
 0x4c2   : > { %14720 = vmatprep.subr.bf16.mxu0 %v19038_v41  ;;  %15376 = vmatprep.subr.bf16.mxu1 %v19040_v42  ;;  %v2999_v41 = vld [vmem:[%s21083_s17 + $0x2600] sm:$0xff]  ;;  %v3036_v29 = vld [vmem:[%s21083_s17 + $0x2728] sm:$0xff] }
 0x4c3   : > { %v3003_v42 = vld [vmem:[%s21083_s17 + $0x2620] sm:$0xff] }
 0x4c4   : > { %v19085_v55 = vcombine.low %v2999_v41, %v3003_v42 }
 0x4c5   : > { %14721 = vmatpush1.bf16.msra.mxu0 %v19037_v46  ;;  %15377 = vmatpush1.bf16.msra.mxu1 %v19039_v47  ;;  %v19086_v46 = vcombine.high %v2999_v41, %v3003_v42  ;;  %v19088_v47 = vcombine.high %v3000_v26, %v3004_v44  ;;  %v3040_v41 = vld [vmem:[%s21083_s17 + $0x2748] sm:$0xff]  ;;  %v19119_v44 = vcombine.low %v3032_v28, %v3036_v29 }
 0x4c6   : > { %14722 = vmatprep.subr.bf16.mxu0 %v19046_v37  ;;  %15378 = vmatprep.subr.bf16.mxu1 %v19048_v49  ;;  %v3007_v37 = vld [vmem:[%s21083_s17 + $0x2640] sm:$0xff]  ;;  %v3044_v42 = vld [vmem:[%s21083_s17 + $0x2768] sm:$0xff] }
 0x4c7   : > { %v3011_v49 = vld [vmem:[%s21083_s17 + $0x2660] sm:$0xff] }
 0x4c8   : > { %v19093_v5 = vcombine.low %v3007_v37, %v3011_v49 }
 0x4c9   : > { %14723 = vmatpush1.bf16.msra.mxu0 %v19045_v22  ;;  %15379 = vmatpush1.bf16.msra.mxu1 %v19047_v60  ;;  %v19094_v22 = vcombine.high %v3007_v37, %v3011_v49  ;;  %v19096_v60 = vcombine.high %v3008_v27, %v3012_v53  ;;  %v3048_v37 = vld [vmem:[%s21083_s17 + $0x2788] sm:$0xff]  ;;  %v19127_v53 = vcombine.low %v3040_v41, %v3044_v42 }
 0x4ca   : > { %14724 = vmatprep.subr.bf16.mxu0 %v19054_v62  ;;  %15380 = vmatprep.subr.bf16.mxu1 %v19056_v63  ;;  %v3015_v62 = vld [vmem:[%s21083_s17 + $0x2680] sm:$0xff]  ;;  %v3052_v49 = vld [vmem:[%s21083_s17 + $0x27a8] sm:$0xff] }
 0x4cb   : > { %v3019_v63 = vld [vmem:[%s21083_s17 + $0x26a0] sm:$0xff] }
 0x4cc   : > { %v19101_v14 = vcombine.low %v3015_v62, %v3019_v63 }
 0x4cd   : > { %14725 = vmatpush1.bf16.msra.mxu0 %v19053_v8  ;;  %15381 = vmatpush1.bf16.msra.mxu1 %v19055_v52  ;;  %v19102_v8 = vcombine.high %v3015_v62, %v3019_v63  ;;  %v19104_v52 = vcombine.high %v3016_v3, %v3020_v4  ;;  %v3977_v62 = vcombine.high %v21918_v61, %v21918_v61  ;;  %v3056_v63 = vld [vmem:[%s21083_s17 + $0x27c8] sm:$0xff] }
 0x4ce   : > { %14726 = vmatprep.subr.bf16.mxu0 %v19062_v9  ;;  %15382 = vmatprep.subr.bf16.mxu1 %v19064_v10  ;;  %v3023_v9 = vld [vmem:[%s21083_s17 + $0x26c0] sm:$0xff]  ;;  %v3060_v3 = vld [vmem:[%s21083_s17 + $0x27e8] sm:$0xff] }
 0x4cf   : > { %v3027_v10 = vld [vmem:[%s21083_s17 + $0x26e0] sm:$0xff]  ;;  %v3064_v61 = vld [vmem:[%s21083_s17 + $0x2808] sm:$0xff] }
 0x4d0   : > { %v19109_v0 = vcombine.low %v3023_v9, %v3027_v10 }
 0x4d1   : > { %14727 = vmatpush1.bf16.msra.mxu0 %v19061_v23  ;;  %15383 = vmatpush1.bf16.msra.mxu1 %v19063_v24  ;;  %v19110_v23 = vcombine.high %v3023_v9, %v3027_v10  ;;  %v19112_v24 = vcombine.high %v3024_v12, %v3028_v11  ;;  %v3067_v9 = vld [vmem:[%s21083_s17 + $0x2820] sm:$0xff]  ;;  %v22082_v10 = vrot.slane %v3977_v62, %v21314_v58  ;;  %v3068_v12 = vld [vmem:[%s21083_s17 + $0x2828] sm:$0xff] }
 0x4d2   : > { %14728 = vmatprep.subr.bf16.mxu0 %v19070_v21  ;;  %15384 = vmatprep.subr.bf16.mxu1 %v19072_v32  ;;  %v3031_v21 = vld [vmem:[%s21083_s17 + $0x2700] sm:$0xff] }
 0x4d3   : > { %v3035_v32 = vld [vmem:[%s21083_s17 + $0x2720] sm:$0xff] }
 0x4d4   : > { %v19117_v26 = vcombine.low %v3031_v21, %v3035_v32  ;;  %v3095_v62 = vld [vmem:[%s21083_s17 + $0x2900] sm:$0xff] }
 0x4d5   : > { %14729 = vmatpush1.bf16.msra.mxu0 %v19069_v51  ;;  %15385 = vmatpush1.bf16.msra.mxu1 %v19071_v38  ;;  %v19118_v51 = vcombine.high %v3031_v21, %v3035_v32  ;;  %v19120_v38 = vcombine.high %v3032_v28, %v3036_v29  ;;  %v3075_v21 = vld [vmem:[%s21083_s17 + $0x2860] sm:$0xff]  ;;  %v3993_v32 = vcombine.high %v22082_v10, %v22082_v10  ;;  %v3072_v29 = vld [vmem:[%s21083_s17 + $0x2848] sm:$0xff] }
 0x4d6   : > { %14730 = vmatprep.subr.bf16.mxu0 %v19078_v39  ;;  %15386 = vmatprep.subr.bf16.mxu1 %v19080_v40  ;;  %v3039_v39 = vld [vmem:[%s21083_s17 + $0x2740] sm:$0xff]  ;;  %v22092_v28 = vcombine.high %v22009_v17, %v22009_v17 }
 0x4d7   : > { %v3043_v40 = vld [vmem:[%s21083_s17 + $0x2760] sm:$0xff] }
 0x4d8   : > { %v19125_v27 = vcombine.low %v3039_v39, %v3043_v40 }
 0x4d9   : > { %14731 = vmatpush1.bf16.msra.mxu0 %v19077_v43  ;;  %15387 = vmatpush1.bf16.msra.mxu1 %v19079_v35  ;;  %v19126_v43 = vcombine.high %v3039_v39, %v3043_v40  ;;  %v19128_v35 = vcombine.high %v3040_v41, %v3044_v42  ;;  %v3079_v40 = vld [vmem:[%s21083_s17 + $0x2880] sm:$0xff]  ;;  %v22099_v42 = vrot.slane %v3993_v32, %v21314_v58 }
 0x4da   : > { %14732 = vmatprep.subr.bf16.mxu0 %v19086_v46  ;;  %15388 = vmatprep.subr.bf16.mxu1 %v19088_v47  ;;  %v3047_v46 = vld [vmem:[%s21083_s17 + $0x2780] sm:$0xff] }
 0x4db   : > { %v3051_v47 = vld [vmem:[%s21083_s17 + $0x27a0] sm:$0xff] }
 0x4dc   : > { %v19133_v4 = vcombine.low %v3047_v46, %v3051_v47  ;;  %v3083_v41 = vld [vmem:[%s21083_s17 + $0x28a0] sm:$0xff] }
 0x4dd   : > { %14733 = vmatpush1.bf16.msra.mxu0 %v19085_v55  ;;  %15389 = vmatpush1.bf16.msra.mxu1 %v19087_v56  ;;  %v19134_v55 = vcombine.high %v3047_v46, %v3051_v47  ;;  %v19136_v56 = vcombine.high %v3048_v37, %v3052_v49  ;;  %v19166_v46 = vcombine.high %v3079_v40, %v3083_v41  ;;  %v3115_v32 = vld [vmem:[%s21083_s17 + $0x29a0] sm:$0xff] }
 0x4de   : > { %14734 = vmatprep.subr.bf16.mxu0 %v19094_v22  ;;  %15390 = vmatprep.subr.bf16.mxu1 %v19096_v60  ;;  %v3055_v22 = vld [vmem:[%s21083_s17 + $0x27c0] sm:$0xff] }
 0x4df   : > { %v3059_v60 = vld [vmem:[%s21083_s17 + $0x27e0] sm:$0xff] }
 0x4e0   : > { %v19141_v11 = vcombine.low %v3055_v22, %v3059_v60 }
 0x4e1   : > { %14735 = vmatpush1.bf16.msra.mxu0 %v19093_v5  ;;  %15391 = vmatpush1.bf16.msra.mxu1 %v19095_v6  ;;  %v19135_v5 = vcombine.low %v3048_v37, %v3052_v49  ;;  %v19142_v6 = vcombine.high %v3055_v22, %v3059_v60  ;;  %v3087_v37 = vld [vmem:[%s21083_s17 + $0x28c0] sm:$0xff] }
 0x4e2   : > { %14736 = vmatprep.subr.bf16.mxu0 %v19102_v8  ;;  %15392 = vmatprep.subr.bf16.mxu1 %v19104_v52  ;;  %v19144_v8 = vcombine.high %v3056_v63, %v3060_v3  ;;  %v3063_v52 = vld [vmem:[%s21083_s17 + $0x2800] sm:$0xff] }
 0x4e3   : > { %v3091_v49 = vld [vmem:[%s21083_s17 + $0x28e0] sm:$0xff] }
 0x4e4   : > { %v19174_v22 = vcombine.high %v3087_v37, %v3091_v49 }
 0x4e5   : > { %14737 = vmatpush1.bf16.msra.mxu0 %v19101_v14  ;;  %15393 = vmatpush1.bf16.msra.mxu1 %v19103_v15  ;;  %v19143_v14 = vcombine.low %v3056_v63, %v3060_v3  ;;  %v19150_v15 = vcombine.high %v3063_v52, %v3067_v9  ;;  %v3099_v63 = vld [vmem:[%s21083_s17 + $0x2920] sm:$0xff]  ;;  %v3096_v3 = vld [vmem:[%s21083_s17 + $0x2908] sm:$0xff] }
 0x4e6   : > { %14738 = vmatprep.subr.bf16.mxu0 %v19110_v23  ;;  %15394 = vmatprep.subr.bf16.mxu1 %v19112_v24  ;;  %v19152_v23 = vcombine.high %v3064_v61, %v3068_v12  ;;  %v3071_v24 = vld [vmem:[%s21083_s17 + $0x2840] sm:$0xff] }
 0x4e9   : > { %14739 = vmatpush1.bf16.msra.mxu0 %v19109_v0  ;;  %15395 = vmatpush1.bf16.msra.mxu1 %v19111_v54  ;;  %v3076_v0 = vld [vmem:[%s21083_s17 + $0x2868] sm:$0xff]  ;;  %v19149_v54 = vcombine.low %v3063_v52, %v3067_v9  ;;  %v3103_v9 = vld [vmem:[%s21083_s17 + $0x2940] sm:$0xff] }
 0x4ea   : > { %14740 = vmatprep.subr.bf16.mxu0 %v19118_v51  ;;  %15396 = vmatprep.subr.bf16.mxu1 %v19120_v38  ;;  %v19151_v51 = vcombine.low %v3064_v61, %v3068_v12  ;;  %v19158_v38 = vcombine.high %v3071_v24, %v3075_v21  ;;  %v19160_v39 = vcombine.high %v3072_v29, %v3076_v0  ;;  %v3107_v61 = vld [vmem:[%s21083_s17 + $0x2960] sm:$0xff]  ;;  %v3104_v12 = vld [vmem:[%s21083_s17 + $0x2948] sm:$0xff] }
 0x4ed   : > { %14741 = vmatpush1.bf16.msra.mxu0 %v19117_v26  ;;  %15397 = vmatpush1.bf16.msra.mxu1 %v19119_v44  ;;  %v3080_v26 = vld [vmem:[%s21083_s17 + $0x2888] sm:$0xff] }
 0x4ee   : > { %14742 = vmatprep.subr.bf16.mxu0 %v19126_v43  ;;  %15398 = vmatprep.subr.bf16.mxu1 %v19128_v35  ;;  %v3084_v44 = vld [vmem:[%s21083_s17 + $0x28a8] sm:$0xff]  ;;  %v19157_v43 = vcombine.low %v3071_v24, %v3075_v21  ;;  %v19159_v35 = vcombine.low %v3072_v29, %v3076_v0  ;;  %v3111_v21 = vld [vmem:[%s21083_s17 + $0x2980] sm:$0xff] }
 0x4ef   : > { %v19168_v47 = vcombine.high %v3080_v26, %v3084_v44  ;;  %v3112_v29 = vld [vmem:[%s21083_s17 + $0x2988] sm:$0xff] }
 0x4f0   : > { %v3116_v0 = vld [vmem:[%s21083_s17 + $0x29a8] sm:$0xff] }
 0x4f1   : > { %14743 = vmatpush1.bf16.msra.mxu0 %v19125_v27  ;;  %15399 = vmatpush1.bf16.msra.mxu1 %v19127_v53  ;;  %v3088_v27 = vld [vmem:[%s21083_s17 + $0x28c8] sm:$0xff] }
 0x4f2   : > { %14744 = vmatprep.subr.bf16.mxu0 %v19134_v55  ;;  %15400 = vmatprep.subr.bf16.mxu1 %v19136_v56  ;;  %v3092_v53 = vld [vmem:[%s21083_s17 + $0x28e8] sm:$0xff]  ;;  %v19165_v55 = vcombine.low %v3079_v40, %v3083_v41  ;;  %v19167_v56 = vcombine.low %v3080_v26, %v3084_v44  ;;  %v3119_v40 = vld [vmem:[%s21083_s17 + $0x29c0] sm:$0xff] }
 0x4f3   : > { %v19176_v60 = vcombine.high %v3088_v27, %v3092_v53  ;;  %v3123_v41 = vld [vmem:[%s21083_s17 + $0x29e0] sm:$0xff]  ;;  %v3120_v26 = vld [vmem:[%s21083_s17 + $0x29c8] sm:$0xff] }
 0x4f4   : > { %v3124_v44 = vld [vmem:[%s21083_s17 + $0x29e8] sm:$0xff] }
 0x4f5   : > { %14745 = vmatpush1.bf16.msra.mxu0 %v19133_v4  ;;  %15401 = vmatpush1.bf16.msra.mxu1 %v19135_v5  ;;  %v3100_v4 = vld [vmem:[%s21083_s17 + $0x2928] sm:$0xff]  ;;  %v19173_v5 = vcombine.low %v3087_v37, %v3091_v49  ;;  %v3127_v37 = vld [vmem:[%s21083_s17 + $0x2a00] sm:$0xff] }
 0x4f6   : > { %14746 = vmatprep.subr.bf16.mxu0 %v19142_v6  ;;  %15402 = vmatprep.subr.bf16.mxu1 %v19144_v8  ;;  %v19175_v6 = vcombine.low %v3088_v27, %v3092_v53  ;;  %v19182_v8 = vcombine.high %v3095_v62, %v3099_v63  ;;  %v19184_v52 = vcombine.high %v3096_v3, %v3100_v4  ;;  %v3131_v49 = vld [vmem:[%s21083_s17 + $0x2a20] sm:$0xff]  ;;  %v3128_v27 = vld [vmem:[%s21083_s17 + $0x2a08] sm:$0xff] }
 0x4f7   : > { %v3132_v53 = vld [vmem:[%s21083_s17 + $0x2a28] sm:$0xff] }
 0x4f9   : > { %14747 = vmatpush1.bf16.msra.mxu0 %v19141_v11  ;;  %15403 = vmatpush1.bf16.msra.mxu1 %v19143_v14  ;;  %v3108_v11 = vld [vmem:[%s21083_s17 + $0x2968] sm:$0xff]  ;;  %v19181_v14 = vcombine.low %v3095_v62, %v3099_v63  ;;  %v3135_v62 = vld [vmem:[%s21083_s17 + $0x2a40] sm:$0xff] }
 0x4fa   : > { %14757 = vmatprep.subr.bf16.mxu0 %v19150_v15  ;;  %15413 = vmatprep.subr.bf16.mxu1 %v19152_v23  ;;  %v19183_v15 = vcombine.low %v3096_v3, %v3100_v4  ;;  %v19190_v23 = vcombine.high %v3103_v9, %v3107_v61  ;;  %v19192_v24 = vcombine.high %v3104_v12, %v3108_v11  ;;  %v3139_v63 = vld [vmem:[%s21083_s17 + $0x2a60] sm:$0xff]  ;;  %v3136_v3 = vld [vmem:[%s21083_s17 + $0x2a48] sm:$0xff] }
 0x4fb   : > { %v3140_v4 = vld [vmem:[%s21083_s17 + $0x2a68] sm:$0xff] }
 0x4fc   : > { %14749 = vmatmul.mubr.bf16.vlgmr.msra.gmra.mrb[0].mxu0 %v22092_v28  ;;  %15405 = vmatmul.mubr.bf16.vlgmr.msra.gmra.mrb[0].mxu1 %v22092_v28 }
 0x4fd   : > { %14758 = vmatpush1.bf16.msra.mxu0 %v19149_v54  ;;  %15414 = vmatpush1.bf16.msra.mxu1 %v19151_v51  ;;  %v19189_v54 = vcombine.low %v3103_v9, %v3107_v61  ;;  %v19191_v51 = vcombine.low %v3104_v12, %v3108_v11  ;;  %v3143_v9 = vld [vmem:[%s21083_s17 + $0x2a80] sm:$0xff]  ;;  %v3144_v12 = vld [vmem:[%s21083_s17 + $0x2a88] sm:$0xff] }
 0x4fe   : > { %14759 = vmatprep.subr.bf16.mxu0 %v19158_v38  ;;  %15415 = vmatprep.subr.bf16.mxu1 %v19160_v39  ;;  %v19198_v38 = vcombine.high %v3111_v21, %v3115_v32  ;;  %v19200_v39 = vcombine.high %v3112_v29, %v3116_v0  ;;  %v3147_v61 = vld [vmem:[%s21083_s17 + $0x2aa0] sm:$0xff]  ;;  %v3148_v11 = vld [vmem:[%s21083_s17 + $0x2aa8] sm:$0xff] }
 0x4ff   : > { %14789 = vmatprep.mubr.bf16.mxu0 %v22099_v42  ;;  %15445 = vmatprep.mubr.bf16.mxu1 %v22099_v42 }
 0x501   : > { %14760 = vmatpush1.bf16.msra.mxu0 %v19157_v43  ;;  %15416 = vmatpush1.bf16.msra.mxu1 %v19159_v35  ;;  %v19197_v43 = vcombine.low %v3111_v21, %v3115_v32  ;;  %v19199_v35 = vcombine.low %v3112_v29, %v3116_v0  ;;  %v3151_v21 = vld [vmem:[%s21083_s17 + $0x2ac0] sm:$0xff]  ;;  %v3152_v29 = vld [vmem:[%s21083_s17 + $0x2ac8] sm:$0xff] }
 0x502   : > { %14761 = vmatprep.subr.bf16.mxu0 %v19166_v46  ;;  %15417 = vmatprep.subr.bf16.mxu1 %v19168_v47  ;;  %v19206_v46 = vcombine.high %v3119_v40, %v3123_v41  ;;  %v19208_v47 = vcombine.high %v3120_v26, %v3124_v44  ;;  %v3155_v32 = vld [vmem:[%s21083_s17 + $0x2ae0] sm:$0xff]  ;;  %v3156_v0 = vld [vmem:[%s21083_s17 + $0x2ae8] sm:$0xff] }
 0x505   : > { %14762 = vmatpush1.bf16.msra.mxu0 %v19165_v55  ;;  %15418 = vmatpush1.bf16.msra.mxu1 %v19167_v56  ;;  %v19205_v55 = vcombine.low %v3119_v40, %v3123_v41  ;;  %v19207_v56 = vcombine.low %v3120_v26, %v3124_v44  ;;  %v3159_v40 = vld [vmem:[%s21083_s17 + $0x2b00] sm:$0xff]  ;;  %v3160_v26 = vld [vmem:[%s21083_s17 + $0x2b08] sm:$0xff] }
 0x506   : > { %14763 = vmatprep.subr.bf16.mxu0 %v19174_v22  ;;  %15419 = vmatprep.subr.bf16.mxu1 %v19176_v60  ;;  %v19214_v22 = vcombine.high %v3127_v37, %v3131_v49  ;;  %v19216_v60 = vcombine.high %v3128_v27, %v3132_v53  ;;  %v3163_v41 = vld [vmem:[%s21083_s17 + $0x2b20] sm:$0xff]  ;;  %v3164_v44 = vld [vmem:[%s21083_s17 + $0x2b28] sm:$0xff] }
 0x509   : > { %14764 = vmatpush1.bf16.msra.mxu0 %v19173_v5  ;;  %15420 = vmatpush1.bf16.msra.mxu1 %v19175_v6  ;;  %v19213_v5 = vcombine.low %v3127_v37, %v3131_v49  ;;  %v19215_v6 = vcombine.low %v3128_v27, %v3132_v53  ;;  %v3167_v37 = vld [vmem:[%s21083_s17 + $0x2b40] sm:$0xff]  ;;  %v3168_v27 = vld [vmem:[%s21083_s17 + $0x2b48] sm:$0xff] }
 0x50a   : > { %14765 = vmatprep.subr.bf16.mxu0 %v19182_v8  ;;  %15421 = vmatprep.subr.bf16.mxu1 %v19184_v52  ;;  %v19222_v8 = vcombine.high %v3135_v62, %v3139_v63  ;;  %v19224_v52 = vcombine.high %v3136_v3, %v3140_v4  ;;  %v3171_v49 = vld [vmem:[%s21083_s17 + $0x2b60] sm:$0xff]  ;;  %v3172_v53 = vld [vmem:[%s21083_s17 + $0x2b68] sm:$0xff] }
 0x50d   : > { %14766 = vmatpush1.bf16.msra.mxu0 %v19181_v14  ;;  %15422 = vmatpush1.bf16.msra.mxu1 %v19183_v15  ;;  %v19221_v14 = vcombine.low %v3135_v62, %v3139_v63  ;;  %v19223_v15 = vcombine.low %v3136_v3, %v3140_v4  ;;  %v3175_v62 = vld [vmem:[%s21083_s17 + $0x2b80] sm:$0xff]  ;;  %v3176_v3 = vld [vmem:[%s21083_s17 + $0x2b88] sm:$0xff] }
 0x50e   : > { %14767 = vmatprep.subr.bf16.mxu0 %v19190_v23  ;;  %15423 = vmatprep.subr.bf16.mxu1 %v19192_v24  ;;  %v19230_v23 = vcombine.high %v3143_v9, %v3147_v61  ;;  %v19232_v24 = vcombine.high %v3144_v12, %v3148_v11  ;;  %v3179_v63 = vld [vmem:[%s21083_s17 + $0x2ba0] sm:$0xff]  ;;  %v3180_v4 = vld [vmem:[%s21083_s17 + $0x2ba8] sm:$0xff] }
 0x511   : > { %14768 = vmatpush1.bf16.msra.mxu0 %v19189_v54  ;;  %15424 = vmatpush1.bf16.msra.mxu1 %v19191_v51  ;;  %v19229_v54 = vcombine.low %v3143_v9, %v3147_v61  ;;  %v19231_v51 = vcombine.low %v3144_v12, %v3148_v11  ;;  %v3183_v9 = vld [vmem:[%s21083_s17 + $0x2bc0] sm:$0xff]  ;;  %v3184_v12 = vld [vmem:[%s21083_s17 + $0x2bc8] sm:$0xff] }
 0x512   : > { %14769 = vmatprep.subr.bf16.mxu0 %v19198_v38  ;;  %15425 = vmatprep.subr.bf16.mxu1 %v19200_v39  ;;  %v19238_v38 = vcombine.high %v3151_v21, %v3155_v32  ;;  %v19240_v39 = vcombine.high %v3152_v29, %v3156_v0  ;;  %v3187_v61 = vld [vmem:[%s21083_s17 + $0x2be0] sm:$0xff]  ;;  %v3188_v11 = vld [vmem:[%s21083_s17 + $0x2be8] sm:$0xff] }
 0x515   : > { %14770 = vmatpush1.bf16.msra.mxu0 %v19197_v43  ;;  %15426 = vmatpush1.bf16.msra.mxu1 %v19199_v35  ;;  %v19237_v43 = vcombine.low %v3151_v21, %v3155_v32  ;;  %v19239_v35 = vcombine.low %v3152_v29, %v3156_v0  ;;  %v3191_v21 = vld [vmem:[%s21083_s17 + $0x2c00] sm:$0xff]  ;;  %v3192_v29 = vld [vmem:[%s21083_s17 + $0x2c08] sm:$0xff] }
 0x516   : > { %14771 = vmatprep.subr.bf16.mxu0 %v19206_v46  ;;  %15427 = vmatprep.subr.bf16.mxu1 %v19208_v47  ;;  %v19246_v46 = vcombine.high %v3159_v40, %v3163_v41  ;;  %v19248_v47 = vcombine.high %v3160_v26, %v3164_v44  ;;  %v3195_v32 = vld [vmem:[%s21083_s17 + $0x2c20] sm:$0xff]  ;;  %v3196_v0 = vld [vmem:[%s21083_s17 + $0x2c28] sm:$0xff] }
 0x519   : > { %14772 = vmatpush1.bf16.msra.mxu0 %v19205_v55  ;;  %15428 = vmatpush1.bf16.msra.mxu1 %v19207_v56  ;;  %v19245_v55 = vcombine.low %v3159_v40, %v3163_v41  ;;  %v19247_v56 = vcombine.low %v3160_v26, %v3164_v44  ;;  %v3199_v40 = vld [vmem:[%s21083_s17 + $0x2c40] sm:$0xff]  ;;  %v22167_v26 = vrot.slane %v22082_v10, %v21314_v58  ;;  %v3200_v44 = vld [vmem:[%s21083_s17 + $0x2c48] sm:$0xff] }
 0x51a   : > { %14773 = vmatprep.subr.bf16.mxu0 %v19214_v22  ;;  %15429 = vmatprep.subr.bf16.mxu1 %v19216_v60  ;;  %v19254_v22 = vcombine.high %v3167_v37, %v3171_v49  ;;  %v19256_v60 = vcombine.high %v3168_v27, %v3172_v53  ;;  %v3203_v41 = vld [vmem:[%s21083_s17 + $0x2c60] sm:$0xff]  ;;  %v3208_v10 = vld [vmem:[%s21083_s17 + $0x2c88] sm:$0xff] }
 0x51d   : > { %14774 = vmatpush1.bf16.msra.mxu0 %v19213_v5  ;;  %15430 = vmatpush1.bf16.msra.mxu1 %v19215_v6  ;;  %v19253_v5 = vcombine.low %v3167_v37, %v3171_v49  ;;  %v19255_v6 = vcombine.low %v3168_v27, %v3172_v53  ;;  %v3207_v49 = vld [vmem:[%s21083_s17 + $0x2c80] sm:$0xff]  ;;  %v22175_v53 = vcombine.high %v22099_v42, %v22099_v42 }
 0x51e   : > { %14775 = vmatprep.subr.bf16.mxu0 %v19222_v8  ;;  %15431 = vmatprep.subr.bf16.mxu1 %v19224_v52  ;;  %v19262_v8 = vcombine.high %v3175_v62, %v3179_v63  ;;  %v19264_v52 = vcombine.high %v3176_v3, %v3180_v4  ;;  %v3211_v27 = vld [vmem:[%s21083_s17 + $0x2ca0] sm:$0xff] }
 0x521   : > { %14776 = vmatpush1.bf16.msra.mxu0 %v19221_v14  ;;  %15432 = vmatpush1.bf16.msra.mxu1 %v19223_v15  ;;  %v19261_v14 = vcombine.low %v3175_v62, %v3179_v63  ;;  %v19263_v15 = vcombine.low %v3176_v3, %v3180_v4  ;;  %v3215_v63 = vld [vmem:[%s21083_s17 + $0x2cc0] sm:$0xff]  ;;  %v3216_v4 = vld [vmem:[%s21083_s17 + $0x2cc8] sm:$0xff] }
 0x522   : > { %14777 = vmatprep.subr.bf16.mxu0 %v19230_v23  ;;  %15433 = vmatprep.subr.bf16.mxu1 %v19232_v24  ;;  %v19270_v23 = vcombine.high %v3183_v9, %v3187_v61  ;;  %v19272_v24 = vcombine.high %v3184_v12, %v3188_v11  ;;  %v3219_v3 = vld [vmem:[%s21083_s17 + $0x2ce0] sm:$0xff] }
 0x525   : > { %14778 = vmatpush1.bf16.msra.mxu0 %v19229_v54  ;;  %15434 = vmatpush1.bf16.msra.mxu1 %v19231_v51  ;;  %v19269_v54 = vcombine.low %v3183_v9, %v3187_v61  ;;  %v19271_v51 = vcombine.low %v3184_v12, %v3188_v11  ;;  %v3223_v61 = vld [vmem:[%s21083_s17 + $0x2d00] sm:$0xff]  ;;  %v3224_v11 = vld [vmem:[%s21083_s17 + $0x2d08] sm:$0xff] }
 0x526   : > { %14779 = vmatprep.subr.bf16.mxu0 %v19238_v38  ;;  %15435 = vmatprep.subr.bf16.mxu1 %v19240_v39  ;;  %v19278_v38 = vcombine.high %v3191_v21, %v3195_v32  ;;  %v19280_v39 = vcombine.high %v3192_v29, %v3196_v0  ;;  %v3227_v12 = vld [vmem:[%s21083_s17 + $0x2d20] sm:$0xff] }
 0x529   : > { %14780 = vmatpush1.bf16.msra.mxu0 %v19237_v43  ;;  %15436 = vmatpush1.bf16.msra.mxu1 %v19239_v35  ;;  %v3204_v43 = vld [vmem:[%s21083_s17 + $0x2c68] sm:$0xff]  ;;  %v19277_v35 = vcombine.low %v3191_v21, %v3195_v32  ;;  %v3231_v32 = vld [vmem:[%s21083_s17 + $0x2d40] sm:$0xff] }
 0x52a   : > { %14781 = vmatprep.subr.bf16.mxu0 %v19246_v46  ;;  %15437 = vmatprep.subr.bf16.mxu1 %v19248_v47  ;;  %v19279_v46 = vcombine.low %v3192_v29, %v3196_v0  ;;  %v19286_v47 = vcombine.high %v3199_v40, %v3203_v41  ;;  %v19288_v37 = vcombine.high %v3200_v44, %v3204_v43  ;;  %v3235_v29 = vld [vmem:[%s21083_s17 + $0x2d60] sm:$0xff]  ;;  %v3232_v0 = vld [vmem:[%s21083_s17 + $0x2d48] sm:$0xff] }
 0x52d   : > { %14782 = vmatpush1.bf16.msra.mxu0 %v19245_v55  ;;  %15438 = vmatpush1.bf16.msra.mxu1 %v19247_v56  ;;  %v3212_v55 = vld [vmem:[%s21083_s17 + $0x2ca8] sm:$0xff]  ;;  %v19285_v56 = vcombine.low %v3199_v40, %v3203_v41  ;;  %v3239_v41 = vld [vmem:[%s21083_s17 + $0x2d80] sm:$0xff] }
 0x52e   : > { %14783 = vmatprep.subr.bf16.mxu0 %v19254_v22  ;;  %15439 = vmatprep.subr.bf16.mxu1 %v19256_v60  ;;  %v19287_v22 = vcombine.low %v3200_v44, %v3204_v43  ;;  %v19294_v60 = vcombine.high %v3207_v49, %v3211_v27  ;;  %v19296_v62 = vcombine.high %v3208_v10, %v3212_v55  ;;  %v3243_v44 = vld [vmem:[%s21083_s17 + $0x2da0] sm:$0xff]  ;;  %v3240_v43 = vld [vmem:[%s21083_s17 + $0x2d88] sm:$0xff] }
 0x531   : > { %14784 = vmatpush1.bf16.msra.mxu0 %v19253_v5  ;;  %15440 = vmatpush1.bf16.msra.mxu1 %v19255_v6  ;;  %v3220_v5 = vld [vmem:[%s21083_s17 + $0x2ce8] sm:$0xff]  ;;  %v19293_v6 = vcombine.low %v3207_v49, %v3211_v27  ;;  %v3247_v27 = vld [vmem:[%s21083_s17 + $0x2dc0] sm:$0xff] }
 0x532   : > { %14785 = vmatprep.subr.bf16.mxu0 %v19262_v8  ;;  %15441 = vmatprep.subr.bf16.mxu1 %v19264_v52  ;;  %v19295_v8 = vcombine.low %v3208_v10, %v3212_v55  ;;  %v19302_v52 = vcombine.high %v3215_v63, %v3219_v3  ;;  %v19304_v9 = vcombine.high %v3216_v4, %v3220_v5  ;;  %v3251_v10 = vld [vmem:[%s21083_s17 + $0x2de0] sm:$0xff]  ;;  %v3248_v55 = vld [vmem:[%s21083_s17 + $0x2dc8] sm:$0xff] }
 0x535   : > { %14786 = vmatpush1.bf16.msra.mxu0 %v19261_v14  ;;  %15442 = vmatpush1.bf16.msra.mxu1 %v19263_v15  ;;  %v3228_v14 = vld [vmem:[%s21083_s17 + $0x2d28] sm:$0xff]  ;;  %v19301_v15 = vcombine.low %v3215_v63, %v3219_v3  ;;  %v3255_v3 = vld [vmem:[%s21083_s17 + $0x2e00] sm:$0xff] }
 0x536   : > { %14787 = vmatprep.subr.bf16.mxu0 %v19270_v23  ;;  %15443 = vmatprep.subr.bf16.mxu1 %v19272_v24  ;;  %v19303_v23 = vcombine.low %v3216_v4, %v3220_v5  ;;  %v19310_v24 = vcombine.high %v3223_v61, %v3227_v12  ;;  %v19312_v21 = vcombine.high %v3224_v11, %v3228_v14  ;;  %v3259_v4 = vld [vmem:[%s21083_s17 + $0x2e20] sm:$0xff]  ;;  %v3256_v5 = vld [vmem:[%s21083_s17 + $0x2e08] sm:$0xff] }
 0x539   : > { %14788 = vmatpush1.bf16.msra.mxu0 %v19269_v54  ;;  %15444 = vmatpush1.bf16.msra.mxu1 %v19271_v51  ;;  %v3236_v54 = vld [vmem:[%s21083_s17 + $0x2d68] sm:$0xff]  ;;  %v19309_v51 = vcombine.low %v3223_v61, %v3227_v12  ;;  %v3263_v12 = vld [vmem:[%s21083_s17 + $0x2e40] sm:$0xff] }
 0x53a   : > { %14798 = vmatprep.subr.bf16.mxu0 %v19278_v38  ;;  %15454 = vmatprep.subr.bf16.mxu1 %v19280_v39  ;;  %v19311_v38 = vcombine.low %v3224_v11, %v3228_v14  ;;  %v19318_v39 = vcombine.high %v3231_v32, %v3235_v29  ;;  %v19320_v40 = vcombine.high %v3232_v0, %v3236_v54  ;;  %v3267_v11 = vld [vmem:[%s21083_s17 + $0x2e60] sm:$0xff]  ;;  %v3264_v14 = vld [vmem:[%s21083_s17 + $0x2e48] sm:$0xff] }
 0x53c   : > { %14790 = vmatmul.mubr.bf16.vlgmr.msra.gmra.mrb[0].mxu0 %v22167_v26  ;;  %15446 = vmatmul.mubr.bf16.vlgmr.msra.gmra.mrb[0].mxu1 %v22167_v26 }
 0x53d   : > { %14799 = vmatpush1.bf16.msra.mxu0 %v19277_v35  ;;  %15455 = vmatpush1.bf16.msra.mxu1 %v19279_v46  ;;  %v3244_v35 = vld [vmem:[%s21083_s17 + $0x2da8] sm:$0xff]  ;;  %v19317_v46 = vcombine.low %v3231_v32, %v3235_v29  ;;  %v3271_v29 = vld [vmem:[%s21083_s17 + $0x2e80] sm:$0xff] }
 0x53e   : > { %14800 = vmatprep.subr.bf16.mxu0 %v19286_v47  ;;  %15456 = vmatprep.subr.bf16.mxu1 %v19288_v37  ;;  %v19319_v47 = vcombine.low %v3232_v0, %v3236_v54  ;;  %v19326_v37 = vcombine.high %v3239_v41, %v3243_v44  ;;  %v19328_v49 = vcombine.high %v3240_v43, %v3244_v35  ;;  %v3275_v0 = vld [vmem:[%s21083_s17 + $0x2ea0] sm:$0xff]  ;;  %v3272_v54 = vld [vmem:[%s21083_s17 + $0x2e88] sm:$0xff] }
 0x53f   : > { %14830 = vmatprep.mubr.bf16.mxu0 %v22175_v53  ;;  %15486 = vmatprep.mubr.bf16.mxu1 %v22175_v53 }
 0x541   : > { %14801 = vmatpush1.bf16.msra.mxu0 %v19285_v56  ;;  %15457 = vmatpush1.bf16.msra.mxu1 %v19287_v22  ;;  %v3252_v56 = vld [vmem:[%s21083_s17 + $0x2de8] sm:$0xff]  ;;  %v19325_v22 = vcombine.low %v3239_v41, %v3243_v44  ;;  %v3279_v44 = vld [vmem:[%s21083_s17 + $0x2ec0] sm:$0xff] }
 0x542   : > { %14802 = vmatprep.subr.bf16.mxu0 %v19294_v60  ;;  %15458 = vmatprep.subr.bf16.mxu1 %v19296_v62  ;;  %v19327_v60 = vcombine.low %v3240_v43, %v3244_v35  ;;  %v19334_v62 = vcombine.high %v3247_v27, %v3251_v10  ;;  %v19336_v63 = vcombine.high %v3248_v55, %v3252_v56  ;;  %v3283_v43 = vld [vmem:[%s21083_s17 + $0x2ee0] sm:$0xff]  ;;  %v3280_v35 = vld [vmem:[%s21083_s17 + $0x2ec8] sm:$0xff] }
 0x545   : > { %14803 = vmatpush1.bf16.msra.mxu0 %v19293_v6  ;;  %15459 = vmatpush1.bf16.msra.mxu1 %v19295_v8  ;;  %v3260_v6 = vld [vmem:[%s21083_s17 + $0x2e28] sm:$0xff]  ;;  %v19333_v8 = vcombine.low %v3247_v27, %v3251_v10  ;;  %v3287_v10 = vld [vmem:[%s21083_s17 + $0x2f00] sm:$0xff] }
 0x546   : > { %14804 = vmatprep.subr.bf16.mxu0 %v19302_v52  ;;  %15460 = vmatprep.subr.bf16.mxu1 %v19304_v9  ;;  %v19335_v52 = vcombine.low %v3248_v55, %v3252_v56  ;;  %v19342_v9 = vcombine.high %v3255_v3, %v3259_v4  ;;  %v19344_v61 = vcombine.high %v3256_v5, %v3260_v6  ;;  %v3291_v55 = vld [vmem:[%s21083_s17 + $0x2f20] sm:$0xff]  ;;  %v3288_v56 = vld [vmem:[%s21083_s17 + $0x2f08] sm:$0xff] }
 0x549   : > { %14805 = vmatpush1.bf16.msra.mxu0 %v19301_v15  ;;  %15461 = vmatpush1.bf16.msra.mxu1 %v19303_v23  ;;  %v3268_v15 = vld [vmem:[%s21083_s17 + $0x2e68] sm:$0xff]  ;;  %v19341_v23 = vcombine.low %v3255_v3, %v3259_v4  ;;  %v3295_v4 = vld [vmem:[%s21083_s17 + $0x2f40] sm:$0xff] }
 0x54a   : > { %14806 = vmatprep.subr.bf16.mxu0 %v19310_v24  ;;  %15462 = vmatprep.subr.bf16.mxu1 %v19312_v21  ;;  %v19343_v24 = vcombine.low %v3256_v5, %v3260_v6  ;;  %v19350_v21 = vcombine.high %v3263_v12, %v3267_v11  ;;  %v19352_v32 = vcombine.high %v3264_v14, %v3268_v15  ;;  %v3299_v5 = vld [vmem:[%s21083_s17 + $0x2f60] sm:$0xff]  ;;  %v3296_v6 = vld [vmem:[%s21083_s17 + $0x2f48] sm:$0xff] }
 0x54d   : > { %14807 = vmatpush1.bf16.msra.mxu0 %v19309_v51  ;;  %15463 = vmatpush1.bf16.msra.mxu1 %v19311_v38  ;;  %v3276_v51 = vld [vmem:[%s21083_s17 + $0x2ea8] sm:$0xff]  ;;  %v19349_v38 = vcombine.low %v3263_v12, %v3267_v11  ;;  %v3303_v11 = vld [vmem:[%s21083_s17 + $0x2f80] sm:$0xff] }
 0x54e   : > { %14808 = vmatprep.subr.bf16.mxu0 %v19318_v39  ;;  %15464 = vmatprep.subr.bf16.mxu1 %v19320_v40  ;;  %v19351_v39 = vcombine.low %v3264_v14, %v3268_v15  ;;  %v19358_v40 = vcombine.high %v3271_v29, %v3275_v0  ;;  %v19360_v41 = vcombine.high %v3272_v54, %v3276_v51  ;;  %v3307_v14 = vld [vmem:[%s21083_s17 + $0x2fa0] sm:$0xff]  ;;  %v3304_v15 = vld [vmem:[%s21083_s17 + $0x2f88] sm:$0xff] }
 0x551   : > { %14809 = vmatpush1.bf16.msra.mxu0 %v19317_v46  ;;  %15465 = vmatpush1.bf16.msra.mxu1 %v19319_v47  ;;  %v3284_v46 = vld [vmem:[%s21083_s17 + $0x2ee8] sm:$0xff]  ;;  %v19357_v47 = vcombine.low %v3271_v29, %v3275_v0  ;;  %v3311_v0 = vld [vmem:[%s21083_s17 + $0x2fc0] sm:$0xff] }
 0x552   : > { %14810 = vmatprep.subr.bf16.mxu0 %v19326_v37  ;;  %15466 = vmatprep.subr.bf16.mxu1 %v19328_v49  ;;  %v19359_v37 = vcombine.low %v3272_v54, %v3276_v51  ;;  %v19366_v49 = vcombine.high %v3279_v44, %v3283_v43  ;;  %v19368_v27 = vcombine.high %v3280_v35, %v3284_v46  ;;  %v3315_v54 = vld [vmem:[%s21083_s17 + $0x2fe0] sm:$0xff]  ;;  %v3312_v51 = vld [vmem:[%s21083_s17 + $0x2fc8] sm:$0xff] }
 0x555   : > { %14811 = vmatpush1.bf16.msra.mxu0 %v19325_v22  ;;  %15467 = vmatpush1.bf16.msra.mxu1 %v19327_v60  ;;  %v3292_v22 = vld [vmem:[%s21083_s17 + $0x2f28] sm:$0xff]  ;;  %v19365_v60 = vcombine.low %v3279_v44, %v3283_v43  ;;  %v19398_v44 = vcombine.high %v3311_v0, %v3315_v54 }
 0x556   : > { %14812 = vmatprep.subr.bf16.mxu0 %v19334_v62  ;;  %15468 = vmatprep.subr.bf16.mxu1 %v19336_v63  ;;  %v19367_v62 = vcombine.low %v3280_v35, %v3284_v46  ;;  %v19374_v63 = vcombine.high %v3287_v10, %v3291_v55  ;;  %v19376_v3 = vcombine.high %v3288_v56, %v3292_v22  ;;  %v3319_v35 = vld [vmem:[%s21083_s17 + $0x3000] sm:$0xff] }
 0x557   : > { %v3323_v46 = vld [vmem:[%s21083_s17 + $0x3020] sm:$0xff] }
 0x559   : > { %14813 = vmatpush1.bf16.msra.mxu0 %v19333_v8  ;;  %15469 = vmatpush1.bf16.msra.mxu1 %v19335_v52  ;;  %v3300_v8 = vld [vmem:[%s21083_s17 + $0x2f68] sm:$0xff]  ;;  %v19373_v52 = vcombine.low %v3287_v10, %v3291_v55  ;;  %v19406_v55 = vcombine.high %v3319_v35, %v3323_v46 }
 0x55a   : > { %14814 = vmatprep.subr.bf16.mxu0 %v19342_v9  ;;  %15470 = vmatprep.subr.bf16.mxu1 %v19344_v61  ;;  %v19375_v9 = vcombine.low %v3288_v56, %v3292_v22  ;;  %v19382_v61 = vcombine.high %v3295_v4, %v3299_v5  ;;  %v19384_v12 = vcombine.high %v3296_v6, %v3300_v8  ;;  %v3327_v22 = vld [vmem:[%s21083_s17 + $0x3040] sm:$0xff] }
 0x55d   : > { %14815 = vmatpush1.bf16.msra.mxu0 %v19341_v23  ;;  %15471 = vmatpush1.bf16.msra.mxu1 %v19343_v24  ;;  %v3308_v23 = vld [vmem:[%s21083_s17 + $0x2fa8] sm:$0xff]  ;;  %v19381_v24 = vcombine.low %v3295_v4, %v3299_v5  ;;  %v19405_v5 = vcombine.low %v3319_v35, %v3323_v46 }
 0x55e   : > { %14816 = vmatprep.subr.bf16.mxu0 %v19350_v21  ;;  %15472 = vmatprep.subr.bf16.mxu1 %v19352_v32  ;;  %v19383_v21 = vcombine.low %v3296_v6, %v3300_v8  ;;  %v19390_v32 = vcombine.high %v3303_v11, %v3307_v14  ;;  %v19392_v29 = vcombine.high %v3304_v15, %v3308_v23  ;;  %v3332_v4 = vld [vmem:[%s21083_s17 + $0x3068] sm:$0xff] }
 0x55f   : > { %v3352_v35 = vld [vmem:[%s21083_s17 + $0x3108] sm:$0xff] }
 0x560   : > { %v3356_v46 = vld [vmem:[%s21083_s17 + $0x3128] sm:$0xff] }
 0x561   : > { %14817 = vmatpush1.bf16.msra.mxu0 %v19349_v38  ;;  %15473 = vmatpush1.bf16.msra.mxu1 %v19351_v39  ;;  %v3316_v38 = vld [vmem:[%s21083_s17 + $0x2fe8] sm:$0xff] }
 0x562   : > { %14818 = vmatprep.subr.bf16.mxu0 %v19358_v40  ;;  %15474 = vmatprep.subr.bf16.mxu1 %v19360_v41  ;;  %v22235_v39 = vld [vmem:[#allocation2 + $0x18] sm:$0xff]  ;;  %v19389_v40 = vcombine.low %v3303_v11, %v3307_v14  ;;  %v19391_v41 = vcombine.low %v3304_v15, %v3308_v23  ;;  %v19400_v43 = vcombine.high %v3312_v51, %v3316_v38 }
 0x563   : > { %v19399_v10 = vcombine.low %v3312_v51, %v3316_v38  ;;  %v3336_v11 = vld [vmem:[%s21083_s17 + $0x3088] sm:$0xff] }
 0x564   : > { %v3340_v14 = vld [vmem:[%s21083_s17 + $0x30a8] sm:$0xff] }
 0x565   : > { %14819 = vmatpush1.bf16.msra.mxu0 %v19357_v47  ;;  %15475 = vmatpush1.bf16.msra.mxu1 %v19359_v37  ;;  %v22241_v47 = vrot.slane %v22235_v39, %v21314_v58  ;;  %v3320_v37 = vld [vmem:[%s21083_s17 + $0x3008] sm:$0xff]  ;;  %v19423_v38 = vcombine.low %v3336_v11, %v3340_v14 }
 0x566   : > { %14820 = vmatprep.subr.bf16.mxu0 %v19366_v49  ;;  %15476 = vmatprep.subr.bf16.mxu1 %v19368_v27  ;;  %v3324_v49 = vld [vmem:[%s21083_s17 + $0x3028] sm:$0xff]  ;;  %v19397_v27 = vcombine.low %v3311_v0, %v3315_v54 }
 0x567   : > { %v19408_v56 = vcombine.high %v3320_v37, %v3324_v49  ;;  %v19407_v6 = vcombine.low %v3320_v37, %v3324_v49  ;;  %v3344_v0 = vld [vmem:[%s21083_s17 + $0x30c8] sm:$0xff] }
 0x568   : > { %v3348_v54 = vld [vmem:[%s21083_s17 + $0x30e8] sm:$0xff] }
 0x569   : > { %14821 = vmatpush1.bf16.msra.mxu0 %v19365_v60  ;;  %15477 = vmatpush1.bf16.msra.mxu1 %v19367_v62  ;;  %v3331_v60 = vld [vmem:[%s21083_s17 + $0x3060] sm:$0xff]  ;;  %v4041_v62 = vcombine.high %v22241_v47, %v22241_v47  ;;  %v19431_v49 = vcombine.low %v3344_v0, %v3348_v54 }
 0x56a   : > { %14822 = vmatprep.subr.bf16.mxu0 %v19374_v63  ;;  %15478 = vmatprep.subr.bf16.mxu1 %v19376_v3  ;;  %v22251_v63 = vcombine.high %v22167_v26, %v22167_v26  ;;  %v3328_v3 = vld [vmem:[%s21083_s17 + $0x3048] sm:$0xff]  ;;  %v19414_v8 = vcombine.high %v3327_v22, %v3331_v60  ;;  %v19413_v15 = vcombine.low %v3327_v22, %v3331_v60 }
 0x56b   : > { %v19415_v23 = vcombine.low %v3328_v3, %v3332_v4  ;;  %v3360_v22 = vld [vmem:[%s21083_s17 + $0x3148] sm:$0xff] }
 0x56c   : > { %v3364_v60 = vld [vmem:[%s21083_s17 + $0x3168] sm:$0xff] }
 0x56d   : > { %14823 = vmatpush1.bf16.msra.mxu0 %v19373_v52  ;;  %15479 = vmatpush1.bf16.msra.mxu1 %v19375_v9  ;;  %v19416_v52 = vcombine.high %v3328_v3, %v3332_v4  ;;  %v3335_v9 = vld [vmem:[%s21083_s17 + $0x3080] sm:$0xff]  ;;  %v19439_v3 = vcombine.low %v3352_v35, %v3356_v46 }
 0x56e   : > { %14824 = vmatprep.subr.bf16.mxu0 %v19382_v61  ;;  %15480 = vmatprep.subr.bf16.mxu1 %v19384_v12  ;;  %v3339_v61 = vld [vmem:[%s21083_s17 + $0x30a0] sm:$0xff]  ;;  %v22258_v12 = vrot.slane %v4041_v62, %v21314_v58 }
 0x56f   : > { %v19421_v51 = vcombine.low %v3335_v9, %v3339_v61 }
 0x571   : > { %14825 = vmatpush1.bf16.msra.mxu0 %v19381_v24  ;;  %15481 = vmatpush1.bf16.msra.mxu1 %v19383_v21  ;;  %v19422_v24 = vcombine.high %v3335_v9, %v3339_v61  ;;  %v19424_v21 = vcombine.high %v3336_v11, %v3340_v14  ;;  %v3372_v9 = vld [vmem:[%s21083_s17 + $0x31a8] sm:$0xff]  ;;  %v19447_v11 = vcombine.low %v3360_v22, %v3364_v60 }
 0x572   : > { %14826 = vmatprep.subr.bf16.mxu0 %v19390_v32  ;;  %15482 = vmatprep.subr.bf16.mxu1 %v19392_v29  ;;  %v3343_v32 = vld [vmem:[%s21083_s17 + $0x30c0] sm:$0xff] }
 0x573   : > { %v3347_v29 = vld [vmem:[%s21083_s17 + $0x30e0] sm:$0xff] }
 0x574   : > { %v19429_v37 = vcombine.low %v3343_v32, %v3347_v29 }
 0x575   : > { %14827 = vmatpush1.bf16.msra.mxu0 %v19389_v40  ;;  %15483 = vmatpush1.bf16.msra.mxu1 %v19391_v41  ;;  %v19430_v40 = vcombine.high %v3343_v32, %v3347_v29  ;;  %v19432_v41 = vcombine.high %v3344_v0, %v3348_v54  ;;  %v3380_v32 = vld [vmem:[%s21083_s17 + $0x31e8] sm:$0xff] }
 0x576   : > { %14828 = vmatprep.subr.bf16.mxu0 %v19398_v44  ;;  %15484 = vmatprep.subr.bf16.mxu1 %v19400_v43  ;;  %v3351_v44 = vld [vmem:[%s21083_s17 + $0x3100] sm:$0xff] }
 0x577   : > { %v3355_v43 = vld [vmem:[%s21083_s17 + $0x3120] sm:$0xff] }
 0x578   : > { %v19437_v62 = vcombine.low %v3351_v44, %v3355_v43 }
 0x579   : > { %14829 = vmatpush1.bf16.msra.mxu0 %v19397_v27  ;;  %15485 = vmatpush1.bf16.msra.mxu1 %v19399_v10  ;;  %v19438_v27 = vcombine.high %v3351_v44, %v3355_v43  ;;  %v19440_v10 = vcombine.high %v3352_v35, %v3356_v46  ;;  %v3388_v44 = vld [vmem:[%s21083_s17 + $0x3228] sm:$0xff] }
 0x57a   : > { %14839 = vmatprep.subr.bf16.mxu0 %v19406_v55  ;;  %15495 = vmatprep.subr.bf16.mxu1 %v19408_v56  ;;  %v3359_v55 = vld [vmem:[%s21083_s17 + $0x3140] sm:$0xff] }
 0x57b   : > { %v3363_v56 = vld [vmem:[%s21083_s17 + $0x3160] sm:$0xff] }
 0x57c   : > { %14831 = vmatmul.mubr.bf16.vlgmr.msra.gmra.mrb[0].mxu0 %v22251_v63  ;;  %15487 = vmatmul.mubr.bf16.vlgmr.msra.gmra.mrb[0].mxu1 %v22251_v63  ;;  %v19446_v4 = vcombine.high %v3359_v55, %v3363_v56  ;;  %v19445_v61 = vcombine.low %v3359_v55, %v3363_v56  ;;  %v3396_v55 = vld [vmem:[%s21083_s17 + $0x3268] sm:$0xff] }
 0x57d   : > { %14840 = vmatpush1.bf16.msra.mxu0 %v19405_v5  ;;  %15496 = vmatpush1.bf16.msra.mxu1 %v19407_v6  ;;  %v19448_v5 = vcombine.high %v3360_v22, %v3364_v60  ;;  %v3367_v6 = vld [vmem:[%s21083_s17 + $0x3180] sm:$0xff] }
 0x57e   : > { %14841 = vmatprep.subr.bf16.mxu0 %v19414_v8  ;;  %15497 = vmatprep.subr.bf16.mxu1 %v19416_v52  ;;  %v3371_v8 = vld [vmem:[%s21083_s17 + $0x31a0] sm:$0xff]  ;;  %v3368_v52 = vld [vmem:[%s21083_s17 + $0x3188] sm:$0xff] }
 0x57f   : > { %14871 = vmatprep.mubr.bf16.mxu0 %v22258_v12  ;;  %15527 = vmatprep.mubr.bf16.mxu1 %v22258_v12  ;;  %v19454_v14 = vcombine.high %v3367_v6, %v3371_v8  ;;  %v19453_v29 = vcombine.low %v3367_v6, %v3371_v8  ;;  %v19455_v0 = vcombine.low %v3368_v52, %v3372_v9  ;;  %v3404_v6 = vld [vmem:[%s21083_s17 + $0x32a8] sm:$0xff] }
 0x581   : > { %14842 = vmatpush1.bf16.msra.mxu0 %v19413_v15  ;;  %15498 = vmatpush1.bf16.msra.mxu1 %v19415_v23  ;;  %v19456_v15 = vcombine.high %v3368_v52, %v3372_v9  ;;  %v3375_v23 = vld [vmem:[%s21083_s17 + $0x31c0] sm:$0xff] }
 0x582   : > { %14843 = vmatprep.subr.bf16.mxu0 %v19422_v24  ;;  %15499 = vmatprep.subr.bf16.mxu1 %v19424_v21  ;;  %v3379_v24 = vld [vmem:[%s21083_s17 + $0x31e0] sm:$0xff]  ;;  %v3376_v21 = vld [vmem:[%s21083_s17 + $0x31c8] sm:$0xff] }
 0x583   : > { %v19462_v54 = vcombine.high %v3375_v23, %v3379_v24  ;;  %v19461_v43 = vcombine.low %v3375_v23, %v3379_v24  ;;  %v19463_v35 = vcombine.low %v3376_v21, %v3380_v32  ;;  %v3412_v23 = vld [vmem:[%s21083_s17 + $0x32e8] sm:$0xff] }
 0x585   : > { %14844 = vmatpush1.bf16.msra.mxu0 %v19421_v51  ;;  %15500 = vmatpush1.bf16.msra.mxu1 %v19423_v38  ;;  %v19464_v51 = vcombine.high %v3376_v21, %v3380_v32  ;;  %v3383_v38 = vld [vmem:[%s21083_s17 + $0x3200] sm:$0xff] }
 0x586   : > { %14845 = vmatprep.subr.bf16.mxu0 %v19430_v40  ;;  %15501 = vmatprep.subr.bf16.mxu1 %v19432_v41  ;;  %v3387_v40 = vld [vmem:[%s21083_s17 + $0x3220] sm:$0xff]  ;;  %v3384_v41 = vld [vmem:[%s21083_s17 + $0x3208] sm:$0xff] }
 0x587   : > { %v19470_v46 = vcombine.high %v3383_v38, %v3387_v40  ;;  %v19469_v56 = vcombine.low %v3383_v38, %v3387_v40  ;;  %v19471_v22 = vcombine.low %v3384_v41, %v3388_v44  ;;  %v3420_v38 = vld [vmem:[%s21083_s17 + $0x3328] sm:$0xff] }
 0x589   : > { %14846 = vmatpush1.bf16.msra.mxu0 %v19429_v37  ;;  %15502 = vmatpush1.bf16.msra.mxu1 %v19431_v49  ;;  %v19472_v37 = vcombine.high %v3384_v41, %v3388_v44  ;;  %v3391_v49 = vld [vmem:[%s21083_s17 + $0x3240] sm:$0xff] }
 0x58a   : > { %14847 = vmatprep.subr.bf16.mxu0 %v19438_v27  ;;  %15503 = vmatprep.subr.bf16.mxu1 %v19440_v10  ;;  %v3395_v27 = vld [vmem:[%s21083_s17 + $0x3260] sm:$0xff]  ;;  %v3392_v10 = vld [vmem:[%s21083_s17 + $0x3248] sm:$0xff] }
 0x58b   : > { %v19478_v60 = vcombine.high %v3391_v49, %v3395_v27  ;;  %v19477_v8 = vcombine.low %v3391_v49, %v3395_v27  ;;  %v19479_v52 = vcombine.low %v3392_v10, %v3396_v55  ;;  %v3428_v49 = vld [vmem:[%s21083_s17 + $0x3368] sm:$0xff] }
 0x58d   : > { %14848 = vmatpush1.bf16.msra.mxu0 %v19437_v62  ;;  %15504 = vmatpush1.bf16.msra.mxu1 %v19439_v3  ;;  %v19480_v62 = vcombine.high %v3392_v10, %v3396_v55  ;;  %v3399_v3 = vld [vmem:[%s21083_s17 + $0x3280] sm:$0xff] }
 0x58e   : > { %14849 = vmatprep.subr.bf16.mxu0 %v19446_v4  ;;  %15505 = vmatprep.subr.bf16.mxu1 %v19448_v5  ;;  %v3403_v4 = vld [vmem:[%s21083_s17 + $0x32a0] sm:$0xff]  ;;  %v3400_v5 = vld [vmem:[%s21083_s17 + $0x3288] sm:$0xff] }
 0x58f   : > { %v19486_v9 = vcombine.high %v3399_v3, %v3403_v4  ;;  %v19485_v24 = vcombine.low %v3399_v3, %v3403_v4  ;;  %v19487_v21 = vcombine.low %v3400_v5, %v3404_v6  ;;  %v3436_v3 = vld [vmem:[%s21083_s17 + $0x33a8] sm:$0xff] }
 0x591   : > { %14850 = vmatpush1.bf16.msra.mxu0 %v19445_v61  ;;  %15506 = vmatpush1.bf16.msra.mxu1 %v19447_v11  ;;  %v19488_v61 = vcombine.high %v3400_v5, %v3404_v6  ;;  %v3407_v11 = vld [vmem:[%s21083_s17 + $0x32c0] sm:$0xff] }
 0x592   : > { %14851 = vmatprep.subr.bf16.mxu0 %v19454_v14  ;;  %15507 = vmatprep.subr.bf16.mxu1 %v19456_v15  ;;  %v3411_v14 = vld [vmem:[%s21083_s17 + $0x32e0] sm:$0xff]  ;;  %v3408_v15 = vld [vmem:[%s21083_s17 + $0x32c8] sm:$0xff] }
 0x593   : > { %v19494_v32 = vcombine.high %v3407_v11, %v3411_v14  ;;  %v19493_v40 = vcombine.low %v3407_v11, %v3411_v14  ;;  %v19495_v41 = vcombine.low %v3408_v15, %v3412_v23  ;;  %v3444_v11 = vld [vmem:[%s21083_s17 + $0x33e8] sm:$0xff] }
 0x595   : > { %14852 = vmatpush1.bf16.msra.mxu0 %v19453_v29  ;;  %15508 = vmatpush1.bf16.msra.mxu1 %v19455_v0  ;;  %v19496_v29 = vcombine.high %v3408_v15, %v3412_v23  ;;  %v3415_v0 = vld [vmem:[%s21083_s17 + $0x3300] sm:$0xff] }
 0x596   : > { %14853 = vmatprep.subr.bf16.mxu0 %v19462_v54  ;;  %15509 = vmatprep.subr.bf16.mxu1 %v19464_v51  ;;  %v3419_v54 = vld [vmem:[%s21083_s17 + $0x3320] sm:$0xff]  ;;  %v3416_v51 = vld [vmem:[%s21083_s17 + $0x3308] sm:$0xff] }
 0x597   : > { %v19502_v44 = vcombine.high %v3415_v0, %v3419_v54  ;;  %v19501_v27 = vcombine.low %v3415_v0, %v3419_v54  ;;  %v19503_v10 = vcombine.low %v3416_v51, %v3420_v38  ;;  %v3452_v0 = vld [vmem:[%s21083_s17 + $0x3428] sm:$0xff] }
 0x599   : > { %14854 = vmatpush1.bf16.msra.mxu0 %v19461_v43  ;;  %15510 = vmatpush1.bf16.msra.mxu1 %v19463_v35  ;;  %v19504_v43 = vcombine.high %v3416_v51, %v3420_v38  ;;  %v3423_v35 = vld [vmem:[%s21083_s17 + $0x3340] sm:$0xff] }
 0x59a   : > { %14855 = vmatprep.subr.bf16.mxu0 %v19470_v46  ;;  %15511 = vmatprep.subr.bf16.mxu1 %v19472_v37  ;;  %v3427_v46 = vld [vmem:[%s21083_s17 + $0x3360] sm:$0xff]  ;;  %v3424_v37 = vld [vmem:[%s21083_s17 + $0x3348] sm:$0xff] }
 0x59b   : > { %v19510_v55 = vcombine.high %v3423_v35, %v3427_v46  ;;  %v19509_v4 = vcombine.low %v3423_v35, %v3427_v46  ;;  %v19511_v5 = vcombine.low %v3424_v37, %v3428_v49  ;;  %v3456_v35 = vld [vmem:[%s21083_s17 + $0x3448] sm:$0xff] }
 0x59c   : > { %v3460_v46 = vld [vmem:[%s21083_s17 + $0x3468] sm:$0xff] }
 0x59d   : > { %14856 = vmatpush1.bf16.msra.mxu0 %v19469_v56  ;;  %15512 = vmatpush1.bf16.msra.mxu1 %v19471_v22  ;;  %v19512_v56 = vcombine.high %v3424_v37, %v3428_v49  ;;  %v3431_v22 = vld [vmem:[%s21083_s17 + $0x3380] sm:$0xff] }
 0x59e   : > { %14857 = vmatprep.subr.bf16.mxu0 %v19478_v60  ;;  %15513 = vmatprep.subr.bf16.mxu1 %v19480_v62  ;;  %v3435_v60 = vld [vmem:[%s21083_s17 + $0x33a0] sm:$0xff]  ;;  %v3432_v62 = vld [vmem:[%s21083_s17 + $0x3388] sm:$0xff] }
 0x59f   : > { %v19518_v6 = vcombine.high %v3431_v22, %v3435_v60  ;;  %v19517_v14 = vcombine.low %v3431_v22, %v3435_v60  ;;  %v19519_v15 = vcombine.low %v3432_v62, %v3436_v3  ;;  %v22334_v22 = vcombine.high %v22258_v12, %v22258_v12  ;;  %v3468_v60 = vld [vmem:[%s21083_s17 + $0x34a8] sm:$0xff] }
 0x5a1   : > { %14858 = vmatpush1.bf16.msra.mxu0 %v19477_v8  ;;  %15514 = vmatpush1.bf16.msra.mxu1 %v19479_v52  ;;  %v19520_v8 = vcombine.high %v3432_v62, %v3436_v3  ;;  %v3439_v52 = vld [vmem:[%s21083_s17 + $0x33c0] sm:$0xff]  ;;  %v19543_v3 = vcombine.low %v3456_v35, %v3460_v46 }
 0x5a2   : > { %14859 = vmatprep.subr.bf16.mxu0 %v19486_v9  ;;  %15515 = vmatprep.subr.bf16.mxu1 %v19488_v61  ;;  %v3443_v9 = vld [vmem:[%s21083_s17 + $0x33e0] sm:$0xff]  ;;  %v3440_v61 = vld [vmem:[%s21083_s17 + $0x33c8] sm:$0xff] }
 0x5a3   : > { %v19526_v23 = vcombine.high %v3439_v52, %v3443_v9  ;;  %v19525_v54 = vcombine.low %v3439_v52, %v3443_v9  ;;  %v19527_v51 = vcombine.low %v3440_v61, %v3444_v11  ;;  %v3472_v52 = vld [vmem:[%s21083_s17 + $0x34c8] sm:$0xff] }
 0x5a4   : > { %v3476_v9 = vld [vmem:[%s21083_s17 + $0x34e8] sm:$0xff] }
 0x5a5   : > { %14860 = vmatpush1.bf16.msra.mxu0 %v19485_v24  ;;  %15516 = vmatpush1.bf16.msra.mxu1 %v19487_v21  ;;  %v19528_v24 = vcombine.high %v3440_v61, %v3444_v11  ;;  %v3447_v21 = vld [vmem:[%s21083_s17 + $0x3400] sm:$0xff] }
 0x5a6   : > { %14861 = vmatprep.subr.bf16.mxu0 %v19494_v32  ;;  %15517 = vmatprep.subr.bf16.mxu1 %v19496_v29  ;;  %v3451_v32 = vld [vmem:[%s21083_s17 + $0x3420] sm:$0xff]  ;;  %v3448_v29 = vld [vmem:[%s21083_s17 + $0x3408] sm:$0xff] }
 0x5a7   : > { %v19534_v38 = vcombine.high %v3447_v21, %v3451_v32  ;;  %v19533_v37 = vcombine.low %v3447_v21, %v3451_v32  ;;  %v19535_v49 = vcombine.low %v3448_v29, %v3452_v0  ;;  %v3480_v21 = vld [vmem:[%s21083_s17 + $0x3508] sm:$0xff] }
 0x5a8   : > { %v3484_v32 = vld [vmem:[%s21083_s17 + $0x3528] sm:$0xff] }
 0x5a9   : > { %14862 = vmatpush1.bf16.msra.mxu0 %v19493_v40  ;;  %15518 = vmatpush1.bf16.msra.mxu1 %v19495_v41  ;;  %v19536_v40 = vcombine.high %v3448_v29, %v3452_v0  ;;  %v3455_v41 = vld [vmem:[%s21083_s17 + $0x3440] sm:$0xff]  ;;  %v19559_v0 = vcombine.low %v3472_v52, %v3476_v9 }
 0x5aa   : > { %14863 = vmatprep.subr.bf16.mxu0 %v19502_v44  ;;  %15519 = vmatprep.subr.bf16.mxu1 %v19504_v43  ;;  %v3459_v44 = vld [vmem:[%s21083_s17 + $0x3460] sm:$0xff]  ;;  %v22326_v43 = vrot.slane %v22241_v47, %v21314_v58  ;;  %v3464_v47 = vld [vmem:[%s21083_s17 + $0x3488] sm:$0xff] }
 0x5ab   : > { %v19541_v62 = vcombine.low %v3455_v41, %v3459_v44  ;;  %v19551_v11 = vcombine.low %v3464_v47, %v3468_v60 }
 0x5ad   : > { %14864 = vmatpush1.bf16.msra.mxu0 %v19501_v27  ;;  %15520 = vmatpush1.bf16.msra.mxu1 %v19503_v10  ;;  %v19542_v27 = vcombine.high %v3455_v41, %v3459_v44  ;;  %v19544_v10 = vcombine.high %v3456_v35, %v3460_v46  ;;  %v3488_v41 = vld [vmem:[%s21083_s17 + $0x3548] sm:$0xff]  ;;  %v19567_v46 = vcombine.low %v3480_v21, %v3484_v32 }
 0x5ae   : > { %14865 = vmatprep.subr.bf16.mxu0 %v19510_v55  ;;  %15521 = vmatprep.subr.bf16.mxu1 %v19512_v56  ;;  %v3463_v55 = vld [vmem:[%s21083_s17 + $0x3480] sm:$0xff]  ;;  %v3492_v44 = vld [vmem:[%s21083_s17 + $0x3568] sm:$0xff] }
 0x5af   : > { %v3467_v56 = vld [vmem:[%s21083_s17 + $0x34a0] sm:$0xff] }
 0x5b0   : > { %v19549_v61 = vcombine.low %v3463_v55, %v3467_v56 }
 0x5b1   : > { %14866 = vmatpush1.bf16.msra.mxu0 %v19509_v4  ;;  %15522 = vmatpush1.bf16.msra.mxu1 %v19511_v5  ;;  %v19550_v4 = vcombine.high %v3463_v55, %v3467_v56  ;;  %v19552_v5 = vcombine.high %v3464_v47, %v3468_v60  ;;  %v3496_v55 = vld [vmem:[%s21083_s17 + $0x3588] sm:$0xff]  ;;  %v19575_v60 = vcombine.low %v3488_v41, %v3492_v44 }
 0x5b2   : > { %14867 = vmatprep.subr.bf16.mxu0 %v19518_v6  ;;  %15523 = vmatprep.subr.bf16.mxu1 %v19520_v8  ;;  %v3471_v6 = vld [vmem:[%s21083_s17 + $0x34c0] sm:$0xff]  ;;  %v3500_v56 = vld [vmem:[%s21083_s17 + $0x35a8] sm:$0xff] }
 0x5b3   : > { %v3475_v8 = vld [vmem:[%s21083_s17 + $0x34e0] sm:$0xff] }
 0x5b4   : > { %v19557_v29 = vcombine.low %v3471_v6, %v3475_v8 }
 0x5b5   : > { %14868 = vmatpush1.bf16.msra.mxu0 %v19517_v14  ;;  %15524 = vmatpush1.bf16.msra.mxu1 %v19519_v15  ;;  %v19558_v14 = vcombine.high %v3471_v6, %v3475_v8  ;;  %v19560_v15 = vcombine.high %v3472_v52, %v3476_v9  ;;  %v3504_v6 = vld [vmem:[%s21083_s17 + $0x35c8] sm:$0xff]  ;;  %v19583_v9 = vcombine.low %v3496_v55, %v3500_v56 }
 0x5b6   : > { %14869 = vmatprep.subr.bf16.mxu0 %v19526_v23  ;;  %15525 = vmatprep.subr.bf16.mxu1 %v19528_v24  ;;  %v3479_v23 = vld [vmem:[%s21083_s17 + $0x3500] sm:$0xff]  ;;  %v3508_v8 = vld [vmem:[%s21083_s17 + $0x35e8] sm:$0xff] }
 0x5b7   : > { %v3483_v24 = vld [vmem:[%s21083_s17 + $0x3520] sm:$0xff] }
 0x5b8   : > { %v19565_v35 = vcombine.low %v3479_v23, %v3483_v24 }
 0x5b9   : > { %14870 = vmatpush1.bf16.msra.mxu0 %v19525_v54  ;;  %15526 = vmatpush1.bf16.msra.mxu1 %v19527_v51  ;;  %v19566_v54 = vcombine.high %v3479_v23, %v3483_v24  ;;  %v19568_v51 = vcombine.high %v3480_v21, %v3484_v32  ;;  %v3512_v23 = vld [vmem:[%s21083_s17 + $0x3608] sm:$0xff]  ;;  %v19591_v32 = vcombine.low %v3504_v6, %v3508_v8 }
 0x5ba   : > { %14880 = vmatprep.subr.bf16.mxu0 %v19534_v38  ;;  %15536 = vmatprep.subr.bf16.mxu1 %v19536_v40  ;;  %v3487_v38 = vld [vmem:[%s21083_s17 + $0x3540] sm:$0xff]  ;;  %v3516_v24 = vld [vmem:[%s21083_s17 + $0x3628] sm:$0xff] }
 0x5bb   : > { %v3491_v40 = vld [vmem:[%s21083_s17 + $0x3560] sm:$0xff] }
 0x5bc   : > { %14872 = vmatmul.mubr.bf16.vlgmr.msra.gmra.mrb[0].mxu0 %v22326_v43  ;;  %15528 = vmatmul.mubr.bf16.vlgmr.msra.gmra.mrb[0].mxu1 %v22326_v43  ;;  %v19573_v47 = vcombine.low %v3487_v38, %v3491_v40 }
 0x5bd   : > { %14881 = vmatpush1.bf16.msra.mxu0 %v19533_v37  ;;  %15537 = vmatpush1.bf16.msra.mxu1 %v19535_v49  ;;  %v19574_v37 = vcombine.high %v3487_v38, %v3491_v40  ;;  %v19576_v49 = vcombine.high %v3488_v41, %v3492_v44  ;;  %v3520_v38 = vld [vmem:[%s21083_s17 + $0x3648] sm:$0xff]  ;;  %v19599_v44 = vcombine.low %v3512_v23, %v3516_v24 }
 0x5be   : > { %14882 = vmatprep.subr.bf16.mxu0 %v19542_v27  ;;  %15538 = vmatprep.subr.bf16.mxu1 %v19544_v10  ;;  %v3495_v27 = vld [vmem:[%s21083_s17 + $0x3580] sm:$0xff]  ;;  %v3524_v40 = vld [vmem:[%s21083_s17 + $0x3668] sm:$0xff] }
 0x5bf   : > { %14912 = vmatprep.mubr.bf16.mxu0 %v22334_v22  ;;  %15568 = vmatprep.mubr.bf16.mxu1 %v22334_v22  ;;  %v3499_v10 = vld [vmem:[%s21083_s17 + $0x35a0] sm:$0xff] }
 0x5c0   : > { %v19581_v52 = vcombine.low %v3495_v27, %v3499_v10 }
 0x5c1   : > { %14883 = vmatpush1.bf16.msra.mxu0 %v19541_v62  ;;  %15539 = vmatpush1.bf16.msra.mxu1 %v19543_v3  ;;  %v19582_v62 = vcombine.high %v3495_v27, %v3499_v10  ;;  %v19584_v3 = vcombine.high %v3496_v55, %v3500_v56  ;;  %v3528_v27 = vld [vmem:[%s21083_s17 + $0x3688] sm:$0xff]  ;;  %v19607_v56 = vcombine.low %v3520_v38, %v3524_v40 }
 0x5c2   : > { %14884 = vmatprep.subr.bf16.mxu0 %v19550_v4  ;;  %15540 = vmatprep.subr.bf16.mxu1 %v19552_v5  ;;  %v3503_v4 = vld [vmem:[%s21083_s17 + $0x35c0] sm:$0xff]  ;;  %v3532_v10 = vld [vmem:[%s21083_s17 + $0x36a8] sm:$0xff] }
 0x5c3   : > { %v3507_v5 = vld [vmem:[%s21083_s17 + $0x35e0] sm:$0xff] }
 0x5c4   : > { %v19589_v21 = vcombine.low %v3503_v4, %v3507_v5 }
 0x5c5   : > { %14885 = vmatpush1.bf16.msra.mxu0 %v19549_v61  ;;  %15541 = vmatpush1.bf16.msra.mxu1 %v19551_v11  ;;  %v19590_v61 = vcombine.high %v3503_v4, %v3507_v5  ;;  %v19592_v11 = vcombine.high %v3504_v6, %v3508_v8  ;;  %v3536_v4 = vld [vmem:[%s21083_s17 + $0x36c8] sm:$0xff]  ;;  %v19615_v8 = vcombine.low %v3528_v27, %v3532_v10 }
 0x5c6   : > { %14886 = vmatprep.subr.bf16.mxu0 %v19558_v14  ;;  %15542 = vmatprep.subr.bf16.mxu1 %v19560_v15  ;;  %v3511_v14 = vld [vmem:[%s21083_s17 + $0x3600] sm:$0xff]  ;;  %v3540_v5 = vld [vmem:[%s21083_s17 + $0x36e8] sm:$0xff] }
 0x5c7   : > { %v3515_v15 = vld [vmem:[%s21083_s17 + $0x3620] sm:$0xff] }
 0x5c8   : > { %v19597_v41 = vcombine.low %v3511_v14, %v3515_v15 }
 0x5c9   : > { %14887 = vmatpush1.bf16.msra.mxu0 %v19557_v29  ;;  %15543 = vmatpush1.bf16.msra.mxu1 %v19559_v0  ;;  %v19598_v29 = vcombine.high %v3511_v14, %v3515_v15  ;;  %v19600_v0 = vcombine.high %v3512_v23, %v3516_v24  ;;  %v3544_v14 = vld [vmem:[%s21083_s17 + $0x3708] sm:$0xff]  ;;  %v19623_v24 = vcombine.low %v3536_v4, %v3540_v5 }
 0x5ca   : > { %14888 = vmatprep.subr.bf16.mxu0 %v19566_v54  ;;  %15544 = vmatprep.subr.bf16.mxu1 %v19568_v51  ;;  %v3519_v54 = vld [vmem:[%s21083_s17 + $0x3640] sm:$0xff]  ;;  %v3548_v15 = vld [vmem:[%s21083_s17 + $0x3728] sm:$0xff] }
 0x5cb   : > { %v3523_v51 = vld [vmem:[%s21083_s17 + $0x3660] sm:$0xff] }
 0x5cc   : > { %v19605_v55 = vcombine.low %v3519_v54, %v3523_v51 }
 0x5cd   : > { %14889 = vmatpush1.bf16.msra.mxu0 %v19565_v35  ;;  %15545 = vmatpush1.bf16.msra.mxu1 %v19567_v46  ;;  %v19606_v35 = vcombine.high %v3519_v54, %v3523_v51  ;;  %v19608_v46 = vcombine.high %v3520_v38, %v3524_v40  ;;  %v3552_v54 = vld [vmem:[%s21083_s17 + $0x3748] sm:$0xff]  ;;  %v19631_v40 = vcombine.low %v3544_v14, %v3548_v15 }
 0x5ce   : > { %14890 = vmatprep.subr.bf16.mxu0 %v19574_v37  ;;  %15546 = vmatprep.subr.bf16.mxu1 %v19576_v49  ;;  %v3527_v37 = vld [vmem:[%s21083_s17 + $0x3680] sm:$0xff]  ;;  %v3556_v51 = vld [vmem:[%s21083_s17 + $0x3768] sm:$0xff] }
 0x5cf   : > { %v3531_v49 = vld [vmem:[%s21083_s17 + $0x36a0] sm:$0xff] }
 0x5d0   : > { %v19613_v6 = vcombine.low %v3527_v37, %v3531_v49 }
 0x5d1   : > { %14891 = vmatpush1.bf16.msra.mxu0 %v19573_v47  ;;  %15547 = vmatpush1.bf16.msra.mxu1 %v19575_v60  ;;  %v19614_v47 = vcombine.high %v3527_v37, %v3531_v49  ;;  %v19616_v60 = vcombine.high %v3528_v27, %v3532_v10  ;;  %v3560_v37 = vld [vmem:[%s21083_s17 + $0x3788] sm:$0xff]  ;;  %v19639_v10 = vcombine.low %v3552_v54, %v3556_v51 }
 0x5d2   : > { %14892 = vmatprep.subr.bf16.mxu0 %v19582_v62  ;;  %15548 = vmatprep.subr.bf16.mxu1 %v19584_v3  ;;  %v3535_v62 = vld [vmem:[%s21083_s17 + $0x36c0] sm:$0xff]  ;;  %v3564_v49 = vld [vmem:[%s21083_s17 + $0x37a8] sm:$0xff] }
 0x5d3   : > { %v3539_v3 = vld [vmem:[%s21083_s17 + $0x36e0] sm:$0xff] }
 0x5d4   : > { %v19621_v23 = vcombine.low %v3535_v62, %v3539_v3 }
 0x5d5   : > { %14893 = vmatpush1.bf16.msra.mxu0 %v19581_v52  ;;  %15549 = vmatpush1.bf16.msra.mxu1 %v19583_v9  ;;  %v19622_v52 = vcombine.high %v3535_v62, %v3539_v3  ;;  %v19624_v9 = vcombine.high %v3536_v4, %v3540_v5  ;;  %v4026_v62 = vcombine.high %v22235_v39, %v22235_v39  ;;  %v3568_v3 = vld [vmem:[%s21083_s17 + $0x37c8] sm:$0xff] }
 0x5d6   : > { %14894 = vmatprep.subr.bf16.mxu0 %v19590_v61  ;;  %15550 = vmatprep.subr.bf16.mxu1 %v19592_v11  ;;  %v3543_v61 = vld [vmem:[%s21083_s17 + $0x3700] sm:$0xff]  ;;  %v3572_v4 = vld [vmem:[%s21083_s17 + $0x37e8] sm:$0xff] }
 0x5d7   : > { %v3547_v11 = vld [vmem:[%s21083_s17 + $0x3720] sm:$0xff]  ;;  %v3576_v39 = vld [vmem:[%s21083_s17 + $0x3808] sm:$0xff] }
 0x5d8   : > { %v19629_v38 = vcombine.low %v3543_v61, %v3547_v11 }
 0x5d9   : > { %14895 = vmatpush1.bf16.msra.mxu0 %v19589_v21  ;;  %15551 = vmatpush1.bf16.msra.mxu1 %v19591_v32  ;;  %v19630_v21 = vcombine.high %v3543_v61, %v3547_v11  ;;  %v19632_v32 = vcombine.high %v3544_v14, %v3548_v15  ;;  %v3579_v61 = vld [vmem:[%s21083_s17 + $0x3820] sm:$0xff]  ;;  %v22399_v11 = vrot.slane %v4026_v62, %v21314_v58  ;;  %v3580_v14 = vld [vmem:[%s21083_s17 + $0x3828] sm:$0xff] }
 0x5da   : > { %14896 = vmatprep.subr.bf16.mxu0 %v19598_v29  ;;  %15552 = vmatprep.subr.bf16.mxu1 %v19600_v0  ;;  %v3551_v29 = vld [vmem:[%s21083_s17 + $0x3740] sm:$0xff] }
 0x5db   : > { %v3555_v0 = vld [vmem:[%s21083_s17 + $0x3760] sm:$0xff] }
 0x5dc   : > { %v19637_v27 = vcombine.low %v3551_v29, %v3555_v0  ;;  %v3599_v62 = vld [vmem:[%s21083_s17 + $0x38c0] sm:$0xff] }
 0x5dd   : > { %14897 = vmatpush1.bf16.msra.mxu0 %v19597_v41  ;;  %15553 = vmatpush1.bf16.msra.mxu1 %v19599_v44  ;;  %v19638_v41 = vcombine.high %v3551_v29, %v3555_v0  ;;  %v19640_v44 = vcombine.high %v3552_v54, %v3556_v51  ;;  %v3587_v29 = vld [vmem:[%s21083_s17 + $0x3860] sm:$0xff]  ;;  %v4042_v0 = vcombine.high %v22399_v11, %v22399_v11  ;;  %v3584_v51 = vld [vmem:[%s21083_s17 + $0x3848] sm:$0xff] }
 0x5de   : > { %14898 = vmatprep.subr.bf16.mxu0 %v19606_v35  ;;  %15554 = vmatprep.subr.bf16.mxu1 %v19608_v46  ;;  %v3559_v35 = vld [vmem:[%s21083_s17 + $0x3780] sm:$0xff]  ;;  %v22409_v54 = vcombine.high %v22326_v43, %v22326_v43 }
 0x5df   : > { %v3563_v46 = vld [vmem:[%s21083_s17 + $0x37a0] sm:$0xff] }
 0x5e0   : > { %v19645_v5 = vcombine.low %v3559_v35, %v3563_v46 }
 0x5e1   : > { %14899 = vmatpush1.bf16.msra.mxu0 %v19605_v55  ;;  %15555 = vmatpush1.bf16.msra.mxu1 %v19607_v56  ;;  %v19646_v55 = vcombine.high %v3559_v35, %v3563_v46  ;;  %v19648_v56 = vcombine.high %v3560_v37, %v3564_v49  ;;  %v3591_v46 = vld [vmem:[%s21083_s17 + $0x3880] sm:$0xff] }
 0x5e2   : > { %14900 = vmatprep.subr.bf16.mxu0 %v19614_v47  ;;  %15556 = vmatprep.subr.bf16.mxu1 %v19616_v60  ;;  %v3567_v47 = vld [vmem:[%s21083_s17 + $0x37c0] sm:$0xff] }
 0x5e3   : > { %v3571_v60 = vld [vmem:[%s21083_s17 + $0x37e0] sm:$0xff] }
 0x5e4   : > { %v19653_v15 = vcombine.low %v3567_v47, %v3571_v60 }
 0x5e5   : > { %14901 = vmatpush1.bf16.msra.mxu0 %v19613_v6  ;;  %15557 = vmatpush1.bf16.msra.mxu1 %v19615_v8  ;;  %v19647_v6 = vcombine.low %v3560_v37, %v3564_v49  ;;  %v19654_v8 = vcombine.high %v3567_v47, %v3571_v60  ;;  %v3595_v37 = vld [vmem:[%s21083_s17 + $0x38a0] sm:$0xff]  ;;  %v22416_v49 = vrot.slane %v4042_v0, %v21314_v58 }
 0x5e6   : > { %14902 = vmatprep.subr.bf16.mxu0 %v19622_v52  ;;  %15558 = vmatprep.subr.bf16.mxu1 %v19624_v9  ;;  %v19656_v52 = vcombine.high %v3568_v3, %v3572_v4  ;;  %v3575_v9 = vld [vmem:[%s21083_s17 + $0x3800] sm:$0xff]  ;;  %v19678_v47 = vcombine.high %v3591_v46, %v3595_v37 }
 0x5e7   : > { %v3619_v0 = vld [vmem:[%s21083_s17 + $0x3960] sm:$0xff] }
 0x5e9   : > { %14903 = vmatpush1.bf16.msra.mxu0 %v19621_v23  ;;  %15559 = vmatpush1.bf16.msra.mxu1 %v19623_v24  ;;  %v19655_v23 = vcombine.low %v3568_v3, %v3572_v4  ;;  %v19662_v24 = vcombine.high %v3575_v9, %v3579_v61  ;;  %v3603_v3 = vld [vmem:[%s21083_s17 + $0x38e0] sm:$0xff]  ;;  %v3600_v4 = vld [vmem:[%s21083_s17 + $0x38c8] sm:$0xff] }
 0x5ea   : > { %14904 = vmatprep.subr.bf16.mxu0 %v19630_v21  ;;  %15560 = vmatprep.subr.bf16.mxu1 %v19632_v32  ;;  %v19664_v21 = vcombine.high %v3576_v39, %v3580_v14  ;;  %v3583_v32 = vld [vmem:[%s21083_s17 + $0x3840] sm:$0xff] }
 0x5ed   : > { %14905 = vmatpush1.bf16.msra.mxu0 %v19629_v38  ;;  %15561 = vmatpush1.bf16.msra.mxu1 %v19631_v40  ;;  %v3588_v38 = vld [vmem:[%s21083_s17 + $0x3868] sm:$0xff]  ;;  %v19661_v40 = vcombine.low %v3575_v9, %v3579_v61  ;;  %v3607_v61 = vld [vmem:[%s21083_s17 + $0x3900] sm:$0xff] }
 0x5ee   : > { %14906 = vmatprep.subr.bf16.mxu0 %v19638_v41  ;;  %15562 = vmatprep.subr.bf16.mxu1 %v19640_v44  ;;  %v19663_v41 = vcombine.low %v3576_v39, %v3580_v14  ;;  %v19670_v44 = vcombine.high %v3583_v32, %v3587_v29  ;;  %v19672_v35 = vcombine.high %v3584_v51, %v3588_v38  ;;  %v3611_v39 = vld [vmem:[%s21083_s17 + $0x3920] sm:$0xff]  ;;  %v3608_v14 = vld [vmem:[%s21083_s17 + $0x3908] sm:$0xff] }
 0x5f1   : > { %14907 = vmatpush1.bf16.msra.mxu0 %v19637_v27  ;;  %15563 = vmatpush1.bf16.msra.mxu1 %v19639_v10  ;;  %v3592_v27 = vld [vmem:[%s21083_s17 + $0x3888] sm:$0xff] }
 0x5f2   : > { %14908 = vmatprep.subr.bf16.mxu0 %v19646_v55  ;;  %15564 = vmatprep.subr.bf16.mxu1 %v19648_v56  ;;  %v3596_v10 = vld [vmem:[%s21083_s17 + $0x38a8] sm:$0xff]  ;;  %v19669_v55 = vcombine.low %v3583_v32, %v3587_v29  ;;  %v19671_v56 = vcombine.low %v3584_v51, %v3588_v38  ;;  %v3615_v29 = vld [vmem:[%s21083_s17 + $0x3940] sm:$0xff] }
 0x5f3   : > { %v19680_v60 = vcombine.high %v3592_v27, %v3596_v10  ;;  %v3616_v51 = vld [vmem:[%s21083_s17 + $0x3948] sm:$0xff] }
 0x5f4   : > { %v3620_v38 = vld [vmem:[%s21083_s17 + $0x3968] sm:$0xff] }
 0x5f5   : > { %14909 = vmatpush1.bf16.msra.mxu0 %v19645_v5  ;;  %15565 = vmatpush1.bf16.msra.mxu1 %v19647_v6  ;;  %v3604_v5 = vld [vmem:[%s21083_s17 + $0x38e8] sm:$0xff]  ;;  %v19677_v6 = vcombine.low %v3591_v46, %v3595_v37  ;;  %v3623_v46 = vld [vmem:[%s21083_s17 + $0x3980] sm:$0xff] }
 0x5f6   : > { %14910 = vmatprep.subr.bf16.mxu0 %v19654_v8  ;;  %15566 = vmatprep.subr.bf16.mxu1 %v19656_v52  ;;  %v19679_v8 = vcombine.low %v3592_v27, %v3596_v10  ;;  %v19686_v52 = vcombine.high %v3599_v62, %v3603_v3  ;;  %v19688_v9 = vcombine.high %v3600_v4, %v3604_v5  ;;  %v3627_v37 = vld [vmem:[%s21083_s17 + $0x39a0] sm:$0xff]  ;;  %v3624_v27 = vld [vmem:[%s21083_s17 + $0x3988] sm:$0xff] }
 0x5f7   : > { %v3628_v10 = vld [vmem:[%s21083_s17 + $0x39a8] sm:$0xff] }
 0x5f9   : > { %14911 = vmatpush1.bf16.msra.mxu0 %v19653_v15  ;;  %15567 = vmatpush1.bf16.msra.mxu1 %v19655_v23  ;;  %v3612_v15 = vld [vmem:[%s21083_s17 + $0x3928] sm:$0xff]  ;;  %v19685_v23 = vcombine.low %v3599_v62, %v3603_v3  ;;  %v3631_v62 = vld [vmem:[%s21083_s17 + $0x39c0] sm:$0xff] }
 0x5fa   : > { %14921 = vmatprep.subr.bf16.mxu0 %v19662_v24  ;;  %15577 = vmatprep.subr.bf16.mxu1 %v19664_v21  ;;  %v19687_v24 = vcombine.low %v3600_v4, %v3604_v5  ;;  %v19694_v21 = vcombine.high %v3607_v61, %v3611_v39  ;;  %v19696_v32 = vcombine.high %v3608_v14, %v3612_v15  ;;  %v3635_v3 = vld [vmem:[%s21083_s17 + $0x39e0] sm:$0xff]  ;;  %v3632_v4 = vld [vmem:[%s21083_s17 + $0x39c8] sm:$0xff] }
 0x5fb   : > { %v3636_v5 = vld [vmem:[%s21083_s17 + $0x39e8] sm:$0xff] }
 0x5fc   : > { %14913 = vmatmul.mubr.bf16.vlgmr.msra.gmra.mrb[0].mxu0 %v22409_v54  ;;  %15569 = vmatmul.mubr.bf16.vlgmr.msra.gmra.mrb[0].mxu1 %v22409_v54 }
 0x5fd   : > { %14922 = vmatpush1.bf16.msra.mxu0 %v19661_v40  ;;  %15578 = vmatpush1.bf16.msra.mxu1 %v19663_v41  ;;  %v19693_v40 = vcombine.low %v3607_v61, %v3611_v39  ;;  %v19695_v41 = vcombine.low %v3608_v14, %v3612_v15  ;;  %v3639_v61 = vld [vmem:[%s21083_s17 + $0x3a00] sm:$0xff]  ;;  %v3640_v14 = vld [vmem:[%s21083_s17 + $0x3a08] sm:$0xff] }
 0x5fe   : > { %14923 = vmatprep.subr.bf16.mxu0 %v19670_v44  ;;  %15579 = vmatprep.subr.bf16.mxu1 %v19672_v35  ;;  %v19702_v44 = vcombine.high %v3615_v29, %v3619_v0  ;;  %v19704_v35 = vcombine.high %v3616_v51, %v3620_v38  ;;  %v3643_v39 = vld [vmem:[%s21083_s17 + $0x3a20] sm:$0xff]  ;;  %v3644_v15 = vld [vmem:[%s21083_s17 + $0x3a28] sm:$0xff] }
 0x5ff   : > { %14953 = vmatprep.mubr.bf16.mxu0 %v22416_v49  ;;  %15609 = vmatprep.mubr.bf16.mxu1 %v22416_v49 }
 0x601   : > { %14924 = vmatpush1.bf16.msra.mxu0 %v19669_v55  ;;  %15580 = vmatpush1.bf16.msra.mxu1 %v19671_v56  ;;  %v19701_v55 = vcombine.low %v3615_v29, %v3619_v0  ;;  %v19703_v56 = vcombine.low %v3616_v51, %v3620_v38  ;;  %v3647_v29 = vld [vmem:[%s21083_s17 + $0x3a40] sm:$0xff]  ;;  %v3648_v51 = vld [vmem:[%s21083_s17 + $0x3a48] sm:$0xff] }
 0x602   : > { %14925 = vmatprep.subr.bf16.mxu0 %v19678_v47  ;;  %15581 = vmatprep.subr.bf16.mxu1 %v19680_v60  ;;  %v19710_v47 = vcombine.high %v3623_v46, %v3627_v37  ;;  %v19712_v60 = vcombine.high %v3624_v27, %v3628_v10  ;;  %v3651_v0 = vld [vmem:[%s21083_s17 + $0x3a60] sm:$0xff]  ;;  %v3652_v38 = vld [vmem:[%s21083_s17 + $0x3a68] sm:$0xff] }
 0x605   : > { %14926 = vmatpush1.bf16.msra.mxu0 %v19677_v6  ;;  %15582 = vmatpush1.bf16.msra.mxu1 %v19679_v8  ;;  %v19709_v6 = vcombine.low %v3623_v46, %v3627_v37  ;;  %v19711_v8 = vcombine.low %v3624_v27, %v3628_v10  ;;  %v3655_v46 = vld [vmem:[%s21083_s17 + $0x3a80] sm:$0xff]  ;;  %v3656_v27 = vld [vmem:[%s21083_s17 + $0x3a88] sm:$0xff] }
 0x606   : > { %14927 = vmatprep.subr.bf16.mxu0 %v19686_v52  ;;  %15583 = vmatprep.subr.bf16.mxu1 %v19688_v9  ;;  %v19718_v52 = vcombine.high %v3631_v62, %v3635_v3  ;;  %v19720_v9 = vcombine.high %v3632_v4, %v3636_v5  ;;  %v3659_v37 = vld [vmem:[%s21083_s17 + $0x3aa0] sm:$0xff]  ;;  %v3660_v10 = vld [vmem:[%s21083_s17 + $0x3aa8] sm:$0xff] }
 0x609   : > { %14928 = vmatpush1.bf16.msra.mxu0 %v19685_v23  ;;  %15584 = vmatpush1.bf16.msra.mxu1 %v19687_v24  ;;  %v19717_v23 = vcombine.low %v3631_v62, %v3635_v3  ;;  %v19719_v24 = vcombine.low %v3632_v4, %v3636_v5  ;;  %v3663_v62 = vld [vmem:[%s21083_s17 + $0x3ac0] sm:$0xff]  ;;  %v3664_v4 = vld [vmem:[%s21083_s17 + $0x3ac8] sm:$0xff] }
 0x60a   : > { %14929 = vmatprep.subr.bf16.mxu0 %v19694_v21  ;;  %15585 = vmatprep.subr.bf16.mxu1 %v19696_v32  ;;  %v19726_v21 = vcombine.high %v3639_v61, %v3643_v39  ;;  %v19728_v32 = vcombine.high %v3640_v14, %v3644_v15  ;;  %v3667_v3 = vld [vmem:[%s21083_s17 + $0x3ae0] sm:$0xff]  ;;  %v3668_v5 = vld [vmem:[%s21083_s17 + $0x3ae8] sm:$0xff] }
 0x60d   : > { %14930 = vmatpush1.bf16.msra.mxu0 %v19693_v40  ;;  %15586 = vmatpush1.bf16.msra.mxu1 %v19695_v41  ;;  %v19725_v40 = vcombine.low %v3639_v61, %v3643_v39  ;;  %v19727_v41 = vcombine.low %v3640_v14, %v3644_v15  ;;  %v3671_v61 = vld [vmem:[%s21083_s17 + $0x3b00] sm:$0xff]  ;;  %v3672_v14 = vld [vmem:[%s21083_s17 + $0x3b08] sm:$0xff] }
 0x60e   : > { %14931 = vmatprep.subr.bf16.mxu0 %v19702_v44  ;;  %15587 = vmatprep.subr.bf16.mxu1 %v19704_v35  ;;  %v19734_v44 = vcombine.high %v3647_v29, %v3651_v0  ;;  %v19736_v35 = vcombine.high %v3648_v51, %v3652_v38  ;;  %v3675_v39 = vld [vmem:[%s21083_s17 + $0x3b20] sm:$0xff]  ;;  %v3676_v15 = vld [vmem:[%s21083_s17 + $0x3b28] sm:$0xff] }
 0x611   : > { %14932 = vmatpush1.bf16.msra.mxu0 %v19701_v55  ;;  %15588 = vmatpush1.bf16.msra.mxu1 %v19703_v56  ;;  %v19733_v55 = vcombine.low %v3647_v29, %v3651_v0  ;;  %v19735_v56 = vcombine.low %v3648_v51, %v3652_v38  ;;  %v3679_v29 = vld [vmem:[%s21083_s17 + $0x3b40] sm:$0xff]  ;;  %v3680_v51 = vld [vmem:[%s21083_s17 + $0x3b48] sm:$0xff] }
 0x612   : > { %14933 = vmatprep.subr.bf16.mxu0 %v19710_v47  ;;  %15589 = vmatprep.subr.bf16.mxu1 %v19712_v60  ;;  %v19742_v47 = vcombine.high %v3655_v46, %v3659_v37  ;;  %v19744_v60 = vcombine.high %v3656_v27, %v3660_v10  ;;  %v3683_v0 = vld [vmem:[%s21083_s17 + $0x3b60] sm:$0xff]  ;;  %v3684_v38 = vld [vmem:[%s21083_s17 + $0x3b68] sm:$0xff] }
 0x615   : > { %14934 = vmatpush1.bf16.msra.mxu0 %v19709_v6  ;;  %15590 = vmatpush1.bf16.msra.mxu1 %v19711_v8  ;;  %v19741_v6 = vcombine.low %v3655_v46, %v3659_v37  ;;  %v19743_v8 = vcombine.low %v3656_v27, %v3660_v10  ;;  %v3687_v46 = vld [vmem:[%s21083_s17 + $0x3b80] sm:$0xff]  ;;  %v3688_v27 = vld [vmem:[%s21083_s17 + $0x3b88] sm:$0xff] }
 0x616   : > { %14935 = vmatprep.subr.bf16.mxu0 %v19718_v52  ;;  %15591 = vmatprep.subr.bf16.mxu1 %v19720_v9  ;;  %v19750_v52 = vcombine.high %v3663_v62, %v3667_v3  ;;  %v19752_v9 = vcombine.high %v3664_v4, %v3668_v5  ;;  %v3691_v37 = vld [vmem:[%s21083_s17 + $0x3ba0] sm:$0xff]  ;;  %v3692_v10 = vld [vmem:[%s21083_s17 + $0x3ba8] sm:$0xff] }
 0x619   : > { %14936 = vmatpush1.bf16.msra.mxu0 %v19717_v23  ;;  %15592 = vmatpush1.bf16.msra.mxu1 %v19719_v24  ;;  %v19749_v23 = vcombine.low %v3663_v62, %v3667_v3  ;;  %v19751_v24 = vcombine.low %v3664_v4, %v3668_v5  ;;  %v3695_v62 = vld [vmem:[%s21083_s17 + $0x3bc0] sm:$0xff]  ;;  %v3696_v4 = vld [vmem:[%s21083_s17 + $0x3bc8] sm:$0xff] }
 0x61a   : > { %14937 = vmatprep.subr.bf16.mxu0 %v19726_v21  ;;  %15593 = vmatprep.subr.bf16.mxu1 %v19728_v32  ;;  %v19758_v21 = vcombine.high %v3671_v61, %v3675_v39  ;;  %v19760_v32 = vcombine.high %v3672_v14, %v3676_v15  ;;  %v3699_v3 = vld [vmem:[%s21083_s17 + $0x3be0] sm:$0xff]  ;;  %v3700_v5 = vld [vmem:[%s21083_s17 + $0x3be8] sm:$0xff] }
 0x61d   : > { %14938 = vmatpush1.bf16.msra.mxu0 %v19725_v40  ;;  %15594 = vmatpush1.bf16.msra.mxu1 %v19727_v41  ;;  %v19757_v40 = vcombine.low %v3671_v61, %v3675_v39  ;;  %v19759_v41 = vcombine.low %v3672_v14, %v3676_v15  ;;  %v3703_v61 = vld [vmem:[%s21083_s17 + $0x3c00] sm:$0xff]  ;;  %v3704_v14 = vld [vmem:[%s21083_s17 + $0x3c08] sm:$0xff] }
 0x61e   : > { %14939 = vmatprep.subr.bf16.mxu0 %v19734_v44  ;;  %15595 = vmatprep.subr.bf16.mxu1 %v19736_v35  ;;  %v19766_v44 = vcombine.high %v3679_v29, %v3683_v0  ;;  %v19768_v35 = vcombine.high %v3680_v51, %v3684_v38  ;;  %v3707_v39 = vld [vmem:[%s21083_s17 + $0x3c20] sm:$0xff]  ;;  %v3708_v15 = vld [vmem:[%s21083_s17 + $0x3c28] sm:$0xff] }
 0x621   : > { %14940 = vmatpush1.bf16.msra.mxu0 %v19733_v55  ;;  %15596 = vmatpush1.bf16.msra.mxu1 %v19735_v56  ;;  %v19765_v55 = vcombine.low %v3679_v29, %v3683_v0  ;;  %v19767_v56 = vcombine.low %v3680_v51, %v3684_v38  ;;  %v3711_v29 = vld [vmem:[%s21083_s17 + $0x3c40] sm:$0xff]  ;;  %v22484_v51 = vrot.slane %v22399_v11, %v21314_v58  ;;  %v3712_v38 = vld [vmem:[%s21083_s17 + $0x3c48] sm:$0xff] }
 0x622   : > { %14941 = vmatprep.subr.bf16.mxu0 %v19742_v47  ;;  %15597 = vmatprep.subr.bf16.mxu1 %v19744_v60  ;;  %v19774_v47 = vcombine.high %v3687_v46, %v3691_v37  ;;  %v19776_v60 = vcombine.high %v3688_v27, %v3692_v10  ;;  %v3715_v0 = vld [vmem:[%s21083_s17 + $0x3c60] sm:$0xff]  ;;  %v3720_v58 = vld [vmem:[%s21083_s17 + $0x3c88] sm:$0xff] }
 0x623   : > { %v3724_v11 = vld [vmem:[%s21083_s17 + $0x3ca8] sm:$0xff] }
 0x625   : > { %14942 = vmatpush1.bf16.msra.mxu0 %v19741_v6  ;;  %15598 = vmatpush1.bf16.msra.mxu1 %v19743_v8  ;;  %v19773_v6 = vcombine.low %v3687_v46, %v3691_v37  ;;  %v19775_v8 = vcombine.low %v3688_v27, %v3692_v10  ;;  %v3719_v37 = vld [vmem:[%s21083_s17 + $0x3c80] sm:$0xff]  ;;  %v22492_v10 = vcombine.high %v22416_v49, %v22416_v49 }
 0x626   : > { %14943 = vmatprep.subr.bf16.mxu0 %v19750_v52  ;;  %15599 = vmatprep.subr.bf16.mxu1 %v19752_v9  ;;  %v19782_v52 = vcombine.high %v3695_v62, %v3699_v3  ;;  %v19784_v9 = vcombine.high %v3696_v4, %v3700_v5  ;;  %v3723_v27 = vld [vmem:[%s21083_s17 + $0x3ca0] sm:$0xff] }
 0x629   : > { %14944 = vmatpush1.bf16.msra.mxu0 %v19749_v23  ;;  %15600 = vmatpush1.bf16.msra.mxu1 %v19751_v24  ;;  %v19781_v23 = vcombine.low %v3695_v62, %v3699_v3  ;;  %v19783_v24 = vcombine.low %v3696_v4, %v3700_v5  ;;  %v3727_v62 = vld [vmem:[%s21083_s17 + $0x3cc0] sm:$0xff]  ;;  %v3728_v4 = vld [vmem:[%s21083_s17 + $0x3cc8] sm:$0xff] }
 0x62a   : > { %14945 = vmatprep.subr.bf16.mxu0 %v19758_v21  ;;  %15601 = vmatprep.subr.bf16.mxu1 %v19760_v32  ;;  %v19790_v21 = vcombine.high %v3703_v61, %v3707_v39  ;;  %v19792_v32 = vcombine.high %v3704_v14, %v3708_v15  ;;  %v3731_v3 = vld [vmem:[%s21083_s17 + $0x3ce0] sm:$0xff]  ;;  %v3732_v5 = vld [vmem:[%s21083_s17 + $0x3ce8] sm:$0xff] }
 0x62d   : > { %14946 = vmatpush1.bf16.msra.mxu0 %v19757_v40  ;;  %15602 = vmatpush1.bf16.msra.mxu1 %v19759_v41  ;;  %v3716_v40 = vld [vmem:[%s21083_s17 + $0x3c68] sm:$0xff]  ;;  %v19789_v41 = vcombine.low %v3703_v61, %v3707_v39  ;;  %v3735_v61 = vld [vmem:[%s21083_s17 + $0x3d00] sm:$0xff] }
 0x62e   : > { %14947 = vmatprep.subr.bf16.mxu0 %v19766_v44  ;;  %15603 = vmatprep.subr.bf16.mxu1 %v19768_v35  ;;  %v19791_v44 = vcombine.low %v3704_v14, %v3708_v15  ;;  %v19798_v35 = vcombine.high %v3711_v29, %v3715_v0  ;;  %v19800_v46 = vcombine.high %v3712_v38, %v3716_v40  ;;  %v3739_v39 = vld [vmem:[%s21083_s17 + $0x3d20] sm:$0xff]  ;;  %v3736_v14 = vld [vmem:[%s21083_s17 + $0x3d08] sm:$0xff] }
 0x62f   : > { %v3740_v15 = vld [vmem:[%s21083_s17 + $0x3d28] sm:$0xff] }
 0x631   : > { %14948 = vmatpush1.bf16.msra.mxu0 %v19765_v55  ;;  %15604 = vmatpush1.bf16.msra.mxu1 %v19767_v56  ;;  %v19797_v55 = vcombine.low %v3711_v29, %v3715_v0  ;;  %v19799_v56 = vcombine.low %v3712_v38, %v3716_v40  ;;  %v3743_v29 = vld [vmem:[%s21083_s17 + $0x3d40] sm:$0xff]  ;;  %v3744_v38 = vld [vmem:[%s21083_s17 + $0x3d48] sm:$0xff] }
 0x632   : > { %14949 = vmatprep.subr.bf16.mxu0 %v19774_v47  ;;  %15605 = vmatprep.subr.bf16.mxu1 %v19776_v60  ;;  %v19806_v47 = vcombine.high %v3719_v37, %v3723_v27  ;;  %v19808_v60 = vcombine.high %v3720_v58, %v3724_v11  ;;  %v3747_v0 = vld [vmem:[%s21083_s17 + $0x3d60] sm:$0xff]  ;;  %v3748_v40 = vld [vmem:[%s21083_s17 + $0x3d68] sm:$0xff] }
 0x635   : > { %14950 = vmatpush1.bf16.msra.mxu0 %v19773_v6  ;;  %15606 = vmatpush1.bf16.msra.mxu1 %v19775_v8  ;;  %v19805_v6 = vcombine.low %v3719_v37, %v3723_v27  ;;  %v19807_v8 = vcombine.low %v3720_v58, %v3724_v11  ;;  %v3751_v37 = vld [vmem:[%s21083_s17 + $0x3d80] sm:$0xff]  ;;  %v3752_v58 = vld [vmem:[%s21083_s17 + $0x3d88] sm:$0xff] }
 0x636   : > { %14951 = vmatprep.subr.bf16.mxu0 %v19782_v52  ;;  %15607 = vmatprep.subr.bf16.mxu1 %v19784_v9  ;;  %v19814_v52 = vcombine.high %v3727_v62, %v3731_v3  ;;  %v19816_v9 = vcombine.high %v3728_v4, %v3732_v5  ;;  %v3755_v27 = vld [vmem:[%s21083_s17 + $0x3da0] sm:$0xff]  ;;  %v3756_v11 = vld [vmem:[%s21083_s17 + $0x3da8] sm:$0xff] }
 0x639   : > { %14952 = vmatpush1.bf16.msra.mxu0 %v19781_v23  ;;  %15608 = vmatpush1.bf16.msra.mxu1 %v19783_v24  ;;  %v19813_v23 = vcombine.low %v3727_v62, %v3731_v3  ;;  %v19815_v24 = vcombine.low %v3728_v4, %v3732_v5  ;;  %v3759_v62 = vld [vmem:[%s21083_s17 + $0x3dc0] sm:$0xff]  ;;  %v3760_v4 = vld [vmem:[%s21083_s17 + $0x3dc8] sm:$0xff] }
 0x63a   : > { %14962 = vmatprep.subr.bf16.mxu0 %v19790_v21  ;;  %15618 = vmatprep.subr.bf16.mxu1 %v19792_v32  ;;  %v19822_v21 = vcombine.high %v3735_v61, %v3739_v39  ;;  %v19824_v32 = vcombine.high %v3736_v14, %v3740_v15  ;;  %v3763_v3 = vld [vmem:[%s21083_s17 + $0x3de0] sm:$0xff]  ;;  %v3764_v5 = vld [vmem:[%s21083_s17 + $0x3de8] sm:$0xff] }
 0x63c   : > { %14954 = vmatmul.mubr.bf16.vlgmr.msra.gmra.mrb[0].mxu0 %v22484_v51  ;;  %15610 = vmatmul.mubr.bf16.vlgmr.msra.gmra.mrb[0].mxu1 %v22484_v51 }
 0x63d   : > { %14963 = vmatpush1.bf16.msra.mxu0 %v19789_v41  ;;  %15619 = vmatpush1.bf16.msra.mxu1 %v19791_v44  ;;  %v19821_v41 = vcombine.low %v3735_v61, %v3739_v39  ;;  %v19823_v44 = vcombine.low %v3736_v14, %v3740_v15  ;;  %v3767_v61 = vld [vmem:[%s21083_s17 + $0x3e00] sm:$0xff]  ;;  %v3768_v14 = vld [vmem:[%s21083_s17 + $0x3e08] sm:$0xff] }
 0x63e   : > { %14964 = vmatprep.subr.bf16.mxu0 %v19798_v35  ;;  %15620 = vmatprep.subr.bf16.mxu1 %v19800_v46  ;;  %v19830_v35 = vcombine.high %v3743_v29, %v3747_v0  ;;  %v19832_v46 = vcombine.high %v3744_v38, %v3748_v40  ;;  %v3771_v39 = vld [vmem:[%s21083_s17 + $0x3e20] sm:$0xff]  ;;  %v3772_v15 = vld [vmem:[%s21083_s17 + $0x3e28] sm:$0xff] }
 0x63f   : > { %14994 = vmatprep.mubr.bf16.mxu0 %v22492_v10  ;;  %15650 = vmatprep.mubr.bf16.mxu1 %v22492_v10 }
 0x641   : > { %14965 = vmatpush1.bf16.msra.mxu0 %v19797_v55  ;;  %15621 = vmatpush1.bf16.msra.mxu1 %v19799_v56  ;;  %v19829_v55 = vcombine.low %v3743_v29, %v3747_v0  ;;  %v19831_v56 = vcombine.low %v3744_v38, %v3748_v40  ;;  %v3775_v29 = vld [vmem:[%s21083_s17 + $0x3e40] sm:$0xff]  ;;  %v3776_v38 = vld [vmem:[%s21083_s17 + $0x3e48] sm:$0xff] }
 0x642   : > { %14966 = vmatprep.subr.bf16.mxu0 %v19806_v47  ;;  %15622 = vmatprep.subr.bf16.mxu1 %v19808_v60  ;;  %v19838_v47 = vcombine.high %v3751_v37, %v3755_v27  ;;  %v19840_v60 = vcombine.high %v3752_v58, %v3756_v11  ;;  %v3779_v0 = vld [vmem:[%s21083_s17 + $0x3e60] sm:$0xff]  ;;  %v3780_v40 = vld [vmem:[%s21083_s17 + $0x3e68] sm:$0xff] }
 0x645   : > { %14967 = vmatpush1.bf16.msra.mxu0 %v19805_v6  ;;  %15623 = vmatpush1.bf16.msra.mxu1 %v19807_v8  ;;  %v19837_v6 = vcombine.low %v3751_v37, %v3755_v27  ;;  %v19839_v8 = vcombine.low %v3752_v58, %v3756_v11  ;;  %v3783_v37 = vld [vmem:[%s21083_s17 + $0x3e80] sm:$0xff]  ;;  %v3784_v58 = vld [vmem:[%s21083_s17 + $0x3e88] sm:$0xff] }
 0x646   : > { %14968 = vmatprep.subr.bf16.mxu0 %v19814_v52  ;;  %15624 = vmatprep.subr.bf16.mxu1 %v19816_v9  ;;  %v19846_v52 = vcombine.high %v3759_v62, %v3763_v3  ;;  %v19848_v9 = vcombine.high %v3760_v4, %v3764_v5  ;;  %v3787_v27 = vld [vmem:[%s21083_s17 + $0x3ea0] sm:$0xff]  ;;  %v3788_v11 = vld [vmem:[%s21083_s17 + $0x3ea8] sm:$0xff] }
 0x649   : > { %14969 = vmatpush1.bf16.msra.mxu0 %v19813_v23  ;;  %15625 = vmatpush1.bf16.msra.mxu1 %v19815_v24  ;;  %v19845_v23 = vcombine.low %v3759_v62, %v3763_v3  ;;  %v19847_v24 = vcombine.low %v3760_v4, %v3764_v5  ;;  %v3791_v62 = vld [vmem:[%s21083_s17 + $0x3ec0] sm:$0xff]  ;;  %v3792_v4 = vld [vmem:[%s21083_s17 + $0x3ec8] sm:$0xff] }
 0x64a   : > { %14970 = vmatprep.subr.bf16.mxu0 %v19822_v21  ;;  %15626 = vmatprep.subr.bf16.mxu1 %v19824_v32  ;;  %v19854_v21 = vcombine.high %v3767_v61, %v3771_v39  ;;  %v19856_v32 = vcombine.high %v3768_v14, %v3772_v15  ;;  %v3795_v3 = vld [vmem:[%s21083_s17 + $0x3ee0] sm:$0xff]  ;;  %v3796_v5 = vld [vmem:[%s21083_s17 + $0x3ee8] sm:$0xff] }
 0x64d   : > { %14971 = vmatpush1.bf16.msra.mxu0 %v19821_v41  ;;  %15627 = vmatpush1.bf16.msra.mxu1 %v19823_v44  ;;  %v19853_v41 = vcombine.low %v3767_v61, %v3771_v39  ;;  %v19855_v44 = vcombine.low %v3768_v14, %v3772_v15  ;;  %v3799_v61 = vld [vmem:[%s21083_s17 + $0x3f00] sm:$0xff]  ;;  %v3800_v14 = vld [vmem:[%s21083_s17 + $0x3f08] sm:$0xff] }
 0x64e   : > { %14972 = vmatprep.subr.bf16.mxu0 %v19830_v35  ;;  %15628 = vmatprep.subr.bf16.mxu1 %v19832_v46  ;;  %v19862_v35 = vcombine.high %v3775_v29, %v3779_v0  ;;  %v19864_v46 = vcombine.high %v3776_v38, %v3780_v40  ;;  %v3803_v39 = vld [vmem:[%s21083_s17 + $0x3f20] sm:$0xff]  ;;  %v3804_v15 = vld [vmem:[%s21083_s17 + $0x3f28] sm:$0xff] }
 0x651   : > { %14973 = vmatpush1.bf16.msra.mxu0 %v19829_v55  ;;  %15629 = vmatpush1.bf16.msra.mxu1 %v19831_v56  ;;  %v19861_v55 = vcombine.low %v3775_v29, %v3779_v0  ;;  %v19863_v56 = vcombine.low %v3776_v38, %v3780_v40  ;;  %v3807_v29 = vld [vmem:[%s21083_s17 + $0x3f40] sm:$0xff]  ;;  %v3808_v38 = vld [vmem:[%s21083_s17 + $0x3f48] sm:$0xff] }
 0x652   : > { %14974 = vmatprep.subr.bf16.mxu0 %v19838_v47  ;;  %15630 = vmatprep.subr.bf16.mxu1 %v19840_v60  ;;  %v19870_v47 = vcombine.high %v3783_v37, %v3787_v27  ;;  %v19872_v60 = vcombine.high %v3784_v58, %v3788_v11  ;;  %v3811_v0 = vld [vmem:[%s21083_s17 + $0x3f60] sm:$0xff]  ;;  %v3812_v40 = vld [vmem:[%s21083_s17 + $0x3f68] sm:$0xff] }
 0x655   : > { %14975 = vmatpush1.bf16.msra.mxu0 %v19837_v6  ;;  %15631 = vmatpush1.bf16.msra.mxu1 %v19839_v8  ;;  %v19869_v6 = vcombine.low %v3783_v37, %v3787_v27  ;;  %v19871_v8 = vcombine.low %v3784_v58, %v3788_v11  ;;  %v3815_v37 = vld [vmem:[%s21083_s17 + $0x3f80] sm:$0xff]  ;;  %v3816_v58 = vld [vmem:[%s21083_s17 + $0x3f88] sm:$0xff] }
 0x656   : > { %14976 = vmatprep.subr.bf16.mxu0 %v19846_v52  ;;  %15632 = vmatprep.subr.bf16.mxu1 %v19848_v9  ;;  %v19878_v52 = vcombine.high %v3791_v62, %v3795_v3  ;;  %v19880_v9 = vcombine.high %v3792_v4, %v3796_v5  ;;  %v3819_v27 = vld [vmem:[%s21083_s17 + $0x3fa0] sm:$0xff]  ;;  %v3820_v11 = vld [vmem:[%s21083_s17 + $0x3fa8] sm:$0xff] }
 0x659   : > { %14977 = vmatpush1.bf16.msra.mxu0 %v19845_v23  ;;  %15633 = vmatpush1.bf16.msra.mxu1 %v19847_v24  ;;  %v19877_v23 = vcombine.low %v3791_v62, %v3795_v3  ;;  %v19879_v24 = vcombine.low %v3792_v4, %v3796_v5  ;;  %v3823_v62 = vld [vmem:[%s21083_s17 + $0x3fc0] sm:$0xff]  ;;  %v3824_v4 = vld [vmem:[%s21083_s17 + $0x3fc8] sm:$0xff] }
 0x65a   : > { %14978 = vmatprep.subr.bf16.mxu0 %v19854_v21  ;;  %15634 = vmatprep.subr.bf16.mxu1 %v19856_v32  ;;  %v19886_v21 = vcombine.high %v3799_v61, %v3803_v39  ;;  %v19888_v32 = vcombine.high %v3800_v14, %v3804_v15  ;;  %v3827_v3 = vld [vmem:[%s21083_s17 + $0x3fe0] sm:$0xff]  ;;  %v3828_v5 = vld [vmem:[%s21083_s17 + $0x3fe8] sm:$0xff] }
 0x65d   : > { %14979 = vmatpush1.bf16.msra.mxu0 %v19853_v41  ;;  %15635 = vmatpush1.bf16.msra.mxu1 %v19855_v44  ;;  %v19885_v41 = vcombine.low %v3799_v61, %v3803_v39  ;;  %v19887_v44 = vcombine.low %v3800_v14, %v3804_v15  ;;  %v1785_v61 = vld [vmem:[%s21083_s17 + $0x10] sm:$0xff]  ;;  %v1786_v14 = vld [vmem:[%s21083_s17 + $0x18] sm:$0xff] }
 0x65e   : > { %14980 = vmatprep.subr.bf16.mxu0 %v19862_v35  ;;  %15636 = vmatprep.subr.bf16.mxu1 %v19864_v46  ;;  %v19894_v35 = vcombine.high %v3807_v29, %v3811_v0  ;;  %v19896_v46 = vcombine.high %v3808_v38, %v3812_v40  ;;  %v1789_v39 = vld [vmem:[%s21083_s17 + $0x30] sm:$0xff]  ;;  %v1790_v15 = vld [vmem:[%s21083_s17 + $0x38] sm:$0xff] }
 0x661   : > { %14981 = vmatpush1.bf16.msra.mxu0 %v19861_v55  ;;  %15637 = vmatpush1.bf16.msra.mxu1 %v19863_v56  ;;  %v19893_v55 = vcombine.low %v3807_v29, %v3811_v0  ;;  %v19895_v56 = vcombine.low %v3808_v38, %v3812_v40  ;;  %v1793_v29 = vld [vmem:[%s21083_s17 + $0x50] sm:$0xff]  ;;  %v22560_v38 = vcombine.high %v22484_v51, %v22484_v51  ;;  %v1794_v40 = vld [vmem:[%s21083_s17 + $0x58] sm:$0xff] }
 0x662   : > { %14982 = vmatprep.subr.bf16.mxu0 %v19870_v47  ;;  %15638 = vmatprep.subr.bf16.mxu1 %v19872_v60  ;;  %v19902_v47 = vcombine.high %v3815_v37, %v3819_v27  ;;  %v19904_v60 = vcombine.high %v3816_v58, %v3820_v11  ;;  %v1797_v0 = vld [vmem:[%s21083_s17 + $0x70] sm:$0xff] }
 0x665   : > { %14983 = vmatpush1.bf16.msra.mxu0 %v19869_v6  ;;  %15639 = vmatpush1.bf16.msra.mxu1 %v19871_v8  ;;  %v19901_v6 = vcombine.low %v3815_v37, %v3819_v27  ;;  %v19903_v8 = vcombine.low %v3816_v58, %v3820_v11  ;;  %v1801_v27 = vld [vmem:[%s21083_s17 + $0x90] sm:$0xff]  ;;  %v1802_v11 = vld [vmem:[%s21083_s17 + $0x98] sm:$0xff] }
 0x666   : > { %14984 = vmatprep.subr.bf16.mxu0 %v19878_v52  ;;  %15640 = vmatprep.subr.bf16.mxu1 %v19880_v9  ;;  %v19910_v52 = vcombine.high %v3823_v62, %v3827_v3  ;;  %v19912_v9 = vcombine.high %v3824_v4, %v3828_v5  ;;  %v1805_v58 = vld [vmem:[%s21083_s17 + $0xb0] sm:$0xff] }
 0x669   : > { %14985 = vmatpush1.bf16.msra.mxu0 %v19877_v23  ;;  %15641 = vmatpush1.bf16.msra.mxu1 %v19879_v24  ;;  %v19909_v23 = vcombine.low %v3823_v62, %v3827_v3  ;;  %v19911_v24 = vcombine.low %v3824_v4, %v3828_v5  ;;  %v1809_v3 = vld [vmem:[%s21083_s17 + $0xd0] sm:$0xff]  ;;  %v1810_v5 = vld [vmem:[%s21083_s17 + $0xd8] sm:$0xff] }
 0x66a   : > { %14986 = vmatprep.subr.bf16.mxu0 %v19886_v21  ;;  %15642 = vmatprep.subr.bf16.mxu1 %v19888_v32  ;;  %v17874_v21 = vcombine.high %v1785_v61, %v1789_v39  ;;  %v17876_v32 = vcombine.high %v1786_v14, %v1790_v15  ;;  %v1813_v4 = vld [vmem:[%s21083_s17 + $0xf0] sm:$0xff] }
 0x66d   : > { %14987 = vmatpush1.bf16.msra.mxu0 %v19885_v41  ;;  %15643 = vmatpush1.bf16.msra.mxu1 %v19887_v44  ;;  %v1798_v41 = vld [vmem:[%s21083_s17 + $0x78] sm:$0xff]  ;;  %v17873_v44 = vcombine.low %v1785_v61, %v1789_v39  ;;  %v1817_v39 = vld [vmem:[%s21083_s17 + $0x110] sm:$0xff] }
 0x66e   : > { %14988 = vmatprep.subr.bf16.mxu0 %v19894_v35  ;;  %15644 = vmatprep.subr.bf16.mxu1 %v19896_v46  ;;  %v17875_v35 = vcombine.low %v1786_v14, %v1790_v15  ;;  %v17882_v46 = vcombine.high %v1793_v29, %v1797_v0  ;;  %v17884_v37 = vcombine.high %v1794_v40, %v1798_v41  ;;  %v1821_v14 = vld [vmem:[%s21083_s17 + $0x130] sm:$0xff]  ;;  %v1818_v15 = vld [vmem:[%s21083_s17 + $0x118] sm:$0xff] }
 0x671   : > { %14989 = vmatpush1.bf16.msra.mxu0 %v19893_v55  ;;  %15645 = vmatpush1.bf16.msra.mxu1 %v19895_v56  ;;  %v1806_v55 = vld [vmem:[%s21083_s17 + $0xb8] sm:$0xff]  ;;  %v17881_v56 = vcombine.low %v1793_v29, %v1797_v0  ;;  %v1825_v29 = vld [vmem:[%s21083_s17 + $0x150] sm:$0xff] }
 0x672   : > { %14990 = vmatprep.subr.bf16.mxu0 %v19902_v47  ;;  %15646 = vmatprep.subr.bf16.mxu1 %v19904_v60  ;;  %v17883_v47 = vcombine.low %v1794_v40, %v1798_v41  ;;  %v17890_v60 = vcombine.high %v1801_v27, %v1805_v58  ;;  %v17892_v62 = vcombine.high %v1802_v11, %v1806_v55  ;;  %v1829_v0 = vld [vmem:[%s21083_s17 + $0x170] sm:$0xff]  ;;  %v1826_v40 = vld [vmem:[%s21083_s17 + $0x158] sm:$0xff] }
 0x673   : > { %v1830_v41 = vld [vmem:[%s21083_s17 + $0x178] sm:$0xff] }
 0x675   : > { %14991 = vmatpush1.bf16.msra.mxu0 %v19901_v6  ;;  %15647 = vmatpush1.bf16.msra.mxu1 %v19903_v8  ;;  %v1814_v6 = vld [vmem:[%s21083_s17 + $0xf8] sm:$0xff]  ;;  %v17889_v8 = vcombine.low %v1801_v27, %v1805_v58  ;;  %v1833_v27 = vld [vmem:[%s21083_s17 + $0x190] sm:$0xff] }
 0x676   : > { %14992 = vmatprep.subr.bf16.mxu0 %v19910_v52  ;;  %15648 = vmatprep.subr.bf16.mxu1 %v19912_v9  ;;  %v17891_v52 = vcombine.low %v1802_v11, %v1806_v55  ;;  %v17898_v9 = vcombine.high %v1809_v3, %v1813_v4  ;;  %v17900_v61 = vcombine.high %v1810_v5, %v1814_v6  ;;  %v1837_v58 = vld [vmem:[%s21083_s17 + $0x1b0] sm:$0xff]  ;;  %v1834_v11 = vld [vmem:[%s21083_s17 + $0x198] sm:$0xff] }
 0x677   : > { %v1838_v55 = vld [vmem:[%s21083_s17 + $0x1b8] sm:$0xff] }
 0x679   : > { %14993 = vmatpush1.bf16.msra.mxu0 %v19909_v23  ;;  %15649 = vmatpush1.bf16.msra.mxu1 %v19911_v24  ;;  %v1822_v23 = vld [vmem:[%s21083_s17 + $0x138] sm:$0xff]  ;;  %v17897_v24 = vcombine.low %v1809_v3, %v1813_v4  ;;  %v1841_v3 = vld [vmem:[%s21083_s17 + $0x1d0] sm:$0xff] }
 0x67a   : > { %15659 = vmatprep.subr.bf16.mxu0 %v17874_v21  ;;  %16315 = vmatprep.subr.bf16.mxu1 %v17876_v32  ;;  %v17906_v21 = vcombine.high %v1817_v39, %v1821_v14  ;;  %v17908_v32 = vcombine.high %v1818_v15, %v1822_v23  ;;  %v1845_v4 = vld [vmem:[%s21083_s17 + $0x1f0] sm:$0xff] }
 0x67c   : > { %14995 = vmatmul.mubr.bf16.vlgmr.msra.gmra.mrb[0].mxu0 %v22560_v38  ;;  %15651 = vmatmul.mubr.bf16.vlgmr.msra.gmra.mrb[0].mxu1 %v22560_v38 }
 0x67d   : > { %15660 = vmatpush1.bf16.msra.mxu0 %v17873_v44  ;;  %16316 = vmatpush1.bf16.msra.mxu1 %v17875_v35  ;;  %v17905_v44 = vcombine.low %v1817_v39, %v1821_v14  ;;  %v17907_v35 = vcombine.low %v1818_v15, %v1822_v23  ;;  %v1849_v39 = vld [vmem:[%s21083_s17 + $0x210] sm:$0xff]  ;;  %v1850_v15 = vld [vmem:[%s21083_s17 + $0x218] sm:$0xff] }
 0x67e   : > { %15661 = vmatprep.subr.bf16.mxu0 %v17882_v46  ;;  %16317 = vmatprep.subr.bf16.mxu1 %v17884_v37  ;;  %v17914_v46 = vcombine.high %v1825_v29, %v1829_v0  ;;  %v17916_v37 = vcombine.high %v1826_v40, %v1830_v41  ;;  %v1853_v14 = vld [vmem:[%s21083_s17 + $0x230] sm:$0xff]  ;;  %v1854_v23 = vld [vmem:[%s21083_s17 + $0x238] sm:$0xff] }
 0x67f   : > { %15691 = vmatprep.mubr.bf16.mxu0 %v21333_v33  ;;  %16347 = vmatprep.mubr.bf16.mxu1 %v21333_v33  ;;  %v17899_v33 = vcombine.low %v1810_v5, %v1814_v6  ;;  %v1842_v5 = vld [vmem:[%s21083_s17 + $0x1d8] sm:$0xff] }
 0x680   : > { %v1846_v6 = vld [vmem:[%s21083_s17 + $0x1f8] sm:$0xff] }
 0x681   : > { %15662 = vmatpush1.bf16.msra.mxu0 %v17881_v56  ;;  %16318 = vmatpush1.bf16.msra.mxu1 %v17883_v47  ;;  %v17913_v56 = vcombine.low %v1825_v29, %v1829_v0  ;;  %v17915_v47 = vcombine.low %v1826_v40, %v1830_v41  ;;  %v1857_v29 = vld [vmem:[%s21083_s17 + $0x250] sm:$0xff]  ;;  %v1858_v40 = vld [vmem:[%s21083_s17 + $0x258] sm:$0xff] }
 0x682   : > { %15663 = vmatprep.subr.bf16.mxu0 %v17890_v60  ;;  %16319 = vmatprep.subr.bf16.mxu1 %v17892_v62  ;;  %v17922_v60 = vcombine.high %v1833_v27, %v1837_v58  ;;  %v17924_v62 = vcombine.high %v1834_v11, %v1838_v55  ;;  %v1861_v0 = vld [vmem:[%s21083_s17 + $0x270] sm:$0xff]  ;;  %v1862_v41 = vld [vmem:[%s21083_s17 + $0x278] sm:$0xff] }
 0x685   : > { %15664 = vmatpush1.bf16.msra.mxu0 %v17889_v8  ;;  %16320 = vmatpush1.bf16.msra.mxu1 %v17891_v52  ;;  %v17921_v8 = vcombine.low %v1833_v27, %v1837_v58  ;;  %v17923_v52 = vcombine.low %v1834_v11, %v1838_v55  ;;  %v1865_v27 = vld [vmem:[%s21083_s17 + $0x290] sm:$0xff]  ;;  %v1866_v11 = vld [vmem:[%s21083_s17 + $0x298] sm:$0xff] }
 0x686   : > { %15665 = vmatprep.subr.bf16.mxu0 %v17898_v9  ;;  %16321 = vmatprep.subr.bf16.mxu1 %v17900_v61  ;;  %v17930_v9 = vcombine.high %v1841_v3, %v1845_v4  ;;  %v17932_v61 = vcombine.high %v1842_v5, %v1846_v6  ;;  %v1869_v58 = vld [vmem:[%s21083_s17 + $0x2b0] sm:$0xff]  ;;  %v1870_v55 = vld [vmem:[%s21083_s17 + $0x2b8] sm:$0xff] }
 0x689   : > { %15666 = vmatpush1.bf16.msra.mxu0 %v17897_v24  ;;  %16322 = vmatpush1.bf16.msra.mxu1 %v17899_v33  ;;  %v17929_v24 = vcombine.low %v1841_v3, %v1845_v4  ;;  %v17931_v33 = vcombine.low %v1842_v5, %v1846_v6  ;;  %v1873_v3 = vld [vmem:[%s21083_s17 + $0x2d0] sm:$0xff]  ;;  %v1874_v5 = vld [vmem:[%s21083_s17 + $0x2d8] sm:$0xff] }
 0x68a   : > { %15667 = vmatprep.subr.bf16.mxu0 %v17906_v21  ;;  %16323 = vmatprep.subr.bf16.mxu1 %v17908_v32  ;;  %v17938_v21 = vcombine.high %v1849_v39, %v1853_v14  ;;  %v17940_v32 = vcombine.high %v1850_v15, %v1854_v23  ;;  %v1877_v4 = vld [vmem:[%s21083_s17 + $0x2f0] sm:$0xff]  ;;  %v1878_v6 = vld [vmem:[%s21083_s17 + $0x2f8] sm:$0xff] }
 0x68d   : > { %15668 = vmatpush1.bf16.msra.mxu0 %v17905_v44  ;;  %16324 = vmatpush1.bf16.msra.mxu1 %v17907_v35  ;;  %v17937_v44 = vcombine.low %v1849_v39, %v1853_v14  ;;  %v17939_v35 = vcombine.low %v1850_v15, %v1854_v23  ;;  %v1881_v39 = vld [vmem:[%s21083_s17 + $0x310] sm:$0xff]  ;;  %v1882_v15 = vld [vmem:[%s21083_s17 + $0x318] sm:$0xff] }
 0x68e   : > { %15669 = vmatprep.subr.bf16.mxu0 %v17914_v46  ;;  %16325 = vmatprep.subr.bf16.mxu1 %v17916_v37  ;;  %v17946_v46 = vcombine.high %v1857_v29, %v1861_v0  ;;  %v17948_v37 = vcombine.high %v1858_v40, %v1862_v41  ;;  %v1885_v14 = vld [vmem:[%s21083_s17 + $0x330] sm:$0xff]  ;;  %v1886_v23 = vld [vmem:[%s21083_s17 + $0x338] sm:$0xff] }
 0x691   : > { %15670 = vmatpush1.bf16.msra.mxu0 %v17913_v56  ;;  %16326 = vmatpush1.bf16.msra.mxu1 %v17915_v47  ;;  %v17945_v56 = vcombine.low %v1857_v29, %v1861_v0  ;;  %v17947_v47 = vcombine.low %v1858_v40, %v1862_v41  ;;  %v1889_v29 = vld [vmem:[%s21083_s17 + $0x350] sm:$0xff]  ;;  %v1890_v40 = vld [vmem:[%s21083_s17 + $0x358] sm:$0xff] }
 0x692   : > { %15671 = vmatprep.subr.bf16.mxu0 %v17922_v60  ;;  %16327 = vmatprep.subr.bf16.mxu1 %v17924_v62  ;;  %v17954_v60 = vcombine.high %v1865_v27, %v1869_v58  ;;  %v17956_v62 = vcombine.high %v1866_v11, %v1870_v55  ;;  %v1893_v0 = vld [vmem:[%s21083_s17 + $0x370] sm:$0xff]  ;;  %v1894_v41 = vld [vmem:[%s21083_s17 + $0x378] sm:$0xff] }
 0x695   : > { %15672 = vmatpush1.bf16.msra.mxu0 %v17921_v8  ;;  %16328 = vmatpush1.bf16.msra.mxu1 %v17923_v52  ;;  %v17953_v8 = vcombine.low %v1865_v27, %v1869_v58  ;;  %v17955_v52 = vcombine.low %v1866_v11, %v1870_v55  ;;  %v1897_v27 = vld [vmem:[%s21083_s17 + $0x390] sm:$0xff]  ;;  %v1898_v11 = vld [vmem:[%s21083_s17 + $0x398] sm:$0xff] }
 0x696   : > { %15673 = vmatprep.subr.bf16.mxu0 %v17930_v9  ;;  %16329 = vmatprep.subr.bf16.mxu1 %v17932_v61  ;;  %v17962_v9 = vcombine.high %v1873_v3, %v1877_v4  ;;  %v17964_v61 = vcombine.high %v1874_v5, %v1878_v6  ;;  %v1901_v58 = vld [vmem:[%s21083_s17 + $0x3b0] sm:$0xff]  ;;  %v1902_v55 = vld [vmem:[%s21083_s17 + $0x3b8] sm:$0xff] }
 0x699   : > { %15674 = vmatpush1.bf16.msra.mxu0 %v17929_v24  ;;  %16330 = vmatpush1.bf16.msra.mxu1 %v17931_v33  ;;  %v17961_v24 = vcombine.low %v1873_v3, %v1877_v4  ;;  %v17963_v33 = vcombine.low %v1874_v5, %v1878_v6  ;;  %v1905_v3 = vld [vmem:[%s21083_s17 + $0x3d0] sm:$0xff]  ;;  %v1906_v5 = vld [vmem:[%s21083_s17 + $0x3d8] sm:$0xff] }
 0x69a   : > { %15675 = vmatprep.subr.bf16.mxu0 %v17938_v21  ;;  %16331 = vmatprep.subr.bf16.mxu1 %v17940_v32  ;;  %v17970_v21 = vcombine.high %v1881_v39, %v1885_v14  ;;  %v17972_v32 = vcombine.high %v1882_v15, %v1886_v23  ;;  %v1909_v4 = vld [vmem:[%s21083_s17 + $0x3f0] sm:$0xff]  ;;  %v1910_v6 = vld [vmem:[%s21083_s17 + $0x3f8] sm:$0xff] }
 0x69d   : > { %15676 = vmatpush1.bf16.msra.mxu0 %v17937_v44  ;;  %16332 = vmatpush1.bf16.msra.mxu1 %v17939_v35  ;;  %v17969_v44 = vcombine.low %v1881_v39, %v1885_v14  ;;  %v17971_v35 = vcombine.low %v1882_v15, %v1886_v23  ;;  %v1913_v39 = vld [vmem:[%s21083_s17 + $0x410] sm:$0xff]  ;;  %v1914_v15 = vld [vmem:[%s21083_s17 + $0x418] sm:$0xff] }
 0x69e   : > { %15677 = vmatprep.subr.bf16.mxu0 %v17946_v46  ;;  %16333 = vmatprep.subr.bf16.mxu1 %v17948_v37  ;;  %v17978_v46 = vcombine.high %v1889_v29, %v1893_v0  ;;  %v17980_v37 = vcombine.high %v1890_v40, %v1894_v41  ;;  %v1917_v14 = vld [vmem:[%s21083_s17 + $0x430] sm:$0xff]  ;;  %v1918_v23 = vld [vmem:[%s21083_s17 + $0x438] sm:$0xff] }
 0x6a1   : > { %15678 = vmatpush1.bf16.msra.mxu0 %v17945_v56  ;;  %16334 = vmatpush1.bf16.msra.mxu1 %v17947_v47  ;;  %v17977_v56 = vcombine.low %v1889_v29, %v1893_v0  ;;  %v17979_v47 = vcombine.low %v1890_v40, %v1894_v41  ;;  %v1921_v29 = vld [vmem:[%s21083_s17 + $0x450] sm:$0xff]  ;;  %v1922_v40 = vld [vmem:[%s21083_s17 + $0x458] sm:$0xff] }
 0x6a2   : > { %15679 = vmatprep.subr.bf16.mxu0 %v17954_v60  ;;  %16335 = vmatprep.subr.bf16.mxu1 %v17956_v62  ;;  %v17986_v60 = vcombine.high %v1897_v27, %v1901_v58  ;;  %v17988_v62 = vcombine.high %v1898_v11, %v1902_v55  ;;  %v1925_v0 = vld [vmem:[%s21083_s17 + $0x470] sm:$0xff]  ;;  %v1926_v41 = vld [vmem:[%s21083_s17 + $0x478] sm:$0xff] }
 0x6a5   : > { %15680 = vmatpush1.bf16.msra.mxu0 %v17953_v8  ;;  %16336 = vmatpush1.bf16.msra.mxu1 %v17955_v52  ;;  %v17985_v8 = vcombine.low %v1897_v27, %v1901_v58  ;;  %v17987_v52 = vcombine.low %v1898_v11, %v1902_v55  ;;  %v1929_v27 = vld [vmem:[%s21083_s17 + $0x490] sm:$0xff]  ;;  %v1930_v11 = vld [vmem:[%s21083_s17 + $0x498] sm:$0xff] }
 0x6a6   : > { %15681 = vmatprep.subr.bf16.mxu0 %v17962_v9  ;;  %16337 = vmatprep.subr.bf16.mxu1 %v17964_v61  ;;  %v17994_v9 = vcombine.high %v1905_v3, %v1909_v4  ;;  %v17996_v61 = vcombine.high %v1906_v5, %v1910_v6  ;;  %v1933_v58 = vld [vmem:[%s21083_s17 + $0x4b0] sm:$0xff]  ;;  %v1934_v55 = vld [vmem:[%s21083_s17 + $0x4b8] sm:$0xff] }
 0x6a9   : > { %15682 = vmatpush1.bf16.msra.mxu0 %v17961_v24  ;;  %16338 = vmatpush1.bf16.msra.mxu1 %v17963_v33  ;;  %v17993_v24 = vcombine.low %v1905_v3, %v1909_v4  ;;  %v17995_v33 = vcombine.low %v1906_v5, %v1910_v6  ;;  %v1937_v3 = vld [vmem:[%s21083_s17 + $0x4d0] sm:$0xff]  ;;  %v1938_v5 = vld [vmem:[%s21083_s17 + $0x4d8] sm:$0xff] }
 0x6aa   : > { %15683 = vmatprep.subr.bf16.mxu0 %v17970_v21  ;;  %16339 = vmatprep.subr.bf16.mxu1 %v17972_v32  ;;  %v18002_v21 = vcombine.high %v1913_v39, %v1917_v14  ;;  %v18004_v32 = vcombine.high %v1914_v15, %v1918_v23  ;;  %v1941_v4 = vld [vmem:[%s21083_s17 + $0x4f0] sm:$0xff]  ;;  %v1942_v6 = vld [vmem:[%s21083_s17 + $0x4f8] sm:$0xff] }
 0x6ad   : > { %15684 = vmatpush1.bf16.msra.mxu0 %v17969_v44  ;;  %16340 = vmatpush1.bf16.msra.mxu1 %v17971_v35  ;;  %v18001_v44 = vcombine.low %v1913_v39, %v1917_v14  ;;  %v18003_v35 = vcombine.low %v1914_v15, %v1918_v23  ;;  %v1949_v39 = vld [vmem:[%s21083_s17 + $0x530] sm:$0xff]  ;;  %v1946_v14 = vld [vmem:[%s21083_s17 + $0x518] sm:$0xff]  ;;  %v18025_v23 = vcombine.low %v1937_v3, %v1941_v4 }
 0x6ae   : > { %15685 = vmatprep.subr.bf16.mxu0 %v17978_v46  ;;  %16341 = vmatprep.subr.bf16.mxu1 %v17980_v37  ;;  %v18010_v46 = vcombine.high %v1921_v29, %v1925_v0  ;;  %v18012_v37 = vcombine.high %v1922_v40, %v1926_v41  ;;  %v1950_v15 = vld [vmem:[%s21083_s17 + $0x538] sm:$0xff] }
 0x6b1   : > { %15686 = vmatpush1.bf16.msra.mxu0 %v17977_v56  ;;  %16342 = vmatpush1.bf16.msra.mxu1 %v17979_v47  ;;  %v18009_v56 = vcombine.low %v1921_v29, %v1925_v0  ;;  %v18011_v47 = vcombine.low %v1922_v40, %v1926_v41  ;;  %v1954_v29 = vld [vmem:[%s21083_s17 + $0x558] sm:$0xff]  ;;  %v18035_v41 = vcombine.low %v1946_v14, %v1950_v15 }
 0x6b2   : > { %15687 = vmatprep.subr.bf16.mxu0 %v17986_v60  ;;  %16343 = vmatprep.subr.bf16.mxu1 %v17988_v62  ;;  %v18018_v60 = vcombine.high %v1929_v27, %v1933_v58  ;;  %v18020_v62 = vcombine.high %v1930_v11, %v1934_v55  ;;  %v1958_v0 = vld [vmem:[%s21083_s17 + $0x578] sm:$0xff] }
 0x6b5   : > { %15688 = vmatpush1.bf16.msra.mxu0 %v17985_v8  ;;  %16344 = vmatpush1.bf16.msra.mxu1 %v17987_v52  ;;  %v18019_v8 = vcombine.low %v1930_v11, %v1934_v55  ;;  %v18026_v52 = vcombine.high %v1937_v3, %v1941_v4  ;;  %v18043_v55 = vcombine.low %v1954_v29, %v1958_v0  ;;  %v1970_v3 = vld [vmem:[%s21083_s17 + $0x5d8] sm:$0xff] }
 0x6b6   : > { %15689 = vmatprep.subr.bf16.mxu0 %v17994_v9  ;;  %16345 = vmatprep.subr.bf16.mxu1 %v17996_v61  ;;  %v18028_v9 = vcombine.high %v1938_v5, %v1942_v6  ;;  %v1945_v61 = vld [vmem:[%s21083_s17 + $0x510] sm:$0xff]  ;;  %v1974_v4 = vld [vmem:[%s21083_s17 + $0x5f8] sm:$0xff] }
 0x6b7   : > { %v18033_v40 = vcombine.low %v1945_v61, %v1949_v39 }
 0x6b9   : > { %15690 = vmatpush1.bf16.msra.mxu0 %v17993_v24  ;;  %16346 = vmatpush1.bf16.msra.mxu1 %v17995_v33  ;;  %v18034_v24 = vcombine.high %v1945_v61, %v1949_v39  ;;  %v18036_v33 = vcombine.high %v1946_v14, %v1950_v15  ;;  %v1978_v61 = vld [vmem:[%s21083_s17 + $0x618] sm:$0xff]  ;;  %v18059_v15 = vcombine.low %v1970_v3, %v1974_v4 }
 0x6ba   : > { %15700 = vmatprep.subr.bf16.mxu0 %v18002_v21  ;;  %16356 = vmatprep.subr.bf16.mxu1 %v18004_v32  ;;  %v1953_v21 = vld [vmem:[%s21083_s17 + $0x550] sm:$0xff]  ;;  %v1982_v39 = vld [vmem:[%s21083_s17 + $0x638] sm:$0xff] }
 0x6bb   : > { %v1957_v32 = vld [vmem:[%s21083_s17 + $0x570] sm:$0xff] }
 0x6bc   : > { %15692 = vmatmul.mubr.bf16.vlgmr.msra.gmra.mrb[4].mxu0 %v21375_v48  ;;  %16348 = vmatmul.mubr.bf16.vlgmr.msra.gmra.mrb[4].mxu1 %v21375_v48  ;;  %v18017_v48 = vcombine.low %v1929_v27, %v1933_v58  ;;  %v1962_v27 = vld [vmem:[%s21083_s17 + $0x598] sm:$0xff]  ;;  %v18041_v11 = vcombine.low %v1953_v21, %v1957_v32 }
 0x6bd   : > { %15701 = vmatpush1.bf16.msra.mxu0 %v18001_v44  ;;  %16357 = vmatpush1.bf16.msra.mxu1 %v18003_v35  ;;  %v18042_v44 = vcombine.high %v1953_v21, %v1957_v32  ;;  %v18044_v35 = vcombine.high %v1954_v29, %v1958_v0  ;;  %v1966_v58 = vld [vmem:[%s21083_s17 + $0x5b8] sm:$0xff]  ;;  %v18067_v0 = vcombine.low %v1978_v61, %v1982_v39 }
 0x6be   : > { %15702 = vmatprep.subr.bf16.mxu0 %v18010_v46  ;;  %16358 = vmatprep.subr.bf16.mxu1 %v18012_v37  ;;  %v1961_v46 = vld [vmem:[%s21083_s17 + $0x590] sm:$0xff]  ;;  %v1986_v21 = vld [vmem:[%s21083_s17 + $0x658] sm:$0xff] }
 0x6bf   : > { %15732 = vmatprep.mubr.bf16.mxu0 %v21383_v59  ;;  %16388 = vmatprep.mubr.bf16.mxu1 %v21383_v59  ;;  %v18027_v59 = vcombine.low %v1938_v5, %v1942_v6  ;;  %v1965_v37 = vld [vmem:[%s21083_s17 + $0x5b0] sm:$0xff]  ;;  %v18051_v6 = vcombine.low %v1962_v27, %v1966_v58  ;;  %v1990_v32 = vld [vmem:[%s21083_s17 + $0x678] sm:$0xff] }
 0x6c0   : > { %v18049_v5 = vcombine.low %v1961_v46, %v1965_v37 }
 0x6c1   : > { %15703 = vmatpush1.bf16.msra.mxu0 %v18009_v56  ;;  %16359 = vmatpush1.bf16.msra.mxu1 %v18011_v47  ;;  %v18050_v56 = vcombine.high %v1961_v46, %v1965_v37  ;;  %v18052_v47 = vcombine.high %v1962_v27, %v1966_v58  ;;  %v1994_v46 = vld [vmem:[%s21083_s17 + $0x698] sm:$0xff]  ;;  %v18075_v58 = vcombine.low %v1986_v21, %v1990_v32 }
 0x6c2   : > { %15704 = vmatprep.subr.bf16.mxu0 %v18018_v60  ;;  %16360 = vmatprep.subr.bf16.mxu1 %v18020_v62  ;;  %v1969_v60 = vld [vmem:[%s21083_s17 + $0x5d0] sm:$0xff]  ;;  %v1998_v37 = vld [vmem:[%s21083_s17 + $0x6b8] sm:$0xff] }
 0x6c3   : > { %v1973_v62 = vld [vmem:[%s21083_s17 + $0x5f0] sm:$0xff] }
 0x6c4   : > { %v18057_v14 = vcombine.low %v1969_v60, %v1973_v62 }
 0x6c5   : > { %15705 = vmatpush1.bf16.msra.mxu0 %v18017_v48  ;;  %16361 = vmatpush1.bf16.msra.mxu1 %v18019_v8  ;;  %v18058_v48 = vcombine.high %v1969_v60, %v1973_v62  ;;  %v18060_v8 = vcombine.high %v1970_v3, %v1974_v4  ;;  %v2002_v60 = vld [vmem:[%s21083_s17 + $0x6d8] sm:$0xff]  ;;  %v18083_v4 = vcombine.low %v1994_v46, %v1998_v37 }
 0x6c6   : > { %15706 = vmatprep.subr.bf16.mxu0 %v18026_v52  ;;  %16362 = vmatprep.subr.bf16.mxu1 %v18028_v9  ;;  %v1977_v52 = vld [vmem:[%s21083_s17 + $0x610] sm:$0xff]  ;;  %v2006_v62 = vld [vmem:[%s21083_s17 + $0x6f8] sm:$0xff] }
 0x6c7   : > { %v1981_v9 = vld [vmem:[%s21083_s17 + $0x630] sm:$0xff] }
 0x6c8   : > { %v18065_v29 = vcombine.low %v1977_v52, %v1981_v9 }
 0x6c9   : > { %15707 = vmatpush1.bf16.msra.mxu0 %v18025_v23  ;;  %16363 = vmatpush1.bf16.msra.mxu1 %v18027_v59  ;;  %v18066_v23 = vcombine.high %v1977_v52, %v1981_v9  ;;  %v18068_v59 = vcombine.high %v1978_v61, %v1982_v39  ;;  %v2010_v52 = vld [vmem:[%s21083_s17 + $0x718] sm:$0xff]  ;;  %v18091_v39 = vcombine.low %v2002_v60, %v2006_v62 }
 0x6ca   : > { %15708 = vmatprep.subr.bf16.mxu0 %v18034_v24  ;;  %16364 = vmatprep.subr.bf16.mxu1 %v18036_v33  ;;  %v1985_v24 = vld [vmem:[%s21083_s17 + $0x650] sm:$0xff]  ;;  %v2014_v9 = vld [vmem:[%s21083_s17 + $0x738] sm:$0xff] }
 0x6cb   : > { %v1989_v33 = vld [vmem:[%s21083_s17 + $0x670] sm:$0xff] }
 0x6cc   : > { %v18073_v27 = vcombine.low %v1985_v24, %v1989_v33 }
 0x6cd   : > { %15709 = vmatpush1.bf16.msra.mxu0 %v18033_v40  ;;  %16365 = vmatpush1.bf16.msra.mxu1 %v18035_v41  ;;  %v18074_v40 = vcombine.high %v1985_v24, %v1989_v33  ;;  %v18076_v41 = vcombine.high %v1986_v21, %v1990_v32  ;;  %v2018_v24 = vld [vmem:[%s21083_s17 + $0x758] sm:$0xff]  ;;  %v18099_v32 = vcombine.low %v2010_v52, %v2014_v9 }
 0x6ce   : > { %15710 = vmatprep.subr.bf16.mxu0 %v18042_v44  ;;  %16366 = vmatprep.subr.bf16.mxu1 %v18044_v35  ;;  %v1993_v44 = vld [vmem:[%s21083_s17 + $0x690] sm:$0xff]  ;;  %v2022_v33 = vld [vmem:[%s21083_s17 + $0x778] sm:$0xff] }
 0x6cf   : > { %v1997_v35 = vld [vmem:[%s21083_s17 + $0x6b0] sm:$0xff] }
 0x6d0   : > { %v18081_v3 = vcombine.low %v1993_v44, %v1997_v35 }
 0x6d1   : > { %15711 = vmatpush1.bf16.msra.mxu0 %v18041_v11  ;;  %16367 = vmatpush1.bf16.msra.mxu1 %v18043_v55  ;;  %v18082_v11 = vcombine.high %v1993_v44, %v1997_v35  ;;  %v18084_v55 = vcombine.high %v1994_v46, %v1998_v37  ;;  %v2026_v44 = vld [vmem:[%s21083_s17 + $0x798] sm:$0xff]  ;;  %v18107_v37 = vcombine.low %v2018_v24, %v2022_v33 }
 0x6d2   : > { %15712 = vmatprep.subr.bf16.mxu0 %v18050_v56  ;;  %16368 = vmatprep.subr.bf16.mxu1 %v18052_v47  ;;  %v2001_v56 = vld [vmem:[%s21083_s17 + $0x6d0] sm:$0xff]  ;;  %v2030_v35 = vld [vmem:[%s21083_s17 + $0x7b8] sm:$0xff] }
 0x6d3   : > { %v2005_v47 = vld [vmem:[%s21083_s17 + $0x6f0] sm:$0xff] }
 0x6d4   : > { %v18089_v61 = vcombine.low %v2001_v56, %v2005_v47 }
 0x6d5   : > { %15713 = vmatpush1.bf16.msra.mxu0 %v18049_v5  ;;  %16369 = vmatpush1.bf16.msra.mxu1 %v18051_v6  ;;  %v18090_v5 = vcombine.high %v2001_v56, %v2005_v47  ;;  %v18092_v6 = vcombine.high %v2002_v60, %v2006_v62  ;;  %v2034_v56 = vld [vmem:[%s21083_s17 + $0x7d8] sm:$0xff]  ;;  %v18115_v62 = vcombine.low %v2026_v44, %v2030_v35 }
 0x6d6   : > { %15714 = vmatprep.subr.bf16.mxu0 %v18058_v48  ;;  %16370 = vmatprep.subr.bf16.mxu1 %v18060_v8  ;;  %v2009_v48 = vld [vmem:[%s21083_s17 + $0x710] sm:$0xff]  ;;  %v2038_v47 = vld [vmem:[%s21083_s17 + $0x7f8] sm:$0xff] }
 0x6d7   : > { %v2013_v8 = vld [vmem:[%s21083_s17 + $0x730] sm:$0xff] }
 0x6d8   : > { %v18097_v21 = vcombine.low %v2009_v48, %v2013_v8 }
 0x6d9   : > { %15715 = vmatpush1.bf16.msra.mxu0 %v18057_v14  ;;  %16371 = vmatpush1.bf16.msra.mxu1 %v18059_v15  ;;  %v18098_v14 = vcombine.high %v2009_v48, %v2013_v8  ;;  %v18100_v15 = vcombine.high %v2010_v52, %v2014_v9  ;;  %v2042_v48 = vld [vmem:[%s21083_s17 + $0x818] sm:$0xff]  ;;  %v18123_v9 = vcombine.low %v2034_v56, %v2038_v47 }
 0x6da   : > { %15716 = vmatprep.subr.bf16.mxu0 %v18066_v23  ;;  %16372 = vmatprep.subr.bf16.mxu1 %v18068_v59  ;;  %v2017_v23 = vld [vmem:[%s21083_s17 + $0x750] sm:$0xff]  ;;  %v2046_v8 = vld [vmem:[%s21083_s17 + $0x838] sm:$0xff] }
 0x6db   : > { %v2021_v59 = vld [vmem:[%s21083_s17 + $0x770] sm:$0xff] }
 0x6dc   : > { %v18105_v46 = vcombine.low %v2017_v23, %v2021_v59 }
 0x6dd   : > { %15717 = vmatpush1.bf16.msra.mxu0 %v18065_v29  ;;  %16373 = vmatpush1.bf16.msra.mxu1 %v18067_v0  ;;  %v18106_v29 = vcombine.high %v2017_v23, %v2021_v59  ;;  %v18108_v0 = vcombine.high %v2018_v24, %v2022_v33  ;;  %v2050_v23 = vld [vmem:[%s21083_s17 + $0x858] sm:$0xff]  ;;  %v18131_v33 = vcombine.low %v2042_v48, %v2046_v8 }
 0x6de   : > { %15718 = vmatprep.subr.bf16.mxu0 %v18074_v40  ;;  %16374 = vmatprep.subr.bf16.mxu1 %v18076_v41  ;;  %v2025_v40 = vld [vmem:[%s21083_s17 + $0x790] sm:$0xff]  ;;  %v2054_v59 = vld [vmem:[%s21083_s17 + $0x878] sm:$0xff] }
 0x6df   : > { %v2029_v41 = vld [vmem:[%s21083_s17 + $0x7b0] sm:$0xff] }
 0x6e0   : > { %v18113_v60 = vcombine.low %v2025_v40, %v2029_v41 }
 0x6e1   : > { %15719 = vmatpush1.bf16.msra.mxu0 %v18073_v27  ;;  %16375 = vmatpush1.bf16.msra.mxu1 %v18075_v58  ;;  %v18114_v27 = vcombine.high %v2025_v40, %v2029_v41  ;;  %v18116_v58 = vcombine.high %v2026_v44, %v2030_v35  ;;  %v2058_v40 = vld [vmem:[%s21083_s17 + $0x898] sm:$0xff]  ;;  %v18139_v35 = vcombine.low %v2050_v23, %v2054_v59 }
 0x6e2   : > { %15720 = vmatprep.subr.bf16.mxu0 %v18082_v11  ;;  %16376 = vmatprep.subr.bf16.mxu1 %v18084_v55  ;;  %v2033_v11 = vld [vmem:[%s21083_s17 + $0x7d0] sm:$0xff]  ;;  %v2062_v41 = vld [vmem:[%s21083_s17 + $0x8b8] sm:$0xff] }
 0x6e3   : > { %v2037_v55 = vld [vmem:[%s21083_s17 + $0x7f0] sm:$0xff] }
 0x6e4   : > { %v18121_v52 = vcombine.low %v2033_v11, %v2037_v55 }
 0x6e5   : > { %15721 = vmatpush1.bf16.msra.mxu0 %v18081_v3  ;;  %16377 = vmatpush1.bf16.msra.mxu1 %v18083_v4  ;;  %v18122_v3 = vcombine.high %v2033_v11, %v2037_v55  ;;  %v18124_v4 = vcombine.high %v2034_v56, %v2038_v47  ;;  %v2066_v11 = vld [vmem:[%s21083_s17 + $0x8d8] sm:$0xff]  ;;  %v18147_v56 = vcombine.low %v2058_v40, %v2062_v41 }
 0x6e6   : > { %15722 = vmatprep.subr.bf16.mxu0 %v18090_v5  ;;  %16378 = vmatprep.subr.bf16.mxu1 %v18092_v6  ;;  %v2041_v5 = vld [vmem:[%s21083_s17 + $0x810] sm:$0xff]  ;;  %v2070_v55 = vld [vmem:[%s21083_s17 + $0x8f8] sm:$0xff] }
 0x6e7   : > { %v2045_v6 = vld [vmem:[%s21083_s17 + $0x830] sm:$0xff] }
 0x6e8   : > { %v18129_v24 = vcombine.low %v2041_v5, %v2045_v6 }
 0x6e9   : > { %15723 = vmatpush1.bf16.msra.mxu0 %v18089_v61  ;;  %16379 = vmatpush1.bf16.msra.mxu1 %v18091_v39  ;;  %v18130_v61 = vcombine.high %v2041_v5, %v2045_v6  ;;  %v18132_v39 = vcombine.high %v2042_v48, %v2046_v8  ;;  %v2078_v5 = vld [vmem:[%s21083_s17 + $0x938] sm:$0xff] }
 0x6ea   : > { %15724 = vmatprep.subr.bf16.mxu0 %v18098_v14  ;;  %16380 = vmatprep.subr.bf16.mxu1 %v18100_v15  ;;  %v2049_v14 = vld [vmem:[%s21083_s17 + $0x850] sm:$0xff] }
 0x6eb   : > { %v2053_v15 = vld [vmem:[%s21083_s17 + $0x870] sm:$0xff] }
 0x6ec   : > { %v18137_v44 = vcombine.low %v2049_v14, %v2053_v15 }
 0x6ed   : > { %15725 = vmatpush1.bf16.msra.mxu0 %v18097_v21  ;;  %16381 = vmatpush1.bf16.msra.mxu1 %v18099_v32  ;;  %v18138_v21 = vcombine.high %v2049_v14, %v2053_v15  ;;  %v18140_v32 = vcombine.high %v2050_v23, %v2054_v59 }
 0x6ee   : > { %15726 = vmatprep.subr.bf16.mxu0 %v18106_v29  ;;  %16382 = vmatprep.subr.bf16.mxu1 %v18108_v0  ;;  %v2057_v29 = vld [vmem:[%s21083_s17 + $0x890] sm:$0xff] }
 0x6ef   : > { %v2061_v0 = vld [vmem:[%s21083_s17 + $0x8b0] sm:$0xff] }
 0x6f1   : > { %15727 = vmatpush1.bf16.msra.mxu0 %v18105_v46  ;;  %16383 = vmatpush1.bf16.msra.mxu1 %v18107_v37  ;;  %v18146_v46 = vcombine.high %v2057_v29, %v2061_v0  ;;  %v18148_v37 = vcombine.high %v2058_v40, %v2062_v41 }
 0x6f2   : > { %15728 = vmatprep.subr.bf16.mxu0 %v18114_v27  ;;  %16384 = vmatprep.subr.bf16.mxu1 %v18116_v58  ;;  %v2065_v27 = vld [vmem:[%s21083_s17 + $0x8d0] sm:$0xff] }
 0x6f3   : > { %v2069_v58 = vld [vmem:[%s21083_s17 + $0x8f0] sm:$0xff] }
 0x6f4   : > { %v18154_v47 = vcombine.high %v2065_v27, %v2069_v58  ;;  %v18153_v6 = vcombine.low %v2065_v27, %v2069_v58 }
 0x6f5   : > { %15729 = vmatpush1.bf16.msra.mxu0 %v18113_v60  ;;  %16385 = vmatpush1.bf16.msra.mxu1 %v18115_v62  ;;  %v18156_v60 = vcombine.high %v2066_v11, %v2070_v55  ;;  %v2073_v62 = vld [vmem:[%s21083_s17 + $0x910] sm:$0xff] }
 0x6f6   : > { %15730 = vmatprep.subr.bf16.mxu0 %v18122_v3  ;;  %16386 = vmatprep.subr.bf16.mxu1 %v18124_v4  ;;  %v2077_v3 = vld [vmem:[%s21083_s17 + $0x930] sm:$0xff]  ;;  %v2074_v4 = vld [vmem:[%s21083_s17 + $0x918] sm:$0xff] }
 0x6f7   : > { %v18162_v48 = vcombine.high %v2073_v62, %v2077_v3  ;;  %v18164_v8 = vcombine.high %v2074_v4, %v2078_v5  ;;  %v18161_v14 = vcombine.low %v2073_v62, %v2077_v3  ;;  %v18163_v15 = vcombine.low %v2074_v4, %v2078_v5 }
 0x6f9   : > { %15731 = vmatpush1.bf16.msra.mxu0 %v18121_v52  ;;  %16387 = vmatpush1.bf16.msra.mxu1 %v18123_v9  ;;  %v2081_v52 = vld [vmem:[%s21083_s17 + $0x950] sm:$0xff] }
 0x6fa   : > { %15741 = vmatprep.subr.bf16.mxu0 %v18130_v61  ;;  %16397 = vmatprep.subr.bf16.mxu1 %v18132_v39  ;;  %v2085_v9 = vld [vmem:[%s21083_s17 + $0x970] sm:$0xff]  ;;  %v2082_v61 = vld [vmem:[%s21083_s17 + $0x958] sm:$0xff] }
 0x6fb   : > { %v2086_v39 = vld [vmem:[%s21083_s17 + $0x978] sm:$0xff]  ;;  %v18170_v23 = vcombine.high %v2081_v52, %v2085_v9 }
 0x6fc   : > { %15733 = vmatmul.mubr.bf16.vlgmr.msra.gmra.mrb[4].mxu0 %v21458_v2  ;;  %16389 = vmatmul.mubr.bf16.vlgmr.msra.gmra.mrb[4].mxu1 %v21458_v2  ;;  %v18145_v2 = vcombine.low %v2057_v29, %v2061_v0  ;;  %v18172_v59 = vcombine.high %v2082_v61, %v2086_v39  ;;  %v18169_v29 = vcombine.low %v2081_v52, %v2085_v9 }
 0x6fd   : > { %15742 = vmatpush1.bf16.msra.mxu0 %v18129_v24  ;;  %16398 = vmatpush1.bf16.msra.mxu1 %v18131_v33  ;;  %v2089_v24 = vld [vmem:[%s21083_s17 + $0x990] sm:$0xff]  ;;  %v18171_v0 = vcombine.low %v2082_v61, %v2086_v39 }
 0x6fe   : > { %15743 = vmatprep.subr.bf16.mxu0 %v18138_v21  ;;  %16399 = vmatprep.subr.bf16.mxu1 %v18140_v32  ;;  %v2093_v33 = vld [vmem:[%s21083_s17 + $0x9b0] sm:$0xff]  ;;  %v2090_v21 = vld [vmem:[%s21083_s17 + $0x998] sm:$0xff] }
 0x6ff   : > { %15773 = vmatprep.mubr.bf16.mxu0 %v21465_v57  ;;  %16429 = vmatprep.mubr.bf16.mxu1 %v21465_v57  ;;  %v18155_v57 = vcombine.low %v2066_v11, %v2070_v55  ;;  %v2094_v32 = vld [vmem:[%s21083_s17 + $0x9b8] sm:$0xff]  ;;  %v18178_v40 = vcombine.high %v2089_v24, %v2093_v33  ;;  %v18177_v27 = vcombine.low %v2089_v24, %v2093_v33 }
 0x700   : > { %v18180_v41 = vcombine.high %v2090_v21, %v2094_v32  ;;  %v18179_v58 = vcombine.low %v2090_v21, %v2094_v32 }
 0x701   : > { %15744 = vmatpush1.bf16.msra.mxu0 %v18137_v44  ;;  %16400 = vmatpush1.bf16.msra.mxu1 %v18139_v35  ;;  %v2097_v44 = vld [vmem:[%s21083_s17 + $0x9d0] sm:$0xff] }
 0x702   : > { %15745 = vmatprep.subr.bf16.mxu0 %v18146_v46  ;;  %16401 = vmatprep.subr.bf16.mxu1 %v18148_v37  ;;  %v2101_v35 = vld [vmem:[%s21083_s17 + $0x9f0] sm:$0xff]  ;;  %v2098_v46 = vld [vmem:[%s21083_s17 + $0x9d8] sm:$0xff] }
 0x703   : > { %v2102_v37 = vld [vmem:[%s21083_s17 + $0x9f8] sm:$0xff]  ;;  %v18186_v11 = vcombine.high %v2097_v44, %v2101_v35  ;;  %v18185_v62 = vcombine.low %v2097_v44, %v2101_v35 }
 0x704   : > { %v18188_v55 = vcombine.high %v2098_v46, %v2102_v37  ;;  %v18187_v3 = vcombine.low %v2098_v46, %v2102_v37 }
 0x705   : > { %15746 = vmatpush1.bf16.msra.mxu0 %v18145_v2  ;;  %16402 = vmatpush1.bf16.msra.mxu1 %v18147_v56  ;;  %v2105_v2 = vld [vmem:[%s21083_s17 + $0xa10] sm:$0xff] }
 0x706   : > { %15747 = vmatprep.subr.bf16.mxu0 %v18154_v47  ;;  %16403 = vmatprep.subr.bf16.mxu1 %v18156_v60  ;;  %v2109_v56 = vld [vmem:[%s21083_s17 + $0xa30] sm:$0xff]  ;;  %v2106_v47 = vld [vmem:[%s21083_s17 + $0xa18] sm:$0xff] }
 0x707   : > { %v2110_v60 = vld [vmem:[%s21083_s17 + $0xa38] sm:$0xff]  ;;  %v18194_v4 = vcombine.high %v2105_v2, %v2109_v56  ;;  %v18193_v52 = vcombine.low %v2105_v2, %v2109_v56 }
 0x708   : > { %v18196_v5 = vcombine.high %v2106_v47, %v2110_v60  ;;  %v18195_v9 = vcombine.low %v2106_v47, %v2110_v60 }
 0x709   : > { %15748 = vmatpush1.bf16.msra.mxu0 %v18153_v6  ;;  %16404 = vmatpush1.bf16.msra.mxu1 %v18155_v57  ;;  %v2113_v6 = vld [vmem:[%s21083_s17 + $0xa50] sm:$0xff] }
 0x70a   : > { %15749 = vmatprep.subr.bf16.mxu0 %v18162_v48  ;;  %16405 = vmatprep.subr.bf16.mxu1 %v18164_v8  ;;  %v2117_v57 = vld [vmem:[%s21083_s17 + $0xa70] sm:$0xff]  ;;  %v2114_v48 = vld [vmem:[%s21083_s17 + $0xa58] sm:$0xff] }
 0x70b   : > { %v2118_v8 = vld [vmem:[%s21083_s17 + $0xa78] sm:$0xff]  ;;  %v18202_v61 = vcombine.high %v2113_v6, %v2117_v57  ;;  %v18201_v24 = vcombine.low %v2113_v6, %v2117_v57 }
 0x70c   : > { %v18204_v39 = vcombine.high %v2114_v48, %v2118_v8  ;;  %v18203_v33 = vcombine.low %v2114_v48, %v2118_v8 }
 0x70d   : > { %15750 = vmatpush1.bf16.msra.mxu0 %v18161_v14  ;;  %16406 = vmatpush1.bf16.msra.mxu1 %v18163_v15  ;;  %v2121_v14 = vld [vmem:[%s21083_s17 + $0xa90] sm:$0xff] }
 0x70e   : > { %15751 = vmatprep.subr.bf16.mxu0 %v18170_v23  ;;  %16407 = vmatprep.subr.bf16.mxu1 %v18172_v59  ;;  %v2125_v15 = vld [vmem:[%s21083_s17 + $0xab0] sm:$0xff]  ;;  %v2122_v23 = vld [vmem:[%s21083_s17 + $0xa98] sm:$0xff] }
 0x70f   : > { %v2126_v59 = vld [vmem:[%s21083_s17 + $0xab8] sm:$0xff]  ;;  %v18210_v21 = vcombine.high %v2121_v14, %v2125_v15  ;;  %v18209_v44 = vcombine.low %v2121_v14, %v2125_v15 }
 0x710   : > { %v18212_v32 = vcombine.high %v2122_v23, %v2126_v59  ;;  %v18211_v35 = vcombine.low %v2122_v23, %v2126_v59 }
 0x711   : > { %15752 = vmatpush1.bf16.msra.mxu0 %v18169_v29  ;;  %16408 = vmatpush1.bf16.msra.mxu1 %v18171_v0  ;;  %v2129_v29 = vld [vmem:[%s21083_s17 + $0xad0] sm:$0xff] }
 0x712   : > { %15753 = vmatprep.subr.bf16.mxu0 %v18178_v40  ;;  %16409 = vmatprep.subr.bf16.mxu1 %v18180_v41  ;;  %v2133_v0 = vld [vmem:[%s21083_s17 + $0xaf0] sm:$0xff]  ;;  %v2130_v40 = vld [vmem:[%s21083_s17 + $0xad8] sm:$0xff] }
 0x713   : > { %v2134_v41 = vld [vmem:[%s21083_s17 + $0xaf8] sm:$0xff]  ;;  %v18218_v46 = vcombine.high %v2129_v29, %v2133_v0  ;;  %v18217_v2 = vcombine.low %v2129_v29, %v2133_v0 }
 0x714   : > { %v18220_v37 = vcombine.high %v2130_v40, %v2134_v41  ;;  %v18219_v56 = vcombine.low %v2130_v40, %v2134_v41 }
 0x715   : > { %15754 = vmatpush1.bf16.msra.mxu0 %v18177_v27  ;;  %16410 = vmatpush1.bf16.msra.mxu1 %v18179_v58  ;;  %v2137_v27 = vld [vmem:[%s21083_s17 + $0xb10] sm:$0xff] }
 0x716   : > { %15755 = vmatprep.subr.bf16.mxu0 %v18186_v11  ;;  %16411 = vmatprep.subr.bf16.mxu1 %v18188_v55  ;;  %v2141_v58 = vld [vmem:[%s21083_s17 + $0xb30] sm:$0xff]  ;;  %v2138_v11 = vld [vmem:[%s21083_s17 + $0xb18] sm:$0xff] }
 0x717   : > { %v2142_v55 = vld [vmem:[%s21083_s17 + $0xb38] sm:$0xff]  ;;  %v18226_v47 = vcombine.high %v2137_v27, %v2141_v58  ;;  %v18225_v6 = vcombine.low %v2137_v27, %v2141_v58 }
 0x718   : > { %v18228_v60 = vcombine.high %v2138_v11, %v2142_v55  ;;  %v18227_v57 = vcombine.low %v2138_v11, %v2142_v55 }
 0x719   : > { %15756 = vmatpush1.bf16.msra.mxu0 %v18185_v62  ;;  %16412 = vmatpush1.bf16.msra.mxu1 %v18187_v3  ;;  %v2145_v62 = vld [vmem:[%s21083_s17 + $0xb50] sm:$0xff] }
 0x71a   : > { %15757 = vmatprep.subr.bf16.mxu0 %v18194_v4  ;;  %16413 = vmatprep.subr.bf16.mxu1 %v18196_v5  ;;  %v2149_v3 = vld [vmem:[%s21083_s17 + $0xb70] sm:$0xff]  ;;  %v2146_v4 = vld [vmem:[%s21083_s17 + $0xb58] sm:$0xff] }
 0x71b   : > { %v2150_v5 = vld [vmem:[%s21083_s17 + $0xb78] sm:$0xff]  ;;  %v18234_v48 = vcombine.high %v2145_v62, %v2149_v3  ;;  %v18233_v14 = vcombine.low %v2145_v62, %v2149_v3 }
 0x71c   : > { %v18236_v8 = vcombine.high %v2146_v4, %v2150_v5  ;;  %v18235_v15 = vcombine.low %v2146_v4, %v2150_v5 }
 0x71d   : > { %15758 = vmatpush1.bf16.msra.mxu0 %v18193_v52  ;;  %16414 = vmatpush1.bf16.msra.mxu1 %v18195_v9  ;;  %v2153_v52 = vld [vmem:[%s21083_s17 + $0xb90] sm:$0xff] }
 0x71e   : > { %15759 = vmatprep.subr.bf16.mxu0 %v18202_v61  ;;  %16415 = vmatprep.subr.bf16.mxu1 %v18204_v39  ;;  %v2157_v9 = vld [vmem:[%s21083_s17 + $0xbb0] sm:$0xff]  ;;  %v2154_v61 = vld [vmem:[%s21083_s17 + $0xb98] sm:$0xff] }
 0x71f   : > { %v2158_v39 = vld [vmem:[%s21083_s17 + $0xbb8] sm:$0xff]  ;;  %v18242_v23 = vcombine.high %v2153_v52, %v2157_v9  ;;  %v18241_v29 = vcombine.low %v2153_v52, %v2157_v9 }
 0x720   : > { %v18244_v59 = vcombine.high %v2154_v61, %v2158_v39  ;;  %v18243_v0 = vcombine.low %v2154_v61, %v2158_v39 }
 0x721   : > { %15760 = vmatpush1.bf16.msra.mxu0 %v18201_v24  ;;  %16416 = vmatpush1.bf16.msra.mxu1 %v18203_v33  ;;  %v2161_v24 = vld [vmem:[%s21083_s17 + $0xbd0] sm:$0xff] }
 0x722   : > { %15761 = vmatprep.subr.bf16.mxu0 %v18210_v21  ;;  %16417 = vmatprep.subr.bf16.mxu1 %v18212_v32  ;;  %v2165_v33 = vld [vmem:[%s21083_s17 + $0xbf0] sm:$0xff]  ;;  %v2162_v21 = vld [vmem:[%s21083_s17 + $0xbd8] sm:$0xff] }
 0x723   : > { %v2166_v32 = vld [vmem:[%s21083_s17 + $0xbf8] sm:$0xff]  ;;  %v18250_v40 = vcombine.high %v2161_v24, %v2165_v33  ;;  %v18249_v27 = vcombine.low %v2161_v24, %v2165_v33 }
 0x724   : > { %v18252_v41 = vcombine.high %v2162_v21, %v2166_v32  ;;  %v18251_v58 = vcombine.low %v2162_v21, %v2166_v32  ;;  %v2201_v32 = vld [vmem:[%s21083_s17 + $0xd10] sm:$0xff] }
 0x725   : > { %15762 = vmatpush1.bf16.msra.mxu0 %v18209_v44  ;;  %16418 = vmatpush1.bf16.msra.mxu1 %v18211_v35  ;;  %v2169_v44 = vld [vmem:[%s21083_s17 + $0xc10] sm:$0xff] }
 0x726   : > { %15763 = vmatprep.subr.bf16.mxu0 %v18218_v46  ;;  %16419 = vmatprep.subr.bf16.mxu1 %v18220_v37  ;;  %v2173_v35 = vld [vmem:[%s21083_s17 + $0xc30] sm:$0xff]  ;;  %v2170_v46 = vld [vmem:[%s21083_s17 + $0xc18] sm:$0xff] }
 0x727   : > { %v2174_v37 = vld [vmem:[%s21083_s17 + $0xc38] sm:$0xff]  ;;  %v18258_v11 = vcombine.high %v2169_v44, %v2173_v35  ;;  %v18257_v62 = vcombine.low %v2169_v44, %v2173_v35 }
 0x728   : > { %v18260_v55 = vcombine.high %v2170_v46, %v2174_v37  ;;  %v18259_v3 = vcombine.low %v2170_v46, %v2174_v37  ;;  %v2209_v46 = vld [vmem:[%s21083_s17 + $0xd50] sm:$0xff] }
 0x729   : > { %15764 = vmatpush1.bf16.msra.mxu0 %v18217_v2  ;;  %16420 = vmatpush1.bf16.msra.mxu1 %v18219_v56  ;;  %v2177_v2 = vld [vmem:[%s21083_s17 + $0xc50] sm:$0xff] }
 0x72a   : > { %15765 = vmatprep.subr.bf16.mxu0 %v18226_v47  ;;  %16421 = vmatprep.subr.bf16.mxu1 %v18228_v60  ;;  %v2181_v56 = vld [vmem:[%s21083_s17 + $0xc70] sm:$0xff]  ;;  %v2178_v47 = vld [vmem:[%s21083_s17 + $0xc58] sm:$0xff] }
 0x72b   : > { %v2182_v60 = vld [vmem:[%s21083_s17 + $0xc78] sm:$0xff]  ;;  %v18266_v4 = vcombine.high %v2177_v2, %v2181_v56  ;;  %v18265_v52 = vcombine.low %v2177_v2, %v2181_v56  ;;  %v2213_v37 = vld [vmem:[%s21083_s17 + $0xd70] sm:$0xff] }
 0x72c   : > { %v18268_v5 = vcombine.high %v2178_v47, %v2182_v60  ;;  %v18267_v9 = vcombine.low %v2178_v47, %v2182_v60  ;;  %v18298_v2 = vcombine.high %v2209_v46, %v2213_v37  ;;  %v2217_v47 = vld [vmem:[%s21083_s17 + $0xd90] sm:$0xff] }
 0x72d   : > { %15766 = vmatpush1.bf16.msra.mxu0 %v18225_v6  ;;  %16422 = vmatpush1.bf16.msra.mxu1 %v18227_v57  ;;  %v2185_v6 = vld [vmem:[%s21083_s17 + $0xc90] sm:$0xff] }
 0x72e   : > { %15767 = vmatprep.subr.bf16.mxu0 %v18234_v48  ;;  %16423 = vmatprep.subr.bf16.mxu1 %v18236_v8  ;;  %v2189_v57 = vld [vmem:[%s21083_s17 + $0xcb0] sm:$0xff]  ;;  %v2186_v48 = vld [vmem:[%s21083_s17 + $0xc98] sm:$0xff] }
 0x72f   : > { %v2190_v8 = vld [vmem:[%s21083_s17 + $0xcb8] sm:$0xff]  ;;  %v18274_v61 = vcombine.high %v2185_v6, %v2189_v57  ;;  %v2221_v60 = vld [vmem:[%s21083_s17 + $0xdb0] sm:$0xff] }
 0x730   : > { %v18276_v39 = vcombine.high %v2186_v48, %v2190_v8  ;;  %v18275_v24 = vcombine.low %v2186_v48, %v2190_v8  ;;  %v2225_v8 = vld [vmem:[%s21083_s17 + $0xdd0] sm:$0xff] }
 0x731   : > { %15768 = vmatpush1.bf16.msra.mxu0 %v18233_v14  ;;  %16424 = vmatpush1.bf16.msra.mxu1 %v18235_v15  ;;  %v2193_v14 = vld [vmem:[%s21083_s17 + $0xcd0] sm:$0xff] }
 0x732   : > { %15769 = vmatprep.subr.bf16.mxu0 %v18242_v23  ;;  %16425 = vmatprep.subr.bf16.mxu1 %v18244_v59  ;;  %v2197_v15 = vld [vmem:[%s21083_s17 + $0xcf0] sm:$0xff]  ;;  %v2194_v23 = vld [vmem:[%s21083_s17 + $0xcd8] sm:$0xff] }
 0x733   : > { %v2198_v59 = vld [vmem:[%s21083_s17 + $0xcf8] sm:$0xff]  ;;  %v18282_v33 = vcombine.high %v2193_v14, %v2197_v15 }
 0x734   : > { %v18284_v21 = vcombine.high %v2194_v23, %v2198_v59 }
 0x735   : > { %15770 = vmatpush1.bf16.msra.mxu0 %v18241_v29  ;;  %16426 = vmatpush1.bf16.msra.mxu1 %v18243_v0  ;;  %v2205_v29 = vld [vmem:[%s21083_s17 + $0xd30] sm:$0xff]  ;;  %v2202_v0 = vld [vmem:[%s21083_s17 + $0xd18] sm:$0xff] }
 0x736   : > { %15771 = vmatprep.subr.bf16.mxu0 %v18250_v40  ;;  %16427 = vmatprep.subr.bf16.mxu1 %v18252_v41  ;;  %v2206_v40 = vld [vmem:[%s21083_s17 + $0xd38] sm:$0xff]  ;;  %v18281_v41 = vcombine.low %v2193_v14, %v2197_v15  ;;  %v18290_v44 = vcombine.high %v2201_v32, %v2205_v29 }
 0x737   : > { %v18292_v35 = vcombine.high %v2202_v0, %v2206_v40  ;;  %v2230_v14 = vld [vmem:[%s21083_s17 + $0xdf8] sm:$0xff] }
 0x739   : > { %15772 = vmatpush1.bf16.msra.mxu0 %v18249_v27  ;;  %16428 = vmatpush1.bf16.msra.mxu1 %v18251_v58  ;;  %v2210_v27 = vld [vmem:[%s21083_s17 + $0xd58] sm:$0xff] }
 0x73a   : > { %15782 = vmatprep.subr.bf16.mxu0 %v18258_v11  ;;  %16438 = vmatprep.subr.bf16.mxu1 %v18260_v55  ;;  %v2214_v58 = vld [vmem:[%s21083_s17 + $0xd78] sm:$0xff]  ;;  %v18289_v11 = vcombine.low %v2201_v32, %v2205_v29  ;;  %v18291_v55 = vcombine.low %v2202_v0, %v2206_v40  ;;  %v2233_v0 = vld [vmem:[%s21083_s17 + $0xe10] sm:$0xff] }
 0x73b   : > { %v18300_v56 = vcombine.high %v2210_v27, %v2214_v58  ;;  %v2237_v40 = vld [vmem:[%s21083_s17 + $0xe30] sm:$0xff] }
 0x73c   : > { %15774 = vmatmul.mubr.bf16.vlgmr.msra.gmra.mrb[4].mxu0 %v21533_v19  ;;  %16430 = vmatmul.mubr.bf16.vlgmr.msra.gmra.mrb[4].mxu1 %v21533_v19  ;;  %v18273_v19 = vcombine.low %v2185_v6, %v2189_v57  ;;  %v18306_v6 = vcombine.high %v2217_v47, %v2221_v60 }
 0x73d   : > { %15783 = vmatpush1.bf16.msra.mxu0 %v18257_v62  ;;  %16439 = vmatpush1.bf16.msra.mxu1 %v18259_v3  ;;  %v2218_v62 = vld [vmem:[%s21083_s17 + $0xd98] sm:$0xff] }
 0x73e   : > { %15784 = vmatprep.subr.bf16.mxu0 %v18266_v4  ;;  %16440 = vmatprep.subr.bf16.mxu1 %v18268_v5  ;;  %v2222_v3 = vld [vmem:[%s21083_s17 + $0xdb8] sm:$0xff]  ;;  %v18297_v4 = vcombine.low %v2209_v46, %v2213_v37  ;;  %v18299_v5 = vcombine.low %v2210_v27, %v2214_v58  ;;  %v18322_v46 = vcombine.high %v2233_v0, %v2237_v40  ;;  %v2241_v27 = vld [vmem:[%s21083_s17 + $0xe50] sm:$0xff] }
 0x73f   : > { %15814 = vmatprep.mubr.bf16.mxu0 %v21541_v30  ;;  %16470 = vmatprep.mubr.bf16.mxu1 %v21541_v30  ;;  %v18283_v30 = vcombine.low %v2194_v23, %v2198_v59  ;;  %v18308_v48 = vcombine.high %v2218_v62, %v2222_v3  ;;  %v18305_v59 = vcombine.low %v2217_v47, %v2221_v60  ;;  %v2245_v58 = vld [vmem:[%s21083_s17 + $0xe70] sm:$0xff] }
 0x740   : > { %v18330_v47 = vcombine.high %v2241_v27, %v2245_v58 }
 0x741   : > { %15785 = vmatpush1.bf16.msra.mxu0 %v18265_v52  ;;  %16441 = vmatpush1.bf16.msra.mxu1 %v18267_v9  ;;  %v2229_v52 = vld [vmem:[%s21083_s17 + $0xdf0] sm:$0xff] }
 0x742   : > { %15786 = vmatprep.subr.bf16.mxu0 %v18274_v61  ;;  %16442 = vmatprep.subr.bf16.mxu1 %v18276_v39  ;;  %v2226_v39 = vld [vmem:[%s21083_s17 + $0xdd8] sm:$0xff] }
 0x743   : > { %v18316_v29 = vcombine.high %v2226_v39, %v2230_v14 }
 0x745   : > { %15787 = vmatpush1.bf16.msra.mxu0 %v18273_v19  ;;  %16443 = vmatpush1.bf16.msra.mxu1 %v18275_v24 }
 0x746   : > { %15788 = vmatprep.subr.bf16.mxu0 %v18282_v33  ;;  %16444 = vmatprep.subr.bf16.mxu1 %v18284_v21  ;;  %v18307_v33 = vcombine.low %v2218_v62, %v2222_v3  ;;  %v18314_v21 = vcombine.high %v2225_v8, %v2229_v52  ;;  %v2249_v62 = vld [vmem:[%s21083_s17 + $0xe90] sm:$0xff] }
 0x747   : > { %v2253_v3 = vld [vmem:[%s21083_s17 + $0xeb0] sm:$0xff] }
 0x749   : > { %15789 = vmatpush1.bf16.msra.mxu0 %v18281_v41  ;;  %16445 = vmatpush1.bf16.msra.mxu1 %v18283_v30  ;;  %v2234_v41 = vld [vmem:[%s21083_s17 + $0xe18] sm:$0xff] }
 0x74a   : > { %15790 = vmatprep.subr.bf16.mxu0 %v18290_v44  ;;  %16446 = vmatprep.subr.bf16.mxu1 %v18292_v35  ;;  %v2238_v30 = vld [vmem:[%s21083_s17 + $0xe38] sm:$0xff]  ;;  %v18313_v44 = vcombine.low %v2225_v8, %v2229_v52  ;;  %v18315_v35 = vcombine.low %v2226_v39, %v2230_v14  ;;  %v18338_v8 = vcombine.high %v2249_v62, %v2253_v3  ;;  %v2257_v39 = vld [vmem:[%s21083_s17 + $0xed0] sm:$0xff] }
 0x74b   : > { %v18324_v37 = vcombine.high %v2234_v41, %v2238_v30  ;;  %v2261_v14 = vld [vmem:[%s21083_s17 + $0xef0] sm:$0xff] }
 0x74d   : > { %15791 = vmatpush1.bf16.msra.mxu0 %v18289_v11  ;;  %16447 = vmatpush1.bf16.msra.mxu1 %v18291_v55  ;;  %v2242_v11 = vld [vmem:[%s21083_s17 + $0xe58] sm:$0xff] }
 0x74e   : > { %15792 = vmatprep.subr.bf16.mxu0 %v18298_v2  ;;  %16448 = vmatprep.subr.bf16.mxu1 %v18300_v56  ;;  %v2246_v55 = vld [vmem:[%s21083_s17 + $0xe78] sm:$0xff]  ;;  %v18321_v2 = vcombine.low %v2233_v0, %v2237_v40  ;;  %v18323_v56 = vcombine.low %v2234_v41, %v2238_v30  ;;  %v18345_v41 = vcombine.low %v2257_v39, %v2261_v14 }
 0x74f   : > { %v22792_v57 = vpop.f32.mrb[0].mxu0  ;;  %v22796_v9 = vpop.f32.mrb[0].mxu1  ;;  %v18332_v60 = vcombine.high %v2242_v11, %v2246_v55  ;;  %v2266_v0 = vld [vmem:[%s21083_s17 + $0xf18] sm:$0xff] }
 0x750   : > { %v22798_v61 = vpop.f32.mrb[1].mxu0  ;;  %v22802_v15 = vpop.f32.mrb[1].mxu1  ;;  %v2270_v40 = vld [vmem:[%s21083_s17 + $0xf38] sm:$0xff] }
 0x751   : > { %v15000_v23 = vpop.f32.mrb[2].mxu0  ;;  %15793 = vmatpush1.bf16.msra.mxu0 %v18297_v4  ;;  %v15656_v19 = vpop.f32.mrb[2].mxu1  ;;  %16449 = vmatpush1.bf16.msra.mxu1 %v18299_v5  ;;  %v2250_v4 = vld [vmem:[%s21083_s17 + $0xe98] sm:$0xff] }
 0x752   : > { %v15001_v24 = vpop.f32.mrb[3].mxu0  ;;  %15794 = vmatprep.subr.bf16.mxu0 %v18306_v6  ;;  %v15657_v32 = vpop.f32.mrb[3].mxu1  ;;  %16450 = vmatprep.subr.bf16.mxu1 %v18308_v48  ;;  %v2254_v5 = vld [vmem:[%s21083_s17 + $0xeb8] sm:$0xff]  ;;  %v18329_v6 = vcombine.low %v2241_v27, %v2245_v58  ;;  %v18331_v48 = vcombine.low %v2242_v11, %v2246_v55  ;;  %v18337_v19 = vcombine.low %v2249_v62, %v2253_v3 }
 0x753   : > { %v18340_v52 = vcombine.high %v2250_v4, %v2254_v5  ;;  %v2258_v23 = vld [vmem:[%s21083_s17 + $0xed8] sm:$0xff]  ;;  %v18339_v24 = vcombine.low %v2250_v4, %v2254_v5  ;;  %v2265_v32 = vld [vmem:[%s21083_s17 + $0xf10] sm:$0xff]  ;;  %v18355_v55 = vcombine.low %v2266_v0, %v2270_v40 }
 0x754   : > { %v2274_v27 = vld [vmem:[%s21083_s17 + $0xf58] sm:$0xff] }
 0x755   : > { %15795 = vmatpush1.bf16.msra.mxu0 %v18305_v59  ;;  %16451 = vmatpush1.bf16.msra.mxu1 %v18307_v33  ;;  %v2262_v59 = vld [vmem:[%s21083_s17 + $0xef8] sm:$0xff]  ;;  %v18346_v33 = vcombine.high %v2257_v39, %v2261_v14 }
 0x756   : > { %15796 = vmatprep.subr.bf16.mxu0 %v18314_v21  ;;  %16452 = vmatprep.subr.bf16.mxu1 %v18316_v29  ;;  %v18348_v21 = vcombine.high %v2258_v23, %v2262_v59  ;;  %v2269_v29 = vld [vmem:[%s21083_s17 + $0xf30] sm:$0xff]  ;;  %v18347_v30 = vcombine.low %v2258_v23, %v2262_v59  ;;  %v2278_v58 = vld [vmem:[%s21083_s17 + $0xf78] sm:$0xff] }
 0x757   : > { %v18353_v11 = vcombine.low %v2265_v32, %v2269_v29  ;;  %v2282_v62 = vld [vmem:[%s21083_s17 + $0xf98] sm:$0xff]  ;;  %v18363_v5 = vcombine.low %v2274_v27, %v2278_v58 }
 0x758   : > { %v2286_v3 = vld [vmem:[%s21083_s17 + $0xfb8] sm:$0xff] }
 0x759   : > { %15797 = vmatpush1.bf16.msra.mxu0 %v18313_v44  ;;  %16453 = vmatpush1.bf16.msra.mxu1 %v18315_v35  ;;  %v18354_v44 = vcombine.high %v2265_v32, %v2269_v29  ;;  %v18356_v35 = vcombine.high %v2266_v0, %v2270_v40  ;;  %v2290_v39 = vld [vmem:[%s21083_s17 + $0xfd8] sm:$0xff]  ;;  %v18371_v59 = vcombine.low %v2282_v62, %v2286_v3 }
 0x75a   : > { %15798 = vmatprep.subr.bf16.mxu0 %v18322_v46  ;;  %16454 = vmatprep.subr.bf16.mxu1 %v18324_v37  ;;  %v2273_v46 = vld [vmem:[%s21083_s17 + $0xf50] sm:$0xff]  ;;  %v2294_v14 = vld [vmem:[%s21083_s17 + $0xff8] sm:$0xff] }
 0x75b   : > { %v2277_v37 = vld [vmem:[%s21083_s17 + $0xf70] sm:$0xff]  ;;  %v2298_v32 = vld [vmem:[%s21083_s17 + $0x1018] sm:$0xff]  ;;  %v18379_v40 = vcombine.low %v2290_v39, %v2294_v14 }
 0x75c   : > { %v18361_v4 = vcombine.low %v2273_v46, %v2277_v37  ;;  %v2302_v29 = vld [vmem:[%s21083_s17 + $0x1038] sm:$0xff] }
 0x75d   : > { %15799 = vmatpush1.bf16.msra.mxu0 %v18321_v2  ;;  %16455 = vmatpush1.bf16.msra.mxu1 %v18323_v56  ;;  %v18362_v2 = vcombine.high %v2273_v46, %v2277_v37  ;;  %v18364_v56 = vcombine.high %v2274_v27, %v2278_v58  ;;  %v2306_v46 = vld [vmem:[%s21083_s17 + $0x1058] sm:$0xff]  ;;  %v18387_v58 = vcombine.low %v2298_v32, %v2302_v29 }
 0x75e   : > { %15800 = vmatprep.subr.bf16.mxu0 %v18330_v47  ;;  %16456 = vmatprep.subr.bf16.mxu1 %v18332_v60  ;;  %v2281_v47 = vld [vmem:[%s21083_s17 + $0xf90] sm:$0xff]  ;;  %v2310_v37 = vld [vmem:[%s21083_s17 + $0x1078] sm:$0xff] }
 0x75f   : > { %v2285_v60 = vld [vmem:[%s21083_s17 + $0xfb0] sm:$0xff] }
 0x760   : > { %v18369_v23 = vcombine.low %v2281_v47, %v2285_v60 }
 0x761   : > { %15801 = vmatpush1.bf16.msra.mxu0 %v18329_v6  ;;  %16457 = vmatpush1.bf16.msra.mxu1 %v18331_v48  ;;  %v18370_v6 = vcombine.high %v2281_v47, %v2285_v60  ;;  %v18372_v48 = vcombine.high %v2282_v62, %v2286_v3  ;;  %v2314_v47 = vld [vmem:[%s21083_s17 + $0x1098] sm:$0xff]  ;;  %v18395_v3 = vcombine.low %v2306_v46, %v2310_v37 }
 0x762   : > { %15802 = vmatprep.subr.bf16.mxu0 %v18338_v8  ;;  %16458 = vmatprep.subr.bf16.mxu1 %v18340_v52  ;;  %v2289_v8 = vld [vmem:[%s21083_s17 + $0xfd0] sm:$0xff]  ;;  %v2318_v60 = vld [vmem:[%s21083_s17 + $0x10b8] sm:$0xff] }
 0x763   : > { %v2293_v52 = vld [vmem:[%s21083_s17 + $0xff0] sm:$0xff] }
 0x764   : > { %v18377_v0 = vcombine.low %v2289_v8, %v2293_v52 }
 0x765   : > { %15803 = vmatpush1.bf16.msra.mxu0 %v18337_v19  ;;  %16459 = vmatpush1.bf16.msra.mxu1 %v18339_v24  ;;  %v18378_v19 = vcombine.high %v2289_v8, %v2293_v52  ;;  %v18380_v24 = vcombine.high %v2290_v39, %v2294_v14  ;;  %v2322_v8 = vld [vmem:[%s21083_s17 + $0x10d8] sm:$0xff]  ;;  %v18403_v39 = vcombine.low %v2314_v47, %v2318_v60 }
 0x766   : > { %15804 = vmatprep.subr.bf16.mxu0 %v18346_v33  ;;  %16460 = vmatprep.subr.bf16.mxu1 %v18348_v21  ;;  %v2297_v33 = vld [vmem:[%s21083_s17 + $0x1010] sm:$0xff]  ;;  %v2326_v52 = vld [vmem:[%s21083_s17 + $0x10f8] sm:$0xff] }
 0x767   : > { %v2301_v21 = vld [vmem:[%s21083_s17 + $0x1030] sm:$0xff] }
 0x768   : > { %v18385_v27 = vcombine.low %v2297_v33, %v2301_v21 }
 0x769   : > { %15805 = vmatpush1.bf16.msra.mxu0 %v18345_v41  ;;  %16461 = vmatpush1.bf16.msra.mxu1 %v18347_v30  ;;  %v18386_v41 = vcombine.high %v2297_v33, %v2301_v21  ;;  %v18388_v30 = vcombine.high %v2298_v32, %v2302_v29  ;;  %v2334_v33 = vld [vmem:[%s21083_s17 + $0x1138] sm:$0xff] }
 0x76a   : > { %15806 = vmatprep.subr.bf16.mxu0 %v18354_v44  ;;  %16462 = vmatprep.subr.bf16.mxu1 %v18356_v35  ;;  %v2305_v44 = vld [vmem:[%s21083_s17 + $0x1050] sm:$0xff] }
 0x76b   : > { %v2309_v35 = vld [vmem:[%s21083_s17 + $0x1070] sm:$0xff] }
 0x76c   : > { %v18393_v62 = vcombine.low %v2305_v44, %v2309_v35 }
 0x76d   : > { %15807 = vmatpush1.bf16.msra.mxu0 %v18353_v11  ;;  %16463 = vmatpush1.bf16.msra.mxu1 %v18355_v55  ;;  %v18394_v11 = vcombine.high %v2305_v44, %v2309_v35  ;;  %v18396_v55 = vcombine.high %v2306_v46, %v2310_v37 }
 0x76e   : > { %15808 = vmatprep.subr.bf16.mxu0 %v18362_v2  ;;  %16464 = vmatprep.subr.bf16.mxu1 %v18364_v56  ;;  %v2313_v2 = vld [vmem:[%s21083_s17 + $0x1090] sm:$0xff] }
 0x76f   : > { %v2317_v56 = vld [vmem:[%s21083_s17 + $0x10b0] sm:$0xff] }
 0x771   : > { %15809 = vmatpush1.bf16.msra.mxu0 %v18361_v4  ;;  %16465 = vmatpush1.bf16.msra.mxu1 %v18363_v5  ;;  %v18402_v4 = vcombine.high %v2313_v2, %v2317_v56  ;;  %v18404_v5 = vcombine.high %v2314_v47, %v2318_v60 }
 0x772   : > { %15810 = vmatprep.subr.bf16.mxu0 %v18370_v6  ;;  %16466 = vmatprep.subr.bf16.mxu1 %v18372_v48  ;;  %v2321_v6 = vld [vmem:[%s21083_s17 + $0x10d0] sm:$0xff] }
 0x773   : > { %v2325_v48 = vld [vmem:[%s21083_s17 + $0x10f0] sm:$0xff] }
 0x774   : > { %v18410_v14 = vcombine.high %v2321_v6, %v2325_v48  ;;  %v18409_v21 = vcombine.low %v2321_v6, %v2325_v48 }
 0x775   : > { %15811 = vmatpush1.bf16.msra.mxu0 %v18369_v23  ;;  %16467 = vmatpush1.bf16.msra.mxu1 %v18371_v59  ;;  %v18412_v23 = vcombine.high %v2322_v8, %v2326_v52  ;;  %v2329_v59 = vld [vmem:[%s21083_s17 + $0x1110] sm:$0xff] }
 0x776   : > { %15812 = vmatprep.subr.bf16.mxu0 %v18378_v19  ;;  %16468 = vmatprep.subr.bf16.mxu1 %v18380_v24  ;;  %v2333_v19 = vld [vmem:[%s21083_s17 + $0x1130] sm:$0xff]  ;;  %v2330_v24 = vld [vmem:[%s21083_s17 + $0x1118] sm:$0xff] }
 0x777   : > { %v18418_v32 = vcombine.high %v2329_v59, %v2333_v19  ;;  %v18420_v29 = vcombine.high %v2330_v24, %v2334_v33  ;;  %v18417_v44 = vcombine.low %v2329_v59, %v2333_v19  ;;  %v18419_v35 = vcombine.low %v2330_v24, %v2334_v33 }
 0x779   : > { %15813 = vmatpush1.bf16.msra.mxu0 %v18377_v0  ;;  %16469 = vmatpush1.bf16.msra.mxu1 %v18379_v40  ;;  %v2337_v0 = vld [vmem:[%s21083_s17 + $0x1150] sm:$0xff] }
 0x77a   : > { %15823 = vmatprep.subr.bf16.mxu0 %v18386_v41  ;;  %16479 = vmatprep.subr.bf16.mxu1 %v18388_v30  ;;  %v2341_v40 = vld [vmem:[%s21083_s17 + $0x1170] sm:$0xff]  ;;  %v2338_v41 = vld [vmem:[%s21083_s17 + $0x1158] sm:$0xff] }
 0x77b   : > { %v2342_v30 = vld [vmem:[%s21083_s17 + $0x1178] sm:$0xff]  ;;  %v18426_v46 = vcombine.high %v2337_v0, %v2341_v40 }
 0x77c   : > { %15815 = vmatmul.mubr.bf16.vlgmr.msra.gmra.mrb[4].mxu0 %v21617_v45  ;;  %16471 = vmatmul.mubr.bf16.vlgmr.msra.gmra.mrb[4].mxu1 %v21617_v45  ;;  %v18401_v45 = vcombine.low %v2313_v2, %v2317_v56  ;;  %v18428_v37 = vcombine.high %v2338_v41, %v2342_v30  ;;  %v18425_v2 = vcombine.low %v2337_v0, %v2341_v40 }
 0x77d   : > { %15824 = vmatpush1.bf16.msra.mxu0 %v18385_v27  ;;  %16480 = vmatpush1.bf16.msra.mxu1 %v18387_v58  ;;  %v2345_v27 = vld [vmem:[%s21083_s17 + $0x1190] sm:$0xff]  ;;  %v18427_v56 = vcombine.low %v2338_v41, %v2342_v30 }
 0x77e   : > { %15825 = vmatprep.subr.bf16.mxu0 %v18394_v11  ;;  %16481 = vmatprep.subr.bf16.mxu1 %v18396_v55  ;;  %v2349_v58 = vld [vmem:[%s21083_s17 + $0x11b0] sm:$0xff]  ;;  %v2346_v11 = vld [vmem:[%s21083_s17 + $0x1198] sm:$0xff] }
 0x77f   : > { %15855 = vmatprep.mubr.bf16.mxu0 %v21624_v20  ;;  %16511 = vmatprep.mubr.bf16.mxu1 %v21624_v20  ;;  %v18411_v20 = vcombine.low %v2322_v8, %v2326_v52  ;;  %v2350_v55 = vld [vmem:[%s21083_s17 + $0x11b8] sm:$0xff]  ;;  %v18434_v47 = vcombine.high %v2345_v27, %v2349_v58  ;;  %v18433_v6 = vcombine.low %v2345_v27, %v2349_v58 }
 0x780   : > { %v18436_v60 = vcombine.high %v2346_v11, %v2350_v55  ;;  %v18435_v48 = vcombine.low %v2346_v11, %v2350_v55 }
 0x781   : > { %15826 = vmatpush1.bf16.msra.mxu0 %v18393_v62  ;;  %16482 = vmatpush1.bf16.msra.mxu1 %v18395_v3  ;;  %v2353_v62 = vld [vmem:[%s21083_s17 + $0x11d0] sm:$0xff] }
 0x782   : > { %15827 = vmatprep.subr.bf16.mxu0 %v18402_v4  ;;  %16483 = vmatprep.subr.bf16.mxu1 %v18404_v5  ;;  %v2357_v3 = vld [vmem:[%s21083_s17 + $0x11f0] sm:$0xff]  ;;  %v2354_v4 = vld [vmem:[%s21083_s17 + $0x11d8] sm:$0xff] }
 0x783   : > { %v2358_v5 = vld [vmem:[%s21083_s17 + $0x11f8] sm:$0xff]  ;;  %v18442_v8 = vcombine.high %v2353_v62, %v2357_v3  ;;  %v18441_v59 = vcombine.low %v2353_v62, %v2357_v3 }
 0x784   : > { %v18444_v52 = vcombine.high %v2354_v4, %v2358_v5  ;;  %v18443_v19 = vcombine.low %v2354_v4, %v2358_v5 }
 0x785   : > { %15828 = vmatpush1.bf16.msra.mxu0 %v18401_v45  ;;  %16484 = vmatpush1.bf16.msra.mxu1 %v18403_v39  ;;  %v2361_v45 = vld [vmem:[%s21083_s17 + $0x1210] sm:$0xff] }
 0x786   : > { %15829 = vmatprep.subr.bf16.mxu0 %v18410_v14  ;;  %16485 = vmatprep.subr.bf16.mxu1 %v18412_v23  ;;  %v2365_v39 = vld [vmem:[%s21083_s17 + $0x1230] sm:$0xff]  ;;  %v2362_v14 = vld [vmem:[%s21083_s17 + $0x1218] sm:$0xff] }
 0x787   : > { %v2366_v23 = vld [vmem:[%s21083_s17 + $0x1238] sm:$0xff]  ;;  %v18450_v24 = vcombine.high %v2361_v45, %v2365_v39  ;;  %v18449_v0 = vcombine.low %v2361_v45, %v2365_v39 }
 0x788   : > { %v18452_v33 = vcombine.high %v2362_v14, %v2366_v23  ;;  %v18451_v40 = vcombine.low %v2362_v14, %v2366_v23 }
 0x789   : > { %15830 = vmatpush1.bf16.msra.mxu0 %v18409_v21  ;;  %16486 = vmatpush1.bf16.msra.mxu1 %v18411_v20  ;;  %v2369_v21 = vld [vmem:[%s21083_s17 + $0x1250] sm:$0xff] }
 0x78a   : > { %15831 = vmatprep.subr.bf16.mxu0 %v18418_v32  ;;  %16487 = vmatprep.subr.bf16.mxu1 %v18420_v29  ;;  %v2373_v20 = vld [vmem:[%s21083_s17 + $0x1270] sm:$0xff]  ;;  %v2370_v32 = vld [vmem:[%s21083_s17 + $0x1258] sm:$0xff] }
 0x78b   : > { %v2374_v29 = vld [vmem:[%s21083_s17 + $0x1278] sm:$0xff]  ;;  %v18458_v41 = vcombine.high %v2369_v21, %v2373_v20  ;;  %v18457_v27 = vcombine.low %v2369_v21, %v2373_v20 }
 0x78c   : > { %v18460_v30 = vcombine.high %v2370_v32, %v2374_v29  ;;  %v18459_v58 = vcombine.low %v2370_v32, %v2374_v29 }
 0x78d   : > { %15832 = vmatpush1.bf16.msra.mxu0 %v18417_v44  ;;  %16488 = vmatpush1.bf16.msra.mxu1 %v18419_v35  ;;  %v2377_v44 = vld [vmem:[%s21083_s17 + $0x1290] sm:$0xff] }
 0x78e   : > { %15833 = vmatprep.subr.bf16.mxu0 %v18426_v46  ;;  %16489 = vmatprep.subr.bf16.mxu1 %v18428_v37  ;;  %v2381_v35 = vld [vmem:[%s21083_s17 + $0x12b0] sm:$0xff]  ;;  %v2378_v46 = vld [vmem:[%s21083_s17 + $0x1298] sm:$0xff] }
 0x78f   : > { %v2382_v37 = vld [vmem:[%s21083_s17 + $0x12b8] sm:$0xff]  ;;  %v18466_v11 = vcombine.high %v2377_v44, %v2381_v35  ;;  %v18465_v62 = vcombine.low %v2377_v44, %v2381_v35 }
 0x790   : > { %v18468_v55 = vcombine.high %v2378_v46, %v2382_v37  ;;  %v18467_v3 = vcombine.low %v2378_v46, %v2382_v37 }
 0x791   : > { %15834 = vmatpush1.bf16.msra.mxu0 %v18425_v2  ;;  %16490 = vmatpush1.bf16.msra.mxu1 %v18427_v56  ;;  %v2385_v2 = vld [vmem:[%s21083_s17 + $0x12d0] sm:$0xff] }
 0x792   : > { %15835 = vmatprep.subr.bf16.mxu0 %v18434_v47  ;;  %16491 = vmatprep.subr.bf16.mxu1 %v18436_v60  ;;  %v2389_v56 = vld [vmem:[%s21083_s17 + $0x12f0] sm:$0xff]  ;;  %v2386_v47 = vld [vmem:[%s21083_s17 + $0x12d8] sm:$0xff] }
 0x793   : > { %v2390_v60 = vld [vmem:[%s21083_s17 + $0x12f8] sm:$0xff]  ;;  %v18474_v4 = vcombine.high %v2385_v2, %v2389_v56  ;;  %v18473_v45 = vcombine.low %v2385_v2, %v2389_v56 }
 0x794   : > { %v18476_v5 = vcombine.high %v2386_v47, %v2390_v60  ;;  %v18475_v39 = vcombine.low %v2386_v47, %v2390_v60 }
 0x795   : > { %15836 = vmatpush1.bf16.msra.mxu0 %v18433_v6  ;;  %16492 = vmatpush1.bf16.msra.mxu1 %v18435_v48  ;;  %v2393_v6 = vld [vmem:[%s21083_s17 + $0x1310] sm:$0xff] }
 0x796   : > { %15837 = vmatprep.subr.bf16.mxu0 %v18442_v8  ;;  %16493 = vmatprep.subr.bf16.mxu1 %v18444_v52  ;;  %v2397_v48 = vld [vmem:[%s21083_s17 + $0x1330] sm:$0xff]  ;;  %v2394_v8 = vld [vmem:[%s21083_s17 + $0x1318] sm:$0xff] }
 0x797   : > { %v2398_v52 = vld [vmem:[%s21083_s17 + $0x1338] sm:$0xff]  ;;  %v18482_v14 = vcombine.high %v2393_v6, %v2397_v48  ;;  %v18481_v21 = vcombine.low %v2393_v6, %v2397_v48 }
 0x798   : > { %v18484_v23 = vcombine.high %v2394_v8, %v2398_v52  ;;  %v18483_v20 = vcombine.low %v2394_v8, %v2398_v52 }
 0x799   : > { %15838 = vmatpush1.bf16.msra.mxu0 %v18441_v59  ;;  %16494 = vmatpush1.bf16.msra.mxu1 %v18443_v19  ;;  %v2401_v59 = vld [vmem:[%s21083_s17 + $0x1350] sm:$0xff] }
 0x79a   : > { %15839 = vmatprep.subr.bf16.mxu0 %v18450_v24  ;;  %16495 = vmatprep.subr.bf16.mxu1 %v18452_v33  ;;  %v2405_v19 = vld [vmem:[%s21083_s17 + $0x1370] sm:$0xff]  ;;  %v2402_v24 = vld [vmem:[%s21083_s17 + $0x1358] sm:$0xff] }
 0x79b   : > { %v2406_v33 = vld [vmem:[%s21083_s17 + $0x1378] sm:$0xff]  ;;  %v18490_v32 = vcombine.high %v2401_v59, %v2405_v19  ;;  %v18489_v44 = vcombine.low %v2401_v59, %v2405_v19 }
 0x79c   : > { %v18492_v29 = vcombine.high %v2402_v24, %v2406_v33  ;;  %v18491_v35 = vcombine.low %v2402_v24, %v2406_v33 }
 0x79d   : > { %15840 = vmatpush1.bf16.msra.mxu0 %v18449_v0  ;;  %16496 = vmatpush1.bf16.msra.mxu1 %v18451_v40  ;;  %v2409_v0 = vld [vmem:[%s21083_s17 + $0x1390] sm:$0xff] }
 0x79e   : > { %15841 = vmatprep.subr.bf16.mxu0 %v18458_v41  ;;  %16497 = vmatprep.subr.bf16.mxu1 %v18460_v30  ;;  %v2413_v40 = vld [vmem:[%s21083_s17 + $0x13b0] sm:$0xff]  ;;  %v2410_v41 = vld [vmem:[%s21083_s17 + $0x1398] sm:$0xff] }
 0x79f   : > { %v2414_v30 = vld [vmem:[%s21083_s17 + $0x13b8] sm:$0xff]  ;;  %v18498_v46 = vcombine.high %v2409_v0, %v2413_v40  ;;  %v18497_v2 = vcombine.low %v2409_v0, %v2413_v40 }
 0x7a0   : > { %v18500_v37 = vcombine.high %v2410_v41, %v2414_v30  ;;  %v18499_v56 = vcombine.low %v2410_v41, %v2414_v30 }
 0x7a1   : > { %15842 = vmatpush1.bf16.msra.mxu0 %v18457_v27  ;;  %16498 = vmatpush1.bf16.msra.mxu1 %v18459_v58  ;;  %v2417_v27 = vld [vmem:[%s21083_s17 + $0x13d0] sm:$0xff] }
 0x7a2   : > { %15843 = vmatprep.subr.bf16.mxu0 %v18466_v11  ;;  %16499 = vmatprep.subr.bf16.mxu1 %v18468_v55  ;;  %v2421_v58 = vld [vmem:[%s21083_s17 + $0x13f0] sm:$0xff]  ;;  %v2418_v11 = vld [vmem:[%s21083_s17 + $0x13d8] sm:$0xff] }
 0x7a3   : > { %v2422_v55 = vld [vmem:[%s21083_s17 + $0x13f8] sm:$0xff]  ;;  %v18506_v47 = vcombine.high %v2417_v27, %v2421_v58  ;;  %v18505_v6 = vcombine.low %v2417_v27, %v2421_v58 }
 0x7a4   : > { %v18508_v60 = vcombine.high %v2418_v11, %v2422_v55  ;;  %v18507_v48 = vcombine.low %v2418_v11, %v2422_v55  ;;  %v2457_v55 = vld [vmem:[%s21083_s17 + $0x1510] sm:$0xff] }
 0x7a5   : > { %15844 = vmatpush1.bf16.msra.mxu0 %v18465_v62  ;;  %16500 = vmatpush1.bf16.msra.mxu1 %v18467_v3  ;;  %v2425_v62 = vld [vmem:[%s21083_s17 + $0x1410] sm:$0xff] }
 0x7a6   : > { %15845 = vmatprep.subr.bf16.mxu0 %v18474_v4  ;;  %16501 = vmatprep.subr.bf16.mxu1 %v18476_v5  ;;  %v2429_v3 = vld [vmem:[%s21083_s17 + $0x1430] sm:$0xff]  ;;  %v2426_v4 = vld [vmem:[%s21083_s17 + $0x1418] sm:$0xff] }
 0x7a7   : > { %v2430_v5 = vld [vmem:[%s21083_s17 + $0x1438] sm:$0xff]  ;;  %v18514_v8 = vcombine.high %v2425_v62, %v2429_v3  ;;  %v18513_v59 = vcombine.low %v2425_v62, %v2429_v3 }
 0x7a8   : > { %v18516_v52 = vcombine.high %v2426_v4, %v2430_v5  ;;  %v18515_v19 = vcombine.low %v2426_v4, %v2430_v5  ;;  %v2465_v4 = vld [vmem:[%s21083_s17 + $0x1550] sm:$0xff] }
 0x7a9   : > { %15846 = vmatpush1.bf16.msra.mxu0 %v18473_v45  ;;  %16502 = vmatpush1.bf16.msra.mxu1 %v18475_v39  ;;  %v2433_v45 = vld [vmem:[%s21083_s17 + $0x1450] sm:$0xff] }
 0x7aa   : > { %15847 = vmatprep.subr.bf16.mxu0 %v18482_v14  ;;  %16503 = vmatprep.subr.bf16.mxu1 %v18484_v23  ;;  %v2437_v39 = vld [vmem:[%s21083_s17 + $0x1470] sm:$0xff]  ;;  %v2434_v14 = vld [vmem:[%s21083_s17 + $0x1458] sm:$0xff] }
 0x7ab   : > { %v2438_v23 = vld [vmem:[%s21083_s17 + $0x1478] sm:$0xff]  ;;  %v18522_v24 = vcombine.high %v2433_v45, %v2437_v39  ;;  %v18521_v0 = vcombine.low %v2433_v45, %v2437_v39  ;;  %v2469_v5 = vld [vmem:[%s21083_s17 + $0x1570] sm:$0xff] }
 0x7ac   : > { %v18524_v33 = vcombine.high %v2434_v14, %v2438_v23  ;;  %v18523_v40 = vcombine.low %v2434_v14, %v2438_v23  ;;  %v18554_v45 = vcombine.high %v2465_v4, %v2469_v5  ;;  %v2473_v14 = vld [vmem:[%s21083_s17 + $0x1590] sm:$0xff] }
 0x7ad   : > { %15848 = vmatpush1.bf16.msra.mxu0 %v18481_v21  ;;  %16504 = vmatpush1.bf16.msra.mxu1 %v18483_v20  ;;  %v2441_v21 = vld [vmem:[%s21083_s17 + $0x1490] sm:$0xff] }
 0x7ae   : > { %15849 = vmatprep.subr.bf16.mxu0 %v18490_v32  ;;  %16505 = vmatprep.subr.bf16.mxu1 %v18492_v29  ;;  %v2445_v20 = vld [vmem:[%s21083_s17 + $0x14b0] sm:$0xff]  ;;  %v2442_v32 = vld [vmem:[%s21083_s17 + $0x1498] sm:$0xff] }
 0x7af   : > { %v2446_v29 = vld [vmem:[%s21083_s17 + $0x14b8] sm:$0xff]  ;;  %v18530_v41 = vcombine.high %v2441_v21, %v2445_v20  ;;  %v2477_v23 = vld [vmem:[%s21083_s17 + $0x15b0] sm:$0xff] }
 0x7b0   : > { %v18532_v30 = vcombine.high %v2442_v32, %v2446_v29  ;;  %v18531_v27 = vcombine.low %v2442_v32, %v2446_v29  ;;  %v2481_v32 = vld [vmem:[%s21083_s17 + $0x15d0] sm:$0xff] }
 0x7b1   : > { %15850 = vmatpush1.bf16.msra.mxu0 %v18489_v44  ;;  %16506 = vmatpush1.bf16.msra.mxu1 %v18491_v35  ;;  %v2449_v44 = vld [vmem:[%s21083_s17 + $0x14d0] sm:$0xff] }
 0x7b2   : > { %15851 = vmatprep.subr.bf16.mxu0 %v18498_v46  ;;  %16507 = vmatprep.subr.bf16.mxu1 %v18500_v37  ;;  %v2453_v35 = vld [vmem:[%s21083_s17 + $0x14f0] sm:$0xff]  ;;  %v2450_v46 = vld [vmem:[%s21083_s17 + $0x14d8] sm:$0xff] }
 0x7b3   : > { %v2454_v37 = vld [vmem:[%s21083_s17 + $0x14f8] sm:$0xff]  ;;  %v18538_v58 = vcombine.high %v2449_v44, %v2453_v35  ;;  %v2485_v29 = vld [vmem:[%s21083_s17 + $0x15f0] sm:$0xff] }
 0x7b4   : > { %v18540_v11 = vcombine.high %v2450_v46, %v2454_v37 }
 0x7b5   : > { %15852 = vmatpush1.bf16.msra.mxu0 %v18497_v2  ;;  %16508 = vmatpush1.bf16.msra.mxu1 %v18499_v56  ;;  %v2461_v2 = vld [vmem:[%s21083_s17 + $0x1530] sm:$0xff]  ;;  %v2458_v56 = vld [vmem:[%s21083_s17 + $0x1518] sm:$0xff] }
 0x7b6   : > { %15853 = vmatprep.subr.bf16.mxu0 %v18506_v47  ;;  %16509 = vmatprep.subr.bf16.mxu1 %v18508_v60  ;;  %v2462_v47 = vld [vmem:[%s21083_s17 + $0x1538] sm:$0xff]  ;;  %v18537_v60 = vcombine.low %v2449_v44, %v2453_v35  ;;  %v18546_v62 = vcombine.high %v2457_v55, %v2461_v2  ;;  %v18570_v44 = vcombine.high %v2481_v32, %v2485_v29 }
 0x7b7   : > { %v18548_v3 = vcombine.high %v2458_v56, %v2462_v47 }
 0x7b9   : > { %15854 = vmatpush1.bf16.msra.mxu0 %v18505_v6  ;;  %16510 = vmatpush1.bf16.msra.mxu1 %v18507_v48  ;;  %v2466_v6 = vld [vmem:[%s21083_s17 + $0x1558] sm:$0xff] }
 0x7ba   : > { %15864 = vmatprep.subr.bf16.mxu0 %v18514_v8  ;;  %16520 = vmatprep.subr.bf16.mxu1 %v18516_v52  ;;  %v2470_v48 = vld [vmem:[%s21083_s17 + $0x1578] sm:$0xff]  ;;  %v18545_v8 = vcombine.low %v2457_v55, %v2461_v2  ;;  %v18547_v52 = vcombine.low %v2458_v56, %v2462_v47  ;;  %v2497_v56 = vld [vmem:[%s21083_s17 + $0x1650] sm:$0xff] }
 0x7bb   : > { %v18556_v39 = vcombine.high %v2466_v6, %v2470_v48  ;;  %v2501_v47 = vld [vmem:[%s21083_s17 + $0x1670] sm:$0xff] }
 0x7bc   : > { %15856 = vmatmul.mubr.bf16.vlgmr.msra.gmra.mrb[4].mxu0 %v21692_v13  ;;  %16512 = vmatmul.mubr.bf16.vlgmr.msra.gmra.mrb[4].mxu1 %v21692_v13  ;;  %v18529_v13 = vcombine.low %v2441_v21, %v2445_v20  ;;  %v18562_v21 = vcombine.high %v2473_v14, %v2477_v23 }
 0x7bd   : > { %15865 = vmatpush1.bf16.msra.mxu0 %v18513_v59  ;;  %16521 = vmatpush1.bf16.msra.mxu1 %v18515_v19  ;;  %v2474_v59 = vld [vmem:[%s21083_s17 + $0x1598] sm:$0xff] }
 0x7be   : > { %15866 = vmatprep.subr.bf16.mxu0 %v18522_v24  ;;  %16522 = vmatprep.subr.bf16.mxu1 %v18524_v33  ;;  %v2478_v19 = vld [vmem:[%s21083_s17 + $0x15b8] sm:$0xff]  ;;  %v18553_v24 = vcombine.low %v2465_v4, %v2469_v5  ;;  %v18555_v33 = vcombine.low %v2466_v6, %v2470_v48  ;;  %v18586_v4 = vcombine.high %v2497_v56, %v2501_v47  ;;  %v2505_v6 = vld [vmem:[%s21083_s17 + $0x1690] sm:$0xff] }
 0x7bf   : > { %15896 = vmatprep.mubr.bf16.mxu0 %v21700_v25  ;;  %16552 = vmatprep.mubr.bf16.mxu1 %v21700_v25  ;;  %v18539_v25 = vcombine.low %v2450_v46, %v2454_v37  ;;  %v18564_v20 = vcombine.high %v2474_v59, %v2478_v19  ;;  %v2489_v46 = vld [vmem:[%s21083_s17 + $0x1610] sm:$0xff] }
 0x7c0   : > { %v2493_v37 = vld [vmem:[%s21083_s17 + $0x1630] sm:$0xff] }
 0x7c1   : > { %15867 = vmatpush1.bf16.msra.mxu0 %v18521_v0  ;;  %16523 = vmatpush1.bf16.msra.mxu1 %v18523_v40  ;;  %v2482_v0 = vld [vmem:[%s21083_s17 + $0x15d8] sm:$0xff]  ;;  %v18578_v55 = vcombine.high %v2489_v46, %v2493_v37  ;;  %v2509_v48 = vld [vmem:[%s21083_s17 + $0x16b0] sm:$0xff] }
 0x7c2   : > { %15868 = vmatprep.subr.bf16.mxu0 %v18530_v41  ;;  %16524 = vmatprep.subr.bf16.mxu1 %v18532_v30  ;;  %v2486_v40 = vld [vmem:[%s21083_s17 + $0x15f8] sm:$0xff]  ;;  %v18561_v41 = vcombine.low %v2473_v14, %v2477_v23  ;;  %v18563_v30 = vcombine.low %v2474_v59, %v2478_v19  ;;  %v18594_v14 = vcombine.high %v2505_v6, %v2509_v48  ;;  %v2513_v59 = vld [vmem:[%s21083_s17 + $0x16d0] sm:$0xff] }
 0x7c3   : > { %v18572_v35 = vcombine.high %v2482_v0, %v2486_v40  ;;  %v2517_v19 = vld [vmem:[%s21083_s17 + $0x16f0] sm:$0xff] }
 0x7c5   : > { %15869 = vmatpush1.bf16.msra.mxu0 %v18529_v13  ;;  %16525 = vmatpush1.bf16.msra.mxu1 %v18531_v27  ;;  %v2490_v13 = vld [vmem:[%s21083_s17 + $0x1618] sm:$0xff] }
 0x7c6   : > { %15870 = vmatprep.subr.bf16.mxu0 %v18538_v58  ;;  %16526 = vmatprep.subr.bf16.mxu1 %v18540_v11  ;;  %v2494_v27 = vld [vmem:[%s21083_s17 + $0x1638] sm:$0xff]  ;;  %v18569_v58 = vcombine.low %v2481_v32, %v2485_v29  ;;  %v18571_v11 = vcombine.low %v2482_v0, %v2486_v40  ;;  %v18602_v32 = vcombine.high %v2513_v59, %v2517_v19  ;;  %v2521_v0 = vld [vmem:[%s21083_s17 + $0x1710] sm:$0xff] }
 0x7c7   : > { %v18580_v2 = vcombine.high %v2490_v13, %v2494_v27  ;;  %v2525_v40 = vld [vmem:[%s21083_s17 + $0x1730] sm:$0xff] }
 0x7c9   : > { %15871 = vmatpush1.bf16.msra.mxu0 %v18537_v60  ;;  %16527 = vmatpush1.bf16.msra.mxu1 %v18539_v25  ;;  %v2498_v60 = vld [vmem:[%s21083_s17 + $0x1658] sm:$0xff] }
 0x7ca   : > { %15872 = vmatprep.subr.bf16.mxu0 %v18546_v62  ;;  %16528 = vmatprep.subr.bf16.mxu1 %v18548_v3  ;;  %v2502_v25 = vld [vmem:[%s21083_s17 + $0x1678] sm:$0xff]  ;;  %v18577_v62 = vcombine.low %v2489_v46, %v2493_v37  ;;  %v18579_v3 = vcombine.low %v2490_v13, %v2494_v27  ;;  %v18610_v46 = vcombine.high %v2521_v0, %v2525_v40  ;;  %v2529_v13 = vld [vmem:[%s21083_s17 + $0x1750] sm:$0xff] }
 0x7cb   : > { %v18588_v5 = vcombine.high %v2498_v60, %v2502_v25  ;;  %v2533_v27 = vld [vmem:[%s21083_s17 + $0x1770] sm:$0xff] }
 0x7cd   : > { %15873 = vmatpush1.bf16.msra.mxu0 %v18545_v8  ;;  %16529 = vmatpush1.bf16.msra.mxu1 %v18547_v52  ;;  %v2506_v8 = vld [vmem:[%s21083_s17 + $0x1698] sm:$0xff] }
 0x7ce   : > { %15874 = vmatprep.subr.bf16.mxu0 %v18554_v45  ;;  %16530 = vmatprep.subr.bf16.mxu1 %v18556_v39  ;;  %v2510_v52 = vld [vmem:[%s21083_s17 + $0x16b8] sm:$0xff]  ;;  %v18585_v45 = vcombine.low %v2497_v56, %v2501_v47  ;;  %v18587_v39 = vcombine.low %v2498_v60, %v2502_v25  ;;  %v18618_v56 = vcombine.high %v2529_v13, %v2533_v27  ;;  %v2537_v60 = vld [vmem:[%s21083_s17 + $0x1790] sm:$0xff] }
 0x7cf   : > { %v18596_v23 = vcombine.high %v2506_v8, %v2510_v52  ;;  %v2541_v25 = vld [vmem:[%s21083_s17 + $0x17b0] sm:$0xff] }
 0x7d1   : > { %15875 = vmatpush1.bf16.msra.mxu0 %v18553_v24  ;;  %16531 = vmatpush1.bf16.msra.mxu1 %v18555_v33  ;;  %v2514_v24 = vld [vmem:[%s21083_s17 + $0x16d8] sm:$0xff] }
 0x7d2   : > { %15876 = vmatprep.subr.bf16.mxu0 %v18562_v21  ;;  %16532 = vmatprep.subr.bf16.mxu1 %v18564_v20  ;;  %v2518_v33 = vld [vmem:[%s21083_s17 + $0x16f8] sm:$0xff]  ;;  %v18593_v21 = vcombine.low %v2505_v6, %v2509_v48  ;;  %v18595_v20 = vcombine.low %v2506_v8, %v2510_v52  ;;  %v18626_v6 = vcombine.high %v2537_v60, %v2541_v25  ;;  %v2545_v8 = vld [vmem:[%s21083_s17 + $0x17d0] sm:$0xff] }
 0x7d3   : > { %v18604_v29 = vcombine.high %v2514_v24, %v2518_v33  ;;  %v2549_v52 = vld [vmem:[%s21083_s17 + $0x17f0] sm:$0xff] }
 0x7d5   : > { %15877 = vmatpush1.bf16.msra.mxu0 %v18561_v41  ;;  %16533 = vmatpush1.bf16.msra.mxu1 %v18563_v30  ;;  %v2522_v41 = vld [vmem:[%s21083_s17 + $0x1718] sm:$0xff] }
 0x7d6   : > { %15878 = vmatprep.subr.bf16.mxu0 %v18570_v44  ;;  %16534 = vmatprep.subr.bf16.mxu1 %v18572_v35  ;;  %v2526_v30 = vld [vmem:[%s21083_s17 + $0x1738] sm:$0xff]  ;;  %v18601_v44 = vcombine.low %v2513_v59, %v2517_v19  ;;  %v18603_v35 = vcombine.low %v2514_v24, %v2518_v33  ;;  %v18634_v59 = vcombine.high %v2545_v8, %v2549_v52  ;;  %v2553_v24 = vld [vmem:[%s21083_s17 + $0x1810] sm:$0xff] }
 0x7d7   : > { %v18612_v37 = vcombine.high %v2522_v41, %v2526_v30  ;;  %v2557_v33 = vld [vmem:[%s21083_s17 + $0x1830] sm:$0xff] }
 0x7d9   : > { %15879 = vmatpush1.bf16.msra.mxu0 %v18569_v58  ;;  %16535 = vmatpush1.bf16.msra.mxu1 %v18571_v11  ;;  %v2530_v58 = vld [vmem:[%s21083_s17 + $0x1758] sm:$0xff] }
 0x7da   : > { %15880 = vmatprep.subr.bf16.mxu0 %v18578_v55  ;;  %16536 = vmatprep.subr.bf16.mxu1 %v18580_v2  ;;  %v2534_v11 = vld [vmem:[%s21083_s17 + $0x1778] sm:$0xff]  ;;  %v18609_v55 = vcombine.low %v2521_v0, %v2525_v40  ;;  %v18611_v2 = vcombine.low %v2522_v41, %v2526_v30  ;;  %v18642_v0 = vcombine.high %v2553_v24, %v2557_v33  ;;  %v2561_v41 = vld [vmem:[%s21083_s17 + $0x1850] sm:$0xff] }
 0x7db   : > { %v18620_v47 = vcombine.high %v2530_v58, %v2534_v11  ;;  %v2565_v30 = vld [vmem:[%s21083_s17 + $0x1870] sm:$0xff] }
 0x7dd   : > { %15881 = vmatpush1.bf16.msra.mxu0 %v18577_v62  ;;  %16537 = vmatpush1.bf16.msra.mxu1 %v18579_v3  ;;  %v2538_v62 = vld [vmem:[%s21083_s17 + $0x1798] sm:$0xff] }
 0x7de   : > { %15882 = vmatprep.subr.bf16.mxu0 %v18586_v4  ;;  %16538 = vmatprep.subr.bf16.mxu1 %v18588_v5  ;;  %v2542_v3 = vld [vmem:[%s21083_s17 + $0x17b8] sm:$0xff]  ;;  %v18617_v4 = vcombine.low %v2529_v13, %v2533_v27  ;;  %v18619_v5 = vcombine.low %v2530_v58, %v2534_v11  ;;  %v18650_v13 = vcombine.high %v2561_v41, %v2565_v30  ;;  %v2569_v58 = vld [vmem:[%s21083_s17 + $0x1890] sm:$0xff] }
 0x7df   : > { %v18628_v48 = vcombine.high %v2538_v62, %v2542_v3  ;;  %v2573_v11 = vld [vmem:[%s21083_s17 + $0x18b0] sm:$0xff] }
 0x7e1   : > { %15883 = vmatpush1.bf16.msra.mxu0 %v18585_v45  ;;  %16539 = vmatpush1.bf16.msra.mxu1 %v18587_v39  ;;  %v2546_v45 = vld [vmem:[%s21083_s17 + $0x17d8] sm:$0xff] }
 0x7e2   : > { %15884 = vmatprep.subr.bf16.mxu0 %v18594_v14  ;;  %16540 = vmatprep.subr.bf16.mxu1 %v18596_v23  ;;  %v2550_v39 = vld [vmem:[%s21083_s17 + $0x17f8] sm:$0xff]  ;;  %v18625_v14 = vcombine.low %v2537_v60, %v2541_v25  ;;  %v18627_v23 = vcombine.low %v2538_v62, %v2542_v3  ;;  %v18658_v60 = vcombine.high %v2569_v58, %v2573_v11  ;;  %v2577_v62 = vld [vmem:[%s21083_s17 + $0x18d0] sm:$0xff] }
 0x7e3   : > { %v18636_v19 = vcombine.high %v2546_v45, %v2550_v39  ;;  %v2581_v3 = vld [vmem:[%s21083_s17 + $0x18f0] sm:$0xff] }
 0x7e5   : > { %15885 = vmatpush1.bf16.msra.mxu0 %v18593_v21  ;;  %16541 = vmatpush1.bf16.msra.mxu1 %v18595_v20  ;;  %v2554_v21 = vld [vmem:[%s21083_s17 + $0x1818] sm:$0xff] }
 0x7e6   : > { %15886 = vmatprep.subr.bf16.mxu0 %v18602_v32  ;;  %16542 = vmatprep.subr.bf16.mxu1 %v18604_v29  ;;  %v2558_v20 = vld [vmem:[%s21083_s17 + $0x1838] sm:$0xff]  ;;  %v18633_v32 = vcombine.low %v2545_v8, %v2549_v52  ;;  %v18635_v29 = vcombine.low %v2546_v45, %v2550_v39  ;;  %v2585_v52 = vld [vmem:[%s21083_s17 + $0x1910] sm:$0xff] }
 0x7e7   : > { %v18644_v40 = vcombine.high %v2554_v21, %v2558_v20  ;;  %v2589_v45 = vld [vmem:[%s21083_s17 + $0x1930] sm:$0xff]  ;;  %v2586_v39 = vld [vmem:[%s21083_s17 + $0x1918] sm:$0xff] }
 0x7e9   : > { %15887 = vmatpush1.bf16.msra.mxu0 %v18601_v44  ;;  %16543 = vmatpush1.bf16.msra.mxu1 %v18603_v35  ;;  %v2562_v44 = vld [vmem:[%s21083_s17 + $0x1858] sm:$0xff] }
 0x7ea   : > { %15888 = vmatprep.subr.bf16.mxu0 %v18610_v46  ;;  %16544 = vmatprep.subr.bf16.mxu1 %v18612_v37  ;;  %v2566_v35 = vld [vmem:[%s21083_s17 + $0x1878] sm:$0xff]  ;;  %v18641_v46 = vcombine.low %v2553_v24, %v2557_v33  ;;  %v18643_v37 = vcombine.low %v2554_v21, %v2558_v20  ;;  %v2593_v24 = vld [vmem:[%s21083_s17 + $0x1950] sm:$0xff] }
 0x7eb   : > { %v18652_v27 = vcombine.high %v2562_v44, %v2566_v35  ;;  %v2597_v33 = vld [vmem:[%s21083_s17 + $0x1970] sm:$0xff]  ;;  %v2594_v21 = vld [vmem:[%s21083_s17 + $0x1958] sm:$0xff] }
 0x7ec   : > { %v2598_v20 = vld [vmem:[%s21083_s17 + $0x1978] sm:$0xff] }
 0x7ed   : > { %15889 = vmatpush1.bf16.msra.mxu0 %v18609_v55  ;;  %16545 = vmatpush1.bf16.msra.mxu1 %v18611_v2  ;;  %v2570_v55 = vld [vmem:[%s21083_s17 + $0x1898] sm:$0xff] }
 0x7ee   : > { %15890 = vmatprep.subr.bf16.mxu0 %v18618_v56  ;;  %16546 = vmatprep.subr.bf16.mxu1 %v18620_v47  ;;  %v2574_v2 = vld [vmem:[%s21083_s17 + $0x18b8] sm:$0xff]  ;;  %v18649_v56 = vcombine.low %v2561_v41, %v2565_v30  ;;  %v18651_v47 = vcombine.low %v2562_v44, %v2566_v35  ;;  %v2601_v41 = vld [vmem:[%s21083_s17 + $0x1990] sm:$0xff] }
 0x7ef   : > { %v18660_v25 = vcombine.high %v2570_v55, %v2574_v2  ;;  %v2605_v30 = vld [vmem:[%s21083_s17 + $0x19b0] sm:$0xff]  ;;  %v2602_v44 = vld [vmem:[%s21083_s17 + $0x1998] sm:$0xff] }
 0x7f0   : > { %v2606_v35 = vld [vmem:[%s21083_s17 + $0x19b8] sm:$0xff] }
 0x7f1   : > { %15891 = vmatpush1.bf16.msra.mxu0 %v18617_v4  ;;  %16547 = vmatpush1.bf16.msra.mxu1 %v18619_v5  ;;  %v2578_v4 = vld [vmem:[%s21083_s17 + $0x18d8] sm:$0xff] }
 0x7f2   : > { %15892 = vmatprep.subr.bf16.mxu0 %v18626_v6  ;;  %16548 = vmatprep.subr.bf16.mxu1 %v18628_v48  ;;  %v2582_v5 = vld [vmem:[%s21083_s17 + $0x18f8] sm:$0xff]  ;;  %v18659_v6 = vcombine.low %v2570_v55, %v2574_v2  ;;  %v18666_v48 = vcombine.high %v2577_v62, %v2581_v3 }
 0x7f3   : > { %v18668_v8 = vcombine.high %v2578_v4, %v2582_v5  ;;  %v2610_v55 = vld [vmem:[%s21083_s17 + $0x19d8] sm:$0xff] }
 0x7f4   : > { %v2614_v2 = vld [vmem:[%s21083_s17 + $0x19f8] sm:$0xff] }
 0x7f5   : > { %15893 = vmatpush1.bf16.msra.mxu0 %v18625_v14  ;;  %16549 = vmatpush1.bf16.msra.mxu1 %v18627_v23  ;;  %v2590_v14 = vld [vmem:[%s21083_s17 + $0x1938] sm:$0xff]  ;;  %v18665_v23 = vcombine.low %v2577_v62, %v2581_v3  ;;  %v2617_v62 = vld [vmem:[%s21083_s17 + $0x1a10] sm:$0xff] }
 0x7f6   : > { %15894 = vmatprep.subr.bf16.mxu0 %v18634_v59  ;;  %16550 = vmatprep.subr.bf16.mxu1 %v18636_v19  ;;  %v18674_v59 = vcombine.high %v2585_v52, %v2589_v45  ;;  %v18676_v19 = vcombine.high %v2586_v39, %v2590_v14  ;;  %v2621_v3 = vld [vmem:[%s21083_s17 + $0x1a30] sm:$0xff] }
 0x7f9   : > { %15895 = vmatpush1.bf16.msra.mxu0 %v18633_v32  ;;  %16551 = vmatpush1.bf16.msra.mxu1 %v18635_v29  ;;  %v18673_v32 = vcombine.low %v2585_v52, %v2589_v45  ;;  %v18675_v29 = vcombine.low %v2586_v39, %v2590_v14  ;;  %v2625_v52 = vld [vmem:[%s21083_s17 + $0x1a50] sm:$0xff]  ;;  %v2626_v39 = vld [vmem:[%s21083_s17 + $0x1a58] sm:$0xff] }
 0x7fa   : > { %15905 = vmatprep.subr.bf16.mxu0 %v18642_v0  ;;  %16561 = vmatprep.subr.bf16.mxu1 %v18644_v40  ;;  %v18682_v0 = vcombine.high %v2593_v24, %v2597_v33  ;;  %v18684_v40 = vcombine.high %v2594_v21, %v2598_v20  ;;  %v2629_v45 = vld [vmem:[%s21083_s17 + $0x1a70] sm:$0xff]  ;;  %v2630_v14 = vld [vmem:[%s21083_s17 + $0x1a78] sm:$0xff] }
 0x7fc   : > { %15897 = vmatmul.mubr.bf16.vlgmr.msra.gmra.mrb[4].mxu0 %v21775_v50  ;;  %16553 = vmatmul.mubr.bf16.vlgmr.msra.gmra.mrb[4].mxu1 %v21775_v50  ;;  %v18657_v50 = vcombine.low %v2569_v58, %v2573_v11  ;;  %v2609_v58 = vld [vmem:[%s21083_s17 + $0x19d0] sm:$0xff] }
 0x7fd   : > { %15906 = vmatpush1.bf16.msra.mxu0 %v18641_v46  ;;  %16562 = vmatpush1.bf16.msra.mxu1 %v18643_v37  ;;  %v18681_v46 = vcombine.low %v2593_v24, %v2597_v33  ;;  %v18683_v37 = vcombine.low %v2594_v21, %v2598_v20  ;;  %v2613_v11 = vld [vmem:[%s21083_s17 + $0x19f0] sm:$0xff]  ;;  %v2634_v21 = vld [vmem:[%s21083_s17 + $0x1a98] sm:$0xff] }
 0x7fe   : > { %15907 = vmatprep.subr.bf16.mxu0 %v18650_v13  ;;  %16563 = vmatprep.subr.bf16.mxu1 %v18652_v27  ;;  %v18690_v13 = vcombine.high %v2601_v41, %v2605_v30  ;;  %v18692_v27 = vcombine.high %v2602_v44, %v2606_v35  ;;  %v2633_v24 = vld [vmem:[%s21083_s17 + $0x1a90] sm:$0xff]  ;;  %v2638_v20 = vld [vmem:[%s21083_s17 + $0x1ab8] sm:$0xff] }
 0x7ff   : > { %15937 = vmatprep.mubr.bf16.mxu0 %v21782_v1  ;;  %16593 = vmatprep.mubr.bf16.mxu1 %v21782_v1  ;;  %v18667_v1 = vcombine.low %v2578_v4, %v2582_v5  ;;  %v2618_v4 = vld [vmem:[%s21083_s17 + $0x1a18] sm:$0xff]  ;;  %v2637_v33 = vld [vmem:[%s21083_s17 + $0x1ab0] sm:$0xff] }
 0x800   : > { %v2622_v5 = vld [vmem:[%s21083_s17 + $0x1a38] sm:$0xff] }
 0x801   : > { %15908 = vmatpush1.bf16.msra.mxu0 %v18649_v56  ;;  %16564 = vmatpush1.bf16.msra.mxu1 %v18651_v47  ;;  %v18689_v56 = vcombine.low %v2601_v41, %v2605_v30  ;;  %v18691_v47 = vcombine.low %v2602_v44, %v2606_v35  ;;  %v2641_v41 = vld [vmem:[%s21083_s17 + $0x1ad0] sm:$0xff]  ;;  %v2642_v44 = vld [vmem:[%s21083_s17 + $0x1ad8] sm:$0xff] }
 0x802   : > { %15909 = vmatprep.subr.bf16.mxu0 %v18658_v60  ;;  %16565 = vmatprep.subr.bf16.mxu1 %v18660_v25  ;;  %v18698_v60 = vcombine.high %v2609_v58, %v2613_v11  ;;  %v18700_v25 = vcombine.high %v2610_v55, %v2614_v2  ;;  %v2645_v30 = vld [vmem:[%s21083_s17 + $0x1af0] sm:$0xff]  ;;  %v2646_v35 = vld [vmem:[%s21083_s17 + $0x1af8] sm:$0xff] }
 0x805   : > { %15910 = vmatpush1.bf16.msra.mxu0 %v18657_v50  ;;  %16566 = vmatpush1.bf16.msra.mxu1 %v18659_v6  ;;  %v18697_v50 = vcombine.low %v2609_v58, %v2613_v11  ;;  %v18699_v6 = vcombine.low %v2610_v55, %v2614_v2  ;;  %v2649_v58 = vld [vmem:[%s21083_s17 + $0x1b10] sm:$0xff]  ;;  %v2650_v55 = vld [vmem:[%s21083_s17 + $0x1b18] sm:$0xff] }
 0x806   : > { %15911 = vmatprep.subr.bf16.mxu0 %v18666_v48  ;;  %16567 = vmatprep.subr.bf16.mxu1 %v18668_v8  ;;  %v18706_v48 = vcombine.high %v2617_v62, %v2621_v3  ;;  %v18708_v8 = vcombine.high %v2618_v4, %v2622_v5  ;;  %v2653_v11 = vld [vmem:[%s21083_s17 + $0x1b30] sm:$0xff]  ;;  %v2654_v2 = vld [vmem:[%s21083_s17 + $0x1b38] sm:$0xff] }
 0x809   : > { %15912 = vmatpush1.bf16.msra.mxu0 %v18665_v23  ;;  %16568 = vmatpush1.bf16.msra.mxu1 %v18667_v1  ;;  %v18705_v23 = vcombine.low %v2617_v62, %v2621_v3  ;;  %v18707_v1 = vcombine.low %v2618_v4, %v2622_v5  ;;  %v2657_v62 = vld [vmem:[%s21083_s17 + $0x1b50] sm:$0xff]  ;;  %v2658_v4 = vld [vmem:[%s21083_s17 + $0x1b58] sm:$0xff] }
 0x80a   : > { %15913 = vmatprep.subr.bf16.mxu0 %v18674_v59  ;;  %16569 = vmatprep.subr.bf16.mxu1 %v18676_v19  ;;  %v18714_v59 = vcombine.high %v2625_v52, %v2629_v45  ;;  %v18716_v19 = vcombine.high %v2626_v39, %v2630_v14  ;;  %v2661_v3 = vld [vmem:[%s21083_s17 + $0x1b70] sm:$0xff]  ;;  %v2662_v5 = vld [vmem:[%s21083_s17 + $0x1b78] sm:$0xff] }
 0x80d   : > { %15914 = vmatpush1.bf16.msra.mxu0 %v18673_v32  ;;  %16570 = vmatpush1.bf16.msra.mxu1 %v18675_v29  ;;  %v18713_v32 = vcombine.low %v2625_v52, %v2629_v45  ;;  %v18715_v29 = vcombine.low %v2626_v39, %v2630_v14  ;;  %v2665_v52 = vld [vmem:[%s21083_s17 + $0x1b90] sm:$0xff]  ;;  %v2666_v39 = vld [vmem:[%s21083_s17 + $0x1b98] sm:$0xff] }
 0x80e   : > { %15915 = vmatprep.subr.bf16.mxu0 %v18682_v0  ;;  %16571 = vmatprep.subr.bf16.mxu1 %v18684_v40  ;;  %v18722_v0 = vcombine.high %v2633_v24, %v2637_v33  ;;  %v18724_v40 = vcombine.high %v2634_v21, %v2638_v20  ;;  %v2669_v45 = vld [vmem:[%s21083_s17 + $0x1bb0] sm:$0xff]  ;;  %v2670_v14 = vld [vmem:[%s21083_s17 + $0x1bb8] sm:$0xff] }
 0x811   : > { %15916 = vmatpush1.bf16.msra.mxu0 %v18681_v46  ;;  %16572 = vmatpush1.bf16.msra.mxu1 %v18683_v37  ;;  %v18721_v46 = vcombine.low %v2633_v24, %v2637_v33  ;;  %v18723_v37 = vcombine.low %v2634_v21, %v2638_v20  ;;  %v2673_v24 = vld [vmem:[%s21083_s17 + $0x1bd0] sm:$0xff]  ;;  %v2674_v21 = vld [vmem:[%s21083_s17 + $0x1bd8] sm:$0xff] }
 0x812   : > { %15917 = vmatprep.subr.bf16.mxu0 %v18690_v13  ;;  %16573 = vmatprep.subr.bf16.mxu1 %v18692_v27  ;;  %v18730_v13 = vcombine.high %v2641_v41, %v2645_v30  ;;  %v18732_v27 = vcombine.high %v2642_v44, %v2646_v35  ;;  %v2677_v33 = vld [vmem:[%s21083_s17 + $0x1bf0] sm:$0xff]  ;;  %v2678_v20 = vld [vmem:[%s21083_s17 + $0x1bf8] sm:$0xff] }
 0x815   : > { %15918 = vmatpush1.bf16.msra.mxu0 %v18689_v56  ;;  %16574 = vmatpush1.bf16.msra.mxu1 %v18691_v47  ;;  %v18729_v56 = vcombine.low %v2641_v41, %v2645_v30  ;;  %v18731_v47 = vcombine.low %v2642_v44, %v2646_v35  ;;  %v2681_v41 = vld [vmem:[%s21083_s17 + $0x1c10] sm:$0xff]  ;;  %v2682_v44 = vld [vmem:[%s21083_s17 + $0x1c18] sm:$0xff] }
 0x816   : > { %15919 = vmatprep.subr.bf16.mxu0 %v18698_v60  ;;  %16575 = vmatprep.subr.bf16.mxu1 %v18700_v25  ;;  %v18738_v60 = vcombine.high %v2649_v58, %v2653_v11  ;;  %v18740_v25 = vcombine.high %v2650_v55, %v2654_v2  ;;  %v2685_v30 = vld [vmem:[%s21083_s17 + $0x1c30] sm:$0xff]  ;;  %v2686_v35 = vld [vmem:[%s21083_s17 + $0x1c38] sm:$0xff] }
 0x819   : > { %15920 = vmatpush1.bf16.msra.mxu0 %v18697_v50  ;;  %16576 = vmatpush1.bf16.msra.mxu1 %v18699_v6  ;;  %v18737_v50 = vcombine.low %v2649_v58, %v2653_v11  ;;  %v18739_v6 = vcombine.low %v2650_v55, %v2654_v2  ;;  %v2689_v58 = vld [vmem:[%s21083_s17 + $0x1c50] sm:$0xff]  ;;  %v2690_v55 = vld [vmem:[%s21083_s17 + $0x1c58] sm:$0xff] }
 0x81a   : > { %15921 = vmatprep.subr.bf16.mxu0 %v18706_v48  ;;  %16577 = vmatprep.subr.bf16.mxu1 %v18708_v8  ;;  %v18746_v48 = vcombine.high %v2657_v62, %v2661_v3  ;;  %v18748_v8 = vcombine.high %v2658_v4, %v2662_v5  ;;  %v2693_v11 = vld [vmem:[%s21083_s17 + $0x1c70] sm:$0xff]  ;;  %v2694_v2 = vld [vmem:[%s21083_s17 + $0x1c78] sm:$0xff] }
 0x81d   : > { %15922 = vmatpush1.bf16.msra.mxu0 %v18705_v23  ;;  %16578 = vmatpush1.bf16.msra.mxu1 %v18707_v1  ;;  %v18745_v23 = vcombine.low %v2657_v62, %v2661_v3  ;;  %v18747_v1 = vcombine.low %v2658_v4, %v2662_v5  ;;  %v2697_v62 = vld [vmem:[%s21083_s17 + $0x1c90] sm:$0xff]  ;;  %v2698_v4 = vld [vmem:[%s21083_s17 + $0x1c98] sm:$0xff] }
 0x81e   : > { %15923 = vmatprep.subr.bf16.mxu0 %v18714_v59  ;;  %16579 = vmatprep.subr.bf16.mxu1 %v18716_v19  ;;  %v18754_v59 = vcombine.high %v2665_v52, %v2669_v45  ;;  %v18756_v19 = vcombine.high %v2666_v39, %v2670_v14  ;;  %v2701_v3 = vld [vmem:[%s21083_s17 + $0x1cb0] sm:$0xff]  ;;  %v2702_v5 = vld [vmem:[%s21083_s17 + $0x1cb8] sm:$0xff] }
 0x821   : > { %15924 = vmatpush1.bf16.msra.mxu0 %v18713_v32  ;;  %16580 = vmatpush1.bf16.msra.mxu1 %v18715_v29  ;;  %v18753_v32 = vcombine.low %v2665_v52, %v2669_v45  ;;  %v18755_v29 = vcombine.low %v2666_v39, %v2670_v14  ;;  %v2705_v52 = vld [vmem:[%s21083_s17 + $0x1cd0] sm:$0xff]  ;;  %v2706_v39 = vld [vmem:[%s21083_s17 + $0x1cd8] sm:$0xff] }
 0x822   : > { %15925 = vmatprep.subr.bf16.mxu0 %v18722_v0  ;;  %16581 = vmatprep.subr.bf16.mxu1 %v18724_v40  ;;  %v18762_v0 = vcombine.high %v2673_v24, %v2677_v33  ;;  %v18764_v40 = vcombine.high %v2674_v21, %v2678_v20  ;;  %v2709_v45 = vld [vmem:[%s21083_s17 + $0x1cf0] sm:$0xff]  ;;  %v2710_v14 = vld [vmem:[%s21083_s17 + $0x1cf8] sm:$0xff] }
 0x825   : > { %15926 = vmatpush1.bf16.msra.mxu0 %v18721_v46  ;;  %16582 = vmatpush1.bf16.msra.mxu1 %v18723_v37  ;;  %v18761_v46 = vcombine.low %v2673_v24, %v2677_v33  ;;  %v18763_v37 = vcombine.low %v2674_v21, %v2678_v20  ;;  %v2717_v24 = vld [vmem:[%s21083_s17 + $0x1d30] sm:$0xff]  ;;  %v2714_v33 = vld [vmem:[%s21083_s17 + $0x1d18] sm:$0xff]  ;;  %v18793_v20 = vcombine.low %v2705_v52, %v2709_v45 }
 0x826   : > { %15927 = vmatprep.subr.bf16.mxu0 %v18730_v13  ;;  %16583 = vmatprep.subr.bf16.mxu1 %v18732_v27  ;;  %v18770_v13 = vcombine.high %v2681_v41, %v2685_v30  ;;  %v18772_v27 = vcombine.high %v2682_v44, %v2686_v35  ;;  %v2718_v21 = vld [vmem:[%s21083_s17 + $0x1d38] sm:$0xff] }
 0x829   : > { %15928 = vmatpush1.bf16.msra.mxu0 %v18729_v56  ;;  %16584 = vmatpush1.bf16.msra.mxu1 %v18731_v47  ;;  %v18769_v56 = vcombine.low %v2681_v41, %v2685_v30  ;;  %v18771_v47 = vcombine.low %v2682_v44, %v2686_v35  ;;  %v2722_v41 = vld [vmem:[%s21083_s17 + $0x1d58] sm:$0xff]  ;;  %v18803_v35 = vcombine.low %v2714_v33, %v2718_v21 }
 0x82a   : > { %15929 = vmatprep.subr.bf16.mxu0 %v18738_v60  ;;  %16585 = vmatprep.subr.bf16.mxu1 %v18740_v25  ;;  %v18778_v60 = vcombine.high %v2689_v58, %v2693_v11  ;;  %v18780_v25 = vcombine.high %v2690_v55, %v2694_v2  ;;  %v2726_v30 = vld [vmem:[%s21083_s17 + $0x1d78] sm:$0xff] }
 0x82d   : > { %15930 = vmatpush1.bf16.msra.mxu0 %v18737_v50  ;;  %16586 = vmatpush1.bf16.msra.mxu1 %v18739_v6  ;;  %v18777_v50 = vcombine.low %v2689_v58, %v2693_v11  ;;  %v18779_v6 = vcombine.low %v2690_v55, %v2694_v2  ;;  %v2730_v58 = vld [vmem:[%s21083_s17 + $0x1d98] sm:$0xff]  ;;  %v18811_v2 = vcombine.low %v2722_v41, %v2726_v30 }
 0x82e   : > { %15931 = vmatprep.subr.bf16.mxu0 %v18746_v48  ;;  %16587 = vmatprep.subr.bf16.mxu1 %v18748_v8  ;;  %v18786_v48 = vcombine.high %v2697_v62, %v2701_v3  ;;  %v18788_v8 = vcombine.high %v2698_v4, %v2702_v5  ;;  %v2734_v11 = vld [vmem:[%s21083_s17 + $0x1db8] sm:$0xff] }
 0x831   : > { %15932 = vmatpush1.bf16.msra.mxu0 %v18745_v23  ;;  %16588 = vmatpush1.bf16.msra.mxu1 %v18747_v1  ;;  %v18787_v23 = vcombine.low %v2698_v4, %v2702_v5  ;;  %v18794_v1 = vcombine.high %v2705_v52, %v2709_v45  ;;  %v18819_v5 = vcombine.low %v2730_v58, %v2734_v11  ;;  %v2746_v52 = vld [vmem:[%s21083_s17 + $0x1e18] sm:$0xff] }
 0x832   : > { %15933 = vmatprep.subr.bf16.mxu0 %v18754_v59  ;;  %16589 = vmatprep.subr.bf16.mxu1 %v18756_v19  ;;  %v18796_v59 = vcombine.high %v2706_v39, %v2710_v14  ;;  %v2713_v19 = vld [vmem:[%s21083_s17 + $0x1d10] sm:$0xff]  ;;  %v2750_v45 = vld [vmem:[%s21083_s17 + $0x1e38] sm:$0xff] }
 0x833   : > { %v18801_v44 = vcombine.low %v2713_v19, %v2717_v24 }
 0x835   : > { %15934 = vmatpush1.bf16.msra.mxu0 %v18753_v32  ;;  %16590 = vmatpush1.bf16.msra.mxu1 %v18755_v29  ;;  %v18802_v32 = vcombine.high %v2713_v19, %v2717_v24  ;;  %v18804_v29 = vcombine.high %v2714_v33, %v2718_v21  ;;  %v2754_v19 = vld [vmem:[%s21083_s17 + $0x1e58] sm:$0xff]  ;;  %v18835_v21 = vcombine.low %v2746_v52, %v2750_v45 }
 0x836   : > { %15935 = vmatprep.subr.bf16.mxu0 %v18762_v0  ;;  %16591 = vmatprep.subr.bf16.mxu1 %v18764_v40  ;;  %v2721_v0 = vld [vmem:[%s21083_s17 + $0x1d50] sm:$0xff]  ;;  %v2758_v24 = vld [vmem:[%s21083_s17 + $0x1e78] sm:$0xff] }
 0x837   : > { %v2725_v40 = vld [vmem:[%s21083_s17 + $0x1d70] sm:$0xff] }
 0x838   : > { %v18809_v55 = vcombine.low %v2721_v0, %v2725_v40 }
 0x839   : > { %15936 = vmatpush1.bf16.msra.mxu0 %v18761_v46  ;;  %16592 = vmatpush1.bf16.msra.mxu1 %v18763_v37  ;;  %v18810_v46 = vcombine.high %v2721_v0, %v2725_v40  ;;  %v18812_v37 = vcombine.high %v2722_v41, %v2726_v30  ;;  %v2762_v0 = vld [vmem:[%s21083_s17 + $0x1e98] sm:$0xff]  ;;  %v18843_v30 = vcombine.low %v2754_v19, %v2758_v24 }
 0x83a   : > { %15946 = vmatprep.subr.bf16.mxu0 %v18770_v13  ;;  %16602 = vmatprep.subr.bf16.mxu1 %v18772_v27  ;;  %v2729_v13 = vld [vmem:[%s21083_s17 + $0x1d90] sm:$0xff]  ;;  %v2766_v40 = vld [vmem:[%s21083_s17 + $0x1eb8] sm:$0xff] }
 0x83b   : > { %v2733_v27 = vld [vmem:[%s21083_s17 + $0x1db0] sm:$0xff] }
 0x83c   : > { %15938 = vmatmul.mubr.bf16.vlgmr.msra.gmra.mrb[4].mxu0 %v21850_v16  ;;  %16594 = vmatmul.mubr.bf16.vlgmr.msra.gmra.mrb[4].mxu1 %v21850_v16  ;;  %v18785_v16 = vcombine.low %v2697_v62, %v2701_v3  ;;  %v2738_v62 = vld [vmem:[%s21083_s17 + $0x1dd8] sm:$0xff]  ;;  %v18817_v4 = vcombine.low %v2729_v13, %v2733_v27 }
 0x83d   : > { %15947 = vmatpush1.bf16.msra.mxu0 %v18769_v56  ;;  %16603 = vmatpush1.bf16.msra.mxu1 %v18771_v47  ;;  %v18818_v56 = vcombine.high %v2729_v13, %v2733_v27  ;;  %v18820_v47 = vcombine.high %v2730_v58, %v2734_v11  ;;  %v2742_v3 = vld [vmem:[%s21083_s17 + $0x1df8] sm:$0xff]  ;;  %v18851_v11 = vcombine.low %v2762_v0, %v2766_v40 }
 0x83e   : > { %15948 = vmatprep.subr.bf16.mxu0 %v18778_v60  ;;  %16604 = vmatprep.subr.bf16.mxu1 %v18780_v25  ;;  %v2737_v60 = vld [vmem:[%s21083_s17 + $0x1dd0] sm:$0xff]  ;;  %v2770_v13 = vld [vmem:[%s21083_s17 + $0x1ed8] sm:$0xff] }
 0x83f   : > { %15978 = vmatprep.mubr.bf16.mxu0 %v21858_v34  ;;  %16634 = vmatprep.mubr.bf16.mxu1 %v21858_v34  ;;  %v18795_v34 = vcombine.low %v2706_v39, %v2710_v14  ;;  %v2741_v25 = vld [vmem:[%s21083_s17 + $0x1df0] sm:$0xff]  ;;  %v18827_v14 = vcombine.low %v2738_v62, %v2742_v3  ;;  %v2774_v27 = vld [vmem:[%s21083_s17 + $0x1ef8] sm:$0xff] }
 0x840   : > { %v18825_v39 = vcombine.low %v2737_v60, %v2741_v25 }
 0x841   : > { %15949 = vmatpush1.bf16.msra.mxu0 %v18777_v50  ;;  %16605 = vmatpush1.bf16.msra.mxu1 %v18779_v6  ;;  %v18826_v50 = vcombine.high %v2737_v60, %v2741_v25  ;;  %v18828_v6 = vcombine.high %v2738_v62, %v2742_v3  ;;  %v2778_v60 = vld [vmem:[%s21083_s17 + $0x1f18] sm:$0xff]  ;;  %v18859_v3 = vcombine.low %v2770_v13, %v2774_v27 }
 0x842   : > { %15950 = vmatprep.subr.bf16.mxu0 %v18786_v48  ;;  %16606 = vmatprep.subr.bf16.mxu1 %v18788_v8  ;;  %v2745_v48 = vld [vmem:[%s21083_s17 + $0x1e10] sm:$0xff]  ;;  %v2782_v25 = vld [vmem:[%s21083_s17 + $0x1f38] sm:$0xff] }
 0x843   : > { %v2749_v8 = vld [vmem:[%s21083_s17 + $0x1e30] sm:$0xff] }
 0x844   : > { %v18833_v33 = vcombine.low %v2745_v48, %v2749_v8 }
 0x845   : > { %15951 = vmatpush1.bf16.msra.mxu0 %v18785_v16  ;;  %16607 = vmatpush1.bf16.msra.mxu1 %v18787_v23  ;;  %v18834_v16 = vcombine.high %v2745_v48, %v2749_v8  ;;  %v18836_v23 = vcombine.high %v2746_v52, %v2750_v45  ;;  %v2786_v48 = vld [vmem:[%s21083_s17 + $0x1f58] sm:$0xff]  ;;  %v18867_v45 = vcombine.low %v2778_v60, %v2782_v25 }
 0x846   : > { %15952 = vmatprep.subr.bf16.mxu0 %v18794_v1  ;;  %16608 = vmatprep.subr.bf16.mxu1 %v18796_v59  ;;  %v2753_v1 = vld [vmem:[%s21083_s17 + $0x1e50] sm:$0xff]  ;;  %v2790_v8 = vld [vmem:[%s21083_s17 + $0x1f78] sm:$0xff] }
 0x847   : > { %v2757_v59 = vld [vmem:[%s21083_s17 + $0x1e70] sm:$0xff] }
 0x848   : > { %v18841_v41 = vcombine.low %v2753_v1, %v2757_v59 }
 0x849   : > { %15953 = vmatpush1.bf16.msra.mxu0 %v18793_v20  ;;  %16609 = vmatpush1.bf16.msra.mxu1 %v18795_v34  ;;  %v18842_v20 = vcombine.high %v2753_v1, %v2757_v59  ;;  %v18844_v34 = vcombine.high %v2754_v19, %v2758_v24  ;;  %v2794_v1 = vld [vmem:[%s21083_s17 + $0x1f98] sm:$0xff]  ;;  %v18875_v24 = vcombine.low %v2786_v48, %v2790_v8 }
 0x84a   : > { %15954 = vmatprep.subr.bf16.mxu0 %v18802_v32  ;;  %16610 = vmatprep.subr.bf16.mxu1 %v18804_v29  ;;  %v2761_v32 = vld [vmem:[%s21083_s17 + $0x1e90] sm:$0xff]  ;;  %v2798_v59 = vld [vmem:[%s21083_s17 + $0x1fb8] sm:$0xff] }
 0x84b   : > { %v2765_v29 = vld [vmem:[%s21083_s17 + $0x1eb0] sm:$0xff] }
 0x84c   : > { %v18849_v58 = vcombine.low %v2761_v32, %v2765_v29 }
 0x84d   : > { %15955 = vmatpush1.bf16.msra.mxu0 %v18801_v44  ;;  %16611 = vmatpush1.bf16.msra.mxu1 %v18803_v35  ;;  %v18850_v44 = vcombine.high %v2761_v32, %v2765_v29  ;;  %v18852_v35 = vcombine.high %v2762_v0, %v2766_v40  ;;  %v2802_v32 = vld [vmem:[%s21083_s17 + $0x1fd8] sm:$0xff]  ;;  %v18883_v40 = vcombine.low %v2794_v1, %v2798_v59 }
 0x84e   : > { %15956 = vmatprep.subr.bf16.mxu0 %v18810_v46  ;;  %16612 = vmatprep.subr.bf16.mxu1 %v18812_v37  ;;  %v2769_v46 = vld [vmem:[%s21083_s17 + $0x1ed0] sm:$0xff]  ;;  %v2806_v29 = vld [vmem:[%s21083_s17 + $0x1ff8] sm:$0xff] }
 0x84f   : > { %v2773_v37 = vld [vmem:[%s21083_s17 + $0x1ef0] sm:$0xff] }
 0x850   : > { %v18857_v62 = vcombine.low %v2769_v46, %v2773_v37 }
 0x851   : > { %15957 = vmatpush1.bf16.msra.mxu0 %v18809_v55  ;;  %16613 = vmatpush1.bf16.msra.mxu1 %v18811_v2  ;;  %v18858_v55 = vcombine.high %v2769_v46, %v2773_v37  ;;  %v18860_v2 = vcombine.high %v2770_v13, %v2774_v27  ;;  %v2810_v46 = vld [vmem:[%s21083_s17 + $0x2018] sm:$0xff]  ;;  %v18891_v27 = vcombine.low %v2802_v32, %v2806_v29 }
 0x852   : > { %15958 = vmatprep.subr.bf16.mxu0 %v18818_v56  ;;  %16614 = vmatprep.subr.bf16.mxu1 %v18820_v47  ;;  %v2777_v56 = vld [vmem:[%s21083_s17 + $0x1f10] sm:$0xff]  ;;  %v2814_v37 = vld [vmem:[%s21083_s17 + $0x2038] sm:$0xff] }
 0x853   : > { %v2781_v47 = vld [vmem:[%s21083_s17 + $0x1f30] sm:$0xff] }
 0x854   : > { %v18865_v52 = vcombine.low %v2777_v56, %v2781_v47 }
 0x855   : > { %15959 = vmatpush1.bf16.msra.mxu0 %v18817_v4  ;;  %16615 = vmatpush1.bf16.msra.mxu1 %v18819_v5  ;;  %v18866_v4 = vcombine.high %v2777_v56, %v2781_v47  ;;  %v18868_v5 = vcombine.high %v2778_v60, %v2782_v25  ;;  %v2818_v56 = vld [vmem:[%s21083_s17 + $0x2058] sm:$0xff]  ;;  %v18899_v25 = vcombine.low %v2810_v46, %v2814_v37 }
 0x856   : > { %15960 = vmatprep.subr.bf16.mxu0 %v18826_v50  ;;  %16616 = vmatprep.subr.bf16.mxu1 %v18828_v6  ;;  %v2785_v50 = vld [vmem:[%s21083_s17 + $0x1f50] sm:$0xff]  ;;  %v2822_v47 = vld [vmem:[%s21083_s17 + $0x2078] sm:$0xff] }
 0x857   : > { %v2789_v6 = vld [vmem:[%s21083_s17 + $0x1f70] sm:$0xff] }
 0x858   : > { %v18873_v19 = vcombine.low %v2785_v50, %v2789_v6 }
 0x859   : > { %15961 = vmatpush1.bf16.msra.mxu0 %v18825_v39  ;;  %16617 = vmatpush1.bf16.msra.mxu1 %v18827_v14  ;;  %v18874_v39 = vcombine.high %v2785_v50, %v2789_v6  ;;  %v18876_v14 = vcombine.high %v2786_v48, %v2790_v8  ;;  %v2826_v50 = vld [vmem:[%s21083_s17 + $0x2098] sm:$0xff]  ;;  %v18907_v8 = vcombine.low %v2818_v56, %v2822_v47 }
 0x85a   : > { %15962 = vmatprep.subr.bf16.mxu0 %v18834_v16  ;;  %16618 = vmatprep.subr.bf16.mxu1 %v18836_v23  ;;  %v2793_v16 = vld [vmem:[%s21083_s17 + $0x1f90] sm:$0xff]  ;;  %v2830_v6 = vld [vmem:[%s21083_s17 + $0x20b8] sm:$0xff] }
 0x85b   : > { %v2797_v23 = vld [vmem:[%s21083_s17 + $0x1fb0] sm:$0xff] }
 0x85c   : > { %v18881_v0 = vcombine.low %v2793_v16, %v2797_v23 }
 0x85d   : > { %15963 = vmatpush1.bf16.msra.mxu0 %v18833_v33  ;;  %16619 = vmatpush1.bf16.msra.mxu1 %v18835_v21  ;;  %v18882_v33 = vcombine.high %v2793_v16, %v2797_v23  ;;  %v18884_v21 = vcombine.high %v2794_v1, %v2798_v59  ;;  %v2834_v16 = vld [vmem:[%s21083_s17 + $0x20d8] sm:$0xff]  ;;  %v18915_v1 = vcombine.low %v2826_v50, %v2830_v6 }
 0x85e   : > { %15964 = vmatprep.subr.bf16.mxu0 %v18842_v20  ;;  %16620 = vmatprep.subr.bf16.mxu1 %v18844_v34  ;;  %v2801_v20 = vld [vmem:[%s21083_s17 + $0x1fd0] sm:$0xff]  ;;  %v2838_v23 = vld [vmem:[%s21083_s17 + $0x20f8] sm:$0xff] }
 0x85f   : > { %v2805_v34 = vld [vmem:[%s21083_s17 + $0x1ff0] sm:$0xff] }
 0x860   : > { %v18889_v13 = vcombine.low %v2801_v20, %v2805_v34 }
 0x861   : > { %15965 = vmatpush1.bf16.msra.mxu0 %v18841_v41  ;;  %16621 = vmatpush1.bf16.msra.mxu1 %v18843_v30  ;;  %v18890_v41 = vcombine.high %v2801_v20, %v2805_v34  ;;  %v18892_v30 = vcombine.high %v2802_v32, %v2806_v29  ;;  %v2846_v20 = vld [vmem:[%s21083_s17 + $0x2138] sm:$0xff] }
 0x862   : > { %15966 = vmatprep.subr.bf16.mxu0 %v18850_v44  ;;  %16622 = vmatprep.subr.bf16.mxu1 %v18852_v35  ;;  %v2809_v44 = vld [vmem:[%s21083_s17 + $0x2010] sm:$0xff] }
 0x863   : > { %v2813_v35 = vld [vmem:[%s21083_s17 + $0x2030] sm:$0xff] }
 0x864   : > { %v18897_v60 = vcombine.low %v2809_v44, %v2813_v35 }
 0x865   : > { %15967 = vmatpush1.bf16.msra.mxu0 %v18849_v58  ;;  %16623 = vmatpush1.bf16.msra.mxu1 %v18851_v11  ;;  %v18898_v58 = vcombine.high %v2809_v44, %v2813_v35  ;;  %v18900_v11 = vcombine.high %v2810_v46, %v2814_v37 }
 0x866   : > { %15968 = vmatprep.subr.bf16.mxu0 %v18858_v55  ;;  %16624 = vmatprep.subr.bf16.mxu1 %v18860_v2  ;;  %v2817_v55 = vld [vmem:[%s21083_s17 + $0x2050] sm:$0xff] }
 0x867   : > { %v2821_v2 = vld [vmem:[%s21083_s17 + $0x2070] sm:$0xff] }
 0x868   : > { %v18905_v48 = vcombine.low %v2817_v55, %v2821_v2 }
 0x869   : > { %15969 = vmatpush1.bf16.msra.mxu0 %v18857_v62  ;;  %16625 = vmatpush1.bf16.msra.mxu1 %v18859_v3  ;;  %v18906_v62 = vcombine.high %v2817_v55, %v2821_v2  ;;  %v18908_v3 = vcombine.high %v2818_v56, %v2822_v47 }
 0x86a   : > { %15970 = vmatprep.subr.bf16.mxu0 %v18866_v4  ;;  %16626 = vmatprep.subr.bf16.mxu1 %v18868_v5  ;;  %v2825_v4 = vld [vmem:[%s21083_s17 + $0x2090] sm:$0xff] }
 0x86b   : > { %v2829_v5 = vld [vmem:[%s21083_s17 + $0x20b0] sm:$0xff] }
 0x86d   : > { %15971 = vmatpush1.bf16.msra.mxu0 %v18865_v52  ;;  %16627 = vmatpush1.bf16.msra.mxu1 %v18867_v45  ;;  %v18914_v52 = vcombine.high %v2825_v4, %v2829_v5  ;;  %v18916_v45 = vcombine.high %v2826_v50, %v2830_v6 }
 0x86e   : > { %15972 = vmatprep.subr.bf16.mxu0 %v18874_v39  ;;  %16628 = vmatprep.subr.bf16.mxu1 %v18876_v14  ;;  %v2833_v39 = vld [vmem:[%s21083_s17 + $0x20d0] sm:$0xff] }
 0x86f   : > { %v2837_v14 = vld [vmem:[%s21083_s17 + $0x20f0] sm:$0xff] }
 0x870   : > { %v18922_v59 = vcombine.high %v2833_v39, %v2837_v14  ;;  %v18921_v34 = vcombine.low %v2833_v39, %v2837_v14 }
 0x871   : > { %15973 = vmatpush1.bf16.msra.mxu0 %v18873_v19  ;;  %16629 = vmatpush1.bf16.msra.mxu1 %v18875_v24  ;;  %v18924_v19 = vcombine.high %v2834_v16, %v2838_v23  ;;  %v2841_v24 = vld [vmem:[%s21083_s17 + $0x2110] sm:$0xff] }
 0x872   : > { %15974 = vmatprep.subr.bf16.mxu0 %v18882_v33  ;;  %16630 = vmatprep.subr.bf16.mxu1 %v18884_v21  ;;  %v2845_v33 = vld [vmem:[%s21083_s17 + $0x2130] sm:$0xff]  ;;  %v2842_v21 = vld [vmem:[%s21083_s17 + $0x2118] sm:$0xff] }
 0x873   : > { %v18930_v32 = vcombine.high %v2841_v24, %v2845_v33  ;;  %v18932_v29 = vcombine.high %v2842_v21, %v2846_v20  ;;  %v18929_v44 = vcombine.low %v2841_v24, %v2845_v33  ;;  %v18931_v35 = vcombine.low %v2842_v21, %v2846_v20 }
 0x875   : > { %15975 = vmatpush1.bf16.msra.mxu0 %v18881_v0  ;;  %16631 = vmatpush1.bf16.msra.mxu1 %v18883_v40  ;;  %v2849_v0 = vld [vmem:[%s21083_s17 + $0x2150] sm:$0xff] }
 0x876   : > { %15976 = vmatprep.subr.bf16.mxu0 %v18890_v41  ;;  %16632 = vmatprep.subr.bf16.mxu1 %v18892_v30  ;;  %v2853_v40 = vld [vmem:[%s21083_s17 + $0x2170] sm:$0xff]  ;;  %v2850_v41 = vld [vmem:[%s21083_s17 + $0x2158] sm:$0xff] }
 0x877   : > { %v2854_v30 = vld [vmem:[%s21083_s17 + $0x2178] sm:$0xff]  ;;  %v18938_v46 = vcombine.high %v2849_v0, %v2853_v40  ;;  %v18937_v55 = vcombine.low %v2849_v0, %v2853_v40 }
 0x878   : > { %v18940_v37 = vcombine.high %v2850_v41, %v2854_v30  ;;  %v18939_v2 = vcombine.low %v2850_v41, %v2854_v30 }
 0x879   : > { %15977 = vmatpush1.bf16.msra.mxu0 %v18889_v13  ;;  %16633 = vmatpush1.bf16.msra.mxu1 %v18891_v27  ;;  %v2857_v13 = vld [vmem:[%s21083_s17 + $0x2190] sm:$0xff] }
 0x87a   : > { %15987 = vmatprep.subr.bf16.mxu0 %v18898_v58  ;;  %16643 = vmatprep.subr.bf16.mxu1 %v18900_v11  ;;  %v2861_v27 = vld [vmem:[%s21083_s17 + $0x21b0] sm:$0xff]  ;;  %v2858_v58 = vld [vmem:[%s21083_s17 + $0x2198] sm:$0xff] }
 0x87b   : > { %v2862_v11 = vld [vmem:[%s21083_s17 + $0x21b8] sm:$0xff]  ;;  %v18946_v56 = vcombine.high %v2857_v13, %v2861_v27 }
 0x87c   : > { %15979 = vmatmul.mubr.bf16.vlgmr.msra.gmra.mrb[4].mxu0 %v21934_v18  ;;  %16635 = vmatmul.mubr.bf16.vlgmr.msra.gmra.mrb[4].mxu1 %v21934_v18  ;;  %v18913_v18 = vcombine.low %v2825_v4, %v2829_v5  ;;  %v18948_v47 = vcombine.high %v2858_v58, %v2862_v11  ;;  %v18945_v4 = vcombine.low %v2857_v13, %v2861_v27 }
 0x87d   : > { %15988 = vmatpush1.bf16.msra.mxu0 %v18897_v60  ;;  %16644 = vmatpush1.bf16.msra.mxu1 %v18899_v25  ;;  %v2865_v60 = vld [vmem:[%s21083_s17 + $0x21d0] sm:$0xff]  ;;  %v18947_v5 = vcombine.low %v2858_v58, %v2862_v11 }
 0x87e   : > { %15989 = vmatprep.subr.bf16.mxu0 %v18906_v62  ;;  %16645 = vmatprep.subr.bf16.mxu1 %v18908_v3  ;;  %v2869_v25 = vld [vmem:[%s21083_s17 + $0x21f0] sm:$0xff]  ;;  %v2866_v62 = vld [vmem:[%s21083_s17 + $0x21d8] sm:$0xff] }
 0x87f   : > { %16019 = vmatprep.mubr.bf16.mxu0 %v21941_v31  ;;  %16675 = vmatprep.mubr.bf16.mxu1 %v21941_v31  ;;  %v18923_v31 = vcombine.low %v2834_v16, %v2838_v23  ;;  %v2870_v3 = vld [vmem:[%s21083_s17 + $0x21f8] sm:$0xff]  ;;  %v18954_v50 = vcombine.high %v2865_v60, %v2869_v25  ;;  %v18953_v39 = vcombine.low %v2865_v60, %v2869_v25 }
 0x880   : > { %v18956_v6 = vcombine.high %v2866_v62, %v2870_v3  ;;  %v18955_v14 = vcombine.low %v2866_v62, %v2870_v3 }
 0x881   : > { %15990 = vmatpush1.bf16.msra.mxu0 %v18905_v48  ;;  %16646 = vmatpush1.bf16.msra.mxu1 %v18907_v8  ;;  %v2873_v48 = vld [vmem:[%s21083_s17 + $0x2210] sm:$0xff] }
 0x882   : > { %15991 = vmatprep.subr.bf16.mxu0 %v18914_v52  ;;  %16647 = vmatprep.subr.bf16.mxu1 %v18916_v45  ;;  %v2877_v8 = vld [vmem:[%s21083_s17 + $0x2230] sm:$0xff]  ;;  %v2874_v52 = vld [vmem:[%s21083_s17 + $0x2218] sm:$0xff] }
 0x883   : > { %v2878_v45 = vld [vmem:[%s21083_s17 + $0x2238] sm:$0xff]  ;;  %v18962_v16 = vcombine.high %v2873_v48, %v2877_v8  ;;  %v18961_v24 = vcombine.low %v2873_v48, %v2877_v8 }
 0x884   : > { %v18964_v23 = vcombine.high %v2874_v52, %v2878_v45  ;;  %v18963_v33 = vcombine.low %v2874_v52, %v2878_v45 }
 0x885   : > { %15992 = vmatpush1.bf16.msra.mxu0 %v18913_v18  ;;  %16648 = vmatpush1.bf16.msra.mxu1 %v18915_v1  ;;  %v2881_v18 = vld [vmem:[%s21083_s17 + $0x2250] sm:$0xff] }
 0x886   : > { %15993 = vmatprep.subr.bf16.mxu0 %v18922_v59  ;;  %16649 = vmatprep.subr.bf16.mxu1 %v18924_v19  ;;  %v2885_v1 = vld [vmem:[%s21083_s17 + $0x2270] sm:$0xff]  ;;  %v2882_v59 = vld [vmem:[%s21083_s17 + $0x2258] sm:$0xff] }
 0x887   : > { %v2886_v19 = vld [vmem:[%s21083_s17 + $0x2278] sm:$0xff]  ;;  %v18970_v21 = vcombine.high %v2881_v18, %v2885_v1  ;;  %v18969_v0 = vcombine.low %v2881_v18, %v2885_v1 }
 0x888   : > { %v18972_v20 = vcombine.high %v2882_v59, %v2886_v19  ;;  %v18971_v40 = vcombine.low %v2882_v59, %v2886_v19 }
 0x889   : > { %15994 = vmatpush1.bf16.msra.mxu0 %v18921_v34  ;;  %16650 = vmatpush1.bf16.msra.mxu1 %v18923_v31  ;;  %v2889_v34 = vld [vmem:[%s21083_s17 + $0x2290] sm:$0xff] }
 0x88a   : > { %15995 = vmatprep.subr.bf16.mxu0 %v18930_v32  ;;  %16651 = vmatprep.subr.bf16.mxu1 %v18932_v29  ;;  %v2893_v31 = vld [vmem:[%s21083_s17 + $0x22b0] sm:$0xff]  ;;  %v2890_v32 = vld [vmem:[%s21083_s17 + $0x2298] sm:$0xff] }
 0x88b   : > { %v2894_v29 = vld [vmem:[%s21083_s17 + $0x22b8] sm:$0xff]  ;;  %v18978_v41 = vcombine.high %v2889_v34, %v2893_v31  ;;  %v18977_v13 = vcombine.low %v2889_v34, %v2893_v31 }
 0x88c   : > { %v18980_v30 = vcombine.high %v2890_v32, %v2894_v29  ;;  %v18979_v27 = vcombine.low %v2890_v32, %v2894_v29 }
 0x88d   : > { %15996 = vmatpush1.bf16.msra.mxu0 %v18929_v44  ;;  %16652 = vmatpush1.bf16.msra.mxu1 %v18931_v35  ;;  %v2897_v44 = vld [vmem:[%s21083_s17 + $0x22d0] sm:$0xff] }
 0x88e   : > { %15997 = vmatprep.subr.bf16.mxu0 %v18938_v46  ;;  %16653 = vmatprep.subr.bf16.mxu1 %v18940_v37  ;;  %v2901_v35 = vld [vmem:[%s21083_s17 + $0x22f0] sm:$0xff]  ;;  %v2898_v46 = vld [vmem:[%s21083_s17 + $0x22d8] sm:$0xff] }
 0x88f   : > { %v2902_v37 = vld [vmem:[%s21083_s17 + $0x22f8] sm:$0xff]  ;;  %v18986_v58 = vcombine.high %v2897_v44, %v2901_v35  ;;  %v18985_v60 = vcombine.low %v2897_v44, %v2901_v35 }
 0x890   : > { %v18988_v11 = vcombine.high %v2898_v46, %v2902_v37  ;;  %v18987_v25 = vcombine.low %v2898_v46, %v2902_v37 }
 0x891   : > { %15998 = vmatpush1.bf16.msra.mxu0 %v18937_v55  ;;  %16654 = vmatpush1.bf16.msra.mxu1 %v18939_v2  ;;  %v2905_v55 = vld [vmem:[%s21083_s17 + $0x2310] sm:$0xff] }
 0x892   : > { %15999 = vmatprep.subr.bf16.mxu0 %v18946_v56  ;;  %16655 = vmatprep.subr.bf16.mxu1 %v18948_v47  ;;  %v2909_v2 = vld [vmem:[%s21083_s17 + $0x2330] sm:$0xff]  ;;  %v2906_v56 = vld [vmem:[%s21083_s17 + $0x2318] sm:$0xff] }
 0x893   : > { %v2910_v47 = vld [vmem:[%s21083_s17 + $0x2338] sm:$0xff]  ;;  %v18994_v62 = vcombine.high %v2905_v55, %v2909_v2  ;;  %v18993_v48 = vcombine.low %v2905_v55, %v2909_v2 }
 0x894   : > { %v18996_v3 = vcombine.high %v2906_v56, %v2910_v47  ;;  %v18995_v8 = vcombine.low %v2906_v56, %v2910_v47 }
 0x895   : > { %16000 = vmatpush1.bf16.msra.mxu0 %v18945_v4  ;;  %16656 = vmatpush1.bf16.msra.mxu1 %v18947_v5  ;;  %v2913_v4 = vld [vmem:[%s21083_s17 + $0x2350] sm:$0xff] }
 0x896   : > { %16001 = vmatprep.subr.bf16.mxu0 %v18954_v50  ;;  %16657 = vmatprep.subr.bf16.mxu1 %v18956_v6  ;;  %v2917_v5 = vld [vmem:[%s21083_s17 + $0x2370] sm:$0xff]  ;;  %v2914_v50 = vld [vmem:[%s21083_s17 + $0x2358] sm:$0xff] }
 0x897   : > { %v2918_v6 = vld [vmem:[%s21083_s17 + $0x2378] sm:$0xff]  ;;  %v19002_v52 = vcombine.high %v2913_v4, %v2917_v5  ;;  %v19001_v18 = vcombine.low %v2913_v4, %v2917_v5 }
 0x898   : > { %v19004_v45 = vcombine.high %v2914_v50, %v2918_v6  ;;  %v19003_v1 = vcombine.low %v2914_v50, %v2918_v6 }
 0x899   : > { %16002 = vmatpush1.bf16.msra.mxu0 %v18953_v39  ;;  %16658 = vmatpush1.bf16.msra.mxu1 %v18955_v14  ;;  %v2921_v39 = vld [vmem:[%s21083_s17 + $0x2390] sm:$0xff] }
 0x89a   : > { %16003 = vmatprep.subr.bf16.mxu0 %v18962_v16  ;;  %16659 = vmatprep.subr.bf16.mxu1 %v18964_v23  ;;  %v2925_v14 = vld [vmem:[%s21083_s17 + $0x23b0] sm:$0xff]  ;;  %v2922_v16 = vld [vmem:[%s21083_s17 + $0x2398] sm:$0xff] }
 0x89b   : > { %v2926_v23 = vld [vmem:[%s21083_s17 + $0x23b8] sm:$0xff]  ;;  %v19010_v59 = vcombine.high %v2921_v39, %v2925_v14  ;;  %v19009_v34 = vcombine.low %v2921_v39, %v2925_v14 }
 0x89c   : > { %v19012_v19 = vcombine.high %v2922_v16, %v2926_v23  ;;  %v19011_v31 = vcombine.low %v2922_v16, %v2926_v23  ;;  %v2969_v23 = vld [vmem:[%s21083_s17 + $0x2510] sm:$0xff] }
 0x89d   : > { %16004 = vmatpush1.bf16.msra.mxu0 %v18961_v24  ;;  %16660 = vmatpush1.bf16.msra.mxu1 %v18963_v33  ;;  %v2929_v24 = vld [vmem:[%s21083_s17 + $0x23d0] sm:$0xff] }
 0x89e   : > { %16005 = vmatprep.subr.bf16.mxu0 %v18970_v21  ;;  %16661 = vmatprep.subr.bf16.mxu1 %v18972_v20  ;;  %v2933_v33 = vld [vmem:[%s21083_s17 + $0x23f0] sm:$0xff]  ;;  %v2930_v21 = vld [vmem:[%s21083_s17 + $0x23d8] sm:$0xff] }
 0x89f   : > { %v2934_v20 = vld [vmem:[%s21083_s17 + $0x23f8] sm:$0xff]  ;;  %v19018_v32 = vcombine.high %v2929_v24, %v2933_v33  ;;  %v19017_v44 = vcombine.low %v2929_v24, %v2933_v33 }
 0x8a0   : > { %v19020_v29 = vcombine.high %v2930_v21, %v2934_v20  ;;  %v19019_v35 = vcombine.low %v2930_v21, %v2934_v20  ;;  %v2977_v21 = vld [vmem:[%s21083_s17 + $0x2550] sm:$0xff] }
 0x8a1   : > { %16006 = vmatpush1.bf16.msra.mxu0 %v18969_v0  ;;  %16662 = vmatpush1.bf16.msra.mxu1 %v18971_v40  ;;  %v2937_v0 = vld [vmem:[%s21083_s17 + $0x2410] sm:$0xff] }
 0x8a2   : > { %16007 = vmatprep.subr.bf16.mxu0 %v18978_v41  ;;  %16663 = vmatprep.subr.bf16.mxu1 %v18980_v30  ;;  %v2941_v40 = vld [vmem:[%s21083_s17 + $0x2430] sm:$0xff]  ;;  %v2938_v41 = vld [vmem:[%s21083_s17 + $0x2418] sm:$0xff] }
 0x8a3   : > { %v2942_v30 = vld [vmem:[%s21083_s17 + $0x2438] sm:$0xff]  ;;  %v19026_v46 = vcombine.high %v2937_v0, %v2941_v40  ;;  %v19025_v55 = vcombine.low %v2937_v0, %v2941_v40  ;;  %v2981_v20 = vld [vmem:[%s21083_s17 + $0x2570] sm:$0xff] }
 0x8a4   : > { %v19028_v37 = vcombine.high %v2938_v41, %v2942_v30  ;;  %v19027_v2 = vcombine.low %v2938_v41, %v2942_v30  ;;  %v19066_v0 = vcombine.high %v2977_v21, %v2981_v20  ;;  %v2985_v41 = vld [vmem:[%s21083_s17 + $0x2590] sm:$0xff] }
 0x8a5   : > { %16008 = vmatpush1.bf16.msra.mxu0 %v18977_v13  ;;  %16664 = vmatpush1.bf16.msra.mxu1 %v18979_v27  ;;  %v2945_v13 = vld [vmem:[%s21083_s17 + $0x2450] sm:$0xff] }
 0x8a6   : > { %16009 = vmatprep.subr.bf16.mxu0 %v18986_v58  ;;  %16665 = vmatprep.subr.bf16.mxu1 %v18988_v11  ;;  %v2949_v27 = vld [vmem:[%s21083_s17 + $0x2470] sm:$0xff]  ;;  %v2946_v58 = vld [vmem:[%s21083_s17 + $0x2458] sm:$0xff] }
 0x8a7   : > { %v2950_v11 = vld [vmem:[%s21083_s17 + $0x2478] sm:$0xff]  ;;  %v19034_v56 = vcombine.high %v2945_v13, %v2949_v27  ;;  %v19033_v4 = vcombine.low %v2945_v13, %v2949_v27  ;;  %v2989_v30 = vld [vmem:[%s21083_s17 + $0x25b0] sm:$0xff] }
 0x8a8   : > { %v19036_v47 = vcombine.high %v2946_v58, %v2950_v11  ;;  %v19035_v5 = vcombine.low %v2946_v58, %v2950_v11  ;;  %v19074_v13 = vcombine.high %v2985_v41, %v2989_v30  ;;  %v2993_v58 = vld [vmem:[%s21083_s17 + $0x25d0] sm:$0xff] }
 0x8a9   : > { %16010 = vmatpush1.bf16.msra.mxu0 %v18985_v60  ;;  %16666 = vmatpush1.bf16.msra.mxu1 %v18987_v25  ;;  %v2953_v60 = vld [vmem:[%s21083_s17 + $0x2490] sm:$0xff] }
 0x8aa   : > { %16011 = vmatprep.subr.bf16.mxu0 %v18994_v62  ;;  %16667 = vmatprep.subr.bf16.mxu1 %v18996_v3  ;;  %v2957_v25 = vld [vmem:[%s21083_s17 + $0x24b0] sm:$0xff]  ;;  %v2954_v62 = vld [vmem:[%s21083_s17 + $0x2498] sm:$0xff] }
 0x8ab   : > { %v2958_v3 = vld [vmem:[%s21083_s17 + $0x24b8] sm:$0xff]  ;;  %v19042_v50 = vcombine.high %v2953_v60, %v2957_v25  ;;  %v2997_v11 = vld [vmem:[%s21083_s17 + $0x25f0] sm:$0xff] }
 0x8ac   : > { %v19044_v6 = vcombine.high %v2954_v62, %v2958_v3  ;;  %v19043_v39 = vcombine.low %v2954_v62, %v2958_v3  ;;  %v3001_v62 = vld [vmem:[%s21083_s17 + $0x2610] sm:$0xff] }
 0x8ad   : > { %16012 = vmatpush1.bf16.msra.mxu0 %v18993_v48  ;;  %16668 = vmatpush1.bf16.msra.mxu1 %v18995_v8  ;;  %v2961_v48 = vld [vmem:[%s21083_s17 + $0x24d0] sm:$0xff] }
 0x8ae   : > { %16013 = vmatprep.subr.bf16.mxu0 %v19002_v52  ;;  %16669 = vmatprep.subr.bf16.mxu1 %v19004_v45  ;;  %v2965_v8 = vld [vmem:[%s21083_s17 + $0x24f0] sm:$0xff]  ;;  %v2962_v52 = vld [vmem:[%s21083_s17 + $0x24d8] sm:$0xff] }
 0x8af   : > { %v2966_v45 = vld [vmem:[%s21083_s17 + $0x24f8] sm:$0xff]  ;;  %v19050_v14 = vcombine.high %v2961_v48, %v2965_v8  ;;  %v3005_v3 = vld [vmem:[%s21083_s17 + $0x2630] sm:$0xff] }
 0x8b0   : > { %v19052_v16 = vcombine.high %v2962_v52, %v2966_v45 }
 0x8b1   : > { %16014 = vmatpush1.bf16.msra.mxu0 %v19001_v18  ;;  %16670 = vmatpush1.bf16.msra.mxu1 %v19003_v1  ;;  %v2973_v18 = vld [vmem:[%s21083_s17 + $0x2530] sm:$0xff]  ;;  %v2970_v1 = vld [vmem:[%s21083_s17 + $0x2518] sm:$0xff] }
 0x8b2   : > { %16015 = vmatprep.subr.bf16.mxu0 %v19010_v59  ;;  %16671 = vmatprep.subr.bf16.mxu1 %v19012_v19  ;;  %v2974_v59 = vld [vmem:[%s21083_s17 + $0x2538] sm:$0xff]  ;;  %v19049_v19 = vcombine.low %v2961_v48, %v2965_v8  ;;  %v19058_v24 = vcombine.high %v2969_v23, %v2973_v18  ;;  %v19090_v48 = vcombine.high %v3001_v62, %v3005_v3 }
 0x8b3   : > { %v19060_v33 = vcombine.high %v2970_v1, %v2974_v59 }
 0x8b5   : > { %16016 = vmatpush1.bf16.msra.mxu0 %v19009_v34  ;;  %16672 = vmatpush1.bf16.msra.mxu1 %v19011_v31  ;;  %v2978_v34 = vld [vmem:[%s21083_s17 + $0x2558] sm:$0xff] }
 0x8b6   : > { %16017 = vmatprep.subr.bf16.mxu0 %v19018_v32  ;;  %16673 = vmatprep.subr.bf16.mxu1 %v19020_v29  ;;  %v2982_v31 = vld [vmem:[%s21083_s17 + $0x2578] sm:$0xff]  ;;  %v19057_v32 = vcombine.low %v2969_v23, %v2973_v18  ;;  %v19059_v29 = vcombine.low %v2970_v1, %v2974_v59  ;;  %v3017_v1 = vld [vmem:[%s21083_s17 + $0x2690] sm:$0xff] }
 0x8b7   : > { %v19068_v40 = vcombine.high %v2978_v34, %v2982_v31  ;;  %v3021_v59 = vld [vmem:[%s21083_s17 + $0x26b0] sm:$0xff] }
 0x8b9   : > { %16018 = vmatpush1.bf16.msra.mxu0 %v19017_v44  ;;  %16674 = vmatpush1.bf16.msra.mxu1 %v19019_v35  ;;  %v2986_v44 = vld [vmem:[%s21083_s17 + $0x2598] sm:$0xff] }
 0x8ba   : > { %16028 = vmatprep.subr.bf16.mxu0 %v19026_v46  ;;  %16684 = vmatprep.subr.bf16.mxu1 %v19028_v37  ;;  %v2990_v35 = vld [vmem:[%s21083_s17 + $0x25b8] sm:$0xff]  ;;  %v19065_v46 = vcombine.low %v2977_v21, %v2981_v20  ;;  %v19067_v37 = vcombine.low %v2978_v34, %v2982_v31  ;;  %v19106_v21 = vcombine.high %v3017_v1, %v3021_v59  ;;  %v3025_v34 = vld [vmem:[%s21083_s17 + $0x26d0] sm:$0xff] }
 0x8bb   : > { %v19076_v27 = vcombine.high %v2986_v44, %v2990_v35  ;;  %v3029_v31 = vld [vmem:[%s21083_s17 + $0x26f0] sm:$0xff] }
 0x8bc   : > { %16020 = vmatmul.mubr.bf16.vlgmr.msra.gmra.mrb[4].mxu0 %v22009_v17  ;;  %16676 = vmatmul.mubr.bf16.vlgmr.msra.gmra.mrb[4].mxu1 %v22009_v17  ;;  %v19041_v17 = vcombine.low %v2953_v60, %v2957_v25  ;;  %v19082_v60 = vcombine.high %v2993_v58, %v2997_v11 }
 0x8bd   : > { %16029 = vmatpush1.bf16.msra.mxu0 %v19025_v55  ;;  %16685 = vmatpush1.bf16.msra.mxu1 %v19027_v2  ;;  %v2994_v55 = vld [vmem:[%s21083_s17 + $0x25d8] sm:$0xff] }
 0x8be   : > { %16030 = vmatprep.subr.bf16.mxu0 %v19034_v56  ;;  %16686 = vmatprep.subr.bf16.mxu1 %v19036_v47  ;;  %v2998_v2 = vld [vmem:[%s21083_s17 + $0x25f8] sm:$0xff]  ;;  %v19073_v56 = vcombine.low %v2985_v41, %v2989_v30  ;;  %v19075_v47 = vcombine.low %v2986_v44, %v2990_v35  ;;  %v19114_v41 = vcombine.high %v3025_v34, %v3029_v31  ;;  %v3033_v44 = vld [vmem:[%s21083_s17 + $0x2710] sm:$0xff] }
 0x8bf   : > { %16060 = vmatprep.mubr.bf16.mxu0 %v22017_v36  ;;  %16716 = vmatprep.mubr.bf16.mxu1 %v22017_v36  ;;  %v19051_v36 = vcombine.low %v2962_v52, %v2966_v45  ;;  %v19084_v25 = vcombine.high %v2994_v55, %v2998_v2  ;;  %v3009_v52 = vld [vmem:[%s21083_s17 + $0x2650] sm:$0xff] }
 0x8c0   : > { %v3013_v45 = vld [vmem:[%s21083_s17 + $0x2670] sm:$0xff] }
 0x8c1   : > { %16031 = vmatpush1.bf16.msra.mxu0 %v19033_v4  ;;  %16687 = vmatpush1.bf16.msra.mxu1 %v19035_v5  ;;  %v3002_v4 = vld [vmem:[%s21083_s17 + $0x2618] sm:$0xff]  ;;  %v19098_v23 = vcombine.high %v3009_v52, %v3013_v45  ;;  %v3037_v35 = vld [vmem:[%s21083_s17 + $0x2730] sm:$0xff] }
 0x8c2   : > { %16032 = vmatprep.subr.bf16.mxu0 %v19042_v50  ;;  %16688 = vmatprep.subr.bf16.mxu1 %v19044_v6  ;;  %v3006_v5 = vld [vmem:[%s21083_s17 + $0x2638] sm:$0xff]  ;;  %v19081_v50 = vcombine.low %v2993_v58, %v2997_v11  ;;  %v19083_v6 = vcombine.low %v2994_v55, %v2998_v2  ;;  %v19122_v58 = vcombine.high %v3033_v44, %v3037_v35  ;;  %v3041_v55 = vld [vmem:[%s21083_s17 + $0x2750] sm:$0xff] }
 0x8c3   : > { %v19092_v8 = vcombine.high %v3002_v4, %v3006_v5  ;;  %v3045_v2 = vld [vmem:[%s21083_s17 + $0x2770] sm:$0xff] }
 0x8c5   : > { %16033 = vmatpush1.bf16.msra.mxu0 %v19041_v17  ;;  %16689 = vmatpush1.bf16.msra.mxu1 %v19043_v39  ;;  %v3010_v17 = vld [vmem:[%s21083_s17 + $0x2658] sm:$0xff] }
 0x8c6   : > { %16034 = vmatprep.subr.bf16.mxu0 %v19050_v14  ;;  %16690 = vmatprep.subr.bf16.mxu1 %v19052_v16  ;;  %v3014_v39 = vld [vmem:[%s21083_s17 + $0x2678] sm:$0xff]  ;;  %v19089_v14 = vcombine.low %v3001_v62, %v3005_v3  ;;  %v19091_v16 = vcombine.low %v3002_v4, %v3006_v5  ;;  %v19130_v62 = vcombine.high %v3041_v55, %v3045_v2  ;;  %v3049_v4 = vld [vmem:[%s21083_s17 + $0x2790] sm:$0xff] }
 0x8c7   : > { %v19100_v18 = vcombine.high %v3010_v17, %v3014_v39  ;;  %v3053_v5 = vld [vmem:[%s21083_s17 + $0x27b0] sm:$0xff] }
 0x8c9   : > { %16035 = vmatpush1.bf16.msra.mxu0 %v19049_v19  ;;  %16691 = vmatpush1.bf16.msra.mxu1 %v19051_v36  ;;  %v3018_v19 = vld [vmem:[%s21083_s17 + $0x2698] sm:$0xff] }
 0x8ca   : > { %16036 = vmatprep.subr.bf16.mxu0 %v19058_v24  ;;  %16692 = vmatprep.subr.bf16.mxu1 %v19060_v33  ;;  %v3022_v36 = vld [vmem:[%s21083_s17 + $0x26b8] sm:$0xff]  ;;  %v19097_v24 = vcombine.low %v3009_v52, %v3013_v45  ;;  %v19099_v33 = vcombine.low %v3010_v17, %v3014_v39  ;;  %v19138_v52 = vcombine.high %v3049_v4, %v3053_v5  ;;  %v3057_v17 = vld [vmem:[%s21083_s17 + $0x27d0] sm:$0xff] }
 0x8cb   : > { %v19108_v20 = vcombine.high %v3018_v19, %v3022_v36  ;;  %v3061_v39 = vld [vmem:[%s21083_s17 + $0x27f0] sm:$0xff] }
 0x8cd   : > { %16037 = vmatpush1.bf16.msra.mxu0 %v19057_v32  ;;  %16693 = vmatpush1.bf16.msra.mxu1 %v19059_v29  ;;  %v3026_v32 = vld [vmem:[%s21083_s17 + $0x26d8] sm:$0xff] }
 0x8ce   : > { %16038 = vmatprep.subr.bf16.mxu0 %v19066_v0  ;;  %16694 = vmatprep.subr.bf16.mxu1 %v19068_v40  ;;  %v3030_v29 = vld [vmem:[%s21083_s17 + $0x26f8] sm:$0xff]  ;;  %v19105_v0 = vcombine.low %v3017_v1, %v3021_v59  ;;  %v19107_v40 = vcombine.low %v3018_v19, %v3022_v36  ;;  %v19146_v1 = vcombine.high %v3057_v17, %v3061_v39  ;;  %v3065_v19 = vld [vmem:[%s21083_s17 + $0x2810] sm:$0xff] }
 0x8cf   : > { %v19116_v30 = vcombine.high %v3026_v32, %v3030_v29  ;;  %v3069_v36 = vld [vmem:[%s21083_s17 + $0x2830] sm:$0xff] }
 0x8d1   : > { %16039 = vmatpush1.bf16.msra.mxu0 %v19065_v46  ;;  %16695 = vmatpush1.bf16.msra.mxu1 %v19067_v37  ;;  %v3034_v46 = vld [vmem:[%s21083_s17 + $0x2718] sm:$0xff] }
 0x8d2   : > { %16040 = vmatprep.subr.bf16.mxu0 %v19074_v13  ;;  %16696 = vmatprep.subr.bf16.mxu1 %v19076_v27  ;;  %v3038_v37 = vld [vmem:[%s21083_s17 + $0x2738] sm:$0xff]  ;;  %v19113_v13 = vcombine.low %v3025_v34, %v3029_v31  ;;  %v19115_v27 = vcombine.low %v3026_v32, %v3030_v29  ;;  %v19154_v34 = vcombine.high %v3065_v19, %v3069_v36  ;;  %v3073_v32 = vld [vmem:[%s21083_s17 + $0x2850] sm:$0xff] }
 0x8d3   : > { %v19124_v11 = vcombine.high %v3034_v46, %v3038_v37  ;;  %v3077_v29 = vld [vmem:[%s21083_s17 + $0x2870] sm:$0xff] }
 0x8d5   : > { %16041 = vmatpush1.bf16.msra.mxu0 %v19073_v56  ;;  %16697 = vmatpush1.bf16.msra.mxu1 %v19075_v47  ;;  %v3042_v56 = vld [vmem:[%s21083_s17 + $0x2758] sm:$0xff] }
 0x8d6   : > { %16042 = vmatprep.subr.bf16.mxu0 %v19082_v60  ;;  %16698 = vmatprep.subr.bf16.mxu1 %v19084_v25  ;;  %v3046_v47 = vld [vmem:[%s21083_s17 + $0x2778] sm:$0xff]  ;;  %v19121_v60 = vcombine.low %v3033_v44, %v3037_v35  ;;  %v19123_v25 = vcombine.low %v3034_v46, %v3038_v37  ;;  %v19162_v44 = vcombine.high %v3073_v32, %v3077_v29  ;;  %v3081_v46 = vld [vmem:[%s21083_s17 + $0x2890] sm:$0xff] }
 0x8d7   : > { %v19132_v3 = vcombine.high %v3042_v56, %v3046_v47  ;;  %v3085_v37 = vld [vmem:[%s21083_s17 + $0x28b0] sm:$0xff] }
 0x8d9   : > { %16043 = vmatpush1.bf16.msra.mxu0 %v19081_v50  ;;  %16699 = vmatpush1.bf16.msra.mxu1 %v19083_v6  ;;  %v3050_v50 = vld [vmem:[%s21083_s17 + $0x2798] sm:$0xff] }
 0x8da   : > { %16044 = vmatprep.subr.bf16.mxu0 %v19090_v48  ;;  %16700 = vmatprep.subr.bf16.mxu1 %v19092_v8  ;;  %v3054_v6 = vld [vmem:[%s21083_s17 + $0x27b8] sm:$0xff]  ;;  %v19129_v48 = vcombine.low %v3041_v55, %v3045_v2  ;;  %v19131_v8 = vcombine.low %v3042_v56, %v3046_v47  ;;  %v19170_v55 = vcombine.high %v3081_v46, %v3085_v37  ;;  %v3089_v56 = vld [vmem:[%s21083_s17 + $0x28d0] sm:$0xff] }
 0x8db   : > { %v19140_v45 = vcombine.high %v3050_v50, %v3054_v6  ;;  %v3093_v47 = vld [vmem:[%s21083_s17 + $0x28f0] sm:$0xff] }
 0x8dd   : > { %16045 = vmatpush1.bf16.msra.mxu0 %v19089_v14  ;;  %16701 = vmatpush1.bf16.msra.mxu1 %v19091_v16  ;;  %v3058_v14 = vld [vmem:[%s21083_s17 + $0x27d8] sm:$0xff] }
 0x8de   : > { %16046 = vmatprep.subr.bf16.mxu0 %v19098_v23  ;;  %16702 = vmatprep.subr.bf16.mxu1 %v19100_v18  ;;  %v3062_v16 = vld [vmem:[%s21083_s17 + $0x27f8] sm:$0xff]  ;;  %v19137_v23 = vcombine.low %v3049_v4, %v3053_v5  ;;  %v19139_v18 = vcombine.low %v3050_v50, %v3054_v6  ;;  %v3097_v5 = vld [vmem:[%s21083_s17 + $0x2910] sm:$0xff] }
 0x8df   : > { %v19148_v59 = vcombine.high %v3058_v14, %v3062_v16  ;;  %v3101_v50 = vld [vmem:[%s21083_s17 + $0x2930] sm:$0xff]  ;;  %v3098_v6 = vld [vmem:[%s21083_s17 + $0x2918] sm:$0xff] }
 0x8e1   : > { %16047 = vmatpush1.bf16.msra.mxu0 %v19097_v24  ;;  %16703 = vmatpush1.bf16.msra.mxu1 %v19099_v33  ;;  %v3066_v24 = vld [vmem:[%s21083_s17 + $0x2818] sm:$0xff] }
 0x8e2   : > { %16048 = vmatprep.subr.bf16.mxu0 %v19106_v21  ;;  %16704 = vmatprep.subr.bf16.mxu1 %v19108_v20  ;;  %v3070_v33 = vld [vmem:[%s21083_s17 + $0x2838] sm:$0xff]  ;;  %v19145_v21 = vcombine.low %v3057_v17, %v3061_v39  ;;  %v19147_v20 = vcombine.low %v3058_v14, %v3062_v16  ;;  %v3105_v17 = vld [vmem:[%s21083_s17 + $0x2950] sm:$0xff] }
 0x8e3   : > { %v19156_v31 = vcombine.high %v3066_v24, %v3070_v33  ;;  %v3109_v39 = vld [vmem:[%s21083_s17 + $0x2970] sm:$0xff]  ;;  %v3106_v14 = vld [vmem:[%s21083_s17 + $0x2958] sm:$0xff] }
 0x8e4   : > { %v3110_v16 = vld [vmem:[%s21083_s17 + $0x2978] sm:$0xff] }
 0x8e5   : > { %16049 = vmatpush1.bf16.msra.mxu0 %v19105_v0  ;;  %16705 = vmatpush1.bf16.msra.mxu1 %v19107_v40  ;;  %v3074_v0 = vld [vmem:[%s21083_s17 + $0x2858] sm:$0xff] }
 0x8e6   : > { %16050 = vmatprep.subr.bf16.mxu0 %v19114_v41  ;;  %16706 = vmatprep.subr.bf16.mxu1 %v19116_v30  ;;  %v3078_v40 = vld [vmem:[%s21083_s17 + $0x2878] sm:$0xff]  ;;  %v19153_v41 = vcombine.low %v3065_v19, %v3069_v36  ;;  %v19155_v30 = vcombine.low %v3066_v24, %v3070_v33  ;;  %v3113_v19 = vld [vmem:[%s21083_s17 + $0x2990] sm:$0xff] }
 0x8e7   : > { %v19164_v35 = vcombine.high %v3074_v0, %v3078_v40  ;;  %v3117_v36 = vld [vmem:[%s21083_s17 + $0x29b0] sm:$0xff]  ;;  %v3114_v24 = vld [vmem:[%s21083_s17 + $0x2998] sm:$0xff] }
 0x8e8   : > { %v3118_v33 = vld [vmem:[%s21083_s17 + $0x29b8] sm:$0xff] }
 0x8e9   : > { %16051 = vmatpush1.bf16.msra.mxu0 %v19113_v13  ;;  %16707 = vmatpush1.bf16.msra.mxu1 %v19115_v27  ;;  %v3082_v13 = vld [vmem:[%s21083_s17 + $0x2898] sm:$0xff] }
 0x8ea   : > { %16052 = vmatprep.subr.bf16.mxu0 %v19122_v58  ;;  %16708 = vmatprep.subr.bf16.mxu1 %v19124_v11  ;;  %v3086_v27 = vld [vmem:[%s21083_s17 + $0x28b8] sm:$0xff]  ;;  %v19161_v58 = vcombine.low %v3073_v32, %v3077_v29  ;;  %v19163_v11 = vcombine.low %v3074_v0, %v3078_v40  ;;  %v3121_v32 = vld [vmem:[%s21083_s17 + $0x29d0] sm:$0xff] }
 0x8eb   : > { %v19172_v2 = vcombine.high %v3082_v13, %v3086_v27  ;;  %v3125_v29 = vld [vmem:[%s21083_s17 + $0x29f0] sm:$0xff]  ;;  %v3122_v0 = vld [vmem:[%s21083_s17 + $0x29d8] sm:$0xff] }
 0x8ec   : > { %v3126_v40 = vld [vmem:[%s21083_s17 + $0x29f8] sm:$0xff] }
 0x8ed   : > { %16053 = vmatpush1.bf16.msra.mxu0 %v19121_v60  ;;  %16709 = vmatpush1.bf16.msra.mxu1 %v19123_v25  ;;  %v3090_v60 = vld [vmem:[%s21083_s17 + $0x28d8] sm:$0xff] }
 0x8ee   : > { %16054 = vmatprep.subr.bf16.mxu0 %v19130_v62  ;;  %16710 = vmatprep.subr.bf16.mxu1 %v19132_v3  ;;  %v3094_v25 = vld [vmem:[%s21083_s17 + $0x28f8] sm:$0xff]  ;;  %v19171_v62 = vcombine.low %v3082_v13, %v3086_v27  ;;  %v19178_v3 = vcombine.high %v3089_v56, %v3093_v47 }
 0x8ef   : > { %v19180_v4 = vcombine.high %v3090_v60, %v3094_v25  ;;  %v3130_v13 = vld [vmem:[%s21083_s17 + $0x2a18] sm:$0xff] }
 0x8f0   : > { %v3134_v27 = vld [vmem:[%s21083_s17 + $0x2a38] sm:$0xff] }
 0x8f1   : > { %16055 = vmatpush1.bf16.msra.mxu0 %v19129_v48  ;;  %16711 = vmatpush1.bf16.msra.mxu1 %v19131_v8  ;;  %v3102_v48 = vld [vmem:[%s21083_s17 + $0x2938] sm:$0xff]  ;;  %v19177_v8 = vcombine.low %v3089_v56, %v3093_v47  ;;  %v3137_v56 = vld [vmem:[%s21083_s17 + $0x2a50] sm:$0xff] }
 0x8f2   : > { %16056 = vmatprep.subr.bf16.mxu0 %v19138_v52  ;;  %16712 = vmatprep.subr.bf16.mxu1 %v19140_v45  ;;  %v19186_v52 = vcombine.high %v3097_v5, %v3101_v50  ;;  %v19188_v45 = vcombine.high %v3098_v6, %v3102_v48  ;;  %v3141_v47 = vld [vmem:[%s21083_s17 + $0x2a70] sm:$0xff] }
 0x8f5   : > { %16057 = vmatpush1.bf16.msra.mxu0 %v19137_v23  ;;  %16713 = vmatpush1.bf16.msra.mxu1 %v19139_v18  ;;  %v19185_v23 = vcombine.low %v3097_v5, %v3101_v50  ;;  %v19187_v18 = vcombine.low %v3098_v6, %v3102_v48  ;;  %v3145_v5 = vld [vmem:[%s21083_s17 + $0x2a90] sm:$0xff]  ;;  %v3146_v6 = vld [vmem:[%s21083_s17 + $0x2a98] sm:$0xff] }
 0x8f6   : > { %16058 = vmatprep.subr.bf16.mxu0 %v19146_v1  ;;  %16714 = vmatprep.subr.bf16.mxu1 %v19148_v59  ;;  %v19194_v1 = vcombine.high %v3105_v17, %v3109_v39  ;;  %v19196_v59 = vcombine.high %v3106_v14, %v3110_v16  ;;  %v3149_v50 = vld [vmem:[%s21083_s17 + $0x2ab0] sm:$0xff]  ;;  %v3150_v48 = vld [vmem:[%s21083_s17 + $0x2ab8] sm:$0xff] }
 0x8f9   : > { %16059 = vmatpush1.bf16.msra.mxu0 %v19145_v21  ;;  %16715 = vmatpush1.bf16.msra.mxu1 %v19147_v20  ;;  %v19193_v21 = vcombine.low %v3105_v17, %v3109_v39  ;;  %v19195_v20 = vcombine.low %v3106_v14, %v3110_v16  ;;  %v3153_v17 = vld [vmem:[%s21083_s17 + $0x2ad0] sm:$0xff]  ;;  %v3154_v14 = vld [vmem:[%s21083_s17 + $0x2ad8] sm:$0xff] }
 0x8fa   : > { %16069 = vmatprep.subr.bf16.mxu0 %v19154_v34  ;;  %16725 = vmatprep.subr.bf16.mxu1 %v19156_v31  ;;  %v19202_v34 = vcombine.high %v3113_v19, %v3117_v36  ;;  %v19204_v31 = vcombine.high %v3114_v24, %v3118_v33  ;;  %v3157_v39 = vld [vmem:[%s21083_s17 + $0x2af0] sm:$0xff]  ;;  %v3158_v16 = vld [vmem:[%s21083_s17 + $0x2af8] sm:$0xff] }
 0x8fc   : > { %16061 = vmatmul.mubr.bf16.vlgmr.msra.gmra.mrb[4].mxu0 %v22092_v28  ;;  %16717 = vmatmul.mubr.bf16.vlgmr.msra.gmra.mrb[4].mxu1 %v22092_v28  ;;  %v19169_v28 = vcombine.low %v3081_v46, %v3085_v37  ;;  %v3129_v46 = vld [vmem:[%s21083_s17 + $0x2a10] sm:$0xff] }
 0x8fd   : > { %16070 = vmatpush1.bf16.msra.mxu0 %v19153_v41  ;;  %16726 = vmatpush1.bf16.msra.mxu1 %v19155_v30  ;;  %v19201_v41 = vcombine.low %v3113_v19, %v3117_v36  ;;  %v19203_v30 = vcombine.low %v3114_v24, %v3118_v33  ;;  %v3133_v37 = vld [vmem:[%s21083_s17 + $0x2a30] sm:$0xff]  ;;  %v3162_v24 = vld [vmem:[%s21083_s17 + $0x2b18] sm:$0xff] }
 0x8fe   : > { %16071 = vmatprep.subr.bf16.mxu0 %v19162_v44  ;;  %16727 = vmatprep.subr.bf16.mxu1 %v19164_v35  ;;  %v19210_v44 = vcombine.high %v3121_v32, %v3125_v29  ;;  %v19212_v35 = vcombine.high %v3122_v0, %v3126_v40  ;;  %v3161_v19 = vld [vmem:[%s21083_s17 + $0x2b10] sm:$0xff]  ;;  %v3166_v33 = vld [vmem:[%s21083_s17 + $0x2b38] sm:$0xff] }
 0x8ff   : > { %16101 = vmatprep.mubr.bf16.mxu0 %v22099_v42  ;;  %16757 = vmatprep.mubr.bf16.mxu1 %v22099_v42  ;;  %v19179_v42 = vcombine.low %v3090_v60, %v3094_v25  ;;  %v3138_v60 = vld [vmem:[%s21083_s17 + $0x2a58] sm:$0xff]  ;;  %v3165_v36 = vld [vmem:[%s21083_s17 + $0x2b30] sm:$0xff] }
 0x900   : > { %v3142_v25 = vld [vmem:[%s21083_s17 + $0x2a78] sm:$0xff] }
 0x901   : > { %16072 = vmatpush1.bf16.msra.mxu0 %v19161_v58  ;;  %16728 = vmatpush1.bf16.msra.mxu1 %v19163_v11  ;;  %v19209_v58 = vcombine.low %v3121_v32, %v3125_v29  ;;  %v19211_v11 = vcombine.low %v3122_v0, %v3126_v40  ;;  %v3169_v32 = vld [vmem:[%s21083_s17 + $0x2b50] sm:$0xff]  ;;  %v3170_v0 = vld [vmem:[%s21083_s17 + $0x2b58] sm:$0xff] }
 0x902   : > { %16073 = vmatprep.subr.bf16.mxu0 %v19170_v55  ;;  %16729 = vmatprep.subr.bf16.mxu1 %v19172_v2  ;;  %v19218_v55 = vcombine.high %v3129_v46, %v3133_v37  ;;  %v19220_v2 = vcombine.high %v3130_v13, %v3134_v27  ;;  %v3173_v29 = vld [vmem:[%s21083_s17 + $0x2b70] sm:$0xff]  ;;  %v3174_v40 = vld [vmem:[%s21083_s17 + $0x2b78] sm:$0xff] }
 0x905   : > { %16074 = vmatpush1.bf16.msra.mxu0 %v19169_v28  ;;  %16730 = vmatpush1.bf16.msra.mxu1 %v19171_v62  ;;  %v19217_v28 = vcombine.low %v3129_v46, %v3133_v37  ;;  %v19219_v62 = vcombine.low %v3130_v13, %v3134_v27  ;;  %v3177_v46 = vld [vmem:[%s21083_s17 + $0x2b90] sm:$0xff]  ;;  %v3178_v13 = vld [vmem:[%s21083_s17 + $0x2b98] sm:$0xff] }
 0x906   : > { %16075 = vmatprep.subr.bf16.mxu0 %v19178_v3  ;;  %16731 = vmatprep.subr.bf16.mxu1 %v19180_v4  ;;  %v19226_v3 = vcombine.high %v3137_v56, %v3141_v47  ;;  %v19228_v4 = vcombine.high %v3138_v60, %v3142_v25  ;;  %v3181_v37 = vld [vmem:[%s21083_s17 + $0x2bb0] sm:$0xff]  ;;  %v3182_v27 = vld [vmem:[%s21083_s17 + $0x2bb8] sm:$0xff] }
 0x909   : > { %16076 = vmatpush1.bf16.msra.mxu0 %v19177_v8  ;;  %16732 = vmatpush1.bf16.msra.mxu1 %v19179_v42  ;;  %v19225_v8 = vcombine.low %v3137_v56, %v3141_v47  ;;  %v19227_v42 = vcombine.low %v3138_v60, %v3142_v25  ;;  %v3185_v56 = vld [vmem:[%s21083_s17 + $0x2bd0] sm:$0xff]  ;;  %v3186_v60 = vld [vmem:[%s21083_s17 + $0x2bd8] sm:$0xff] }
 0x90a   : > { %16077 = vmatprep.subr.bf16.mxu0 %v19186_v52  ;;  %16733 = vmatprep.subr.bf16.mxu1 %v19188_v45  ;;  %v19234_v52 = vcombine.high %v3145_v5, %v3149_v50  ;;  %v19236_v45 = vcombine.high %v3146_v6, %v3150_v48  ;;  %v3189_v47 = vld [vmem:[%s21083_s17 + $0x2bf0] sm:$0xff]  ;;  %v3190_v25 = vld [vmem:[%s21083_s17 + $0x2bf8] sm:$0xff] }
 0x90d   : > { %16078 = vmatpush1.bf16.msra.mxu0 %v19185_v23  ;;  %16734 = vmatpush1.bf16.msra.mxu1 %v19187_v18  ;;  %v19233_v23 = vcombine.low %v3145_v5, %v3149_v50  ;;  %v19235_v18 = vcombine.low %v3146_v6, %v3150_v48  ;;  %v3193_v5 = vld [vmem:[%s21083_s17 + $0x2c10] sm:$0xff]  ;;  %v3194_v6 = vld [vmem:[%s21083_s17 + $0x2c18] sm:$0xff] }
 0x90e   : > { %16079 = vmatprep.subr.bf16.mxu0 %v19194_v1  ;;  %16735 = vmatprep.subr.bf16.mxu1 %v19196_v59  ;;  %v19242_v1 = vcombine.high %v3153_v17, %v3157_v39  ;;  %v19244_v59 = vcombine.high %v3154_v14, %v3158_v16  ;;  %v3197_v50 = vld [vmem:[%s21083_s17 + $0x2c30] sm:$0xff]  ;;  %v3198_v48 = vld [vmem:[%s21083_s17 + $0x2c38] sm:$0xff] }
 0x911   : > { %16080 = vmatpush1.bf16.msra.mxu0 %v19193_v21  ;;  %16736 = vmatpush1.bf16.msra.mxu1 %v19195_v20  ;;  %v19241_v21 = vcombine.low %v3153_v17, %v3157_v39  ;;  %v19243_v20 = vcombine.low %v3154_v14, %v3158_v16  ;;  %v3201_v17 = vld [vmem:[%s21083_s17 + $0x2c50] sm:$0xff]  ;;  %v3202_v14 = vld [vmem:[%s21083_s17 + $0x2c58] sm:$0xff] }
 0x912   : > { %16081 = vmatprep.subr.bf16.mxu0 %v19202_v34  ;;  %16737 = vmatprep.subr.bf16.mxu1 %v19204_v31  ;;  %v19250_v34 = vcombine.high %v3161_v19, %v3165_v36  ;;  %v19252_v31 = vcombine.high %v3162_v24, %v3166_v33  ;;  %v3205_v39 = vld [vmem:[%s21083_s17 + $0x2c70] sm:$0xff]  ;;  %v3206_v16 = vld [vmem:[%s21083_s17 + $0x2c78] sm:$0xff] }
 0x915   : > { %16082 = vmatpush1.bf16.msra.mxu0 %v19201_v41  ;;  %16738 = vmatpush1.bf16.msra.mxu1 %v19203_v30  ;;  %v19249_v41 = vcombine.low %v3161_v19, %v3165_v36  ;;  %v19251_v30 = vcombine.low %v3162_v24, %v3166_v33  ;;  %v3209_v19 = vld [vmem:[%s21083_s17 + $0x2c90] sm:$0xff]  ;;  %v3210_v24 = vld [vmem:[%s21083_s17 + $0x2c98] sm:$0xff] }
 0x916   : > { %16083 = vmatprep.subr.bf16.mxu0 %v19210_v44  ;;  %16739 = vmatprep.subr.bf16.mxu1 %v19212_v35  ;;  %v19258_v44 = vcombine.high %v3169_v32, %v3173_v29  ;;  %v19260_v35 = vcombine.high %v3170_v0, %v3174_v40  ;;  %v3213_v36 = vld [vmem:[%s21083_s17 + $0x2cb0] sm:$0xff]  ;;  %v3214_v33 = vld [vmem:[%s21083_s17 + $0x2cb8] sm:$0xff] }
 0x919   : > { %16084 = vmatpush1.bf16.msra.mxu0 %v19209_v58  ;;  %16740 = vmatpush1.bf16.msra.mxu1 %v19211_v11  ;;  %v19257_v58 = vcombine.low %v3169_v32, %v3173_v29  ;;  %v19259_v11 = vcombine.low %v3170_v0, %v3174_v40  ;;  %v3217_v32 = vld [vmem:[%s21083_s17 + $0x2cd0] sm:$0xff]  ;;  %v3218_v0 = vld [vmem:[%s21083_s17 + $0x2cd8] sm:$0xff] }
 0x91a   : > { %16085 = vmatprep.subr.bf16.mxu0 %v19218_v55  ;;  %16741 = vmatprep.subr.bf16.mxu1 %v19220_v2  ;;  %v19266_v55 = vcombine.high %v3177_v46, %v3181_v37  ;;  %v19268_v2 = vcombine.high %v3178_v13, %v3182_v27  ;;  %v3221_v29 = vld [vmem:[%s21083_s17 + $0x2cf0] sm:$0xff]  ;;  %v3222_v40 = vld [vmem:[%s21083_s17 + $0x2cf8] sm:$0xff] }
 0x91d   : > { %16086 = vmatpush1.bf16.msra.mxu0 %v19217_v28  ;;  %16742 = vmatpush1.bf16.msra.mxu1 %v19219_v62  ;;  %v19265_v28 = vcombine.low %v3177_v46, %v3181_v37  ;;  %v19267_v62 = vcombine.low %v3178_v13, %v3182_v27  ;;  %v3229_v46 = vld [vmem:[%s21083_s17 + $0x2d30] sm:$0xff]  ;;  %v3226_v37 = vld [vmem:[%s21083_s17 + $0x2d18] sm:$0xff]  ;;  %v19305_v27 = vcombine.low %v3217_v32, %v3221_v29 }
 0x91e   : > { %16087 = vmatprep.subr.bf16.mxu0 %v19226_v3  ;;  %16743 = vmatprep.subr.bf16.mxu1 %v19228_v4  ;;  %v19274_v3 = vcombine.high %v3185_v56, %v3189_v47  ;;  %v19276_v4 = vcombine.high %v3186_v60, %v3190_v25  ;;  %v3230_v13 = vld [vmem:[%s21083_s17 + $0x2d38] sm:$0xff] }
 0x921   : > { %16088 = vmatpush1.bf16.msra.mxu0 %v19225_v8  ;;  %16744 = vmatpush1.bf16.msra.mxu1 %v19227_v42  ;;  %v19273_v8 = vcombine.low %v3185_v56, %v3189_v47  ;;  %v19275_v42 = vcombine.low %v3186_v60, %v3190_v25  ;;  %v3234_v56 = vld [vmem:[%s21083_s17 + $0x2d58] sm:$0xff]  ;;  %v19315_v25 = vcombine.low %v3226_v37, %v3230_v13 }
 0x922   : > { %16089 = vmatprep.subr.bf16.mxu0 %v19234_v52  ;;  %16745 = vmatprep.subr.bf16.mxu1 %v19236_v45  ;;  %v19282_v52 = vcombine.high %v3193_v5, %v3197_v50  ;;  %v19284_v45 = vcombine.high %v3194_v6, %v3198_v48  ;;  %v3238_v47 = vld [vmem:[%s21083_s17 + $0x2d78] sm:$0xff] }
 0x925   : > { %16090 = vmatpush1.bf16.msra.mxu0 %v19233_v23  ;;  %16746 = vmatpush1.bf16.msra.mxu1 %v19235_v18  ;;  %v19281_v23 = vcombine.low %v3193_v5, %v3197_v50  ;;  %v19283_v18 = vcombine.low %v3194_v6, %v3198_v48  ;;  %v3242_v5 = vld [vmem:[%s21083_s17 + $0x2d98] sm:$0xff]  ;;  %v19323_v48 = vcombine.low %v3234_v56, %v3238_v47 }
 0x926   : > { %16091 = vmatprep.subr.bf16.mxu0 %v19242_v1  ;;  %16747 = vmatprep.subr.bf16.mxu1 %v19244_v59  ;;  %v19290_v1 = vcombine.high %v3201_v17, %v3205_v39  ;;  %v19292_v59 = vcombine.high %v3202_v14, %v3206_v16  ;;  %v3246_v50 = vld [vmem:[%s21083_s17 + $0x2db8] sm:$0xff] }
 0x929   : > { %16092 = vmatpush1.bf16.msra.mxu0 %v19241_v21  ;;  %16748 = vmatpush1.bf16.msra.mxu1 %v19243_v20  ;;  %v19289_v21 = vcombine.low %v3201_v17, %v3205_v39  ;;  %v19291_v20 = vcombine.low %v3202_v14, %v3206_v16  ;;  %v3250_v17 = vld [vmem:[%s21083_s17 + $0x2dd8] sm:$0xff]  ;;  %v19331_v16 = vcombine.low %v3242_v5, %v3246_v50 }
 0x92a   : > { %16093 = vmatprep.subr.bf16.mxu0 %v19250_v34  ;;  %16749 = vmatprep.subr.bf16.mxu1 %v19252_v31  ;;  %v19298_v34 = vcombine.high %v3209_v19, %v3213_v36  ;;  %v19300_v31 = vcombine.high %v3210_v24, %v3214_v33  ;;  %v3254_v39 = vld [vmem:[%s21083_s17 + $0x2df8] sm:$0xff] }
 0x92d   : > { %16094 = vmatpush1.bf16.msra.mxu0 %v19249_v41  ;;  %16750 = vmatpush1.bf16.msra.mxu1 %v19251_v30  ;;  %v19299_v41 = vcombine.low %v3210_v24, %v3214_v33  ;;  %v19306_v30 = vcombine.high %v3217_v32, %v3221_v29  ;;  %v19339_v33 = vcombine.low %v3250_v17, %v3254_v39  ;;  %v3266_v32 = vld [vmem:[%s21083_s17 + $0x2e58] sm:$0xff] }
 0x92e   : > { %16095 = vmatprep.subr.bf16.mxu0 %v19258_v44  ;;  %16751 = vmatprep.subr.bf16.mxu1 %v19260_v35  ;;  %v19308_v44 = vcombine.high %v3218_v0, %v3222_v40  ;;  %v3225_v35 = vld [vmem:[%s21083_s17 + $0x2d10] sm:$0xff]  ;;  %v3270_v29 = vld [vmem:[%s21083_s17 + $0x2e78] sm:$0xff] }
 0x92f   : > { %v19313_v60 = vcombine.low %v3225_v35, %v3229_v46 }
 0x931   : > { %16096 = vmatpush1.bf16.msra.mxu0 %v19257_v58  ;;  %16752 = vmatpush1.bf16.msra.mxu1 %v19259_v11  ;;  %v19314_v58 = vcombine.high %v3225_v35, %v3229_v46  ;;  %v19316_v11 = vcombine.high %v3226_v37, %v3230_v13  ;;  %v3274_v35 = vld [vmem:[%s21083_s17 + $0x2e98] sm:$0xff]  ;;  %v19355_v13 = vcombine.low %v3266_v32, %v3270_v29 }
 0x932   : > { %16097 = vmatprep.subr.bf16.mxu0 %v19266_v55  ;;  %16753 = vmatprep.subr.bf16.mxu1 %v19268_v2  ;;  %v3233_v55 = vld [vmem:[%s21083_s17 + $0x2d50] sm:$0xff]  ;;  %v3278_v46 = vld [vmem:[%s21083_s17 + $0x2eb8] sm:$0xff] }
 0x933   : > { %v3237_v2 = vld [vmem:[%s21083_s17 + $0x2d70] sm:$0xff] }
 0x934   : > { %v19321_v6 = vcombine.low %v3233_v55, %v3237_v2 }
 0x935   : > { %16098 = vmatpush1.bf16.msra.mxu0 %v19265_v28  ;;  %16754 = vmatpush1.bf16.msra.mxu1 %v19267_v62  ;;  %v19322_v28 = vcombine.high %v3233_v55, %v3237_v2  ;;  %v19324_v62 = vcombine.high %v3234_v56, %v3238_v47  ;;  %v3282_v55 = vld [vmem:[%s21083_s17 + $0x2ed8] sm:$0xff]  ;;  %v19363_v47 = vcombine.low %v3274_v35, %v3278_v46 }
 0x936   : > { %16099 = vmatprep.subr.bf16.mxu0 %v19274_v3  ;;  %16755 = vmatprep.subr.bf16.mxu1 %v19276_v4  ;;  %v3241_v3 = vld [vmem:[%s21083_s17 + $0x2d90] sm:$0xff]  ;;  %v3286_v2 = vld [vmem:[%s21083_s17 + $0x2ef8] sm:$0xff] }
 0x937   : > { %v3245_v4 = vld [vmem:[%s21083_s17 + $0x2db0] sm:$0xff] }
 0x938   : > { %v19329_v14 = vcombine.low %v3241_v3, %v3245_v4 }
 0x939   : > { %16100 = vmatpush1.bf16.msra.mxu0 %v19273_v8  ;;  %16756 = vmatpush1.bf16.msra.mxu1 %v19275_v42  ;;  %v19330_v8 = vcombine.high %v3241_v3, %v3245_v4  ;;  %v19332_v42 = vcombine.high %v3242_v5, %v3246_v50  ;;  %v3290_v3 = vld [vmem:[%s21083_s17 + $0x2f18] sm:$0xff]  ;;  %v19371_v50 = vcombine.low %v3282_v55, %v3286_v2 }
 0x93a   : > { %16110 = vmatprep.subr.bf16.mxu0 %v19282_v52  ;;  %16766 = vmatprep.subr.bf16.mxu1 %v19284_v45  ;;  %v3249_v52 = vld [vmem:[%s21083_s17 + $0x2dd0] sm:$0xff]  ;;  %v3294_v4 = vld [vmem:[%s21083_s17 + $0x2f38] sm:$0xff] }
 0x93b   : > { %v3253_v45 = vld [vmem:[%s21083_s17 + $0x2df0] sm:$0xff] }
 0x93c   : > { %16102 = vmatmul.mubr.bf16.vlgmr.msra.gmra.mrb[4].mxu0 %v22167_v26  ;;  %16758 = vmatmul.mubr.bf16.vlgmr.msra.gmra.mrb[4].mxu1 %v22167_v26  ;;  %v19297_v26 = vcombine.low %v3209_v19, %v3213_v36  ;;  %v3258_v19 = vld [vmem:[%s21083_s17 + $0x2e18] sm:$0xff]  ;;  %v19337_v24 = vcombine.low %v3249_v52, %v3253_v45 }
 0x93d   : > { %16111 = vmatpush1.bf16.msra.mxu0 %v19281_v23  ;;  %16767 = vmatpush1.bf16.msra.mxu1 %v19283_v18  ;;  %v19338_v23 = vcombine.high %v3249_v52, %v3253_v45  ;;  %v19340_v18 = vcombine.high %v3250_v17, %v3254_v39  ;;  %v3262_v36 = vld [vmem:[%s21083_s17 + $0x2e38] sm:$0xff]  ;;  %v19379_v39 = vcombine.low %v3290_v3, %v3294_v4 }
 0x93e   : > { %16112 = vmatprep.subr.bf16.mxu0 %v19290_v1  ;;  %16768 = vmatprep.subr.bf16.mxu1 %v19292_v59  ;;  %v3257_v1 = vld [vmem:[%s21083_s17 + $0x2e10] sm:$0xff]  ;;  %v3298_v52 = vld [vmem:[%s21083_s17 + $0x2f58] sm:$0xff] }
 0x93f   : > { %16142 = vmatprep.mubr.bf16.mxu0 %v22175_v53  ;;  %16798 = vmatprep.mubr.bf16.mxu1 %v22175_v53  ;;  %v19307_v53 = vcombine.low %v3218_v0, %v3222_v40  ;;  %v3261_v59 = vld [vmem:[%s21083_s17 + $0x2e30] sm:$0xff]  ;;  %v19347_v40 = vcombine.low %v3258_v19, %v3262_v36  ;;  %v3302_v45 = vld [vmem:[%s21083_s17 + $0x2f78] sm:$0xff] }
 0x940   : > { %v19345_v0 = vcombine.low %v3257_v1, %v3261_v59 }
 0x941   : > { %16113 = vmatpush1.bf16.msra.mxu0 %v19289_v21  ;;  %16769 = vmatpush1.bf16.msra.mxu1 %v19291_v20  ;;  %v19346_v21 = vcombine.high %v3257_v1, %v3261_v59  ;;  %v19348_v20 = vcombine.high %v3258_v19, %v3262_v36  ;;  %v3306_v1 = vld [vmem:[%s21083_s17 + $0x2f98] sm:$0xff]  ;;  %v19387_v36 = vcombine.low %v3298_v52, %v3302_v45 }
 0x942   : > { %16114 = vmatprep.subr.bf16.mxu0 %v19298_v34  ;;  %16770 = vmatprep.subr.bf16.mxu1 %v19300_v31  ;;  %v3265_v34 = vld [vmem:[%s21083_s17 + $0x2e50] sm:$0xff]  ;;  %v3310_v59 = vld [vmem:[%s21083_s17 + $0x2fb8] sm:$0xff] }
 0x943   : > { %v3269_v31 = vld [vmem:[%s21083_s17 + $0x2e70] sm:$0xff] }
 0x944   : > { %v19353_v37 = vcombine.low %v3265_v34, %v3269_v31 }
 0x945   : > { %16115 = vmatpush1.bf16.msra.mxu0 %v19297_v26  ;;  %16771 = vmatpush1.bf16.msra.mxu1 %v19299_v41  ;;  %v19354_v26 = vcombine.high %v3265_v34, %v3269_v31  ;;  %v19356_v41 = vcombine.high %v3266_v32, %v3270_v29  ;;  %v3314_v34 = vld [vmem:[%s21083_s17 + $0x2fd8] sm:$0xff]  ;;  %v19395_v29 = vcombine.low %v3306_v1, %v3310_v59 }
 0x946   : > { %16116 = vmatprep.subr.bf16.mxu0 %v19306_v30  ;;  %16772 = vmatprep.subr.bf16.mxu1 %v19308_v44  ;;  %v3273_v30 = vld [vmem:[%s21083_s17 + $0x2e90] sm:$0xff]  ;;  %v3318_v31 = vld [vmem:[%s21083_s17 + $0x2ff8] sm:$0xff] }
 0x947   : > { %v3277_v44 = vld [vmem:[%s21083_s17 + $0x2eb0] sm:$0xff] }
 0x948   : > { %v19361_v56 = vcombine.low %v3273_v30, %v3277_v44 }
 0x949   : > { %16117 = vmatpush1.bf16.msra.mxu0 %v19305_v27  ;;  %16773 = vmatpush1.bf16.msra.mxu1 %v19307_v53  ;;  %v19362_v27 = vcombine.high %v3273_v30, %v3277_v44  ;;  %v19364_v53 = vcombine.high %v3274_v35, %v3278_v46  ;;  %v3322_v30 = vld [vmem:[%s21083_s17 + $0x3018] sm:$0xff]  ;;  %v19403_v46 = vcombine.low %v3314_v34, %v3318_v31 }
 0x94a   : > { %16118 = vmatprep.subr.bf16.mxu0 %v19314_v58  ;;  %16774 = vmatprep.subr.bf16.mxu1 %v19316_v11  ;;  %v3281_v58 = vld [vmem:[%s21083_s17 + $0x2ed0] sm:$0xff]  ;;  %v3326_v44 = vld [vmem:[%s21083_s17 + $0x3038] sm:$0xff] }
 0x94b   : > { %v3285_v11 = vld [vmem:[%s21083_s17 + $0x2ef0] sm:$0xff] }
 0x94c   : > { %v19369_v5 = vcombine.low %v3281_v58, %v3285_v11 }
 0x94d   : > { %16119 = vmatpush1.bf16.msra.mxu0 %v19313_v60  ;;  %16775 = vmatpush1.bf16.msra.mxu1 %v19315_v25  ;;  %v19370_v60 = vcombine.high %v3281_v58, %v3285_v11  ;;  %v19372_v25 = vcombine.high %v3282_v55, %v3286_v2  ;;  %v3330_v58 = vld [vmem:[%s21083_s17 + $0x3058] sm:$0xff]  ;;  %v19411_v2 = vcombine.low %v3322_v30, %v3326_v44 }
 0x94e   : > { %16120 = vmatprep.subr.bf16.mxu0 %v19322_v28  ;;  %16776 = vmatprep.subr.bf16.mxu1 %v19324_v62  ;;  %v3289_v28 = vld [vmem:[%s21083_s17 + $0x2f10] sm:$0xff]  ;;  %v3334_v11 = vld [vmem:[%s21083_s17 + $0x3078] sm:$0xff] }
 0x94f   : > { %v3293_v62 = vld [vmem:[%s21083_s17 + $0x2f30] sm:$0xff] }
 0x950   : > { %v19377_v17 = vcombine.low %v3289_v28, %v3293_v62 }
 0x951   : > { %16121 = vmatpush1.bf16.msra.mxu0 %v19321_v6  ;;  %16777 = vmatpush1.bf16.msra.mxu1 %v19323_v48  ;;  %v19378_v6 = vcombine.high %v3289_v28, %v3293_v62  ;;  %v19380_v48 = vcombine.high %v3290_v3, %v3294_v4  ;;  %v3338_v28 = vld [vmem:[%s21083_s17 + $0x3098] sm:$0xff]  ;;  %v19419_v4 = vcombine.low %v3330_v58, %v3334_v11 }
 0x952   : > { %16122 = vmatprep.subr.bf16.mxu0 %v19330_v8  ;;  %16778 = vmatprep.subr.bf16.mxu1 %v19332_v42  ;;  %v3297_v8 = vld [vmem:[%s21083_s17 + $0x2f50] sm:$0xff]  ;;  %v3342_v62 = vld [vmem:[%s21083_s17 + $0x30b8] sm:$0xff] }
 0x953   : > { %v3301_v42 = vld [vmem:[%s21083_s17 + $0x2f70] sm:$0xff] }
 0x954   : > { %v19385_v19 = vcombine.low %v3297_v8, %v3301_v42 }
 0x955   : > { %16123 = vmatpush1.bf16.msra.mxu0 %v19329_v14  ;;  %16779 = vmatpush1.bf16.msra.mxu1 %v19331_v16  ;;  %v19386_v14 = vcombine.high %v3297_v8, %v3301_v42  ;;  %v19388_v16 = vcombine.high %v3298_v52, %v3302_v45  ;;  %v3346_v8 = vld [vmem:[%s21083_s17 + $0x30d8] sm:$0xff]  ;;  %v19427_v52 = vcombine.low %v3338_v28, %v3342_v62 }
 0x956   : > { %16124 = vmatprep.subr.bf16.mxu0 %v19338_v23  ;;  %16780 = vmatprep.subr.bf16.mxu1 %v19340_v18  ;;  %v3305_v23 = vld [vmem:[%s21083_s17 + $0x2f90] sm:$0xff]  ;;  %v3350_v42 = vld [vmem:[%s21083_s17 + $0x30f8] sm:$0xff] }
 0x957   : > { %v3309_v18 = vld [vmem:[%s21083_s17 + $0x2fb0] sm:$0xff] }
 0x958   : > { %v19393_v32 = vcombine.low %v3305_v23, %v3309_v18 }
 0x959   : > { %16125 = vmatpush1.bf16.msra.mxu0 %v19337_v24  ;;  %16781 = vmatpush1.bf16.msra.mxu1 %v19339_v33  ;;  %v19394_v24 = vcombine.high %v3305_v23, %v3309_v18  ;;  %v19396_v33 = vcombine.high %v3306_v1, %v3310_v59  ;;  %v3358_v23 = vld [vmem:[%s21083_s17 + $0x3138] sm:$0xff] }
 0x95a   : > { %16126 = vmatprep.subr.bf16.mxu0 %v19346_v21  ;;  %16782 = vmatprep.subr.bf16.mxu1 %v19348_v20  ;;  %v3313_v21 = vld [vmem:[%s21083_s17 + $0x2fd0] sm:$0xff] }
 0x95b   : > { %v3317_v20 = vld [vmem:[%s21083_s17 + $0x2ff0] sm:$0xff] }
 0x95c   : > { %v19401_v35 = vcombine.low %v3313_v21, %v3317_v20 }
 0x95d   : > { %16127 = vmatpush1.bf16.msra.mxu0 %v19345_v0  ;;  %16783 = vmatpush1.bf16.msra.mxu1 %v19347_v40  ;;  %v19402_v0 = vcombine.high %v3313_v21, %v3317_v20  ;;  %v19404_v40 = vcombine.high %v3314_v34, %v3318_v31 }
 0x95e   : > { %16128 = vmatprep.subr.bf16.mxu0 %v19354_v26  ;;  %16784 = vmatprep.subr.bf16.mxu1 %v19356_v41  ;;  %v3321_v26 = vld [vmem:[%s21083_s17 + $0x3010] sm:$0xff] }
 0x95f   : > { %v3325_v41 = vld [vmem:[%s21083_s17 + $0x3030] sm:$0xff] }
 0x960   : > { %v19409_v55 = vcombine.low %v3321_v26, %v3325_v41 }
 0x961   : > { %16129 = vmatpush1.bf16.msra.mxu0 %v19353_v37  ;;  %16785 = vmatpush1.bf16.msra.mxu1 %v19355_v13  ;;  %v19410_v37 = vcombine.high %v3321_v26, %v3325_v41  ;;  %v19412_v13 = vcombine.high %v3322_v30, %v3326_v44 }
 0x962   : > { %16130 = vmatprep.subr.bf16.mxu0 %v19362_v27  ;;  %16786 = vmatprep.subr.bf16.mxu1 %v19364_v53  ;;  %v3329_v27 = vld [vmem:[%s21083_s17 + $0x3050] sm:$0xff] }
 0x963   : > { %v3333_v53 = vld [vmem:[%s21083_s17 + $0x3070] sm:$0xff] }
 0x964   : > { %v19417_v3 = vcombine.low %v3329_v27, %v3333_v53 }
 0x965   : > { %16131 = vmatpush1.bf16.msra.mxu0 %v19361_v56  ;;  %16787 = vmatpush1.bf16.msra.mxu1 %v19363_v47  ;;  %v19418_v56 = vcombine.high %v3329_v27, %v3333_v53  ;;  %v19420_v47 = vcombine.high %v3330_v58, %v3334_v11 }
 0x966   : > { %16132 = vmatprep.subr.bf16.mxu0 %v19370_v60  ;;  %16788 = vmatprep.subr.bf16.mxu1 %v19372_v25  ;;  %v3337_v60 = vld [vmem:[%s21083_s17 + $0x3090] sm:$0xff] }
 0x967   : > { %v3341_v25 = vld [vmem:[%s21083_s17 + $0x30b0] sm:$0xff] }
 0x969   : > { %16133 = vmatpush1.bf16.msra.mxu0 %v19369_v5  ;;  %16789 = vmatpush1.bf16.msra.mxu1 %v19371_v50  ;;  %v19426_v5 = vcombine.high %v3337_v60, %v3341_v25  ;;  %v19428_v50 = vcombine.high %v3338_v28, %v3342_v62 }
 0x96a   : > { %16134 = vmatprep.subr.bf16.mxu0 %v19378_v6  ;;  %16790 = vmatprep.subr.bf16.mxu1 %v19380_v48  ;;  %v3345_v6 = vld [vmem:[%s21083_s17 + $0x30d0] sm:$0xff] }
 0x96b   : > { %v3349_v48 = vld [vmem:[%s21083_s17 + $0x30f0] sm:$0xff] }
 0x96c   : > { %v19434_v45 = vcombine.high %v3345_v6, %v3349_v48  ;;  %v19433_v18 = vcombine.low %v3345_v6, %v3349_v48 }
 0x96d   : > { %16135 = vmatpush1.bf16.msra.mxu0 %v19377_v17  ;;  %16791 = vmatpush1.bf16.msra.mxu1 %v19379_v39  ;;  %v19436_v17 = vcombine.high %v3346_v8, %v3350_v42  ;;  %v3353_v39 = vld [vmem:[%s21083_s17 + $0x3110] sm:$0xff] }
 0x96e   : > { %16136 = vmatprep.subr.bf16.mxu0 %v19386_v14  ;;  %16792 = vmatprep.subr.bf16.mxu1 %v19388_v16  ;;  %v3357_v14 = vld [vmem:[%s21083_s17 + $0x3130] sm:$0xff]  ;;  %v3354_v16 = vld [vmem:[%s21083_s17 + $0x3118] sm:$0xff] }
 0x96f   : > { %v19442_v1 = vcombine.high %v3353_v39, %v3357_v14  ;;  %v19444_v59 = vcombine.high %v3354_v16, %v3358_v23  ;;  %v19441_v21 = vcombine.low %v3353_v39, %v3357_v14  ;;  %v19443_v20 = vcombine.low %v3354_v16, %v3358_v23 }
 0x971   : > { %16137 = vmatpush1.bf16.msra.mxu0 %v19385_v19  ;;  %16793 = vmatpush1.bf16.msra.mxu1 %v19387_v36  ;;  %v3361_v19 = vld [vmem:[%s21083_s17 + $0x3150] sm:$0xff] }
 0x972   : > { %16138 = vmatprep.subr.bf16.mxu0 %v19394_v24  ;;  %16794 = vmatprep.subr.bf16.mxu1 %v19396_v33  ;;  %v3365_v36 = vld [vmem:[%s21083_s17 + $0x3170] sm:$0xff]  ;;  %v3362_v24 = vld [vmem:[%s21083_s17 + $0x3158] sm:$0xff] }
 0x973   : > { %v3366_v33 = vld [vmem:[%s21083_s17 + $0x3178] sm:$0xff]  ;;  %v19450_v34 = vcombine.high %v3361_v19, %v3365_v36  ;;  %v19449_v26 = vcombine.low %v3361_v19, %v3365_v36 }
 0x974   : > { %v19452_v31 = vcombine.high %v3362_v24, %v3366_v33  ;;  %v19451_v41 = vcombine.low %v3362_v24, %v3366_v33 }
 0x975   : > { %16139 = vmatpush1.bf16.msra.mxu0 %v19393_v32  ;;  %16795 = vmatpush1.bf16.msra.mxu1 %v19395_v29  ;;  %v3369_v32 = vld [vmem:[%s21083_s17 + $0x3190] sm:$0xff] }
 0x976   : > { %16140 = vmatprep.subr.bf16.mxu0 %v19402_v0  ;;  %16796 = vmatprep.subr.bf16.mxu1 %v19404_v40  ;;  %v3373_v29 = vld [vmem:[%s21083_s17 + $0x31b0] sm:$0xff]  ;;  %v3370_v0 = vld [vmem:[%s21083_s17 + $0x3198] sm:$0xff] }
 0x977   : > { %v3374_v40 = vld [vmem:[%s21083_s17 + $0x31b8] sm:$0xff]  ;;  %v19458_v30 = vcombine.high %v3369_v32, %v3373_v29  ;;  %v19457_v27 = vcombine.low %v3369_v32, %v3373_v29 }
 0x978   : > { %v19460_v44 = vcombine.high %v3370_v0, %v3374_v40  ;;  %v19459_v53 = vcombine.low %v3370_v0, %v3374_v40 }
 0x979   : > { %16141 = vmatpush1.bf16.msra.mxu0 %v19401_v35  ;;  %16797 = vmatpush1.bf16.msra.mxu1 %v19403_v46  ;;  %v3377_v35 = vld [vmem:[%s21083_s17 + $0x31d0] sm:$0xff] }
 0x97a   : > { %16151 = vmatprep.subr.bf16.mxu0 %v19410_v37  ;;  %16807 = vmatprep.subr.bf16.mxu1 %v19412_v13  ;;  %v3381_v46 = vld [vmem:[%s21083_s17 + $0x31f0] sm:$0xff]  ;;  %v3378_v37 = vld [vmem:[%s21083_s17 + $0x31d8] sm:$0xff] }
 0x97b   : > { %v3382_v13 = vld [vmem:[%s21083_s17 + $0x31f8] sm:$0xff]  ;;  %v19466_v58 = vcombine.high %v3377_v35, %v3381_v46 }
 0x97c   : > { %16143 = vmatmul.mubr.bf16.vlgmr.msra.gmra.mrb[4].mxu0 %v22251_v63  ;;  %16799 = vmatmul.mubr.bf16.vlgmr.msra.gmra.mrb[4].mxu1 %v22251_v63  ;;  %v19425_v63 = vcombine.low %v3337_v60, %v3341_v25  ;;  %v19468_v11 = vcombine.high %v3378_v37, %v3382_v13  ;;  %v19465_v60 = vcombine.low %v3377_v35, %v3381_v46 }
 0x97d   : > { %16152 = vmatpush1.bf16.msra.mxu0 %v19409_v55  ;;  %16808 = vmatpush1.bf16.msra.mxu1 %v19411_v2  ;;  %v3385_v55 = vld [vmem:[%s21083_s17 + $0x3210] sm:$0xff]  ;;  %v19467_v25 = vcombine.low %v3378_v37, %v3382_v13 }
 0x97e   : > { %16153 = vmatprep.subr.bf16.mxu0 %v19418_v56  ;;  %16809 = vmatprep.subr.bf16.mxu1 %v19420_v47  ;;  %v3389_v2 = vld [vmem:[%s21083_s17 + $0x3230] sm:$0xff]  ;;  %v3386_v56 = vld [vmem:[%s21083_s17 + $0x3218] sm:$0xff] }
 0x97f   : > { %16183 = vmatprep.mubr.bf16.mxu0 %v22258_v12  ;;  %16839 = vmatprep.mubr.bf16.mxu1 %v22258_v12  ;;  %v19435_v12 = vcombine.low %v3346_v8, %v3350_v42  ;;  %v3390_v47 = vld [vmem:[%s21083_s17 + $0x3238] sm:$0xff]  ;;  %v19474_v28 = vcombine.high %v3385_v55, %v3389_v2  ;;  %v19473_v6 = vcombine.low %v3385_v55, %v3389_v2 }
 0x980   : > { %v19476_v62 = vcombine.high %v3386_v56, %v3390_v47  ;;  %v19475_v48 = vcombine.low %v3386_v56, %v3390_v47 }
 0x981   : > { %16154 = vmatpush1.bf16.msra.mxu0 %v19417_v3  ;;  %16810 = vmatpush1.bf16.msra.mxu1 %v19419_v4  ;;  %v3393_v3 = vld [vmem:[%s21083_s17 + $0x3250] sm:$0xff] }
 0x982   : > { %16155 = vmatprep.subr.bf16.mxu0 %v19426_v5  ;;  %16811 = vmatprep.subr.bf16.mxu1 %v19428_v50  ;;  %v3397_v4 = vld [vmem:[%s21083_s17 + $0x3270] sm:$0xff]  ;;  %v3394_v5 = vld [vmem:[%s21083_s17 + $0x3258] sm:$0xff] }
 0x983   : > { %v3398_v50 = vld [vmem:[%s21083_s17 + $0x3278] sm:$0xff]  ;;  %v19482_v8 = vcombine.high %v3393_v3, %v3397_v4  ;;  %v19481_v39 = vcombine.low %v3393_v3, %v3397_v4 }
 0x984   : > { %v19484_v42 = vcombine.high %v3394_v5, %v3398_v50  ;;  %v19483_v14 = vcombine.low %v3394_v5, %v3398_v50 }
 0x985   : > { %16156 = vmatpush1.bf16.msra.mxu0 %v19425_v63  ;;  %16812 = vmatpush1.bf16.msra.mxu1 %v19427_v52  ;;  %v3401_v63 = vld [vmem:[%s21083_s17 + $0x3290] sm:$0xff] }
 0x986   : > { %16157 = vmatprep.subr.bf16.mxu0 %v19434_v45  ;;  %16813 = vmatprep.subr.bf16.mxu1 %v19436_v17  ;;  %v3405_v52 = vld [vmem:[%s21083_s17 + $0x32b0] sm:$0xff]  ;;  %v3402_v45 = vld [vmem:[%s21083_s17 + $0x3298] sm:$0xff] }
 0x987   : > { %v3406_v17 = vld [vmem:[%s21083_s17 + $0x32b8] sm:$0xff]  ;;  %v19490_v16 = vcombine.high %v3401_v63, %v3405_v52  ;;  %v19489_v19 = vcombine.low %v3401_v63, %v3405_v52 }
 0x988   : > { %v19492_v23 = vcombine.high %v3402_v45, %v3406_v17  ;;  %v19491_v36 = vcombine.low %v3402_v45, %v3406_v17 }
 0x989   : > { %16158 = vmatpush1.bf16.msra.mxu0 %v19433_v18  ;;  %16814 = vmatpush1.bf16.msra.mxu1 %v19435_v12  ;;  %v3409_v18 = vld [vmem:[%s21083_s17 + $0x32d0] sm:$0xff] }
 0x98a   : > { %16159 = vmatprep.subr.bf16.mxu0 %v19442_v1  ;;  %16815 = vmatprep.subr.bf16.mxu1 %v19444_v59  ;;  %v3413_v12 = vld [vmem:[%s21083_s17 + $0x32f0] sm:$0xff]  ;;  %v3410_v1 = vld [vmem:[%s21083_s17 + $0x32d8] sm:$0xff] }
 0x98b   : > { %v3414_v59 = vld [vmem:[%s21083_s17 + $0x32f8] sm:$0xff]  ;;  %v19498_v24 = vcombine.high %v3409_v18, %v3413_v12  ;;  %v19497_v32 = vcombine.low %v3409_v18, %v3413_v12 }
 0x98c   : > { %v19500_v33 = vcombine.high %v3410_v1, %v3414_v59  ;;  %v19499_v29 = vcombine.low %v3410_v1, %v3414_v59 }
 0x98d   : > { %16160 = vmatpush1.bf16.msra.mxu0 %v19441_v21  ;;  %16816 = vmatpush1.bf16.msra.mxu1 %v19443_v20  ;;  %v3417_v21 = vld [vmem:[%s21083_s17 + $0x3310] sm:$0xff] }
 0x98e   : > { %16161 = vmatprep.subr.bf16.mxu0 %v19450_v34  ;;  %16817 = vmatprep.subr.bf16.mxu1 %v19452_v31  ;;  %v3421_v20 = vld [vmem:[%s21083_s17 + $0x3330] sm:$0xff]  ;;  %v3418_v34 = vld [vmem:[%s21083_s17 + $0x3318] sm:$0xff] }
 0x98f   : > { %v3422_v31 = vld [vmem:[%s21083_s17 + $0x3338] sm:$0xff]  ;;  %v19506_v0 = vcombine.high %v3417_v21, %v3421_v20  ;;  %v19505_v35 = vcombine.low %v3417_v21, %v3421_v20 }
 0x990   : > { %v19508_v40 = vcombine.high %v3418_v34, %v3422_v31  ;;  %v19507_v46 = vcombine.low %v3418_v34, %v3422_v31 }
 0x991   : > { %16162 = vmatpush1.bf16.msra.mxu0 %v19449_v26  ;;  %16818 = vmatpush1.bf16.msra.mxu1 %v19451_v41  ;;  %v3425_v26 = vld [vmem:[%s21083_s17 + $0x3350] sm:$0xff] }
 0x992   : > { %16163 = vmatprep.subr.bf16.mxu0 %v19458_v30  ;;  %16819 = vmatprep.subr.bf16.mxu1 %v19460_v44  ;;  %v3429_v41 = vld [vmem:[%s21083_s17 + $0x3370] sm:$0xff]  ;;  %v3426_v30 = vld [vmem:[%s21083_s17 + $0x3358] sm:$0xff] }
 0x993   : > { %v3430_v44 = vld [vmem:[%s21083_s17 + $0x3378] sm:$0xff]  ;;  %v19514_v37 = vcombine.high %v3425_v26, %v3429_v41  ;;  %v19513_v55 = vcombine.low %v3425_v26, %v3429_v41 }
 0x994   : > { %v19516_v13 = vcombine.high %v3426_v30, %v3430_v44  ;;  %v19515_v2 = vcombine.low %v3426_v30, %v3430_v44  ;;  %v3481_v44 = vld [vmem:[%s21083_s17 + $0x3510] sm:$0xff] }
 0x995   : > { %16164 = vmatpush1.bf16.msra.mxu0 %v19457_v27  ;;  %16820 = vmatpush1.bf16.msra.mxu1 %v19459_v53  ;;  %v3433_v27 = vld [vmem:[%s21083_s17 + $0x3390] sm:$0xff] }
 0x996   : > { %16165 = vmatprep.subr.bf16.mxu0 %v19466_v58  ;;  %16821 = vmatprep.subr.bf16.mxu1 %v19468_v11  ;;  %v3437_v53 = vld [vmem:[%s21083_s17 + $0x33b0] sm:$0xff]  ;;  %v3434_v58 = vld [vmem:[%s21083_s17 + $0x3398] sm:$0xff] }
 0x997   : > { %v3438_v11 = vld [vmem:[%s21083_s17 + $0x33b8] sm:$0xff]  ;;  %v19522_v56 = vcombine.high %v3433_v27, %v3437_v53  ;;  %v19521_v3 = vcombine.low %v3433_v27, %v3437_v53 }
 0x998   : > { %v19524_v47 = vcombine.high %v3434_v58, %v3438_v11  ;;  %v19523_v4 = vcombine.low %v3434_v58, %v3438_v11  ;;  %v3489_v58 = vld [vmem:[%s21083_s17 + $0x3550] sm:$0xff] }
 0x999   : > { %16166 = vmatpush1.bf16.msra.mxu0 %v19465_v60  ;;  %16822 = vmatpush1.bf16.msra.mxu1 %v19467_v25  ;;  %v3441_v60 = vld [vmem:[%s21083_s17 + $0x33d0] sm:$0xff] }
 0x99a   : > { %16167 = vmatprep.subr.bf16.mxu0 %v19474_v28  ;;  %16823 = vmatprep.subr.bf16.mxu1 %v19476_v62  ;;  %v3445_v25 = vld [vmem:[%s21083_s17 + $0x33f0] sm:$0xff]  ;;  %v3442_v28 = vld [vmem:[%s21083_s17 + $0x33d8] sm:$0xff] }
 0x99b   : > { %v3446_v62 = vld [vmem:[%s21083_s17 + $0x33f8] sm:$0xff]  ;;  %v19530_v5 = vcombine.high %v3441_v60, %v3445_v25  ;;  %v19529_v63 = vcombine.low %v3441_v60, %v3445_v25  ;;  %v3493_v11 = vld [vmem:[%s21083_s17 + $0x3570] sm:$0xff] }
 0x99c   : > { %v19532_v50 = vcombine.high %v3442_v28, %v3446_v62  ;;  %v19531_v52 = vcombine.low %v3442_v28, %v3446_v62  ;;  %v19578_v60 = vcombine.high %v3489_v58, %v3493_v11  ;;  %v3497_v28 = vld [vmem:[%s21083_s17 + $0x3590] sm:$0xff] }
 0x99d   : > { %16168 = vmatpush1.bf16.msra.mxu0 %v19473_v6  ;;  %16824 = vmatpush1.bf16.msra.mxu1 %v19475_v48  ;;  %v3449_v6 = vld [vmem:[%s21083_s17 + $0x3410] sm:$0xff] }
 0x99e   : > { %16169 = vmatprep.subr.bf16.mxu0 %v19482_v8  ;;  %16825 = vmatprep.subr.bf16.mxu1 %v19484_v42  ;;  %v3453_v48 = vld [vmem:[%s21083_s17 + $0x3430] sm:$0xff]  ;;  %v3450_v8 = vld [vmem:[%s21083_s17 + $0x3418] sm:$0xff] }
 0x99f   : > { %v3454_v42 = vld [vmem:[%s21083_s17 + $0x3438] sm:$0xff]  ;;  %v19538_v45 = vcombine.high %v3449_v6, %v3453_v48  ;;  %v19537_v18 = vcombine.low %v3449_v6, %v3453_v48  ;;  %v3501_v62 = vld [vmem:[%s21083_s17 + $0x35b0] sm:$0xff] }
 0x9a0   : > { %v19540_v17 = vcombine.high %v3450_v8, %v3454_v42  ;;  %v19539_v12 = vcombine.low %v3450_v8, %v3454_v42  ;;  %v19586_v6 = vcombine.high %v3497_v28, %v3501_v62  ;;  %v3505_v8 = vld [vmem:[%s21083_s17 + $0x35d0] sm:$0xff] }
 0x9a1   : > { %16170 = vmatpush1.bf16.msra.mxu0 %v19481_v39  ;;  %16826 = vmatpush1.bf16.msra.mxu1 %v19483_v14  ;;  %v3457_v39 = vld [vmem:[%s21083_s17 + $0x3450] sm:$0xff] }
 0x9a2   : > { %16171 = vmatprep.subr.bf16.mxu0 %v19490_v16  ;;  %16827 = vmatprep.subr.bf16.mxu1 %v19492_v23  ;;  %v3461_v14 = vld [vmem:[%s21083_s17 + $0x3470] sm:$0xff]  ;;  %v3458_v16 = vld [vmem:[%s21083_s17 + $0x3458] sm:$0xff] }
 0x9a3   : > { %v3462_v23 = vld [vmem:[%s21083_s17 + $0x3478] sm:$0xff]  ;;  %v19546_v1 = vcombine.high %v3457_v39, %v3461_v14  ;;  %v19545_v21 = vcombine.low %v3457_v39, %v3461_v14  ;;  %v3509_v42 = vld [vmem:[%s21083_s17 + $0x35f0] sm:$0xff] }
 0x9a4   : > { %v19548_v59 = vcombine.high %v3458_v16, %v3462_v23  ;;  %v19547_v20 = vcombine.low %v3458_v16, %v3462_v23  ;;  %v19594_v39 = vcombine.high %v3505_v8, %v3509_v42  ;;  %v3513_v16 = vld [vmem:[%s21083_s17 + $0x3610] sm:$0xff] }
 0x9a5   : > { %16172 = vmatpush1.bf16.msra.mxu0 %v19489_v19  ;;  %16828 = vmatpush1.bf16.msra.mxu1 %v19491_v36  ;;  %v3465_v19 = vld [vmem:[%s21083_s17 + $0x3490] sm:$0xff] }
 0x9a6   : > { %16173 = vmatprep.subr.bf16.mxu0 %v19498_v24  ;;  %16829 = vmatprep.subr.bf16.mxu1 %v19500_v33  ;;  %v3469_v36 = vld [vmem:[%s21083_s17 + $0x34b0] sm:$0xff]  ;;  %v3466_v24 = vld [vmem:[%s21083_s17 + $0x3498] sm:$0xff] }
 0x9a7   : > { %v3470_v33 = vld [vmem:[%s21083_s17 + $0x34b8] sm:$0xff]  ;;  %v19554_v34 = vcombine.high %v3465_v19, %v3469_v36  ;;  %v3517_v23 = vld [vmem:[%s21083_s17 + $0x3630] sm:$0xff] }
 0x9a8   : > { %v19556_v31 = vcombine.high %v3466_v24, %v3470_v33  ;;  %v19555_v26 = vcombine.low %v3466_v24, %v3470_v33  ;;  %v3521_v24 = vld [vmem:[%s21083_s17 + $0x3650] sm:$0xff] }
 0x9a9   : > { %16174 = vmatpush1.bf16.msra.mxu0 %v19497_v32  ;;  %16830 = vmatpush1.bf16.msra.mxu1 %v19499_v29  ;;  %v3473_v32 = vld [vmem:[%s21083_s17 + $0x34d0] sm:$0xff] }
 0x9aa   : > { %16175 = vmatprep.subr.bf16.mxu0 %v19506_v0  ;;  %16831 = vmatprep.subr.bf16.mxu1 %v19508_v40  ;;  %v3477_v29 = vld [vmem:[%s21083_s17 + $0x34f0] sm:$0xff]  ;;  %v3474_v0 = vld [vmem:[%s21083_s17 + $0x34d8] sm:$0xff] }
 0x9ab   : > { %v3478_v40 = vld [vmem:[%s21083_s17 + $0x34f8] sm:$0xff]  ;;  %v19562_v41 = vcombine.high %v3473_v32, %v3477_v29  ;;  %v3525_v33 = vld [vmem:[%s21083_s17 + $0x3670] sm:$0xff] }
 0x9ac   : > { %v19564_v30 = vcombine.high %v3474_v0, %v3478_v40 }
 0x9ad   : > { %16176 = vmatpush1.bf16.msra.mxu0 %v19505_v35  ;;  %16832 = vmatpush1.bf16.msra.mxu1 %v19507_v46  ;;  %v3485_v35 = vld [vmem:[%s21083_s17 + $0x3530] sm:$0xff]  ;;  %v3482_v46 = vld [vmem:[%s21083_s17 + $0x3518] sm:$0xff] }
 0x9ae   : > { %16177 = vmatprep.subr.bf16.mxu0 %v19514_v37  ;;  %16833 = vmatprep.subr.bf16.mxu1 %v19516_v13  ;;  %v3486_v37 = vld [vmem:[%s21083_s17 + $0x3538] sm:$0xff]  ;;  %v19561_v13 = vcombine.low %v3473_v32, %v3477_v29  ;;  %v19570_v27 = vcombine.high %v3481_v44, %v3485_v35  ;;  %v19610_v32 = vcombine.high %v3521_v24, %v3525_v33 }
 0x9af   : > { %v19572_v53 = vcombine.high %v3482_v46, %v3486_v37 }
 0x9b1   : > { %16178 = vmatpush1.bf16.msra.mxu0 %v19513_v55  ;;  %16834 = vmatpush1.bf16.msra.mxu1 %v19515_v2  ;;  %v3490_v55 = vld [vmem:[%s21083_s17 + $0x3558] sm:$0xff] }
 0x9b2   : > { %16179 = vmatprep.subr.bf16.mxu0 %v19522_v56  ;;  %16835 = vmatprep.subr.bf16.mxu1 %v19524_v47  ;;  %v3494_v2 = vld [vmem:[%s21083_s17 + $0x3578] sm:$0xff]  ;;  %v19569_v56 = vcombine.low %v3481_v44, %v3485_v35  ;;  %v19571_v47 = vcombine.low %v3482_v46, %v3486_v37  ;;  %v3537_v46 = vld [vmem:[%s21083_s17 + $0x36d0] sm:$0xff] }
 0x9b3   : > { %v19580_v25 = vcombine.high %v3490_v55, %v3494_v2  ;;  %v3541_v37 = vld [vmem:[%s21083_s17 + $0x36f0] sm:$0xff] }
 0x9b5   : > { %16180 = vmatpush1.bf16.msra.mxu0 %v19521_v3  ;;  %16836 = vmatpush1.bf16.msra.mxu1 %v19523_v4  ;;  %v3498_v3 = vld [vmem:[%s21083_s17 + $0x3598] sm:$0xff] }
 0x9b6   : > { %16181 = vmatprep.subr.bf16.mxu0 %v19530_v5  ;;  %16837 = vmatprep.subr.bf16.mxu1 %v19532_v50  ;;  %v3502_v4 = vld [vmem:[%s21083_s17 + $0x35b8] sm:$0xff]  ;;  %v19577_v5 = vcombine.low %v3489_v58, %v3493_v11  ;;  %v19579_v50 = vcombine.low %v3490_v55, %v3494_v2  ;;  %v19626_v58 = vcombine.high %v3537_v46, %v3541_v37  ;;  %v3545_v55 = vld [vmem:[%s21083_s17 + $0x3710] sm:$0xff] }
 0x9b7   : > { %v19588_v48 = vcombine.high %v3498_v3, %v3502_v4  ;;  %v3549_v2 = vld [vmem:[%s21083_s17 + $0x3730] sm:$0xff] }
 0x9b9   : > { %16182 = vmatpush1.bf16.msra.mxu0 %v19529_v63  ;;  %16838 = vmatpush1.bf16.msra.mxu1 %v19531_v52  ;;  %v3506_v63 = vld [vmem:[%s21083_s17 + $0x35d8] sm:$0xff] }
 0x9ba   : > { %16192 = vmatprep.subr.bf16.mxu0 %v19538_v45  ;;  %16848 = vmatprep.subr.bf16.mxu1 %v19540_v17  ;;  %v3510_v52 = vld [vmem:[%s21083_s17 + $0x35f8] sm:$0xff]  ;;  %v19585_v45 = vcombine.low %v3497_v28, %v3501_v62  ;;  %v19587_v17 = vcombine.low %v3498_v3, %v3502_v4  ;;  %v19634_v28 = vcombine.high %v3545_v55, %v3549_v2  ;;  %v3553_v3 = vld [vmem:[%s21083_s17 + $0x3750] sm:$0xff] }
 0x9bb   : > { %v19596_v14 = vcombine.high %v3506_v63, %v3510_v52  ;;  %v3557_v4 = vld [vmem:[%s21083_s17 + $0x3770] sm:$0xff] }
 0x9bc   : > { %16184 = vmatmul.mubr.bf16.vlgmr.msra.gmra.mrb[4].mxu0 %v22326_v43  ;;  %16840 = vmatmul.mubr.bf16.vlgmr.msra.gmra.mrb[4].mxu1 %v22326_v43  ;;  %v19553_v43 = vcombine.low %v3465_v19, %v3469_v36  ;;  %v19602_v19 = vcombine.high %v3513_v16, %v3517_v23 }
 0x9bd   : > { %16193 = vmatpush1.bf16.msra.mxu0 %v19537_v18  ;;  %16849 = vmatpush1.bf16.msra.mxu1 %v19539_v12  ;;  %v3514_v18 = vld [vmem:[%s21083_s17 + $0x3618] sm:$0xff] }
 0x9be   : > { %16194 = vmatprep.subr.bf16.mxu0 %v19546_v1  ;;  %16850 = vmatprep.subr.bf16.mxu1 %v19548_v59  ;;  %v3518_v12 = vld [vmem:[%s21083_s17 + $0x3638] sm:$0xff]  ;;  %v19593_v1 = vcombine.low %v3505_v8, %v3509_v42  ;;  %v19595_v59 = vcombine.low %v3506_v63, %v3510_v52  ;;  %v19642_v8 = vcombine.high %v3553_v3, %v3557_v4  ;;  %v3561_v63 = vld [vmem:[%s21083_s17 + $0x3790] sm:$0xff] }
 0x9bf   : > { %16224 = vmatprep.mubr.bf16.mxu0 %v22334_v22  ;;  %16880 = vmatprep.mubr.bf16.mxu1 %v22334_v22  ;;  %v19563_v22 = vcombine.low %v3474_v0, %v3478_v40  ;;  %v19604_v36 = vcombine.high %v3514_v18, %v3518_v12  ;;  %v3529_v0 = vld [vmem:[%s21083_s17 + $0x3690] sm:$0xff] }
 0x9c0   : > { %v3533_v40 = vld [vmem:[%s21083_s17 + $0x36b0] sm:$0xff] }
 0x9c1   : > { %16195 = vmatpush1.bf16.msra.mxu0 %v19545_v21  ;;  %16851 = vmatpush1.bf16.msra.mxu1 %v19547_v20  ;;  %v3522_v21 = vld [vmem:[%s21083_s17 + $0x3658] sm:$0xff]  ;;  %v19618_v44 = vcombine.high %v3529_v0, %v3533_v40  ;;  %v3565_v52 = vld [vmem:[%s21083_s17 + $0x37b0] sm:$0xff] }
 0x9c2   : > { %16196 = vmatprep.subr.bf16.mxu0 %v19554_v34  ;;  %16852 = vmatprep.subr.bf16.mxu1 %v19556_v31  ;;  %v3526_v20 = vld [vmem:[%s21083_s17 + $0x3678] sm:$0xff]  ;;  %v19601_v34 = vcombine.low %v3513_v16, %v3517_v23  ;;  %v19603_v31 = vcombine.low %v3514_v18, %v3518_v12  ;;  %v19650_v16 = vcombine.high %v3561_v63, %v3565_v52  ;;  %v3569_v18 = vld [vmem:[%s21083_s17 + $0x37d0] sm:$0xff] }
 0x9c3   : > { %v19612_v29 = vcombine.high %v3522_v21, %v3526_v20  ;;  %v3573_v12 = vld [vmem:[%s21083_s17 + $0x37f0] sm:$0xff] }
 0x9c5   : > { %16197 = vmatpush1.bf16.msra.mxu0 %v19553_v43  ;;  %16853 = vmatpush1.bf16.msra.mxu1 %v19555_v26  ;;  %v3530_v43 = vld [vmem:[%s21083_s17 + $0x3698] sm:$0xff] }
 0x9c6   : > { %16198 = vmatprep.subr.bf16.mxu0 %v19562_v41  ;;  %16854 = vmatprep.subr.bf16.mxu1 %v19564_v30  ;;  %v3534_v26 = vld [vmem:[%s21083_s17 + $0x36b8] sm:$0xff]  ;;  %v19609_v41 = vcombine.low %v3521_v24, %v3525_v33  ;;  %v19611_v30 = vcombine.low %v3522_v21, %v3526_v20  ;;  %v19658_v24 = vcombine.high %v3569_v18, %v3573_v12  ;;  %v3577_v21 = vld [vmem:[%s21083_s17 + $0x3810] sm:$0xff] }
 0x9c7   : > { %v19620_v35 = vcombine.high %v3530_v43, %v3534_v26  ;;  %v3581_v20 = vld [vmem:[%s21083_s17 + $0x3830] sm:$0xff] }
 0x9c9   : > { %16199 = vmatpush1.bf16.msra.mxu0 %v19561_v13  ;;  %16855 = vmatpush1.bf16.msra.mxu1 %v19563_v22  ;;  %v3538_v13 = vld [vmem:[%s21083_s17 + $0x36d8] sm:$0xff] }
 0x9ca   : > { %16200 = vmatprep.subr.bf16.mxu0 %v19570_v27  ;;  %16856 = vmatprep.subr.bf16.mxu1 %v19572_v53  ;;  %v3542_v22 = vld [vmem:[%s21083_s17 + $0x36f8] sm:$0xff]  ;;  %v19617_v27 = vcombine.low %v3529_v0, %v3533_v40  ;;  %v19619_v53 = vcombine.low %v3530_v43, %v3534_v26  ;;  %v19666_v0 = vcombine.high %v3577_v21, %v3581_v20  ;;  %v3585_v43 = vld [vmem:[%s21083_s17 + $0x3850] sm:$0xff] }
 0x9cb   : > { %v19628_v11 = vcombine.high %v3538_v13, %v3542_v22  ;;  %v3589_v26 = vld [vmem:[%s21083_s17 + $0x3870] sm:$0xff] }
 0x9cd   : > { %16201 = vmatpush1.bf16.msra.mxu0 %v19569_v56  ;;  %16857 = vmatpush1.bf16.msra.mxu1 %v19571_v47  ;;  %v3546_v56 = vld [vmem:[%s21083_s17 + $0x3718] sm:$0xff] }
 0x9ce   : > { %16202 = vmatprep.subr.bf16.mxu0 %v19578_v60  ;;  %16858 = vmatprep.subr.bf16.mxu1 %v19580_v25  ;;  %v3550_v47 = vld [vmem:[%s21083_s17 + $0x3738] sm:$0xff]  ;;  %v19625_v60 = vcombine.low %v3537_v46, %v3541_v37  ;;  %v19627_v25 = vcombine.low %v3538_v13, %v3542_v22  ;;  %v19674_v46 = vcombine.high %v3585_v43, %v3589_v26  ;;  %v3593_v37 = vld [vmem:[%s21083_s17 + $0x3890] sm:$0xff] }
 0x9cf   : > { %v19636_v62 = vcombine.high %v3546_v56, %v3550_v47  ;;  %v3597_v13 = vld [vmem:[%s21083_s17 + $0x38b0] sm:$0xff] }
 0x9d1   : > { %16203 = vmatpush1.bf16.msra.mxu0 %v19577_v5  ;;  %16859 = vmatpush1.bf16.msra.mxu1 %v19579_v50  ;;  %v3554_v5 = vld [vmem:[%s21083_s17 + $0x3758] sm:$0xff] }
 0x9d2   : > { %16204 = vmatprep.subr.bf16.mxu0 %v19586_v6  ;;  %16860 = vmatprep.subr.bf16.mxu1 %v19588_v48  ;;  %v3558_v50 = vld [vmem:[%s21083_s17 + $0x3778] sm:$0xff]  ;;  %v19633_v6 = vcombine.low %v3545_v55, %v3549_v2  ;;  %v19635_v48 = vcombine.low %v3546_v56, %v3550_v47  ;;  %v19682_v2 = vcombine.high %v3593_v37, %v3597_v13  ;;  %v3605_v56 = vld [vmem:[%s21083_s17 + $0x38f0] sm:$0xff] }
 0x9d3   : > { %v19644_v42 = vcombine.high %v3554_v5, %v3558_v50 }
 0x9d5   : > { %16205 = vmatpush1.bf16.msra.mxu0 %v19585_v45  ;;  %16861 = vmatpush1.bf16.msra.mxu1 %v19587_v17  ;;  %v3562_v45 = vld [vmem:[%s21083_s17 + $0x3798] sm:$0xff] }
 0x9d6   : > { %16206 = vmatprep.subr.bf16.mxu0 %v19594_v39  ;;  %16862 = vmatprep.subr.bf16.mxu1 %v19596_v14  ;;  %v3566_v17 = vld [vmem:[%s21083_s17 + $0x37b8] sm:$0xff]  ;;  %v19641_v39 = vcombine.low %v3553_v3, %v3557_v4  ;;  %v19643_v14 = vcombine.low %v3554_v5, %v3558_v50  ;;  %v3613_v4 = vld [vmem:[%s21083_s17 + $0x3930] sm:$0xff] }
 0x9d7   : > { %v19652_v23 = vcombine.high %v3562_v45, %v3566_v17  ;;  %v3610_v50 = vld [vmem:[%s21083_s17 + $0x3918] sm:$0xff] }
 0x9d9   : > { %16207 = vmatpush1.bf16.msra.mxu0 %v19593_v1  ;;  %16863 = vmatpush1.bf16.msra.mxu1 %v19595_v59  ;;  %v3570_v1 = vld [vmem:[%s21083_s17 + $0x37d8] sm:$0xff] }
 0x9da   : > { %16208 = vmatprep.subr.bf16.mxu0 %v19602_v19  ;;  %16864 = vmatprep.subr.bf16.mxu1 %v19604_v36  ;;  %v3574_v59 = vld [vmem:[%s21083_s17 + $0x37f8] sm:$0xff]  ;;  %v19649_v19 = vcombine.low %v3561_v63, %v3565_v52  ;;  %v19651_v36 = vcombine.low %v3562_v45, %v3566_v17  ;;  %v3621_v63 = vld [vmem:[%s21083_s17 + $0x3970] sm:$0xff] }
 0x9db   : > { %v19660_v33 = vcombine.high %v3570_v1, %v3574_v59  ;;  %v3618_v45 = vld [vmem:[%s21083_s17 + $0x3958] sm:$0xff] }
 0x9dc   : > { %v3622_v17 = vld [vmem:[%s21083_s17 + $0x3978] sm:$0xff] }
 0x9dd   : > { %16209 = vmatpush1.bf16.msra.mxu0 %v19601_v34  ;;  %16865 = vmatpush1.bf16.msra.mxu1 %v19603_v31  ;;  %v3578_v34 = vld [vmem:[%s21083_s17 + $0x3818] sm:$0xff] }
 0x9de   : > { %16210 = vmatprep.subr.bf16.mxu0 %v19610_v32  ;;  %16866 = vmatprep.subr.bf16.mxu1 %v19612_v29  ;;  %v3582_v31 = vld [vmem:[%s21083_s17 + $0x3838] sm:$0xff]  ;;  %v19657_v32 = vcombine.low %v3569_v18, %v3573_v12  ;;  %v19659_v29 = vcombine.low %v3570_v1, %v3574_v59  ;;  %v3629_v18 = vld [vmem:[%s21083_s17 + $0x39b0] sm:$0xff]  ;;  %v19708_v12 = vcombine.high %v3618_v45, %v3622_v17 }
 0x9df   : > { %v19668_v40 = vcombine.high %v3578_v34, %v3582_v31  ;;  %v3626_v1 = vld [vmem:[%s21083_s17 + $0x3998] sm:$0xff] }
 0x9e0   : > { %v3630_v59 = vld [vmem:[%s21083_s17 + $0x39b8] sm:$0xff] }
 0x9e1   : > { %16211 = vmatpush1.bf16.msra.mxu0 %v19609_v41  ;;  %16867 = vmatpush1.bf16.msra.mxu1 %v19611_v30  ;;  %v3586_v41 = vld [vmem:[%s21083_s17 + $0x3858] sm:$0xff] }
 0x9e2   : > { %16212 = vmatprep.subr.bf16.mxu0 %v19618_v44  ;;  %16868 = vmatprep.subr.bf16.mxu1 %v19620_v35  ;;  %v3590_v30 = vld [vmem:[%s21083_s17 + $0x3878] sm:$0xff]  ;;  %v19665_v44 = vcombine.low %v3577_v21, %v3581_v20  ;;  %v19667_v35 = vcombine.low %v3578_v34, %v3582_v31  ;;  %v3637_v21 = vld [vmem:[%s21083_s17 + $0x39f0] sm:$0xff]  ;;  %v19716_v20 = vcombine.high %v3626_v1, %v3630_v59 }
 0x9e3   : > { %v19676_v22 = vcombine.high %v3586_v41, %v3590_v30  ;;  %v19675_v55 = vcombine.low %v3586_v41, %v3590_v30  ;;  %v3634_v34 = vld [vmem:[%s21083_s17 + $0x39d8] sm:$0xff] }
 0x9e4   : > { %v3638_v31 = vld [vmem:[%s21083_s17 + $0x39f8] sm:$0xff] }
 0x9e5   : > { %16213 = vmatpush1.bf16.msra.mxu0 %v19617_v27  ;;  %16869 = vmatpush1.bf16.msra.mxu1 %v19619_v53  ;;  %v3594_v27 = vld [vmem:[%s21083_s17 + $0x3898] sm:$0xff] }
 0x9e6   : > { %16214 = vmatprep.subr.bf16.mxu0 %v19626_v58  ;;  %16870 = vmatprep.subr.bf16.mxu1 %v19628_v11  ;;  %v3598_v53 = vld [vmem:[%s21083_s17 + $0x38b8] sm:$0xff]  ;;  %v19673_v58 = vcombine.low %v3585_v43, %v3589_v26  ;;  %v3601_v11 = vld [vmem:[%s21083_s17 + $0x38d0] sm:$0xff]  ;;  %v19724_v26 = vcombine.high %v3634_v34, %v3638_v31 }
 0x9e7   : > { %v19684_v47 = vcombine.high %v3594_v27, %v3598_v53  ;;  %v19690_v3 = vcombine.high %v3601_v11, %v3605_v56  ;;  %v3645_v43 = vld [vmem:[%s21083_s17 + $0x3a30] sm:$0xff]  ;;  %v3642_v41 = vld [vmem:[%s21083_s17 + $0x3a18] sm:$0xff] }
 0x9e8   : > { %v3646_v30 = vld [vmem:[%s21083_s17 + $0x3a38] sm:$0xff] }
 0x9e9   : > { %16215 = vmatpush1.bf16.msra.mxu0 %v19625_v60  ;;  %16871 = vmatpush1.bf16.msra.mxu1 %v19627_v25  ;;  %v3602_v60 = vld [vmem:[%s21083_s17 + $0x38d8] sm:$0xff] }
 0x9ea   : > { %16216 = vmatprep.subr.bf16.mxu0 %v19634_v28  ;;  %16872 = vmatprep.subr.bf16.mxu1 %v19636_v62  ;;  %v3606_v25 = vld [vmem:[%s21083_s17 + $0x38f8] sm:$0xff]  ;;  %v3609_v28 = vld [vmem:[%s21083_s17 + $0x3910] sm:$0xff]  ;;  %v19683_v62 = vcombine.low %v3594_v27, %v3598_v53 }
 0x9eb   : > { %v19692_v5 = vcombine.high %v3602_v60, %v3606_v25  ;;  %v3650_v27 = vld [vmem:[%s21083_s17 + $0x3a58] sm:$0xff] }
 0x9ec   : > { %v3654_v53 = vld [vmem:[%s21083_s17 + $0x3a78] sm:$0xff] }
 0x9ed   : > { %16217 = vmatpush1.bf16.msra.mxu0 %v19633_v6  ;;  %16873 = vmatpush1.bf16.msra.mxu1 %v19635_v48  ;;  %v3614_v6 = vld [vmem:[%s21083_s17 + $0x3938] sm:$0xff]  ;;  %v19689_v48 = vcombine.low %v3601_v11, %v3605_v56  ;;  %v3657_v11 = vld [vmem:[%s21083_s17 + $0x3a90] sm:$0xff] }
 0x9ee   : > { %16218 = vmatprep.subr.bf16.mxu0 %v19642_v8  ;;  %16874 = vmatprep.subr.bf16.mxu1 %v19644_v42  ;;  %v3617_v8 = vld [vmem:[%s21083_s17 + $0x3950] sm:$0xff]  ;;  %v19698_v42 = vcombine.high %v3609_v28, %v3613_v4  ;;  %v19700_v52 = vcombine.high %v3610_v50, %v3614_v6 }
 0x9f1   : > { %16219 = vmatpush1.bf16.msra.mxu0 %v19641_v39  ;;  %16875 = vmatpush1.bf16.msra.mxu1 %v19643_v14  ;;  %v19697_v39 = vcombine.low %v3609_v28, %v3613_v4  ;;  %v3625_v14 = vld [vmem:[%s21083_s17 + $0x3990] sm:$0xff] }
 0x9f2   : > { %16220 = vmatprep.subr.bf16.mxu0 %v19650_v16  ;;  %16876 = vmatprep.subr.bf16.mxu1 %v19652_v23  ;;  %v19699_v16 = vcombine.low %v3610_v50, %v3614_v6  ;;  %v19706_v23 = vcombine.high %v3617_v8, %v3621_v63  ;;  %v3665_v28 = vld [vmem:[%s21083_s17 + $0x3ad0] sm:$0xff]  ;;  %v3666_v50 = vld [vmem:[%s21083_s17 + $0x3ad8] sm:$0xff] }
 0x9f3   : > { %v3669_v4 = vld [vmem:[%s21083_s17 + $0x3af0] sm:$0xff]  ;;  %v3670_v6 = vld [vmem:[%s21083_s17 + $0x3af8] sm:$0xff] }
 0x9f5   : > { %16221 = vmatpush1.bf16.msra.mxu0 %v19649_v19  ;;  %16877 = vmatpush1.bf16.msra.mxu1 %v19651_v36  ;;  %v19705_v19 = vcombine.low %v3617_v8, %v3621_v63  ;;  %v3633_v36 = vld [vmem:[%s21083_s17 + $0x39d0] sm:$0xff] }
 0x9f6   : > { %16222 = vmatprep.subr.bf16.mxu0 %v19658_v24  ;;  %16878 = vmatprep.subr.bf16.mxu1 %v19660_v33  ;;  %v19707_v24 = vcombine.low %v3618_v45, %v3622_v17  ;;  %v19714_v33 = vcombine.high %v3625_v14, %v3629_v18  ;;  %v3673_v8 = vld [vmem:[%s21083_s17 + $0x3b10] sm:$0xff]  ;;  %v3674_v45 = vld [vmem:[%s21083_s17 + $0x3b18] sm:$0xff] }
 0x9f7   : > { %v3677_v63 = vld [vmem:[%s21083_s17 + $0x3b30] sm:$0xff]  ;;  %v3678_v17 = vld [vmem:[%s21083_s17 + $0x3b38] sm:$0xff] }
 0x9f9   : > { %16223 = vmatpush1.bf16.msra.mxu0 %v19657_v32  ;;  %16879 = vmatpush1.bf16.msra.mxu1 %v19659_v29  ;;  %v19713_v32 = vcombine.low %v3625_v14, %v3629_v18  ;;  %v3641_v29 = vld [vmem:[%s21083_s17 + $0x3a10] sm:$0xff] }
 0x9fa   : > { %16233 = vmatprep.subr.bf16.mxu0 %v19666_v0  ;;  %16889 = vmatprep.subr.bf16.mxu1 %v19668_v40  ;;  %v19715_v0 = vcombine.low %v3626_v1, %v3630_v59  ;;  %v19722_v40 = vcombine.high %v3633_v36, %v3637_v21  ;;  %v3681_v14 = vld [vmem:[%s21083_s17 + $0x3b50] sm:$0xff]  ;;  %v3682_v1 = vld [vmem:[%s21083_s17 + $0x3b58] sm:$0xff] }
 0x9fb   : > { %v3685_v18 = vld [vmem:[%s21083_s17 + $0x3b70] sm:$0xff]  ;;  %v3686_v59 = vld [vmem:[%s21083_s17 + $0x3b78] sm:$0xff] }
 0x9fc   : > { %16225 = vmatmul.mubr.bf16.vlgmr.msra.gmra.mrb[4].mxu0 %v22409_v54  ;;  %16881 = vmatmul.mubr.bf16.vlgmr.msra.gmra.mrb[4].mxu1 %v22409_v54  ;;  %v19681_v54 = vcombine.low %v3593_v37, %v3597_v13  ;;  %v19730_v37 = vcombine.high %v3641_v29, %v3645_v43  ;;  %v3653_v13 = vld [vmem:[%s21083_s17 + $0x3a70] sm:$0xff] }
 0x9fd   : > { %16234 = vmatpush1.bf16.msra.mxu0 %v19665_v44  ;;  %16890 = vmatpush1.bf16.msra.mxu1 %v19667_v35  ;;  %v19721_v44 = vcombine.low %v3633_v36, %v3637_v21  ;;  %v3649_v35 = vld [vmem:[%s21083_s17 + $0x3a50] sm:$0xff] }
 0x9fe   : > { %16235 = vmatprep.subr.bf16.mxu0 %v19674_v46  ;;  %16891 = vmatprep.subr.bf16.mxu1 %v19676_v22  ;;  %v19723_v46 = vcombine.low %v3634_v34, %v3638_v31  ;;  %v19732_v22 = vcombine.high %v3642_v41, %v3646_v30  ;;  %v19738_v56 = vcombine.high %v3649_v35, %v3653_v13  ;;  %v3689_v36 = vld [vmem:[%s21083_s17 + $0x3b90] sm:$0xff]  ;;  %v3690_v34 = vld [vmem:[%s21083_s17 + $0x3b98] sm:$0xff] }
 0x9ff   : > { %16265 = vmatprep.mubr.bf16.mxu0 %v22416_v49  ;;  %16921 = vmatprep.mubr.bf16.mxu1 %v22416_v49  ;;  %v19691_v49 = vcombine.low %v3602_v60, %v3606_v25  ;;  %v3662_v60 = vld [vmem:[%s21083_s17 + $0x3ab8] sm:$0xff]  ;;  %v19740_v25 = vcombine.high %v3650_v27, %v3654_v53  ;;  %v3693_v21 = vld [vmem:[%s21083_s17 + $0x3bb0] sm:$0xff] }
 0xa00   : > { %v3694_v31 = vld [vmem:[%s21083_s17 + $0x3bb8] sm:$0xff] }
 0xa01   : > { %16236 = vmatpush1.bf16.msra.mxu0 %v19673_v58  ;;  %16892 = vmatpush1.bf16.msra.mxu1 %v19675_v55  ;;  %v19729_v58 = vcombine.low %v3641_v29, %v3645_v43  ;;  %v3661_v55 = vld [vmem:[%s21083_s17 + $0x3ab0] sm:$0xff] }
 0xa02   : > { %16237 = vmatprep.subr.bf16.mxu0 %v19682_v2  ;;  %16893 = vmatprep.subr.bf16.mxu1 %v19684_v47  ;;  %v19731_v2 = vcombine.low %v3642_v41, %v3646_v30  ;;  %v3658_v47 = vld [vmem:[%s21083_s17 + $0x3a98] sm:$0xff]  ;;  %v3697_v29 = vld [vmem:[%s21083_s17 + $0x3bd0] sm:$0xff] }
 0xa03   : > { %v3701_v43 = vld [vmem:[%s21083_s17 + $0x3bf0] sm:$0xff]  ;;  %v3698_v41 = vld [vmem:[%s21083_s17 + $0x3bd8] sm:$0xff] }
 0xa04   : > { %v3702_v30 = vld [vmem:[%s21083_s17 + $0x3bf8] sm:$0xff] }
 0xa05   : > { %16238 = vmatpush1.bf16.msra.mxu0 %v19681_v54  ;;  %16894 = vmatpush1.bf16.msra.mxu1 %v19683_v62  ;;  %v19737_v54 = vcombine.low %v3649_v35, %v3653_v13  ;;  %v19739_v62 = vcombine.low %v3650_v27, %v3654_v53  ;;  %v3705_v35 = vld [vmem:[%s21083_s17 + $0x3c10] sm:$0xff]  ;;  %v19786_v13 = vcombine.high %v3697_v29, %v3701_v43  ;;  %v3710_v27 = vld [vmem:[%s21083_s17 + $0x3c38] sm:$0xff] }
 0xa06   : > { %16239 = vmatprep.subr.bf16.mxu0 %v19690_v3  ;;  %16895 = vmatprep.subr.bf16.mxu1 %v19692_v5  ;;  %v19746_v3 = vcombine.high %v3657_v11, %v3661_v55  ;;  %v19748_v5 = vcombine.high %v3658_v47, %v3662_v60  ;;  %v19788_v53 = vcombine.high %v3698_v41, %v3702_v30 }
 0xa09   : > { %16240 = vmatpush1.bf16.msra.mxu0 %v19689_v48  ;;  %16896 = vmatpush1.bf16.msra.mxu1 %v19691_v49  ;;  %v19745_v48 = vcombine.low %v3657_v11, %v3661_v55  ;;  %v19747_v49 = vcombine.low %v3658_v47, %v3662_v60  ;;  %v3713_v11 = vld [vmem:[%s21083_s17 + $0x3c50] sm:$0xff]  ;;  %v3714_v60 = vld [vmem:[%s21083_s17 + $0x3c58] sm:$0xff] }
 0xa0a   : > { %16241 = vmatprep.subr.bf16.mxu0 %v19698_v42  ;;  %16897 = vmatprep.subr.bf16.mxu1 %v19700_v52  ;;  %v19754_v42 = vcombine.high %v3665_v28, %v3669_v4  ;;  %v19756_v52 = vcombine.high %v3666_v50, %v3670_v6  ;;  %v3717_v55 = vld [vmem:[%s21083_s17 + $0x3c70] sm:$0xff] }
 0xa0d   : > { %16242 = vmatpush1.bf16.msra.mxu0 %v19697_v39  ;;  %16898 = vmatpush1.bf16.msra.mxu1 %v19699_v16  ;;  %v19753_v39 = vcombine.low %v3665_v28, %v3669_v4  ;;  %v19755_v16 = vcombine.low %v3666_v50, %v3670_v6  ;;  %v3721_v4 = vld [vmem:[%s21083_s17 + $0x3c90] sm:$0xff]  ;;  %v3722_v50 = vld [vmem:[%s21083_s17 + $0x3c98] sm:$0xff] }
 0xa0e   : > { %16243 = vmatprep.subr.bf16.mxu0 %v19706_v23  ;;  %16899 = vmatprep.subr.bf16.mxu1 %v19708_v12  ;;  %v19762_v23 = vcombine.high %v3673_v8, %v3677_v63  ;;  %v19764_v12 = vcombine.high %v3674_v45, %v3678_v17  ;;  %v3726_v6 = vld [vmem:[%s21083_s17 + $0x3cb8] sm:$0xff] }
 0xa11   : > { %16244 = vmatpush1.bf16.msra.mxu0 %v19705_v19  ;;  %16900 = vmatpush1.bf16.msra.mxu1 %v19707_v24  ;;  %v19761_v19 = vcombine.low %v3673_v8, %v3677_v63  ;;  %v19763_v24 = vcombine.low %v3674_v45, %v3678_v17  ;;  %v3729_v63 = vld [vmem:[%s21083_s17 + $0x3cd0] sm:$0xff]  ;;  %v3730_v45 = vld [vmem:[%s21083_s17 + $0x3cd8] sm:$0xff] }
 0xa12   : > { %16245 = vmatprep.subr.bf16.mxu0 %v19714_v33  ;;  %16901 = vmatprep.subr.bf16.mxu1 %v19716_v20  ;;  %v19770_v33 = vcombine.high %v3681_v14, %v3685_v18  ;;  %v19772_v20 = vcombine.high %v3682_v1, %v3686_v59  ;;  %v3734_v17 = vld [vmem:[%s21083_s17 + $0x3cf8] sm:$0xff] }
 0xa15   : > { %16246 = vmatpush1.bf16.msra.mxu0 %v19713_v32  ;;  %16902 = vmatpush1.bf16.msra.mxu1 %v19715_v0  ;;  %v19769_v32 = vcombine.low %v3681_v14, %v3685_v18  ;;  %v19771_v0 = vcombine.low %v3682_v1, %v3686_v59  ;;  %v3741_v18 = vld [vmem:[%s21083_s17 + $0x3d30] sm:$0xff]  ;;  %v3742_v1 = vld [vmem:[%s21083_s17 + $0x3d38] sm:$0xff] }
 0xa16   : > { %16247 = vmatprep.subr.bf16.mxu0 %v19722_v40  ;;  %16903 = vmatprep.subr.bf16.mxu1 %v19724_v26  ;;  %v19778_v40 = vcombine.high %v3689_v36, %v3693_v21  ;;  %v19780_v26 = vcombine.high %v3690_v34, %v3694_v31 }
 0xa19   : > { %16248 = vmatpush1.bf16.msra.mxu0 %v19721_v44  ;;  %16904 = vmatpush1.bf16.msra.mxu1 %v19723_v46  ;;  %v19777_v44 = vcombine.low %v3689_v36, %v3693_v21  ;;  %v3709_v46 = vld [vmem:[%s21083_s17 + $0x3c30] sm:$0xff]  ;;  %v3746_v21 = vld [vmem:[%s21083_s17 + $0x3d58] sm:$0xff] }
 0xa1a   : > { %16249 = vmatprep.subr.bf16.mxu0 %v19730_v37  ;;  %16905 = vmatprep.subr.bf16.mxu1 %v19732_v22  ;;  %v19779_v37 = vcombine.low %v3690_v34, %v3694_v31  ;;  %v3706_v22 = vld [vmem:[%s21083_s17 + $0x3c18] sm:$0xff] }
 0xa1b   : > { %v19796_v47 = vcombine.high %v3706_v22, %v3710_v27  ;;  %v19795_v28 = vcombine.low %v3706_v22, %v3710_v27  ;;  %v3766_v22 = vld [vmem:[%s21083_s17 + $0x3df8] sm:$0xff] }
 0xa1d   : > { %16250 = vmatpush1.bf16.msra.mxu0 %v19729_v58  ;;  %16906 = vmatpush1.bf16.msra.mxu1 %v19731_v2  ;;  %v19785_v58 = vcombine.low %v3697_v29, %v3701_v43  ;;  %v19787_v2 = vcombine.low %v3698_v41, %v3702_v30  ;;  %v3754_v43 = vld [vmem:[%s21083_s17 + $0x3d98] sm:$0xff] }
 0xa1e   : > { %16251 = vmatprep.subr.bf16.mxu0 %v19738_v56  ;;  %16907 = vmatprep.subr.bf16.mxu1 %v19740_v25  ;;  %v19794_v56 = vcombine.high %v3705_v35, %v3709_v46  ;;  %v3718_v25 = vld [vmem:[%s21083_s17 + $0x3c78] sm:$0xff] }
 0xa1f   : > { %v19803_v8 = vcombine.low %v3714_v60, %v3718_v25 }
 0xa21   : > { %16252 = vmatpush1.bf16.msra.mxu0 %v19737_v54  ;;  %16908 = vmatpush1.bf16.msra.mxu1 %v19739_v62  ;;  %v19793_v54 = vcombine.low %v3705_v35, %v3709_v46  ;;  %v19802_v62 = vcombine.high %v3713_v11, %v3717_v55  ;;  %v3761_v46 = vld [vmem:[%s21083_s17 + $0x3dd0] sm:$0xff] }
 0xa22   : > { %16253 = vmatprep.subr.bf16.mxu0 %v19746_v3  ;;  %16909 = vmatprep.subr.bf16.mxu1 %v19748_v5  ;;  %v19804_v3 = vcombine.high %v3714_v60, %v3718_v25  ;;  %v3725_v5 = vld [vmem:[%s21083_s17 + $0x3cb0] sm:$0xff] }
 0xa25   : > { %16254 = vmatpush1.bf16.msra.mxu0 %v19745_v48  ;;  %16910 = vmatpush1.bf16.msra.mxu1 %v19747_v49  ;;  %v19801_v48 = vcombine.low %v3713_v11, %v3717_v55  ;;  %v19810_v49 = vcombine.high %v3721_v4, %v3725_v5  ;;  %v3769_v55 = vld [vmem:[%s21083_s17 + $0x3e10] sm:$0xff] }
 0xa26   : > { %16255 = vmatprep.subr.bf16.mxu0 %v19754_v42  ;;  %16911 = vmatprep.subr.bf16.mxu1 %v19756_v52  ;;  %v19812_v42 = vcombine.high %v3722_v50, %v3726_v6  ;;  %v3733_v52 = vld [vmem:[%s21083_s17 + $0x3cf0] sm:$0xff] }
 0xa27   : > { %v19818_v14 = vcombine.high %v3729_v63, %v3733_v52  ;;  %v19817_v59 = vcombine.low %v3729_v63, %v3733_v52  ;;  %v3786_v63 = vld [vmem:[%s21083_s17 + $0x3e98] sm:$0xff] }
 0xa28   : > { %v3790_v52 = vld [vmem:[%s21083_s17 + $0x3eb8] sm:$0xff] }
 0xa29   : > { %16256 = vmatpush1.bf16.msra.mxu0 %v19753_v39  ;;  %16912 = vmatpush1.bf16.msra.mxu1 %v19755_v16  ;;  %v19811_v39 = vcombine.low %v3722_v50, %v3726_v6  ;;  %v19820_v16 = vcombine.high %v3730_v45, %v3734_v17 }
 0xa2a   : > { %16257 = vmatprep.subr.bf16.mxu0 %v19762_v23  ;;  %16913 = vmatprep.subr.bf16.mxu1 %v19764_v12  ;;  %v3737_v23 = vld [vmem:[%s21083_s17 + $0x3d10] sm:$0xff]  ;;  %v3738_v12 = vld [vmem:[%s21083_s17 + $0x3d18] sm:$0xff] }
 0xa2b   : > { %v19828_v36 = vcombine.high %v3738_v12, %v3742_v1  ;;  %v19825_v34 = vcombine.low %v3737_v23, %v3741_v18  ;;  %v19827_v31 = vcombine.low %v3738_v12, %v3742_v1  ;;  %v19875_v1 = vcombine.low %v3786_v63, %v3790_v52 }
 0xa2d   : > { %16258 = vmatpush1.bf16.msra.mxu0 %v19761_v19  ;;  %16914 = vmatpush1.bf16.msra.mxu1 %v19763_v24  ;;  %v19826_v19 = vcombine.high %v3737_v23, %v3741_v18  ;;  %v3745_v24 = vld [vmem:[%s21083_s17 + $0x3d50] sm:$0xff]  ;;  %v3794_v23 = vld [vmem:[%s21083_s17 + $0x3ed8] sm:$0xff] }
 0xa2e   : > { %16259 = vmatprep.subr.bf16.mxu0 %v19770_v33  ;;  %16915 = vmatprep.subr.bf16.mxu1 %v19772_v20  ;;  %v3749_v33 = vld [vmem:[%s21083_s17 + $0x3d70] sm:$0xff]  ;;  %v3750_v20 = vld [vmem:[%s21083_s17 + $0x3d78] sm:$0xff] }
 0xa2f   : > { %v19836_v29 = vcombine.high %v3746_v21, %v3750_v20  ;;  %v19833_v41 = vcombine.low %v3745_v24, %v3749_v33  ;;  %v19835_v30 = vcombine.low %v3746_v21, %v3750_v20  ;;  %v3798_v18 = vld [vmem:[%s21083_s17 + $0x3ef8] sm:$0xff] }
 0xa30   : > { %v19883_v20 = vcombine.low %v3794_v23, %v3798_v18 }
 0xa31   : > { %16260 = vmatpush1.bf16.msra.mxu0 %v19769_v32  ;;  %16916 = vmatpush1.bf16.msra.mxu1 %v19771_v0  ;;  %v19834_v32 = vcombine.high %v3745_v24, %v3749_v33  ;;  %v3753_v0 = vld [vmem:[%s21083_s17 + $0x3d90] sm:$0xff]  ;;  %v3802_v24 = vld [vmem:[%s21083_s17 + $0x3f18] sm:$0xff] }
 0xa32   : > { %16261 = vmatprep.subr.bf16.mxu0 %v19778_v40  ;;  %16917 = vmatprep.subr.bf16.mxu1 %v19780_v26  ;;  %v3757_v40 = vld [vmem:[%s21083_s17 + $0x3db0] sm:$0xff]  ;;  %v3758_v26 = vld [vmem:[%s21083_s17 + $0x3db8] sm:$0xff] }
 0xa33   : > { %v19844_v35 = vcombine.high %v3754_v43, %v3758_v26  ;;  %v19841_v27 = vcombine.low %v3753_v0, %v3757_v40  ;;  %v3806_v33 = vld [vmem:[%s21083_s17 + $0x3f38] sm:$0xff] }
 0xa35   : > { %16262 = vmatpush1.bf16.msra.mxu0 %v19777_v44  ;;  %16918 = vmatpush1.bf16.msra.mxu1 %v19779_v37  ;;  %v19842_v44 = vcombine.high %v3753_v0, %v3757_v40  ;;  %v3765_v37 = vld [vmem:[%s21083_s17 + $0x3df0] sm:$0xff]  ;;  %v3810_v0 = vld [vmem:[%s21083_s17 + $0x3f58] sm:$0xff] }
 0xa36   : > { %16263 = vmatprep.subr.bf16.mxu0 %v19786_v13  ;;  %16919 = vmatprep.subr.bf16.mxu1 %v19788_v53  ;;  %v3762_v13 = vld [vmem:[%s21083_s17 + $0x3dd8] sm:$0xff]  ;;  %v19843_v53 = vcombine.low %v3754_v43, %v3758_v26  ;;  %v19849_v60 = vcombine.low %v3761_v46, %v3765_v37  ;;  %v19891_v26 = vcombine.low %v3802_v24, %v3806_v33 }
 0xa37   : > { %v19852_v11 = vcombine.high %v3762_v13, %v3766_v22  ;;  %v19851_v25 = vcombine.low %v3762_v13, %v3766_v22  ;;  %v3814_v40 = vld [vmem:[%s21083_s17 + $0x3f78] sm:$0xff]  ;;  %v23653_v22 = vld [vmem:[%s3832_s14] sm:$0xff] }
 0xa38   : > { %v3822_v13 = vld [vmem:[%s21083_s17 + $0x3fb8] sm:$0xff] }
 0xa39   : > { %16264 = vmatpush1.bf16.msra.mxu0 %v19785_v58  ;;  %16920 = vmatpush1.bf16.msra.mxu1 %v19787_v2  ;;  %v19850_v58 = vcombine.high %v3761_v46, %v3765_v37  ;;  %v3773_v2 = vld [vmem:[%s21083_s17 + $0x3e30] sm:$0xff]  ;;  %v3841_v46 = vsub.s32 1, %v21307_v7  ;;  %v3818_v37 = vld [vmem:[%s21083_s17 + $0x3f98] sm:$0xff] }
 0xa3a   : > { %16274 = vmatprep.subr.bf16.mxu0 %v19794_v56  ;;  %16930 = vmatprep.subr.bf16.mxu1 %v19796_v47  ;;  %v3770_v56 = vld [vmem:[%s21083_s17 + $0x3e18] sm:$0xff]  ;;  %v19857_v50 = vcombine.low %v3769_v55, %v3773_v2 }
 0xa3b   : > { %v3774_v47 = vld [vmem:[%s21083_s17 + $0x3e38] sm:$0xff] }
 0xa3c   : > { %16266 = vmatmul.mubr.bf16.vlgmr.msra.gmra.mrb[4].mxu0 %v22484_v51  ;;  %16922 = vmatmul.mubr.bf16.vlgmr.msra.gmra.mrb[4].mxu1 %v22484_v51  ;;  %v19809_v51 = vcombine.low %v3721_v4, %v3725_v5  ;;  %v3778_v4 = vld [vmem:[%s21083_s17 + $0x3e58] sm:$0xff]  ;;  %v19859_v6 = vcombine.low %v3770_v56, %v3774_v47 }
 0xa3d   : > { %16275 = vmatpush1.bf16.msra.mxu0 %v19793_v54  ;;  %16931 = vmatpush1.bf16.msra.mxu1 %v19795_v28  ;;  %v19858_v54 = vcombine.high %v3769_v55, %v3773_v2  ;;  %v19860_v28 = vcombine.high %v3770_v56, %v3774_v47  ;;  %v3782_v5 = vld [vmem:[%s21083_s17 + $0x3e78] sm:$0xff]  ;;  %v19908_v55 = vcombine.high %v3818_v37, %v3822_v13  ;;  %v3825_v2 = vld [vmem:[%s21083_s17 + $0x3fd0] sm:$0xff] }
 0xa3e   : > { %16276 = vmatprep.subr.bf16.mxu0 %v19802_v62  ;;  %16932 = vmatprep.subr.bf16.mxu1 %v19804_v3  ;;  %v3777_v62 = vld [vmem:[%s21083_s17 + $0x3e50] sm:$0xff]  ;;  %v3842_v47 = vrot.slane %v23653_v22, %v3841_v46 }
 0xa3f   : > { %16306 = vmatprep.mubr.bf16.mxu0 %v22492_v10  ;;  %16962 = vmatprep.mubr.bf16.mxu1 %v22492_v10  ;;  %v19819_v10 = vcombine.low %v3730_v45, %v3734_v17  ;;  %v3781_v3 = vld [vmem:[%s21083_s17 + $0x3e70] sm:$0xff]  ;;  %v19867_v17 = vcombine.low %v3778_v4, %v3782_v5 }
 0xa40   : > { %v19865_v45 = vcombine.low %v3777_v62, %v3781_v3  ;;  %v3829_v56 = vld [vmem:[%s21083_s17 + $0x3ff0] sm:$0xff] }
 0xa41   : > { %16277 = vmatpush1.bf16.msra.mxu0 %v19801_v48  ;;  %16933 = vmatpush1.bf16.msra.mxu1 %v19803_v8  ;;  %v19866_v48 = vcombine.high %v3777_v62, %v3781_v3  ;;  %v19868_v8 = vcombine.high %v3778_v4, %v3782_v5  ;;  %v19907_v62 = vcombine.low %v3818_v37, %v3822_v13  ;;  %v20494_v37 = vld [vmem:[%s23528_s13 + $0xf8] sm:$0xff]  }
 0xa42   : > { %16278 = vmatprep.subr.bf16.mxu0 %v19810_v49  ;;  %16934 = vmatprep.subr.bf16.mxu1 %v19812_v42  ;;  %v3785_v49 = vld [vmem:[%s21083_s17 + $0x3e90] sm:$0xff]  ;;  %v19914_v3 = vcombine.high %v3825_v2, %v3829_v56  ;;  %v20079_v5 = vadd.f32 %v22798_v61, %v3842_v47  ;;  %v20495_v13 = vld [vmem:[%s23528_s13 + $0x38] sm:$0xff]  }
 0xa43   : > { %v3789_v42 = vld [vmem:[%s21083_s17 + $0x3eb0] sm:$0xff] }
 0xa44   : > { %v19873_v12 = vcombine.low %v3785_v49, %v3789_v42  ;;  %v20468_v61 = vld [vmem:[%s23528_s13 + $0x80] sm:$0xff]  }
 0xa45   : > { %16279 = vmatpush1.bf16.msra.mxu0 %v19809_v51  ;;  %16935 = vmatpush1.bf16.msra.mxu1 %v19811_v39  ;;  %v19874_v51 = vcombine.high %v3785_v49, %v3789_v42  ;;  %v19876_v39 = vcombine.high %v3786_v63, %v3790_v52  ;;  %v20466_v49 = vld [vmem:[%s23528_s13 + $0xc0] sm:$0xff]   ;;  %v16972_v42 = vmax.f32 %v20079_v5, 0.0  ;;  %v20509_v5 = vld [vmem:[%s23528_s13 + $0x158] sm:$0xff]  }
 0xa46   : > { %16280 = vmatprep.subr.bf16.mxu0 %v19818_v14  ;;  %16936 = vmatprep.subr.bf16.mxu1 %v19820_v16  ;;  %v3793_v14 = vld [vmem:[%s21083_s17 + $0x3ed0] sm:$0xff] }
 0xa47   : > { %v3797_v16 = vld [vmem:[%s21083_s17 + $0x3ef0] sm:$0xff] }
 0xa48   : > { %v19881_v21 = vcombine.low %v3793_v14, %v3797_v16  ;;  %v20467_v52 = vld [vmem:[%s23528_s13] sm:$0xff]  }
 0xa49   : > { %16281 = vmatpush1.bf16.msra.mxu0 %v19817_v59  ;;  %16937 = vmatpush1.bf16.msra.mxu1 %v19819_v10  ;;  %v19882_v59 = vcombine.high %v3793_v14, %v3797_v16  ;;  %v19884_v10 = vcombine.high %v3794_v23, %v3798_v18  ;;  %v20472_v14 = vld [vmem:[%s23528_s13 + $0x88] sm:$0xff]   ;;  %v20473_v16 = vld [vmem:[%s23528_s13 + $0x50] sm:$0xff]  }
 0xa4a   : > { %16282 = vmatprep.subr.bf16.mxu0 %v19826_v19  ;;  %16938 = vmatprep.subr.bf16.mxu1 %v19828_v36  ;;  %v3801_v19 = vld [vmem:[%s21083_s17 + $0x3f10] sm:$0xff]  ;;  %v20474_v23 = vld [vmem:[%s23528_s13 + $0xd0] sm:$0xff]  }
 0xa4b   : > { %v3805_v36 = vld [vmem:[%s21083_s17 + $0x3f30] sm:$0xff]  ;;  %v20475_v18 = vld [vmem:[%s23528_s13 + $0x10] sm:$0xff]  }
 0xa4c   : > { %v19889_v43 = vcombine.low %v3801_v19, %v3805_v36 }
 0xa4d   : > { %16283 = vmatpush1.bf16.msra.mxu0 %v19825_v34  ;;  %16939 = vmatpush1.bf16.msra.mxu1 %v19827_v31  ;;  %v19890_v34 = vcombine.high %v3801_v19, %v3805_v36  ;;  %v19892_v31 = vcombine.high %v3802_v24, %v3806_v33  ;;  %v20481_v19 = vld [vmem:[%s23528_s13 + $0x60] sm:$0xff]   ;;  %v3837_v33 = vsub.s32 0, %v21307_v7 }
 0xa4e   : > { %16284 = vmatprep.subr.bf16.mxu0 %v19834_v32  ;;  %16940 = vmatprep.subr.bf16.mxu1 %v19836_v29  ;;  %v3809_v32 = vld [vmem:[%s21083_s17 + $0x3f50] sm:$0xff] }
 0xa4f   : > { %v3813_v29 = vld [vmem:[%s21083_s17 + $0x3f70] sm:$0xff] }
 0xa50   : > { %v20482_v36 = vld [vmem:[%s23528_s13 + $0xe0] sm:$0xff]  }
 0xa51   : > { %16285 = vmatpush1.bf16.msra.mxu0 %v19833_v41  ;;  %16941 = vmatpush1.bf16.msra.mxu1 %v19835_v30  ;;  %v19898_v41 = vcombine.high %v3809_v32, %v3813_v29  ;;  %v19900_v30 = vcombine.high %v3810_v0, %v3814_v40  ;;  %v20483_v24 = vld [vmem:[%s23528_s13 + $0x20] sm:$0xff]  }
 0xa52   : > { %16286 = vmatprep.subr.bf16.mxu0 %v19842_v44  ;;  %16942 = vmatprep.subr.bf16.mxu1 %v19844_v35  ;;  %v3817_v44 = vld [vmem:[%s21083_s17 + $0x3f90] sm:$0xff] }
 0xa53   : > { %v3821_v35 = vld [vmem:[%s21083_s17 + $0x3fb0] sm:$0xff] }
 0xa55   : > { %16287 = vmatpush1.bf16.msra.mxu0 %v19841_v27  ;;  %16943 = vmatpush1.bf16.msra.mxu1 %v19843_v53  ;;  %v3849_v27 = vsub.s32 3, %v21307_v7  ;;  %v19897_v53 = vcombine.low %v3809_v32, %v3813_v29  ;;  %v20487_v32 = vld [vmem:[%s23528_s13 + $0x28] sm:$0xff]   ;;  %v3838_v29 = vrot.slane %v23653_v22, %v3837_v33 }
 0xa56   : > { %16288 = vmatprep.subr.bf16.mxu0 %v19850_v58  ;;  %16944 = vmatprep.subr.bf16.mxu1 %v19852_v11  ;;  %v19899_v58 = vcombine.low %v3810_v0, %v3814_v40  ;;  %v19906_v11 = vcombine.high %v3817_v44, %v3821_v35  ;;  %v20488_v0 = vld [vmem:[%s23528_s13 + $0xa8] sm:$0xff]   ;;  %v20489_v40 = vld [vmem:[%s23528_s13 + $0x70] sm:$0xff]  }
 0xa59   : > { %16289 = vmatpush1.bf16.msra.mxu0 %v19849_v60  ;;  %16945 = vmatpush1.bf16.msra.mxu1 %v19851_v25  ;;  %v3826_v60 = vld [vmem:[%s21083_s17 + $0x3fd8] sm:$0xff] }
 0xa5a   : > { %16290 = vmatprep.subr.bf16.mxu0 %v19858_v54  ;;  %16946 = vmatprep.subr.bf16.mxu1 %v19860_v28  ;;  %v3830_v25 = vld [vmem:[%s21083_s17 + $0x3ff8] sm:$0xff]  ;;  %v3850_v54 = vrot.slane %v23653_v22, %v3849_v27  ;;  %v19905_v28 = vcombine.low %v3817_v44, %v3821_v35  ;;  %v20493_v35 = vld [vmem:[%s23528_s13 + $0x78] sm:$0xff]  }
 0xa5b   : > { %v19916_v4 = vcombine.high %v3826_v60, %v3830_v25  ;;  %v20492_v44 = vld [vmem:[%s23528_s13 + $0xb0] sm:$0xff]  }
 0xa5d   : > { %16291 = vmatpush1.bf16.msra.mxu0 %v19857_v50  ;;  %16947 = vmatpush1.bf16.msra.mxu1 %v19859_v6  ;;  %v20081_v50 = vadd.f32 %v22802_v15, %v3850_v54  ;;  %v19913_v6 = vcombine.low %v3825_v2, %v3829_v56  ;;  %v20469_v15 = vld [vmem:[%s23528_s13 + $0x48] sm:$0xff]   ;;  %v20500_v2 = vld [vmem:[%s23528_s13 + $0x180] sm:$0xff]  }
 0xa5e   : > { %16292 = vmatprep.subr.bf16.mxu0 %v19866_v48  ;;  %16948 = vmatprep.subr.bf16.mxu1 %v19868_v8  ;;  %v19915_v48 = vcombine.low %v3826_v60, %v3830_v25  ;;  %v20465_v8 = vld [vmem:[%s23528_s13 + $0x40] sm:$0xff]   ;;  %v20501_v56 = vld [vmem:[%s23528_s13 + $0x148] sm:$0xff]  }
 0xa5f   : > { %v16974_v63 = vmax.f32 %v20081_v50, 0.0  ;;  %v20502_v60 = vld [vmem:[%s23528_s13 + $0x1c8] sm:$0xff]   ;;  %v20510_v50 = vld [vmem:[%s23528_s13 + $0x1d8] sm:$0xff]  }
 0xa60   : > { %v20503_v25 = vld [vmem:[%s23528_s13 + $0x108] sm:$0xff]  }
 0xa61   : > { %16293 = vmatpush1.bf16.msra.mxu0 %v19865_v45  ;;  %16949 = vmatpush1.bf16.msra.mxu1 %v19867_v17  ;;  %v16981_v45 = vpack.c.bf16 %v16972_v42, %v16972_v42  ;;  %v20470_v17 = vld [vmem:[%s23528_s13 + $0xc8] sm:$0xff]   ;;  %v20515_v42 = vld [vmem:[%s23528_s13 + $0x120] sm:$0xff]  }
 0xa62   : > { %16294 = vmatprep.subr.bf16.mxu0 %v19874_v51  ;;  %16950 = vmatprep.subr.bf16.mxu1 %v19876_v39  ;;  %v16983_v51 = vpack.c.bf16 %v16974_v63, %v16974_v63  ;;  %v20471_v39 = vld [vmem:[%s23528_s13 + $0x8] sm:$0xff]   ;;  %v20516_v63 = vld [vmem:[%s23528_s13 + $0x1a0] sm:$0xff]  }
 0xa63   : > { %v20504_v54 = vld [vmem:[%s23528_s13 + $0x188] sm:$0xff]  }
 0xa65   : > { %16295 = vmatpush1.bf16.msra.mxu0 %v19873_v12  ;;  %16951 = vmatpush1.bf16.msra.mxu1 %v19875_v1  ;;  %v20477_v12 = vld [vmem:[%s23528_s13 + $0x58] sm:$0xff]  }
 0xa66   : > { %16296 = vmatprep.subr.bf16.mxu0 %v19882_v59  ;;  %16952 = vmatprep.subr.bf16.mxu1 %v19884_v10  ;;  %v20478_v1 = vld [vmem:[%s23528_s13 + $0xd8] sm:$0xff]  }
 0xa67   : > { %v20479_v59 = vld [vmem:[%s23528_s13 + $0x18] sm:$0xff]  }
 0xa68   : > { %v20480_v10 = vld [vmem:[%s23528_s13 + $0x98] sm:$0xff]  }
 0xa69   : > { %16297 = vmatpush1.bf16.msra.mxu0 %v19881_v21  ;;  %16953 = vmatpush1.bf16.msra.mxu1 %v19883_v20  ;;  %v20484_v21 = vld [vmem:[%s23528_s13 + $0xa0] sm:$0xff]   ;;  %v20485_v20 = vld [vmem:[%s23528_s13 + $0x68] sm:$0xff]  }
 0xa6a   : > { %16298 = vmatprep.subr.bf16.mxu0 %v19890_v34  ;;  %16954 = vmatprep.subr.bf16.mxu1 %v19892_v31  ;;  %v3845_v34 = vsub.s32 2, %v21307_v7  ;;  %v20486_v31 = vld [vmem:[%s23528_s13 + $0xe8] sm:$0xff]  }
 0xa6d   : > { %16299 = vmatpush1.bf16.msra.mxu0 %v19889_v43  ;;  %16955 = vmatpush1.bf16.msra.mxu1 %v19891_v26  ;;  %v3846_v43 = vrot.slane %v23653_v22, %v3845_v34  ;;  %v20490_v26 = vld [vmem:[%s23528_s13 + $0xf0] sm:$0xff]  }
 0xa6e   : > { %16300 = vmatprep.subr.bf16.mxu0 %v19898_v41  ;;  %16956 = vmatprep.subr.bf16.mxu1 %v19900_v30  ;;  %v20491_v41 = vld [vmem:[%s23528_s13 + $0x30] sm:$0xff]   ;;  %v20078_v30 = vadd.f32 %v22792_v57, %v3838_v29  ;;  %v20497_v57 = vld [vmem:[%s23528_s13 + $0x140] sm:$0xff]  }
 0xa6f   : > { %v20080_v46 = vadd.f32 %v22796_v9, %v3846_v43 }
 0xa70   : > { %v16971_v27 = vmax.f32 %v20078_v30, 0.0 }
 0xa71   : > { %16301 = vmatpush1.bf16.msra.mxu0 %v19897_v53  ;;  %16957 = vmatpush1.bf16.msra.mxu1 %v19899_v58  ;;  %v20496_v53 = vld [vmem:[%s23528_s13 + $0xb8] sm:$0xff]   ;;  %v16973_v58 = vmax.f32 %v20080_v46, 0.0 }
 0xa72   : > { %16302 = vmatprep.subr.bf16.mxu0 %v19906_v11  ;;  %16958 = vmatprep.subr.bf16.mxu1 %v19908_v55  ;;  %v20498_v11 = vld [vmem:[%s23528_s13 + $0x1c0] sm:$0xff]   ;;  %v16980_v9 = vpack.c.bf16 %v16971_v27, %v16971_v27 }
 0xa73   : > { %v20499_v55 = vld [vmem:[%s23528_s13 + $0x100] sm:$0xff]   ;;  %v16982_v47 = vpack.c.bf16 %v16973_v58, %v16973_v58 }
 0xa75   : > { %16303 = vmatpush1.bf16.msra.mxu0 %v19905_v28  ;;  %16959 = vmatpush1.bf16.msra.mxu1 %v19907_v62  ;;  %v20505_v28 = vld [vmem:[%s23528_s13 + $0x150] sm:$0xff]  }
 0xa76   : > { %16304 = vmatprep.subr.bf16.mxu0 %v19914_v3  ;;  %16960 = vmatprep.subr.bf16.mxu1 %v19916_v4  ;;  %v20506_v62 = vld [vmem:[%s23528_s13 + $0x1d0] sm:$0xff]  }
 0xa77   : > { %v20507_v3 = vld [vmem:[%s23528_s13 + $0x110] sm:$0xff]  }
 0xa78   : > { %v20508_v4 = vld [vmem:[%s23528_s13 + $0x190] sm:$0xff]  }
 0xa79   : > { %16305 = vmatpush1.bf16.msra.mxu0 %v19913_v6  ;;  %16961 = vmatpush1.bf16.msra.mxu1 %v19915_v48  ;;  %v20511_v6 = vld [vmem:[%s23528_s13 + $0x118] sm:$0xff]  }
 0xa7a   : > { %19990 = vmatprep.subr.bf16.mxu0 %v20465_v8  ;;  %20012 = vmatprep.subr.bf16.mxu1 %v20466_v49  ;;  %v20512_v48 = vld [vmem:[%s23528_s13 + $0x198] sm:$0xff]   ;;  %v20513_v8 = vld [vmem:[%s23528_s13 + $0x160] sm:$0xff]  }
 0xa7b   : > { %v20514_v49 = vld [vmem:[%s23528_s13 + $0x1e0] sm:$0xff]  }
 0xa7c   : > { %16307 = vmatmul.mubr.bf16.vlgmr.msra.gmra.mrb[4].mxu0 %v22560_v38  ;;  %16963 = vmatmul.mubr.bf16.vlgmr.msra.gmra.mrb[4].mxu1 %v22560_v38  ;;  %v20476_v38 = vld [vmem:[%s23528_s13 + $0x90] sm:$0xff]  }
 0xa7d   : > { %19991 = vmatpush3.bf16.msra.mxu0 %v20467_v52  ;;  %17535 = vmatprep.mubr.bf16.mxu0 %v16981_v45  ;;  %v20517_v52 = vld [vmem:[%s23528_s13 + $0x168] sm:$0xff]  }
 0xa7e   : > { %20013 = vmatpush3.bf16.msra.mxu1 %v20468_v61  ;;  %17575 = vmatprep.mubr.bf16.mxu1 %v16983_v51  ;;  %v20518_v61 = vld [vmem:[%s23528_s13 + $0x1e8] sm:$0xff]   ;;  %v20522_v51 = vld [vmem:[%s23528_s13 + $0x1f0] sm:$0xff]  }
 0xa7f   : > { %19992 = vmatprep.subr.bf16.mxu0 %v20469_v15  ;;  %20014 = vmatprep.subr.bf16.mxu1 %v20470_v17  ;;  %v20519_v15 = vld [vmem:[%s23528_s13 + $0x128] sm:$0xff]   ;;  %v20521_v17 = vld [vmem:[%s23528_s13 + $0x170] sm:$0xff]  }
 0xa80   : > { %v20520_v45 = vld [vmem:[%s23528_s13 + $0x1a8] sm:$0xff]  }
 0xa81   : > { %19993 = vmatpush3.bf16.msra.mxu0 %v20471_v39  ;;  %v20523_v39 = vld [vmem:[%s23528_s13 + $0x130] sm:$0xff]  }
 0xa82   : > { %20015 = vmatpush3.bf16.msra.mxu1 %v20472_v14  ;;  %19994 = vmatprep.subr.bf16.mxu0 %v20473_v16  ;;  %v20524_v14 = vld [vmem:[%s23528_s13 + $0x1b0] sm:$0xff]   ;;  %v20525_v16 = vld [vmem:[%s23528_s13 + $0x178] sm:$0xff]  }
 0xa83   : > { %20016 = vmatprep.subr.bf16.mxu1 %v20474_v23  ;;  %v20526_v23 = vld [vmem:[%s23528_s13 + $0x1f8] sm:$0xff]  }
 0xa85   : > { %19995 = vmatpush3.bf16.msra.mxu0 %v20475_v18  ;;  %v20527_v18 = vld [vmem:[%s23528_s13 + $0x138] sm:$0xff]  }
 0xa86   : > { %20017 = vmatpush3.bf16.msra.mxu1 %v20476_v38  ;;  %19996 = vmatprep.subr.bf16.mxu0 %v20477_v12  ;;  %v20528_v38 = vld [vmem:[%s23528_s13 + $0x1b8] sm:$0xff]   ;;  %v3853_v12 = vsub.s32 4, %v21307_v7 }
 0xa87   : > { %20018 = vmatprep.subr.bf16.mxu1 %v20478_v1  ;;  %v3861_v1 = vsub.s32 6, %v21307_v7 }
 0xa89   : > { %19997 = vmatpush3.bf16.msra.mxu0 %v20479_v59  ;;  %v3857_v59 = vsub.s32 5, %v21307_v7 }
 0xa8a   : > { %20019 = vmatpush3.bf16.msra.mxu1 %v20480_v10  ;;  %19998 = vmatprep.subr.bf16.mxu0 %v20481_v19  ;;  %v3865_v10 = vsub.s32 7, %v21307_v7  ;;  %v3854_v19 = vrot.slane %v23653_v22, %v3853_v12 }
 0xa8b   : > { %20020 = vmatprep.subr.bf16.mxu1 %v20482_v36  ;;  %v3862_v36 = vrot.slane %v23653_v22, %v3861_v1 }
 0xa8c   : > { %v3866_v33 = vrot.slane %v23653_v22, %v3865_v10 }
 0xa8d   : > { %19999 = vmatpush3.bf16.msra.mxu0 %v20483_v24  ;;  %v3858_v24 = vrot.slane %v23653_v22, %v3857_v59 }
 0xa8e   : > { %20021 = vmatpush3.bf16.msra.mxu1 %v20484_v21  ;;  %20000 = vmatprep.subr.bf16.mxu0 %v20485_v20 }
 0xa8f   : > { %20022 = vmatprep.subr.bf16.mxu1 %v20486_v31 }
 0xa91   : > { %20001 = vmatpush3.bf16.msra.mxu0 %v20487_v32 }
 0xa92   : > { %20023 = vmatpush3.bf16.msra.mxu1 %v20488_v0  ;;  %20002 = vmatprep.subr.bf16.mxu0 %v20489_v40 }
 0xa93   : > { %20024 = vmatprep.subr.bf16.mxu1 %v20490_v26 }
 0xa95   : > { %20003 = vmatpush3.bf16.msra.mxu0 %v20491_v41 }
 0xa96   : > { %20025 = vmatpush3.bf16.msra.mxu1 %v20492_v44  ;;  %20004 = vmatprep.subr.bf16.mxu0 %v20493_v35 }
 0xa97   : > { %20026 = vmatprep.subr.bf16.mxu1 %v20494_v37 }
 0xa99   : > { %20005 = vmatpush3.bf16.msra.mxu0 %v20495_v13 }
 0xa9a   : > { %20027 = vmatpush3.bf16.msra.mxu1 %v20496_v53  ;;  %20034 = vmatprep.subr.bf16.mxu0 %v20497_v57 }
 0xa9b   : > { %20056 = vmatprep.subr.bf16.mxu1 %v20498_v11 }
 0xa9c   : > { %17536 = vmatmul.mubr.bf16.vlgmr.msra.gmra.mrb[8].mxu0 %v16980_v9 }
 0xa9d   : > { %17576 = vmatmul.mubr.bf16.vlgmr.msra.gmra.mrb[8].mxu1 %v16982_v47  ;;  %20035 = vmatpush3.bf16.msra.mxu0 %v20499_v55 }
 0xa9e   : > { %20057 = vmatpush3.bf16.msra.mxu1 %v20500_v2  ;;  %20036 = vmatprep.subr.bf16.mxu0 %v20501_v56 }
 0xa9f   : > { %20058 = vmatprep.subr.bf16.mxu1 %v20502_v60 }
 0xaa1   : > { %20037 = vmatpush3.bf16.msra.mxu0 %v20503_v25 }
 0xaa2   : > { %20059 = vmatpush3.bf16.msra.mxu1 %v20504_v54  ;;  %20038 = vmatprep.subr.bf16.mxu0 %v20505_v28 }
 0xaa3   : > { %20060 = vmatprep.subr.bf16.mxu1 %v20506_v62 }
 0xaa5   : > { %20039 = vmatpush3.bf16.msra.mxu0 %v20507_v3 }
 0xaa6   : > { %20061 = vmatpush3.bf16.msra.mxu1 %v20508_v4  ;;  %20040 = vmatprep.subr.bf16.mxu0 %v20509_v5 }
 0xaa7   : > { %20062 = vmatprep.subr.bf16.mxu1 %v20510_v50 }
 0xaa9   : > { %20041 = vmatpush3.bf16.msra.mxu0 %v20511_v6 }
 0xaaa   : > { %20063 = vmatpush3.bf16.msra.mxu1 %v20512_v48  ;;  %20042 = vmatprep.subr.bf16.mxu0 %v20513_v8 }
 0xaab   : > { %20064 = vmatprep.subr.bf16.mxu1 %v20514_v49 }
 0xaad   : > { %20043 = vmatpush3.bf16.msra.mxu0 %v20515_v42  ;;  %v16979_v42 = vld [vmem:[#allocation3] sm:$0x3] }
 0xaae   : > { %20065 = vmatpush3.bf16.msra.mxu1 %v20516_v63  ;;  %20044 = vmatprep.subr.bf16.mxu0 %v20517_v52 }
 0xaaf   : > { %20066 = vmatprep.subr.bf16.mxu1 %v20518_v61 }
 0xab1   : > { %20045 = vmatpush3.bf16.msra.mxu0 %v20519_v15 }
 0xab2   : > { %20067 = vmatpush3.bf16.msra.mxu1 %v20520_v45  ;;  %20046 = vmatprep.subr.bf16.mxu0 %v20521_v17 }
 0xab3   : > { %20068 = vmatprep.subr.bf16.mxu1 %v20522_v51 }
 0xab5   : > { %20047 = vmatpush3.bf16.msra.mxu0 %v20523_v39 }
 0xab6   : > { %20069 = vmatpush3.bf16.msra.mxu1 %v20524_v14  ;;  %20048 = vmatprep.subr.bf16.mxu0 %v20525_v16 }
 0xab7   : > { %20070 = vmatprep.subr.bf16.mxu1 %v20526_v23 }
 0xab9   : > { %20049 = vmatpush3.bf16.msra.mxu0 %v20527_v18 }
 0xaba   : > { %20071 = vmatpush3.bf16.msra.mxu1 %v20528_v38 }
 0xb4f   : > { %v16308_v21 = vpop.f32.mrb[4].mxu0  ;;  %v16964_v34 = vpop.f32.mrb[4].mxu1 }
 0xb50   : > { %v20082_v20 = vadd.f32 %v16308_v21, %v3854_v19  ;;  %v16310_v31 = vpop.f32.mrb[5].mxu0  ;;  %v20084_v32 = vadd.f32 %v16964_v34, %v3862_v36  ;;  %v16966_v0 = vpop.f32.mrb[5].mxu1 }
 0xb51   : > { %v20083_v29 = vadd.f32 %v16310_v31, %v3858_v24  ;;  %v16312_v40 = vpop.f32.mrb[6].mxu0  ;;  %v20085_v26 = vadd.f32 %v16966_v0, %v3866_v33  ;;  %v16968_v41 = vpop.f32.mrb[6].mxu1 }
 0xb52   : > { %v16975_v43 = vmax.f32 %v20082_v20, 0.0  ;;  %v16313_v7 = vpop.f32.mrb[7].mxu0  ;;  %v16977_v30 = vmax.f32 %v20084_v32, 0.0  ;;  %v16969_v35 = vpop.f32.mrb[7].mxu1 }
 0xb53   : > { %v16976_v44 = vmax.f32 %v20083_v29, 0.0  ;;  %v16978_v46 = vmax.f32 %v20085_v26, 0.0 }
 0xb54   : > { %v16984_v13 = vpack.c.bf16 %v16975_v43, %v16975_v43  ;;  %v16986_v22 = vpack.c.bf16 %v16977_v30, %v16977_v30 }
 0xb55   : > { %v16985_v37 = vpack.c.bf16 %v16976_v44, %v16976_v44  ;;  %v16987_v27 = vpack.c.bf16 %v16978_v46, %v16978_v46 }
 0xb57   : > { %17615 = vmatprep.mubr.bf16.mxu0 %v16985_v37  ;;  %17655 = vmatprep.mubr.bf16.mxu1 %v16987_v27 }
 0xb58   : > { %17616 = vmatmul.mubr.bf16.vlgmr.msra.gmra.mrb[12].mxu0 %v16984_v13  ;;  %17656 = vmatmul.mubr.bf16.vlgmr.msra.gmra.mrb[12].mxu1 %v16986_v22 }
 0xb6f   : > { %v20006_v53 = vpop.f32.mrb[8].mxu0 }
 0xb70   : > { %v20028_v57 = vpop.f32.mrb[8].mxu1  ;;  %v20007_v58 = vpop.f32.mrb[9].mxu0 }
 0xb71   : > { %v20008_v11 = vadd.f32 %v20007_v58, %v20006_v53  ;;  %v20029_v55 = vpop.f32.mrb[9].mxu1  ;;  %v20009_v9 = vpop.f32.mrb[10].mxu0 }
 0xb72   : > { %v20030_v2 = vadd.f32 %v20029_v55, %v20028_v57  ;;  %v20031_v56 = vpop.f32.mrb[10].mxu1  ;;  %v20010_v47 = vpop.f32.mrb[11].mxu0 }
 0xb73   : > { %v20032_v60 = vpop.f32.mrb[11].mxu1 }
 0xb74   : > { %v17578_v25 = vadd.f32 %v20030_v2, %v20008_v11 }
 0xc2b   : > { %v20050_v54 = vpop.f32.mrb[12].mxu0  ;;  %v20072_v28 = vpop.f32.mrb[12].mxu1 }
 0xc2c   : > { %v20051_v62 = vpop.f32.mrb[13].mxu0  ;;  %v20073_v4 = vpop.f32.mrb[13].mxu1 }
 0xc2d   : > { %v20052_v3 = vadd.f32 %v20051_v62, %v20050_v54  ;;  %v20053_v5 = vpop.f32.mrb[14].mxu0  ;;  %v20074_v50 = vadd.f32 %v20073_v4, %v20072_v28  ;;  %v20075_v6 = vpop.f32.mrb[14].mxu1 }
 0xc2e   : > { %v20054_v48 = vpop.f32.mrb[15].mxu0  ;;  %v20076_v49 = vpop.f32.mrb[15].mxu1 }
 0xc2f   : > { %v17618_v8 = vadd.f32 %v20052_v3, %v17578_v25  ;;  %17668 = sbr.rel (%p19983_p13) target bundleno = 3134 (0xc3e), region = 76 }
 0xc31   : > { %v17658_v63 = vadd.f32 %v20074_v50, %v17618_v8 }
 0xc33   : > { %v17663_v52 = vadd.f32 %v17658_v63, %v16979_v42 }
 0xc35   : > { %17664 = vst [vmem:[#allocation3] sm:$0x3] %v17663_v52 }
 0xc3c   : > { %v17669_v61 = vld [vmem:[#allocation3] sm:$0x3] }
 0xc3d   : > { %17670 = vst [vmem:[#allocation15] sm:$0x3] %v17669_v61 }
 0xc3e PF: > { %p20383_p2 = scmp.eq.s32.totalorder %s20880_s27, 3  ;;  %s20815_s9 = smov [#allocation15]  }
 0xc3f   : > { %s17680_s21 = sshll.u32 %s20815_s9, 4  ;;  %s17681_s21 = int_to_ptr.vmem [resolvable:$true] %s17680_s21 }
 0xc40   : > { %s20699_s7 = scalar_lea.vmem %s17681_s21, 32  ;;  %p20706_p6 = scmp.lt.s32.totalorder %s17681_s21, %s17681_s21 }
 0xc41   : > { %p20700_p3 = scmp.ne.s32.totalorder %s17681_s21, %s20699_s7  ;;  %p20707_p9 = scmp.lt.s32.totalorder %s20699_s7, %s20699_s7 }
 0xc43   : > { %p20701_p12 = pnand %p20700_p3, %p20383_p2  ;;  %p20708_p8 = por %p20707_p9, %p20706_p6 }
 0xc45   : > { %p20702_p0 = pneg %p20701_p12 }
 0xc47   : > { %p20709_p7 = pnand %p20708_p8, %p20702_p0 }
 0xc49   : > { %20712 = shalt.err (!%p20709_p7)
}
 0xc4a   : > { %s20713_s18 = scalar_lea.hbm %s23792_s6, 32 }
 0xc4b   : > { %p20714_p10 = scmp.ne.s32.totalorder %s23792_s6, %s20713_s18  ;;  %p20719_p5 = scmp.lt.u32.totalorder %s20713_s18, %s23792_s6 }
 0xc4d   : > { %p20715_p1 = pnand %p20714_p10, %p20383_p2 }
 0xc4f   : > { %p20716_p4 = pneg %p20715_p1 }
 0xc51   : > { %p20721_p11 = pnand %p20719_p5, %p20716_p4 }
 0xc53   : > { %20724 = shalt.err (!%p20721_p11)
}
 0xc54   : > { %20349 = dma.vmem_to_hbm [thread:$0]  (%p20383_p2), %s17681_s21, 32, %s23792_s6, [#allocation6]  }
 0xc55   : > { %20770 = dma.done.wait (%p20383_p2), [#allocation6], 32  }
 0xc56   : > { %20772 = vsyncadd (%p20383_p2), [#allocation6], 4294967264 }
 0xc57 PF: > { %s23_s26 = sadd.s32 1, %s20795_s26   ;;  %s23811_s21 = smov %s20779_s22 }
 0xc58   : > { %p20_p13 = scmp.ge.s32.totalorder %s23_s26, 6   ;;  %s23812_s22 = smov %s20783_s23 }
 0xc59   : > { %s23813_s23 = smov %s21028_s15  ;;  %s23814_s24 = smov %s20791_s25 }
 0xc5a   : > { %s23815_s25 = smov %s23817_s20  ;;  %22 = sbr.rel (!%p20_p13) target bundleno = 8 (0x8), region = 113 }
 0xc61   :  { %17693 = vsyncpa [#allocation5], 1 }
 0xc62   :  { %17695 = vsyncpa [#allocation5 + $0x1], 1 }
 0xc63   :  { %17696 = vsyncpa [#allocation8], 1 }
 0xc64   :  { %17697 = vsyncpa [#allocation11], 1 }
 0xc65   :  { %17699 = vsyncpa [#allocation11 + $0x1], 1 }
 0xc66   :  { %17700 = vsyncpa [#allocation14], 1 }
 0xc67   :  { %17701 = vsyncpa [#allocation6], 1 }
 0xc68   :  { %17703 = vsyncpa [#allocation6 + $0x1], 1 }

</bundles_post_ra>
